<compile_context>
chip_gen: v7x
topology: tpu7x:2x2x1
jax: 0.10.0
libtpu: 0.0.40
codegen_flags: <defaults>
</compile_context>

<pallas_src>
import functools

import jax
import jax.numpy as jnp
from jax.experimental import pallas as pl
from jax.experimental.pallas import tpu as pltpu


# ----------------------------------------------------------------------------
# Dictionary creation (parameter glue, tiny) -- JAX port of creatRealDictionary
# ----------------------------------------------------------------------------
def creat_real_dictionary(T, rr, theta):
    rows = []
    for i in range(T):
        sgn = -1.0 if (i % 2) else 1.0
        c = jnp.cos(i * theta)
        s = jnp.sin(i * theta)
        rpow = rr ** i
        rows.append(
            jnp.concatenate(
                [jnp.ones((1,), jnp.float32), rpow * c, sgn * rpow * c,
                 rpow * s, sgn * rpow * s]))
    dic = jnp.stack(rows, axis=0)                       # (T, 4N+1)
    G = jnp.sqrt(jnp.sum(dic * dic, axis=0))            # column L2 norms
    G = jnp.where(G == 0, jnp.sqrt(float(T)), G)
    return dic / G


# ----------------------------------------------------------------------------
# Pallas kernel: one batch b, one tile of P pixels (pixels on lanes).
# ----------------------------------------------------------------------------
def _seb_kernel(x_ref, wa_ref, ba_ref, dt_ref, ddf_ref, dflat_ref, scal_ref,
                mu_ref, sigma_ref, var_ref, diagr_ref, *, T, K):
    f32 = jnp.float32
    x = x_ref[0]                                   # (T, P)  pixels on lanes
    Wa = wa_ref[...]                               # (K, T)  alphaNet conv weight
    ba = ba_ref[...]                               # (K, 1)  alphaNet conv bias
    Dt = dt_ref[...]                               # (K, T)  D^T
    DDf = ddf_ref[...]                             # (T*T, K): DDf[t*T+s,k]=D[t,k]D[s,k]
    beta = scal_ref[0]                             # scalar exp(logbeta)
    inv_beta = scal_ref[1]                         # scalar 1/beta
    P = x.shape[1]

    # ---- alphaNet: pointwise Conv1d(T -> K) + sigmoid (+eps) -> variances
    z = jnp.dot(Wa, x, preferred_element_type=f32) + ba            # (K, P)
    var = 1.0 / (1.0 + jnp.exp(-z)) + 1e-3                         # (K, P)

    # ---- Dty = D^T y per pixel (lane-dense matmul)
    Dty = jnp.dot(Dt, x, preferred_element_type=f32)               # (K, P)

    # ---- A = D diag(var) D^T + I/beta, built as one (T*T,K)@(K,P) matmul
    a_flat = jnp.dot(DDf, var, preferred_element_type=f32)         # (T*T, P)
    aw = a_flat.reshape(T, T, P)
    row_id = jax.lax.broadcasted_iota(jnp.int32, (T, T, P), 0)
    col_id = jax.lax.broadcasted_iota(jnp.int32, (T, T, P), 1)
    eye3 = jnp.where(row_id == col_id, 1.0, 0.0).astype(f32)       # (T, T, P)
    aw = aw + inv_beta * eye3

    # ---- S = A^{-1} via unrolled Gauss-Jordan, pixels on lanes.
    # TODO(synk): torch.inverse uses LU with partial pivoting; A here is SPD
    # and diagonally loaded by 1/beta (var >= 1e-3), so the pivot-free sweep
    # is numerically equivalent.
    ainv = eye3
    for i in range(T):
        inv_piv = 1.0 / aw[i, i:i + 1, :]                          # (1, P) exact
        pr_a = aw[i] * inv_piv                                     # (T, P)
        pr_s = ainv[i] * inv_piv                                   # (T, P)
        fac = aw[:, i:i + 1, :]                                    # (T, 1, P)
        aw = aw - fac * pr_a[None, :, :]
        ainv = ainv - fac * pr_s[None, :, :]
        row_i = jax.lax.broadcasted_iota(jnp.int32, (T, 1, 1), 0) == i
        aw = jnp.where(row_i, pr_a[None, :, :], aw)
        ainv = jnp.where(row_i, pr_s[None, :, :], ainv)

    # ---- W_t = D^T S[t]   (K, P): T small lane-dense matmuls
    W = [jnp.dot(Dt, ainv[t], preferred_element_type=f32) for t in range(T)]

    # ---- per atom k:
    #   Q_k[l,:]   = sum_t D[t,k] * W_t[l,:]            (D^T S D row k)
    #   R_k        = var_k * var * Q_k                  (DS^T S DS row k)
    #   Sigma_k    = e_k var_k - R_k
    #   mu_k       = beta * <Sigma_k, Dty>
    row_idx = jax.lax.broadcasted_iota(jnp.int32, (K, 1), 0)
    for k in range(K):
        q_k = W[0] * dflat_ref[k]                                  # D[0,k] scalar
        for t in range(1, T):
            q_k = q_k + W[t] * dflat_ref[t * K + k]                # scalar FMA
        r_k = var[k:k + 1, :] * var * q_k                          # (K, P)
        sigma_k = jnp.where(row_idx == k, var[k:k + 1, :], 0.0) - r_k
        sigma_ref[0, k, :, :] = sigma_k
        diagr_ref[0, k:k + 1, :] = r_k[k:k + 1, :]
        mu_ref[0, k:k + 1, :] = beta * jnp.sum(sigma_k * Dty, axis=0,
                                               keepdims=True)
    var_ref[0] = var


# ----------------------------------------------------------------------------
# Wrapper
# ----------------------------------------------------------------------------
def seb_encoder_forward(x, params, *, mode='sbl', tile_m=256):
    if mode not in ('sbl', 'prior_learning'):
        raise ValueError('Error !! Unknown mode')

    B, T, M = x.shape
    D = creat_real_dictionary(T, params['Drr'], params['Dtheta']).astype(jnp.float32)
    K = D.shape[1]

    # Pixel tile: as large as possible (lane-dense), pad M to a tile multiple.
    P = M if M <= tile_m else tile_m
    num_tiles = pl.cdiv(M, P)
    M_pad = num_tiles * P
    x32 = x.astype(jnp.float32)
    if M_pad != M:
        x32 = jnp.pad(x32, ((0, 0), (0, 0), (0, M_pad - M)))

    Dt = jnp.transpose(D)                                          # (K, T)
    DDf = (D[:, None, :] * D[None, :, :]).reshape(T * T, K)        # (T*T, K)
    d_flat = D.reshape(T * K)                                      # SMEM scalars
    Wa = params['Wa'].astype(jnp.float32)                          # (K, T)
    ba = params['ba'].reshape(K, 1).astype(jnp.float32)            # (K, 1)
    beta = jnp.exp(params['logbeta']).astype(jnp.float32)
    scal = jnp.stack([beta, 1.0 / beta])                           # (2,) SMEM

    kernel = functools.partial(_seb_kernel, T=T, K=K)

    out_shape = (
        jax.ShapeDtypeStruct((B, K, M_pad), jnp.float32),          # mu
        jax.ShapeDtypeStruct((B, K, K, M_pad), jnp.float32),       # Sigma
        jax.ShapeDtypeStruct((B, K, M_pad), jnp.float32),          # var
        jax.ShapeDtypeStruct((B, K, M_pad), jnp.float32),          # diag(R)
    )

    grid_spec = pltpu.PrefetchScalarGridSpec(
        num_scalar_prefetch=0,
        grid=(B, num_tiles),
        in_specs=[
            pl.BlockSpec((1, T, P), lambda b, m: (b, 0, m)),           # x tile
            pl.BlockSpec((K, T), lambda b, m: (0, 0)),                 # Wa
            pl.BlockSpec((K, 1), lambda b, m: (0, 0)),                 # ba
            pl.BlockSpec((K, T), lambda b, m: (0, 0)),                 # D^T
            pl.BlockSpec((T * T, K), lambda b, m: (0, 0)),             # DD flat
            pl.BlockSpec(memory_space=pltpu.MemorySpace.SMEM),         # D scalars
            pl.BlockSpec(memory_space=pltpu.MemorySpace.SMEM),         # beta,1/beta
        ],
        out_specs=[
            pl.BlockSpec((1, K, P), lambda b, m: (b, 0, m)),           # mu
            pl.BlockSpec((1, K, K, P), lambda b, m: (b, 0, 0, m)),     # Sigma
            pl.BlockSpec((1, K, P), lambda b, m: (b, 0, m)),           # var
            pl.BlockSpec((1, K, P), lambda b, m: (b, 0, m)),           # diag(R)
        ],
    )

    mu_bkm, sigma_bkkm, var_bkm, diagr_bkm = pl.pallas_call(
        kernel,
        out_shape=out_shape,
        grid_spec=grid_spec,
        compiler_params=pltpu.CompilerParams(
            dimension_semantics=("parallel", "parallel")),
    )(x32, Wa, ba, Dt, DDf, d_flat, scal)

    # drop padded pixels, move to the PyTorch output layouts
    mu_bkm = mu_bkm[:, :, :M]                                      # (B, K, M)
    sigma_bkkm = sigma_bkkm[:, :, :, :M]                           # (B, K, K, M)
    var_bkm = var_bkm[:, :, :M]                                    # (B, K, M) final
    diagr_bkm = diagr_bkm[:, :, :M]                                # (B, K, M)

    mu = jnp.transpose(mu_bkm, (2, 0, 1))                          # (M, B, K)
    Sigma = jnp.transpose(sigma_bkkm, (3, 0, 1, 2))                # (M, B, K, K)

    if mode == 'sbl':
        alpha_loss = jnp.mean((mu_bkm ** 2 - diagr_bkm) ** 2)
    else:  # 'prior_learning'
        alpha_loss = jnp.mean(jnp.abs(mu_bkm))
    return mu, Sigma, alpha_loss, var_bkm


# ----------------------------------------------------------------------------
# Pure-JAX reference (mirrors the PyTorch forward) for a sanity check
# ----------------------------------------------------------------------------
def _reference_forward(x, params, *, mode='sbl'):
    B, T, M = x.shape
    D = creat_real_dictionary(T, params['Drr'], params['Dtheta'])
    K = D.shape[1]
    beta = jnp.exp(params['logbeta'])
    hp = jax.lax.Precision.HIGHEST
    z = jnp.einsum('kt,btm->bkm', params['Wa'], x, precision=hp) \
        + params['ba'][None, :, None]
    var = 1.0 / (1.0 + jnp.exp(-z)) + 1e-3                         # (B,K,M)
    varp = jnp.transpose(var, (2, 0, 1))                           # (M,B,K)
    Dty = jnp.einsum('tk,btm->mbk', D, x, precision=hp)            # (M,B,K)
    DSp = D[None, None] * varp[:, :, None, :]                      # (M,B,T,K)
    A = jnp.einsum('mbtk,sk->mbts', DSp, D, precision=hp) \
        + (1.0 / beta) * jnp.eye(T, dtype=jnp.float32)
    S = jnp.linalg.inv(A)
    R = jnp.einsum('mbkt,mbts,mbsl->mbkl',
                   jnp.swapaxes(DSp, -1, -2), S, DSp, precision=hp)
    Sigma = varp[..., None] * jnp.eye(K, dtype=jnp.float32) - R
    mu = beta * jnp.einsum('mbkl,mbl->mbk', Sigma, Dty, precision=hp)
    diagR = jnp.diagonal(R, axis1=-2, axis2=-1)
    if mode == 'sbl':
        loss = jnp.mean((mu ** 2 - diagR) ** 2)
    else:
        loss = jnp.mean(jnp.abs(mu))
    return mu, Sigma, loss, var


if __name__ == "__main__":
    key = jax.random.PRNGKey(0)
    k1, k2, k3, k4, k5 = jax.random.split(key, 5)

    B, T, M, N = 2, 8, 16, 4
    K = 4 * N + 1                                                  # 17 atoms

    x = jax.random.normal(k1, (B, T, M), jnp.float32)
    params = dict(
        Drr=jax.random.uniform(k2, (N,), jnp.float32, 0.85, 1.05),
        Dtheta=jax.random.uniform(k3, (N,), jnp.float32, 0.1, 1.5),
        Wa=0.3 * jax.random.normal(k4, (K, T), jnp.float32),       # Conv1d(T->K,1)
        ba=0.1 * jax.random.normal(k5, (K,), jnp.float32),
        logbeta=jnp.float32(0.5),
    )

    mu, Sigma, alpha_loss, var = seb_encoder_forward(x, params, mode='sbl')
    jax.block_until_ready((mu, Sigma, alpha_loss, var))

    mu_r, Sigma_r, loss_r, var_r = _reference_forward(x, params, mode='sbl')
    ok = (mu.shape == (M, B, K) and Sigma.shape == (M, B, K, K)
          and var.shape == (B, K, M)
          and bool(jnp.allclose(mu, mu_r, rtol=2e-2, atol=2e-2))
          and bool(jnp.allclose(Sigma, Sigma_r, rtol=2e-2, atol=2e-2))
          and bool(jnp.allclose(var, var_r, rtol=2e-2, atol=2e-2))
          and bool(jnp.allclose(alpha_loss, loss_r, rtol=2e-2, atol=2e-2)))
    if not ok:
        raise SystemExit("mismatch vs pure-JAX reference")
    print("KERNEL_OK")
</pallas_src>

<mosaic_0001>
module attributes {stable_mosaic.version = 11 : i64} {
  func.func @_seb_kernel(%arg0: i32, %arg1: i32, %arg2: memref<1x8x16xf32, #tpu.memory_space<vmem>>, %arg3: memref<17x8xf32, #tpu.memory_space<vmem>>, %arg4: memref<17x1xf32, #tpu.memory_space<vmem>>, %arg5: memref<17x8xf32, #tpu.memory_space<vmem>>, %arg6: memref<64x17xf32, #tpu.memory_space<vmem>>, %arg7: memref<136xf32, #tpu.memory_space<smem>>, %arg8: memref<2xf32, #tpu.memory_space<smem>>, %arg9: memref<1x17x16xf32, #tpu.memory_space<vmem>>, %arg10: memref<1x17x17x16xf32, #tpu.memory_space<vmem>>, %arg11: memref<1x17x16xf32, #tpu.memory_space<vmem>>, %arg12: memref<1x17x16xf32, #tpu.memory_space<vmem>>) attributes {dimension_semantics = [#tpu.dimension_semantics<parallel>, #tpu.dimension_semantics<parallel>], iteration_bounds = array<i64: 2, 1>, scalar_prefetch = 0 : i64, scratch_operands = 0 : i64, tpu.core_type = #tpu.core_type<tc>, window_params = [{transform_indices = @transform_0, window_bounds = array<i64: 1, 8, 16>}, {pipeline_mode = #tpu.pipeline_mode<synchronous>, transform_indices = @transform_1, window_bounds = array<i64: 17, 8>}, {pipeline_mode = #tpu.pipeline_mode<synchronous>, transform_indices = @transform_2, window_bounds = array<i64: 17, 1>}, {pipeline_mode = #tpu.pipeline_mode<synchronous>, transform_indices = @transform_3, window_bounds = array<i64: 17, 8>}, {pipeline_mode = #tpu.pipeline_mode<synchronous>, transform_indices = @transform_4, window_bounds = array<i64: 64, 17>}, {transform_indices = @transform_5, window_bounds = array<i64: 136>}, {transform_indices = @transform_6, window_bounds = array<i64: 2>}, {transform_indices = @transform_7, window_bounds = array<i64: 1, 17, 16>}, {transform_indices = @transform_8, window_bounds = array<i64: 1, 17, 17, 16>}, {transform_indices = @transform_9, window_bounds = array<i64: 1, 17, 16>}, {transform_indices = @transform_10, window_bounds = array<i64: 1, 17, 16>}]} {
    %c0 = arith.constant 0 : index
    %c0_0 = arith.constant 0 : index
    %c0_1 = arith.constant 0 : index
    %0 = vector.load %arg2[%c0, %c0_0, %c0_1] : memref<1x8x16xf32, #tpu.memory_space<vmem>>, vector<1x8x16xf32>
    %1 = vector.shape_cast %0 : vector<1x8x16xf32> to vector<8x16xf32>
    %c0_2 = arith.constant 0 : index
    %c0_3 = arith.constant 0 : index
    %2 = vector.load %arg3[%c0_2, %c0_3] : memref<17x8xf32, #tpu.memory_space<vmem>>, vector<17x8xf32>
    %c0_4 = arith.constant 0 : index
    %c0_5 = arith.constant 0 : index
    %3 = vector.load %arg4[%c0_4, %c0_5] : memref<17x1xf32, #tpu.memory_space<vmem>>, vector<17x1xf32>
    %c0_6 = arith.constant 0 : index
    %c0_7 = arith.constant 0 : index
    %4 = vector.load %arg5[%c0_6, %c0_7] : memref<17x8xf32, #tpu.memory_space<vmem>>, vector<17x8xf32>
    %c0_8 = arith.constant 0 : index
    %c0_9 = arith.constant 0 : index
    %5 = vector.load %arg6[%c0_8, %c0_9] : memref<64x17xf32, #tpu.memory_space<vmem>>, vector<64x17xf32>
    %c0_10 = arith.constant 0 : index
    %6 = memref.load %arg8[%c0_10] : memref<2xf32, #tpu.memory_space<smem>>
    %c1 = arith.constant 1 : index
    %7 = memref.load %arg8[%c1] : memref<2xf32, #tpu.memory_space<smem>>
    %cst = arith.constant dense<0.000000e+00> : vector<17x16xf32>
    %8 = tpu.matmul %2, %1, %cst {dimension_numbers = #tpu.dot_dimension_numbers<[1], [0], [0], [1], [0, 0, 1, 1], [], []>} : vector<17x8xf32>, vector<8x16xf32>, vector<17x16xf32> -> vector<17x16xf32>
    %9 = vector.broadcast %3 : vector<17x1xf32> to vector<17x16xf32>
    %10 = arith.addf %8, %9 : vector<17x16xf32>
    %cst_11 = arith.constant 0.000000e+00 : f32
    %11 = vector.broadcast %cst_11 : f32 to vector<17x16xf32>
    %12 = arith.subf %11, %10 : vector<17x16xf32>
    %13 = math.exp %12 : vector<17x16xf32>
    %cst_12 = arith.constant 1.000000e+00 : f32
    %14 = vector.broadcast %cst_12 : f32 to vector<17x16xf32>
    %15 = arith.addf %14, %13 : vector<17x16xf32>
    %cst_13 = arith.constant 1.000000e+00 : f32
    %16 = vector.broadcast %cst_13 : f32 to vector<17x16xf32>
    %17 = arith.divf %16, %15 : vector<17x16xf32>
    %cst_14 = arith.constant 1.000000e-03 : f32
    %18 = vector.broadcast %cst_14 : f32 to vector<17x16xf32>
    %19 = arith.addf %17, %18 : vector<17x16xf32>
    %cst_15 = arith.constant dense<0.000000e+00> : vector<17x16xf32>
    %20 = tpu.matmul %4, %1, %cst_15 {dimension_numbers = #tpu.dot_dimension_numbers<[1], [0], [0], [1], [0, 0, 1, 1], [], []>} : vector<17x8xf32>, vector<8x16xf32>, vector<17x16xf32> -> vector<17x16xf32>
    %cst_16 = arith.constant dense<0.000000e+00> : vector<64x16xf32>
    %21 = tpu.matmul %5, %19, %cst_16 {dimension_numbers = #tpu.dot_dimension_numbers<[1], [0], [0], [1], [0, 0, 1, 1], [], []>} : vector<64x17xf32>, vector<17x16xf32>, vector<64x16xf32> -> vector<64x16xf32>
    %22 = vector.shape_cast %21 : vector<64x16xf32> to vector<8x8x16xf32>
    %23 = tpu.iota {dimensions = array<i32: 0>} : vector<8x8x16xi32>
    %24 = tpu.iota {dimensions = array<i32: 1>} : vector<8x8x16xi32>
    %25 = arith.cmpi eq, %23, %24 : vector<8x8x16xi32>
    %cst_17 = arith.constant 1.000000e+00 : f32
    %cst_18 = arith.constant 0.000000e+00 : f32
    %26 = vector.broadcast %cst_17 : f32 to vector<8x8x16xf32>
    %27 = vector.broadcast %cst_18 : f32 to vector<8x8x16xf32>
    %28 = arith.select %25, %26, %27 : vector<8x8x16xi1>, vector<8x8x16xf32>
    %29 = vector.broadcast %7 : f32 to vector<8x8x16xf32>
    %30 = arith.mulf %29, %28 : vector<8x8x16xf32>
    %31 = arith.addf %22, %30 : vector<8x8x16xf32>
    %32 = vector.extract_strided_slice %31 {offsets = [0, 0, 0], sizes = [1, 1, 16], strides = [1, 1, 1]} : vector<8x8x16xf32> to vector<1x1x16xf32>
    %33 = vector.shape_cast %32 : vector<1x1x16xf32> to vector<1x16xf32>
    %cst_19 = arith.constant 1.000000e+00 : f32
    %34 = vector.broadcast %cst_19 : f32 to vector<1x16xf32>
    %35 = arith.divf %34, %33 : vector<1x16xf32>
    %36 = vector.extract_strided_slice %31 {offsets = [0, 0, 0], sizes = [1, 8, 16], strides = [1, 1, 1]} : vector<8x8x16xf32> to vector<1x8x16xf32>
    %37 = vector.shape_cast %36 : vector<1x8x16xf32> to vector<8x16xf32>
    %38 = vector.broadcast %35 : vector<1x16xf32> to vector<8x16xf32>
    %39 = arith.mulf %37, %38 : vector<8x16xf32>
    %40 = vector.extract_strided_slice %28 {offsets = [0, 0, 0], sizes = [1, 8, 16], strides = [1, 1, 1]} : vector<8x8x16xf32> to vector<1x8x16xf32>
    %41 = vector.shape_cast %40 : vector<1x8x16xf32> to vector<8x16xf32>
    %42 = vector.broadcast %35 : vector<1x16xf32> to vector<8x16xf32>
    %43 = arith.mulf %41, %42 : vector<8x16xf32>
    %44 = vector.extract_strided_slice %31 {offsets = [0, 0, 0], sizes = [8, 1, 16], strides = [1, 1, 1]} : vector<8x8x16xf32> to vector<8x1x16xf32>
    %45 = vector.shape_cast %39 : vector<8x16xf32> to vector<1x8x16xf32>
    %46 = vector.broadcast %44 : vector<8x1x16xf32> to vector<8x8x16xf32>
    %47 = vector.broadcast %45 : vector<1x8x16xf32> to vector<8x8x16xf32>
    %48 = arith.mulf %46, %47 : vector<8x8x16xf32>
    %49 = arith.subf %31, %48 : vector<8x8x16xf32>
    %50 = vector.shape_cast %43 : vector<8x16xf32> to vector<1x8x16xf32>
    %51 = vector.broadcast %44 : vector<8x1x16xf32> to vector<8x8x16xf32>
    %52 = vector.broadcast %50 : vector<1x8x16xf32> to vector<8x8x16xf32>
    %53 = arith.mulf %51, %52 : vector<8x8x16xf32>
    %54 = arith.subf %28, %53 : vector<8x8x16xf32>
    %55 = tpu.iota {dimensions = array<i32: 0>} : vector<8x1x1xi32>
    %c0_i32 = arith.constant 0 : i32
    %56 = vector.broadcast %c0_i32 : i32 to vector<8x1x1xi32>
    %57 = arith.cmpi eq, %55, %56 : vector<8x1x1xi32>
    %58 = vector.shape_cast %39 : vector<8x16xf32> to vector<1x8x16xf32>
    %59 = vector.shape_cast %57 : vector<8x1x1xi1> to vector<8x1x1xi1>
    %60 = vector.broadcast %59 : vector<8x1x1xi1> to vector<8x8x16xi1>
    %61 = vector.shape_cast %58 : vector<1x8x16xf32> to vector<1x8x16xf32>
    %62 = vector.broadcast %61 : vector<1x8x16xf32> to vector<8x8x16xf32>
    %63 = arith.select %60, %62, %49 : vector<8x8x16xi1>, vector<8x8x16xf32>
    %64 = vector.shape_cast %43 : vector<8x16xf32> to vector<1x8x16xf32>
    %65 = vector.shape_cast %57 : vector<8x1x1xi1> to vector<8x1x1xi1>
    %66 = vector.broadcast %65 : vector<8x1x1xi1> to vector<8x8x16xi1>
    %67 = vector.shape_cast %64 : vector<1x8x16xf32> to vector<1x8x16xf32>
    %68 = vector.broadcast %67 : vector<1x8x16xf32> to vector<8x8x16xf32>
    %69 = arith.select %66, %68, %54 : vector<8x8x16xi1>, vector<8x8x16xf32>
    %70 = vector.extract_strided_slice %63 {offsets = [1, 1, 0], sizes = [1, 1, 16], strides = [1, 1, 1]} : vector<8x8x16xf32> to vector<1x1x16xf32>
    %71 = vector.shape_cast %70 : vector<1x1x16xf32> to vector<1x16xf32>
    %cst_20 = arith.constant 1.000000e+00 : f32
    %72 = vector.broadcast %cst_20 : f32 to vector<1x16xf32>
    %73 = arith.divf %72, %71 : vector<1x16xf32>
    %74 = vector.extract_strided_slice %63 {offsets = [1, 0, 0], sizes = [1, 8, 16], strides = [1, 1, 1]} : vector<8x8x16xf32> to vector<1x8x16xf32>
    %75 = vector.shape_cast %74 : vector<1x8x16xf32> to vector<8x16xf32>
    %76 = vector.broadcast %73 : vector<1x16xf32> to vector<8x16xf32>
    %77 = arith.mulf %75, %76 : vector<8x16xf32>
    %78 = vector.extract_strided_slice %69 {offsets = [1, 0, 0], sizes = [1, 8, 16], strides = [1, 1, 1]} : vector<8x8x16xf32> to vector<1x8x16xf32>
    %79 = vector.shape_cast %78 : vector<1x8x16xf32> to vector<8x16xf32>
    %80 = vector.broadcast %73 : vector<1x16xf32> to vector<8x16xf32>
    %81 = arith.mulf %79, %80 : vector<8x16xf32>
    %82 = vector.extract_strided_slice %63 {offsets = [0, 1, 0], sizes = [8, 1, 16], strides = [1, 1, 1]} : vector<8x8x16xf32> to vector<8x1x16xf32>
    %83 = vector.shape_cast %77 : vector<8x16xf32> to vector<1x8x16xf32>
    %84 = vector.broadcast %82 : vector<8x1x16xf32> to vector<8x8x16xf32>
    %85 = vector.broadcast %83 : vector<1x8x16xf32> to vector<8x8x16xf32>
    %86 = arith.mulf %84, %85 : vector<8x8x16xf32>
    %87 = arith.subf %63, %86 : vector<8x8x16xf32>
    %88 = vector.shape_cast %81 : vector<8x16xf32> to vector<1x8x16xf32>
    %89 = vector.broadcast %82 : vector<8x1x16xf32> to vector<8x8x16xf32>
    %90 = vector.broadcast %88 : vector<1x8x16xf32> to vector<8x8x16xf32>
    %91 = arith.mulf %89, %90 : vector<8x8x16xf32>
    %92 = arith.subf %69, %91 : vector<8x8x16xf32>
    %93 = tpu.iota {dimensions = array<i32: 0>} : vector<8x1x1xi32>
    %c1_i32 = arith.constant 1 : i32
    %94 = vector.broadcast %c1_i32 : i32 to vector<8x1x1xi32>
    %95 = arith.cmpi eq, %93, %94 : vector<8x1x1xi32>
    %96 = vector.shape_cast %77 : vector<8x16xf32> to vector<1x8x16xf32>
    %97 = vector.shape_cast %95 : vector<8x1x1xi1> to vector<8x1x1xi1>
    %98 = vector.broadcast %97 : vector<8x1x1xi1> to vector<8x8x16xi1>
    %99 = vector.shape_cast %96 : vector<1x8x16xf32> to vector<1x8x16xf32>
    %100 = vector.broadcast %99 : vector<1x8x16xf32> to vector<8x8x16xf32>
    %101 = arith.select %98, %100, %87 : vector<8x8x16xi1>, vector<8x8x16xf32>
    %102 = vector.shape_cast %81 : vector<8x16xf32> to vector<1x8x16xf32>
    %103 = vector.shape_cast %95 : vector<8x1x1xi1> to vector<8x1x1xi1>
    %104 = vector.broadcast %103 : vector<8x1x1xi1> to vector<8x8x16xi1>
    %105 = vector.shape_cast %102 : vector<1x8x16xf32> to vector<1x8x16xf32>
    %106 = vector.broadcast %105 : vector<1x8x16xf32> to vector<8x8x16xf32>
    %107 = arith.select %104, %106, %92 : vector<8x8x16xi1>, vector<8x8x16xf32>
    %108 = vector.extract_strided_slice %101 {offsets = [2, 2, 0], sizes = [1, 1, 16], strides = [1, 1, 1]} : vector<8x8x16xf32> to vector<1x1x16xf32>
    %109 = vector.shape_cast %108 : vector<1x1x16xf32> to vector<1x16xf32>
    %cst_21 = arith.constant 1.000000e+00 : f32
    %110 = vector.broadcast %cst_21 : f32 to vector<1x16xf32>
    %111 = arith.divf %110, %109 : vector<1x16xf32>
    %112 = vector.extract_strided_slice %101 {offsets = [2, 0, 0], sizes = [1, 8, 16], strides = [1, 1, 1]} : vector<8x8x16xf32> to vector<1x8x16xf32>
    %113 = vector.shape_cast %112 : vector<1x8x16xf32> to vector<8x16xf32>
    %114 = vector.broadcast %111 : vector<1x16xf32> to vector<8x16xf32>
    %115 = arith.mulf %113, %114 : vector<8x16xf32>
    %116 = vector.extract_strided_slice %107 {offsets = [2, 0, 0], sizes = [1, 8, 16], strides = [1, 1, 1]} : vector<8x8x16xf32> to vector<1x8x16xf32>
    %117 = vector.shape_cast %116 : vector<1x8x16xf32> to vector<8x16xf32>
    %118 = vector.broadcast %111 : vector<1x16xf32> to vector<8x16xf32>
    %119 = arith.mulf %117, %118 : vector<8x16xf32>
    %120 = vector.extract_strided_slice %101 {offsets = [0, 2, 0], sizes = [8, 1, 16], strides = [1, 1, 1]} : vector<8x8x16xf32> to vector<8x1x16xf32>
    %121 = vector.shape_cast %115 : vector<8x16xf32> to vector<1x8x16xf32>
    %122 = vector.broadcast %120 : vector<8x1x16xf32> to vector<8x8x16xf32>
    %123 = vector.broadcast %121 : vector<1x8x16xf32> to vector<8x8x16xf32>
    %124 = arith.mulf %122, %123 : vector<8x8x16xf32>
    %125 = arith.subf %101, %124 : vector<8x8x16xf32>
    %126 = vector.shape_cast %119 : vector<8x16xf32> to vector<1x8x16xf32>
    %127 = vector.broadcast %120 : vector<8x1x16xf32> to vector<8x8x16xf32>
    %128 = vector.broadcast %126 : vector<1x8x16xf32> to vector<8x8x16xf32>
    %129 = arith.mulf %127, %128 : vector<8x8x16xf32>
    %130 = arith.subf %107, %129 : vector<8x8x16xf32>
    %131 = tpu.iota {dimensions = array<i32: 0>} : vector<8x1x1xi32>
    %c2_i32 = arith.constant 2 : i32
    %132 = vector.broadcast %c2_i32 : i32 to vector<8x1x1xi32>
    %133 = arith.cmpi eq, %131, %132 : vector<8x1x1xi32>
    %134 = vector.shape_cast %115 : vector<8x16xf32> to vector<1x8x16xf32>
    %135 = vector.shape_cast %133 : vector<8x1x1xi1> to vector<8x1x1xi1>
    %136 = vector.broadcast %135 : vector<8x1x1xi1> to vector<8x8x16xi1>
    %137 = vector.shape_cast %134 : vector<1x8x16xf32> to vector<1x8x16xf32>
    %138 = vector.broadcast %137 : vector<1x8x16xf32> to vector<8x8x16xf32>
    %139 = arith.select %136, %138, %125 : vector<8x8x16xi1>, vector<8x8x16xf32>
    %140 = vector.shape_cast %119 : vector<8x16xf32> to vector<1x8x16xf32>
    %141 = vector.shape_cast %133 : vector<8x1x1xi1> to vector<8x1x1xi1>
    %142 = vector.broadcast %141 : vector<8x1x1xi1> to vector<8x8x16xi1>
    %143 = vector.shape_cast %140 : vector<1x8x16xf32> to vector<1x8x16xf32>
    %144 = vector.broadcast %143 : vector<1x8x16xf32> to vector<8x8x16xf32>
    %145 = arith.select %142, %144, %130 : vector<8x8x16xi1>, vector<8x8x16xf32>
    %146 = vector.extract_strided_slice %139 {offsets = [3, 3, 0], sizes = [1, 1, 16], strides = [1, 1, 1]} : vector<8x8x16xf32> to vector<1x1x16xf32>
    %147 = vector.shape_cast %146 : vector<1x1x16xf32> to vector<1x16xf32>
    %cst_22 = arith.constant 1.000000e+00 : f32
    %148 = vector.broadcast %cst_22 : f32 to vector<1x16xf32>
    %149 = arith.divf %148, %147 : vector<1x16xf32>
    %150 = vector.extract_strided_slice %139 {offsets = [3, 0, 0], sizes = [1, 8, 16], strides = [1, 1, 1]} : vector<8x8x16xf32> to vector<1x8x16xf32>
    %151 = vector.shape_cast %150 : vector<1x8x16xf32> to vector<8x16xf32>
    %152 = vector.broadcast %149 : vector<1x16xf32> to vector<8x16xf32>
    %153 = arith.mulf %151, %152 : vector<8x16xf32>
    %154 = vector.extract_strided_slice %145 {offsets = [3, 0, 0], sizes = [1, 8, 16], strides = [1, 1, 1]} : vector<8x8x16xf32> to vector<1x8x16xf32>
    %155 = vector.shape_cast %154 : vector<1x8x16xf32> to vector<8x16xf32>
    %156 = vector.broadcast %149 : vector<1x16xf32> to vector<8x16xf32>
    %157 = arith.mulf %155, %156 : vector<8x16xf32>
    %158 = vector.extract_strided_slice %139 {offsets = [0, 3, 0], sizes = [8, 1, 16], strides = [1, 1, 1]} : vector<8x8x16xf32> to vector<8x1x16xf32>
    %159 = vector.shape_cast %153 : vector<8x16xf32> to vector<1x8x16xf32>
    %160 = vector.broadcast %158 : vector<8x1x16xf32> to vector<8x8x16xf32>
    %161 = vector.broadcast %159 : vector<1x8x16xf32> to vector<8x8x16xf32>
    %162 = arith.mulf %160, %161 : vector<8x8x16xf32>
    %163 = arith.subf %139, %162 : vector<8x8x16xf32>
    %164 = vector.shape_cast %157 : vector<8x16xf32> to vector<1x8x16xf32>
    %165 = vector.broadcast %158 : vector<8x1x16xf32> to vector<8x8x16xf32>
    %166 = vector.broadcast %164 : vector<1x8x16xf32> to vector<8x8x16xf32>
    %167 = arith.mulf %165, %166 : vector<8x8x16xf32>
    %168 = arith.subf %145, %167 : vector<8x8x16xf32>
    %169 = tpu.iota {dimensions = array<i32: 0>} : vector<8x1x1xi32>
    %c3_i32 = arith.constant 3 : i32
    %170 = vector.broadcast %c3_i32 : i32 to vector<8x1x1xi32>
    %171 = arith.cmpi eq, %169, %170 : vector<8x1x1xi32>
    %172 = vector.shape_cast %153 : vector<8x16xf32> to vector<1x8x16xf32>
    %173 = vector.shape_cast %171 : vector<8x1x1xi1> to vector<8x1x1xi1>
    %174 = vector.broadcast %173 : vector<8x1x1xi1> to vector<8x8x16xi1>
    %175 = vector.shape_cast %172 : vector<1x8x16xf32> to vector<1x8x16xf32>
    %176 = vector.broadcast %175 : vector<1x8x16xf32> to vector<8x8x16xf32>
    %177 = arith.select %174, %176, %163 : vector<8x8x16xi1>, vector<8x8x16xf32>
    %178 = vector.shape_cast %157 : vector<8x16xf32> to vector<1x8x16xf32>
    %179 = vector.shape_cast %171 : vector<8x1x1xi1> to vector<8x1x1xi1>
    %180 = vector.broadcast %179 : vector<8x1x1xi1> to vector<8x8x16xi1>
    %181 = vector.shape_cast %178 : vector<1x8x16xf32> to vector<1x8x16xf32>
    %182 = vector.broadcast %181 : vector<1x8x16xf32> to vector<8x8x16xf32>
    %183 = arith.select %180, %182, %168 : vector<8x8x16xi1>, vector<8x8x16xf32>
    %184 = vector.extract_strided_slice %177 {offsets = [4, 4, 0], sizes = [1, 1, 16], strides = [1, 1, 1]} : vector<8x8x16xf32> to vector<1x1x16xf32>
    %185 = vector.shape_cast %184 : vector<1x1x16xf32> to vector<1x16xf32>
    %cst_23 = arith.constant 1.000000e+00 : f32
    %186 = vector.broadcast %cst_23 : f32 to vector<1x16xf32>
    %187 = arith.divf %186, %185 : vector<1x16xf32>
    %188 = vector.extract_strided_slice %177 {offsets = [4, 0, 0], sizes = [1, 8, 16], strides = [1, 1, 1]} : vector<8x8x16xf32> to vector<1x8x16xf32>
    %189 = vector.shape_cast %188 : vector<1x8x16xf32> to vector<8x16xf32>
    %190 = vector.broadcast %187 : vector<1x16xf32> to vector<8x16xf32>
    %191 = arith.mulf %189, %190 : vector<8x16xf32>
    %192 = vector.extract_strided_slice %183 {offsets = [4, 0, 0], sizes = [1, 8, 16], strides = [1, 1, 1]} : vector<8x8x16xf32> to vector<1x8x16xf32>
    %193 = vector.shape_cast %192 : vector<1x8x16xf32> to vector<8x16xf32>
    %194 = vector.broadcast %187 : vector<1x16xf32> to vector<8x16xf32>
    %195 = arith.mulf %193, %194 : vector<8x16xf32>
    %196 = vector.extract_strided_slice %177 {offsets = [0, 4, 0], sizes = [8, 1, 16], strides = [1, 1, 1]} : vector<8x8x16xf32> to vector<8x1x16xf32>
    %197 = vector.shape_cast %191 : vector<8x16xf32> to vector<1x8x16xf32>
    %198 = vector.broadcast %196 : vector<8x1x16xf32> to vector<8x8x16xf32>
    %199 = vector.broadcast %197 : vector<1x8x16xf32> to vector<8x8x16xf32>
    %200 = arith.mulf %198, %199 : vector<8x8x16xf32>
    %201 = arith.subf %177, %200 : vector<8x8x16xf32>
    %202 = vector.shape_cast %195 : vector<8x16xf32> to vector<1x8x16xf32>
    %203 = vector.broadcast %196 : vector<8x1x16xf32> to vector<8x8x16xf32>
    %204 = vector.broadcast %202 : vector<1x8x16xf32> to vector<8x8x16xf32>
    %205 = arith.mulf %203, %204 : vector<8x8x16xf32>
    %206 = arith.subf %183, %205 : vector<8x8x16xf32>
    %207 = tpu.iota {dimensions = array<i32: 0>} : vector<8x1x1xi32>
    %c4_i32 = arith.constant 4 : i32
    %208 = vector.broadcast %c4_i32 : i32 to vector<8x1x1xi32>
    %209 = arith.cmpi eq, %207, %208 : vector<8x1x1xi32>
    %210 = vector.shape_cast %191 : vector<8x16xf32> to vector<1x8x16xf32>
    %211 = vector.shape_cast %209 : vector<8x1x1xi1> to vector<8x1x1xi1>
    %212 = vector.broadcast %211 : vector<8x1x1xi1> to vector<8x8x16xi1>
    %213 = vector.shape_cast %210 : vector<1x8x16xf32> to vector<1x8x16xf32>
    %214 = vector.broadcast %213 : vector<1x8x16xf32> to vector<8x8x16xf32>
    %215 = arith.select %212, %214, %201 : vector<8x8x16xi1>, vector<8x8x16xf32>
    %216 = vector.shape_cast %195 : vector<8x16xf32> to vector<1x8x16xf32>
    %217 = vector.shape_cast %209 : vector<8x1x1xi1> to vector<8x1x1xi1>
    %218 = vector.broadcast %217 : vector<8x1x1xi1> to vector<8x8x16xi1>
    %219 = vector.shape_cast %216 : vector<1x8x16xf32> to vector<1x8x16xf32>
    %220 = vector.broadcast %219 : vector<1x8x16xf32> to vector<8x8x16xf32>
    %221 = arith.select %218, %220, %206 : vector<8x8x16xi1>, vector<8x8x16xf32>
    %222 = vector.extract_strided_slice %215 {offsets = [5, 5, 0], sizes = [1, 1, 16], strides = [1, 1, 1]} : vector<8x8x16xf32> to vector<1x1x16xf32>
    %223 = vector.shape_cast %222 : vector<1x1x16xf32> to vector<1x16xf32>
    %cst_24 = arith.constant 1.000000e+00 : f32
    %224 = vector.broadcast %cst_24 : f32 to vector<1x16xf32>
    %225 = arith.divf %224, %223 : vector<1x16xf32>
    %226 = vector.extract_strided_slice %215 {offsets = [5, 0, 0], sizes = [1, 8, 16], strides = [1, 1, 1]} : vector<8x8x16xf32> to vector<1x8x16xf32>
    %227 = vector.shape_cast %226 : vector<1x8x16xf32> to vector<8x16xf32>
    %228 = vector.broadcast %225 : vector<1x16xf32> to vector<8x16xf32>
    %229 = arith.mulf %227, %228 : vector<8x16xf32>
    %230 = vector.extract_strided_slice %221 {offsets = [5, 0, 0], sizes = [1, 8, 16], strides = [1, 1, 1]} : vector<8x8x16xf32> to vector<1x8x16xf32>
    %231 = vector.shape_cast %230 : vector<1x8x16xf32> to vector<8x16xf32>
    %232 = vector.broadcast %225 : vector<1x16xf32> to vector<8x16xf32>
    %233 = arith.mulf %231, %232 : vector<8x16xf32>
    %234 = vector.extract_strided_slice %215 {offsets = [0, 5, 0], sizes = [8, 1, 16], strides = [1, 1, 1]} : vector<8x8x16xf32> to vector<8x1x16xf32>
    %235 = vector.shape_cast %229 : vector<8x16xf32> to vector<1x8x16xf32>
    %236 = vector.broadcast %234 : vector<8x1x16xf32> to vector<8x8x16xf32>
    %237 = vector.broadcast %235 : vector<1x8x16xf32> to vector<8x8x16xf32>
    %238 = arith.mulf %236, %237 : vector<8x8x16xf32>
    %239 = arith.subf %215, %238 : vector<8x8x16xf32>
    %240 = vector.shape_cast %233 : vector<8x16xf32> to vector<1x8x16xf32>
    %241 = vector.broadcast %234 : vector<8x1x16xf32> to vector<8x8x16xf32>
    %242 = vector.broadcast %240 : vector<1x8x16xf32> to vector<8x8x16xf32>
    %243 = arith.mulf %241, %242 : vector<8x8x16xf32>
    %244 = arith.subf %221, %243 : vector<8x8x16xf32>
    %245 = tpu.iota {dimensions = array<i32: 0>} : vector<8x1x1xi32>
    %c5_i32 = arith.constant 5 : i32
    %246 = vector.broadcast %c5_i32 : i32 to vector<8x1x1xi32>
    %247 = arith.cmpi eq, %245, %246 : vector<8x1x1xi32>
    %248 = vector.shape_cast %229 : vector<8x16xf32> to vector<1x8x16xf32>
    %249 = vector.shape_cast %247 : vector<8x1x1xi1> to vector<8x1x1xi1>
    %250 = vector.broadcast %249 : vector<8x1x1xi1> to vector<8x8x16xi1>
    %251 = vector.shape_cast %248 : vector<1x8x16xf32> to vector<1x8x16xf32>
    %252 = vector.broadcast %251 : vector<1x8x16xf32> to vector<8x8x16xf32>
    %253 = arith.select %250, %252, %239 : vector<8x8x16xi1>, vector<8x8x16xf32>
    %254 = vector.shape_cast %233 : vector<8x16xf32> to vector<1x8x16xf32>
    %255 = vector.shape_cast %247 : vector<8x1x1xi1> to vector<8x1x1xi1>
    %256 = vector.broadcast %255 : vector<8x1x1xi1> to vector<8x8x16xi1>
    %257 = vector.shape_cast %254 : vector<1x8x16xf32> to vector<1x8x16xf32>
    %258 = vector.broadcast %257 : vector<1x8x16xf32> to vector<8x8x16xf32>
    %259 = arith.select %256, %258, %244 : vector<8x8x16xi1>, vector<8x8x16xf32>
    %260 = vector.extract_strided_slice %253 {offsets = [6, 6, 0], sizes = [1, 1, 16], strides = [1, 1, 1]} : vector<8x8x16xf32> to vector<1x1x16xf32>
    %261 = vector.shape_cast %260 : vector<1x1x16xf32> to vector<1x16xf32>
    %cst_25 = arith.constant 1.000000e+00 : f32
    %262 = vector.broadcast %cst_25 : f32 to vector<1x16xf32>
    %263 = arith.divf %262, %261 : vector<1x16xf32>
    %264 = vector.extract_strided_slice %253 {offsets = [6, 0, 0], sizes = [1, 8, 16], strides = [1, 1, 1]} : vector<8x8x16xf32> to vector<1x8x16xf32>
    %265 = vector.shape_cast %264 : vector<1x8x16xf32> to vector<8x16xf32>
    %266 = vector.broadcast %263 : vector<1x16xf32> to vector<8x16xf32>
    %267 = arith.mulf %265, %266 : vector<8x16xf32>
    %268 = vector.extract_strided_slice %259 {offsets = [6, 0, 0], sizes = [1, 8, 16], strides = [1, 1, 1]} : vector<8x8x16xf32> to vector<1x8x16xf32>
    %269 = vector.shape_cast %268 : vector<1x8x16xf32> to vector<8x16xf32>
    %270 = vector.broadcast %263 : vector<1x16xf32> to vector<8x16xf32>
    %271 = arith.mulf %269, %270 : vector<8x16xf32>
    %272 = vector.extract_strided_slice %253 {offsets = [0, 6, 0], sizes = [8, 1, 16], strides = [1, 1, 1]} : vector<8x8x16xf32> to vector<8x1x16xf32>
    %273 = vector.shape_cast %267 : vector<8x16xf32> to vector<1x8x16xf32>
    %274 = vector.broadcast %272 : vector<8x1x16xf32> to vector<8x8x16xf32>
    %275 = vector.broadcast %273 : vector<1x8x16xf32> to vector<8x8x16xf32>
    %276 = arith.mulf %274, %275 : vector<8x8x16xf32>
    %277 = arith.subf %253, %276 : vector<8x8x16xf32>
    %278 = vector.shape_cast %271 : vector<8x16xf32> to vector<1x8x16xf32>
    %279 = vector.broadcast %272 : vector<8x1x16xf32> to vector<8x8x16xf32>
    %280 = vector.broadcast %278 : vector<1x8x16xf32> to vector<8x8x16xf32>
    %281 = arith.mulf %279, %280 : vector<8x8x16xf32>
    %282 = arith.subf %259, %281 : vector<8x8x16xf32>
    %283 = tpu.iota {dimensions = array<i32: 0>} : vector<8x1x1xi32>
    %c6_i32 = arith.constant 6 : i32
    %284 = vector.broadcast %c6_i32 : i32 to vector<8x1x1xi32>
    %285 = arith.cmpi eq, %283, %284 : vector<8x1x1xi32>
    %286 = vector.shape_cast %267 : vector<8x16xf32> to vector<1x8x16xf32>
    %287 = vector.shape_cast %285 : vector<8x1x1xi1> to vector<8x1x1xi1>
    %288 = vector.broadcast %287 : vector<8x1x1xi1> to vector<8x8x16xi1>
    %289 = vector.shape_cast %286 : vector<1x8x16xf32> to vector<1x8x16xf32>
    %290 = vector.broadcast %289 : vector<1x8x16xf32> to vector<8x8x16xf32>
    %291 = arith.select %288, %290, %277 : vector<8x8x16xi1>, vector<8x8x16xf32>
    %292 = vector.shape_cast %271 : vector<8x16xf32> to vector<1x8x16xf32>
    %293 = vector.shape_cast %285 : vector<8x1x1xi1> to vector<8x1x1xi1>
    %294 = vector.broadcast %293 : vector<8x1x1xi1> to vector<8x8x16xi1>
    %295 = vector.shape_cast %292 : vector<1x8x16xf32> to vector<1x8x16xf32>
    %296 = vector.broadcast %295 : vector<1x8x16xf32> to vector<8x8x16xf32>
    %297 = arith.select %294, %296, %282 : vector<8x8x16xi1>, vector<8x8x16xf32>
    %298 = vector.extract_strided_slice %291 {offsets = [7, 7, 0], sizes = [1, 1, 16], strides = [1, 1, 1]} : vector<8x8x16xf32> to vector<1x1x16xf32>
    %299 = vector.shape_cast %298 : vector<1x1x16xf32> to vector<1x16xf32>
    %cst_26 = arith.constant 1.000000e+00 : f32
    %300 = vector.broadcast %cst_26 : f32 to vector<1x16xf32>
    %301 = arith.divf %300, %299 : vector<1x16xf32>
    %302 = vector.extract_strided_slice %297 {offsets = [7, 0, 0], sizes = [1, 8, 16], strides = [1, 1, 1]} : vector<8x8x16xf32> to vector<1x8x16xf32>
    %303 = vector.shape_cast %302 : vector<1x8x16xf32> to vector<8x16xf32>
    %304 = vector.broadcast %301 : vector<1x16xf32> to vector<8x16xf32>
    %305 = arith.mulf %303, %304 : vector<8x16xf32>
    %306 = vector.extract_strided_slice %291 {offsets = [0, 7, 0], sizes = [8, 1, 16], strides = [1, 1, 1]} : vector<8x8x16xf32> to vector<8x1x16xf32>
    %307 = vector.shape_cast %305 : vector<8x16xf32> to vector<1x8x16xf32>
    %308 = vector.broadcast %306 : vector<8x1x16xf32> to vector<8x8x16xf32>
    %309 = vector.broadcast %307 : vector<1x8x16xf32> to vector<8x8x16xf32>
    %310 = arith.mulf %308, %309 : vector<8x8x16xf32>
    %311 = arith.subf %297, %310 : vector<8x8x16xf32>
    %312 = tpu.iota {dimensions = array<i32: 0>} : vector<8x1x1xi32>
    %c7_i32 = arith.constant 7 : i32
    %313 = vector.broadcast %c7_i32 : i32 to vector<8x1x1xi32>
    %314 = arith.cmpi eq, %312, %313 : vector<8x1x1xi32>
    %315 = vector.shape_cast %305 : vector<8x16xf32> to vector<1x8x16xf32>
    %316 = vector.shape_cast %314 : vector<8x1x1xi1> to vector<8x1x1xi1>
    %317 = vector.broadcast %316 : vector<8x1x1xi1> to vector<8x8x16xi1>
    %318 = vector.shape_cast %315 : vector<1x8x16xf32> to vector<1x8x16xf32>
    %319 = vector.broadcast %318 : vector<1x8x16xf32> to vector<8x8x16xf32>
    %320 = arith.select %317, %319, %311 : vector<8x8x16xi1>, vector<8x8x16xf32>
    %321 = vector.extract_strided_slice %320 {offsets = [0, 0, 0], sizes = [1, 8, 16], strides = [1, 1, 1]} : vector<8x8x16xf32> to vector<1x8x16xf32>
    %322 = vector.shape_cast %321 : vector<1x8x16xf32> to vector<8x16xf32>
    %cst_27 = arith.constant dense<0.000000e+00> : vector<17x16xf32>
    %323 = tpu.matmul %4, %322, %cst_27 {dimension_numbers = #tpu.dot_dimension_numbers<[1], [0], [0], [1], [0, 0, 1, 1], [], []>} : vector<17x8xf32>, vector<8x16xf32>, vector<17x16xf32> -> vector<17x16xf32>
    %324 = vector.extract_strided_slice %320 {offsets = [1, 0, 0], sizes = [1, 8, 16], strides = [1, 1, 1]} : vector<8x8x16xf32> to vector<1x8x16xf32>
    %325 = vector.shape_cast %324 : vector<1x8x16xf32> to vector<8x16xf32>
    %cst_28 = arith.constant dense<0.000000e+00> : vector<17x16xf32>
    %326 = tpu.matmul %4, %325, %cst_28 {dimension_numbers = #tpu.dot_dimension_numbers<[1], [0], [0], [1], [0, 0, 1, 1], [], []>} : vector<17x8xf32>, vector<8x16xf32>, vector<17x16xf32> -> vector<17x16xf32>
    %327 = vector.extract_strided_slice %320 {offsets = [2, 0, 0], sizes = [1, 8, 16], strides = [1, 1, 1]} : vector<8x8x16xf32> to vector<1x8x16xf32>
    %328 = vector.shape_cast %327 : vector<1x8x16xf32> to vector<8x16xf32>
    %cst_29 = arith.constant dense<0.000000e+00> : vector<17x16xf32>
    %329 = tpu.matmul %4, %328, %cst_29 {dimension_numbers = #tpu.dot_dimension_numbers<[1], [0], [0], [1], [0, 0, 1, 1], [], []>} : vector<17x8xf32>, vector<8x16xf32>, vector<17x16xf32> -> vector<17x16xf32>
    %330 = vector.extract_strided_slice %320 {offsets = [3, 0, 0], sizes = [1, 8, 16], strides = [1, 1, 1]} : vector<8x8x16xf32> to vector<1x8x16xf32>
    %331 = vector.shape_cast %330 : vector<1x8x16xf32> to vector<8x16xf32>
    %cst_30 = arith.constant dense<0.000000e+00> : vector<17x16xf32>
    %332 = tpu.matmul %4, %331, %cst_30 {dimension_numbers = #tpu.dot_dimension_numbers<[1], [0], [0], [1], [0, 0, 1, 1], [], []>} : vector<17x8xf32>, vector<8x16xf32>, vector<17x16xf32> -> vector<17x16xf32>
    %333 = vector.extract_strided_slice %320 {offsets = [4, 0, 0], sizes = [1, 8, 16], strides = [1, 1, 1]} : vector<8x8x16xf32> to vector<1x8x16xf32>
    %334 = vector.shape_cast %333 : vector<1x8x16xf32> to vector<8x16xf32>
    %cst_31 = arith.constant dense<0.000000e+00> : vector<17x16xf32>
    %335 = tpu.matmul %4, %334, %cst_31 {dimension_numbers = #tpu.dot_dimension_numbers<[1], [0], [0], [1], [0, 0, 1, 1], [], []>} : vector<17x8xf32>, vector<8x16xf32>, vector<17x16xf32> -> vector<17x16xf32>
    %336 = vector.extract_strided_slice %320 {offsets = [5, 0, 0], sizes = [1, 8, 16], strides = [1, 1, 1]} : vector<8x8x16xf32> to vector<1x8x16xf32>
    %337 = vector.shape_cast %336 : vector<1x8x16xf32> to vector<8x16xf32>
    %cst_32 = arith.constant dense<0.000000e+00> : vector<17x16xf32>
    %338 = tpu.matmul %4, %337, %cst_32 {dimension_numbers = #tpu.dot_dimension_numbers<[1], [0], [0], [1], [0, 0, 1, 1], [], []>} : vector<17x8xf32>, vector<8x16xf32>, vector<17x16xf32> -> vector<17x16xf32>
    %339 = vector.extract_strided_slice %320 {offsets = [6, 0, 0], sizes = [1, 8, 16], strides = [1, 1, 1]} : vector<8x8x16xf32> to vector<1x8x16xf32>
    %340 = vector.shape_cast %339 : vector<1x8x16xf32> to vector<8x16xf32>
    %cst_33 = arith.constant dense<0.000000e+00> : vector<17x16xf32>
    %341 = tpu.matmul %4, %340, %cst_33 {dimension_numbers = #tpu.dot_dimension_numbers<[1], [0], [0], [1], [0, 0, 1, 1], [], []>} : vector<17x8xf32>, vector<8x16xf32>, vector<17x16xf32> -> vector<17x16xf32>
    %342 = vector.extract_strided_slice %320 {offsets = [7, 0, 0], sizes = [1, 8, 16], strides = [1, 1, 1]} : vector<8x8x16xf32> to vector<1x8x16xf32>
    %343 = vector.shape_cast %342 : vector<1x8x16xf32> to vector<8x16xf32>
    %cst_34 = arith.constant dense<0.000000e+00> : vector<17x16xf32>
    %344 = tpu.matmul %4, %343, %cst_34 {dimension_numbers = #tpu.dot_dimension_numbers<[1], [0], [0], [1], [0, 0, 1, 1], [], []>} : vector<17x8xf32>, vector<8x16xf32>, vector<17x16xf32> -> vector<17x16xf32>
    %345 = tpu.iota {dimensions = array<i32: 0>} : vector<17x1xi32>
    %c0_35 = arith.constant 0 : index
    %346 = memref.load %arg7[%c0_35] : memref<136xf32, #tpu.memory_space<smem>>
    %347 = vector.broadcast %346 : f32 to vector<17x16xf32>
    %348 = arith.mulf %323, %347 : vector<17x16xf32>
    %c17 = arith.constant 17 : index
    %349 = memref.load %arg7[%c17] : memref<136xf32, #tpu.memory_space<smem>>
    %350 = vector.broadcast %349 : f32 to vector<17x16xf32>
    %351 = arith.mulf %326, %350 : vector<17x16xf32>
    %352 = arith.addf %348, %351 : vector<17x16xf32>
    %c34 = arith.constant 34 : index
    %353 = memref.load %arg7[%c34] : memref<136xf32, #tpu.memory_space<smem>>
    %354 = vector.broadcast %353 : f32 to vector<17x16xf32>
    %355 = arith.mulf %329, %354 : vector<17x16xf32>
    %356 = arith.addf %352, %355 : vector<17x16xf32>
    %c51 = arith.constant 51 : index
    %357 = memref.load %arg7[%c51] : memref<136xf32, #tpu.memory_space<smem>>
    %358 = vector.broadcast %357 : f32 to vector<17x16xf32>
    %359 = arith.mulf %332, %358 : vector<17x16xf32>
    %360 = arith.addf %356, %359 : vector<17x16xf32>
    %c68 = arith.constant 68 : index
    %361 = memref.load %arg7[%c68] : memref<136xf32, #tpu.memory_space<smem>>
    %362 = vector.broadcast %361 : f32 to vector<17x16xf32>
    %363 = arith.mulf %335, %362 : vector<17x16xf32>
    %364 = arith.addf %360, %363 : vector<17x16xf32>
    %c85 = arith.constant 85 : index
    %365 = memref.load %arg7[%c85] : memref<136xf32, #tpu.memory_space<smem>>
    %366 = vector.broadcast %365 : f32 to vector<17x16xf32>
    %367 = arith.mulf %338, %366 : vector<17x16xf32>
    %368 = arith.addf %364, %367 : vector<17x16xf32>
    %c102 = arith.constant 102 : index
    %369 = memref.load %arg7[%c102] : memref<136xf32, #tpu.memory_space<smem>>
    %370 = vector.broadcast %369 : f32 to vector<17x16xf32>
    %371 = arith.mulf %341, %370 : vector<17x16xf32>
    %372 = arith.addf %368, %371 : vector<17x16xf32>
    %c119 = arith.constant 119 : index
    %373 = memref.load %arg7[%c119] : memref<136xf32, #tpu.memory_space<smem>>
    %374 = vector.broadcast %373 : f32 to vector<17x16xf32>
    %375 = arith.mulf %344, %374 : vector<17x16xf32>
    %376 = arith.addf %372, %375 : vector<17x16xf32>
    %377 = vector.extract_strided_slice %19 {offsets = [0, 0], sizes = [1, 16], strides = [1, 1]} : vector<17x16xf32> to vector<1x16xf32>
    %378 = vector.broadcast %377 : vector<1x16xf32> to vector<17x16xf32>
    %379 = arith.mulf %378, %19 : vector<17x16xf32>
    %380 = arith.mulf %379, %376 : vector<17x16xf32>
    %c0_i32_36 = arith.constant 0 : i32
    %381 = vector.broadcast %c0_i32_36 : i32 to vector<17x1xi32>
    %382 = arith.cmpi eq, %345, %381 : vector<17x1xi32>
    %383 = vector.extract_strided_slice %19 {offsets = [0, 0], sizes = [1, 16], strides = [1, 1]} : vector<17x16xf32> to vector<1x16xf32>
    %cst_37 = arith.constant 0.000000e+00 : f32
    %384 = vector.shape_cast %382 : vector<17x1xi1> to vector<17x1xi1>
    %385 = vector.broadcast %384 : vector<17x1xi1> to vector<17x16xi1>
    %386 = vector.shape_cast %383 : vector<1x16xf32> to vector<1x16xf32>
    %387 = vector.broadcast %386 : vector<1x16xf32> to vector<17x16xf32>
    %388 = vector.broadcast %cst_37 : f32 to vector<17x16xf32>
    %389 = arith.select %385, %387, %388 : vector<17x16xi1>, vector<17x16xf32>
    %390 = arith.subf %389, %380 : vector<17x16xf32>
    %c0_38 = arith.constant 0 : index
    %c0_39 = arith.constant 0 : index
    %c0_40 = arith.constant 0 : index
    %c0_41 = arith.constant 0 : index
    %391 = vector.load %arg10[%c0_38, %c0_39, %c0_40, %c0_41] : memref<1x17x17x16xf32, #tpu.memory_space<vmem>>, vector<1x1x17x16xf32>
    %392 = vector.shape_cast %391 : vector<1x1x17x16xf32> to vector<17x16xf32>
    %393 = vector.shape_cast %390 : vector<17x16xf32> to vector<1x1x17x16xf32>
    tpu.vector_store %arg10[%c0_38, %c0_39, %c0_40, %c0_41], %393 {strides = array<i32>} : memref<1x17x17x16xf32, #tpu.memory_space<vmem>>, vector<1x1x17x16xf32>,
    %394 = vector.extract_strided_slice %380 {offsets = [0, 0], sizes = [1, 16], strides = [1, 1]} : vector<17x16xf32> to vector<1x16xf32>
    %c0_42 = arith.constant 0 : index
    %c0_43 = arith.constant 0 : index
    %c0_44 = arith.constant 0 : index
    %395 = vector.load %arg12[%c0_42, %c0_43, %c0_44] : memref<1x17x16xf32, #tpu.memory_space<vmem>>, vector<1x1x16xf32>
    %396 = vector.shape_cast %395 : vector<1x1x16xf32> to vector<1x16xf32>
    %397 = vector.shape_cast %394 : vector<1x16xf32> to vector<1x1x16xf32>
    tpu.vector_store %arg12[%c0_42, %c0_43, %c0_44], %397 {strides = array<i32>} : memref<1x17x16xf32, #tpu.memory_space<vmem>>, vector<1x1x16xf32>,
    %398 = arith.mulf %390, %20 : vector<17x16xf32>
    %cst_45 = arith.constant dense<0.000000e+00> : vector<16xf32>
    %399 = vector.multi_reduction <add>, %398, %cst_45 [0] : vector<17x16xf32> to vector<16xf32>
    %400 = vector.shape_cast %399 : vector<16xf32> to vector<1x16xf32>
    %401 = vector.broadcast %6 : f32 to vector<1x16xf32>
    %402 = arith.mulf %401, %400 : vector<1x16xf32>
    %c0_46 = arith.constant 0 : index
    %c0_47 = arith.constant 0 : index
    %c0_48 = arith.constant 0 : index
    %403 = vector.load %arg9[%c0_46, %c0_47, %c0_48] : memref<1x17x16xf32, #tpu.memory_space<vmem>>, vector<1x1x16xf32>
    %404 = vector.shape_cast %403 : vector<1x1x16xf32> to vector<1x16xf32>
    %405 = vector.shape_cast %402 : vector<1x16xf32> to vector<1x1x16xf32>
    tpu.vector_store %arg9[%c0_46, %c0_47, %c0_48], %405 {strides = array<i32>} : memref<1x17x16xf32, #tpu.memory_space<vmem>>, vector<1x1x16xf32>,
    %c1_49 = arith.constant 1 : index
    %406 = memref.load %arg7[%c1_49] : memref<136xf32, #tpu.memory_space<smem>>
    %407 = vector.broadcast %406 : f32 to vector<17x16xf32>
    %408 = arith.mulf %323, %407 : vector<17x16xf32>
    %c18 = arith.constant 18 : index
    %409 = memref.load %arg7[%c18] : memref<136xf32, #tpu.memory_space<smem>>
    %410 = vector.broadcast %409 : f32 to vector<17x16xf32>
    %411 = arith.mulf %326, %410 : vector<17x16xf32>
    %412 = arith.addf %408, %411 : vector<17x16xf32>
    %c35 = arith.constant 35 : index
    %413 = memref.load %arg7[%c35] : memref<136xf32, #tpu.memory_space<smem>>
    %414 = vector.broadcast %413 : f32 to vector<17x16xf32>
    %415 = arith.mulf %329, %414 : vector<17x16xf32>
    %416 = arith.addf %412, %415 : vector<17x16xf32>
    %c52 = arith.constant 52 : index
    %417 = memref.load %arg7[%c52] : memref<136xf32, #tpu.memory_space<smem>>
    %418 = vector.broadcast %417 : f32 to vector<17x16xf32>
    %419 = arith.mulf %332, %418 : vector<17x16xf32>
    %420 = arith.addf %416, %419 : vector<17x16xf32>
    %c69 = arith.constant 69 : index
    %421 = memref.load %arg7[%c69] : memref<136xf32, #tpu.memory_space<smem>>
    %422 = vector.broadcast %421 : f32 to vector<17x16xf32>
    %423 = arith.mulf %335, %422 : vector<17x16xf32>
    %424 = arith.addf %420, %423 : vector<17x16xf32>
    %c86 = arith.constant 86 : index
    %425 = memref.load %arg7[%c86] : memref<136xf32, #tpu.memory_space<smem>>
    %426 = vector.broadcast %425 : f32 to vector<17x16xf32>
    %427 = arith.mulf %338, %426 : vector<17x16xf32>
    %428 = arith.addf %424, %427 : vector<17x16xf32>
    %c103 = arith.constant 103 : index
    %429 = memref.load %arg7[%c103] : memref<136xf32, #tpu.memory_space<smem>>
    %430 = vector.broadcast %429 : f32 to vector<17x16xf32>
    %431 = arith.mulf %341, %430 : vector<17x16xf32>
    %432 = arith.addf %428, %431 : vector<17x16xf32>
    %c120 = arith.constant 120 : index
    %433 = memref.load %arg7[%c120] : memref<136xf32, #tpu.memory_space<smem>>
    %434 = vector.broadcast %433 : f32 to vector<17x16xf32>
    %435 = arith.mulf %344, %434 : vector<17x16xf32>
    %436 = arith.addf %432, %435 : vector<17x16xf32>
    %437 = vector.extract_strided_slice %19 {offsets = [1, 0], sizes = [1, 16], strides = [1, 1]} : vector<17x16xf32> to vector<1x16xf32>
    %438 = vector.broadcast %437 : vector<1x16xf32> to vector<17x16xf32>
    %439 = arith.mulf %438, %19 : vector<17x16xf32>
    %440 = arith.mulf %439, %436 : vector<17x16xf32>
    %c1_i32_50 = arith.constant 1 : i32
    %441 = vector.broadcast %c1_i32_50 : i32 to vector<17x1xi32>
    %442 = arith.cmpi eq, %345, %441 : vector<17x1xi32>
    %443 = vector.extract_strided_slice %19 {offsets = [1, 0], sizes = [1, 16], strides = [1, 1]} : vector<17x16xf32> to vector<1x16xf32>
    %cst_51 = arith.constant 0.000000e+00 : f32
    %444 = vector.shape_cast %442 : vector<17x1xi1> to vector<17x1xi1>
    %445 = vector.broadcast %444 : vector<17x1xi1> to vector<17x16xi1>
    %446 = vector.shape_cast %443 : vector<1x16xf32> to vector<1x16xf32>
    %447 = vector.broadcast %446 : vector<1x16xf32> to vector<17x16xf32>
    %448 = vector.broadcast %cst_51 : f32 to vector<17x16xf32>
    %449 = arith.select %445, %447, %448 : vector<17x16xi1>, vector<17x16xf32>
    %450 = arith.subf %449, %440 : vector<17x16xf32>
    %c0_52 = arith.constant 0 : index
    %c1_53 = arith.constant 1 : index
    %c0_54 = arith.constant 0 : index
    %c0_55 = arith.constant 0 : index
    %451 = vector.load %arg10[%c0_52, %c1_53, %c0_54, %c0_55] : memref<1x17x17x16xf32, #tpu.memory_space<vmem>>, vector<1x1x17x16xf32>
    %452 = vector.shape_cast %451 : vector<1x1x17x16xf32> to vector<17x16xf32>
    %453 = vector.shape_cast %450 : vector<17x16xf32> to vector<1x1x17x16xf32>
    tpu.vector_store %arg10[%c0_52, %c1_53, %c0_54, %c0_55], %453 {strides = array<i32>} : memref<1x17x17x16xf32, #tpu.memory_space<vmem>>, vector<1x1x17x16xf32>,
    %454 = vector.extract_strided_slice %440 {offsets = [1, 0], sizes = [1, 16], strides = [1, 1]} : vector<17x16xf32> to vector<1x16xf32>
    %c0_56 = arith.constant 0 : index
    %c1_57 = arith.constant 1 : index
    %c0_58 = arith.constant 0 : index
    %455 = vector.load %arg12[%c0_56, %c1_57, %c0_58] : memref<1x17x16xf32, #tpu.memory_space<vmem>>, vector<1x1x16xf32>
    %456 = vector.shape_cast %455 : vector<1x1x16xf32> to vector<1x16xf32>
    %457 = vector.shape_cast %454 : vector<1x16xf32> to vector<1x1x16xf32>
    tpu.vector_store %arg12[%c0_56, %c1_57, %c0_58], %457 {strides = array<i32>} : memref<1x17x16xf32, #tpu.memory_space<vmem>>, vector<1x1x16xf32>,
    %458 = arith.mulf %450, %20 : vector<17x16xf32>
    %cst_59 = arith.constant dense<0.000000e+00> : vector<16xf32>
    %459 = vector.multi_reduction <add>, %458, %cst_59 [0] : vector<17x16xf32> to vector<16xf32>
    %460 = vector.shape_cast %459 : vector<16xf32> to vector<1x16xf32>
    %461 = vector.broadcast %6 : f32 to vector<1x16xf32>
    %462 = arith.mulf %461, %460 : vector<1x16xf32>
    %c0_60 = arith.constant 0 : index
    %c1_61 = arith.constant 1 : index
    %c0_62 = arith.constant 0 : index
    %463 = vector.load %arg9[%c0_60, %c1_61, %c0_62] : memref<1x17x16xf32, #tpu.memory_space<vmem>>, vector<1x1x16xf32>
    %464 = vector.shape_cast %463 : vector<1x1x16xf32> to vector<1x16xf32>
    %465 = vector.shape_cast %462 : vector<1x16xf32> to vector<1x1x16xf32>
    tpu.vector_store %arg9[%c0_60, %c1_61, %c0_62], %465 {strides = array<i32>} : memref<1x17x16xf32, #tpu.memory_space<vmem>>, vector<1x1x16xf32>,
    %c2 = arith.constant 2 : index
    %466 = memref.load %arg7[%c2] : memref<136xf32, #tpu.memory_space<smem>>
    %467 = vector.broadcast %466 : f32 to vector<17x16xf32>
    %468 = arith.mulf %323, %467 : vector<17x16xf32>
    %c19 = arith.constant 19 : index
    %469 = memref.load %arg7[%c19] : memref<136xf32, #tpu.memory_space<smem>>
    %470 = vector.broadcast %469 : f32 to vector<17x16xf32>
    %471 = arith.mulf %326, %470 : vector<17x16xf32>
    %472 = arith.addf %468, %471 : vector<17x16xf32>
    %c36 = arith.constant 36 : index
    %473 = memref.load %arg7[%c36] : memref<136xf32, #tpu.memory_space<smem>>
    %474 = vector.broadcast %473 : f32 to vector<17x16xf32>
    %475 = arith.mulf %329, %474 : vector<17x16xf32>
    %476 = arith.addf %472, %475 : vector<17x16xf32>
    %c53 = arith.constant 53 : index
    %477 = memref.load %arg7[%c53] : memref<136xf32, #tpu.memory_space<smem>>
    %478 = vector.broadcast %477 : f32 to vector<17x16xf32>
    %479 = arith.mulf %332, %478 : vector<17x16xf32>
    %480 = arith.addf %476, %479 : vector<17x16xf32>
    %c70 = arith.constant 70 : index
    %481 = memref.load %arg7[%c70] : memref<136xf32, #tpu.memory_space<smem>>
    %482 = vector.broadcast %481 : f32 to vector<17x16xf32>
    %483 = arith.mulf %335, %482 : vector<17x16xf32>
    %484 = arith.addf %480, %483 : vector<17x16xf32>
    %c87 = arith.constant 87 : index
    %485 = memref.load %arg7[%c87] : memref<136xf32, #tpu.memory_space<smem>>
    %486 = vector.broadcast %485 : f32 to vector<17x16xf32>
    %487 = arith.mulf %338, %486 : vector<17x16xf32>
    %488 = arith.addf %484, %487 : vector<17x16xf32>
    %c104 = arith.constant 104 : index
    %489 = memref.load %arg7[%c104] : memref<136xf32, #tpu.memory_space<smem>>
    %490 = vector.broadcast %489 : f32 to vector<17x16xf32>
    %491 = arith.mulf %341, %490 : vector<17x16xf32>
    %492 = arith.addf %488, %491 : vector<17x16xf32>
    %c121 = arith.constant 121 : index
    %493 = memref.load %arg7[%c121] : memref<136xf32, #tpu.memory_space<smem>>
    %494 = vector.broadcast %493 : f32 to vector<17x16xf32>
    %495 = arith.mulf %344, %494 : vector<17x16xf32>
    %496 = arith.addf %492, %495 : vector<17x16xf32>
    %497 = vector.extract_strided_slice %19 {offsets = [2, 0], sizes = [1, 16], strides = [1, 1]} : vector<17x16xf32> to vector<1x16xf32>
    %498 = vector.broadcast %497 : vector<1x16xf32> to vector<17x16xf32>
    %499 = arith.mulf %498, %19 : vector<17x16xf32>
    %500 = arith.mulf %499, %496 : vector<17x16xf32>
    %c2_i32_63 = arith.constant 2 : i32
    %501 = vector.broadcast %c2_i32_63 : i32 to vector<17x1xi32>
    %502 = arith.cmpi eq, %345, %501 : vector<17x1xi32>
    %503 = vector.extract_strided_slice %19 {offsets = [2, 0], sizes = [1, 16], strides = [1, 1]} : vector<17x16xf32> to vector<1x16xf32>
    %cst_64 = arith.constant 0.000000e+00 : f32
    %504 = vector.shape_cast %502 : vector<17x1xi1> to vector<17x1xi1>
    %505 = vector.broadcast %504 : vector<17x1xi1> to vector<17x16xi1>
    %506 = vector.shape_cast %503 : vector<1x16xf32> to vector<1x16xf32>
    %507 = vector.broadcast %506 : vector<1x16xf32> to vector<17x16xf32>
    %508 = vector.broadcast %cst_64 : f32 to vector<17x16xf32>
    %509 = arith.select %505, %507, %508 : vector<17x16xi1>, vector<17x16xf32>
    %510 = arith.subf %509, %500 : vector<17x16xf32>
    %c0_65 = arith.constant 0 : index
    %c2_66 = arith.constant 2 : index
    %c0_67 = arith.constant 0 : index
    %c0_68 = arith.constant 0 : index
    %511 = vector.load %arg10[%c0_65, %c2_66, %c0_67, %c0_68] : memref<1x17x17x16xf32, #tpu.memory_space<vmem>>, vector<1x1x17x16xf32>
    %512 = vector.shape_cast %511 : vector<1x1x17x16xf32> to vector<17x16xf32>
    %513 = vector.shape_cast %510 : vector<17x16xf32> to vector<1x1x17x16xf32>
    tpu.vector_store %arg10[%c0_65, %c2_66, %c0_67, %c0_68], %513 {strides = array<i32>} : memref<1x17x17x16xf32, #tpu.memory_space<vmem>>, vector<1x1x17x16xf32>,
    %514 = vector.extract_strided_slice %500 {offsets = [2, 0], sizes = [1, 16], strides = [1, 1]} : vector<17x16xf32> to vector<1x16xf32>
    %c0_69 = arith.constant 0 : index
    %c2_70 = arith.constant 2 : index
    %c0_71 = arith.constant 0 : index
    %515 = vector.load %arg12[%c0_69, %c2_70, %c0_71] : memref<1x17x16xf32, #tpu.memory_space<vmem>>, vector<1x1x16xf32>
    %516 = vector.shape_cast %515 : vector<1x1x16xf32> to vector<1x16xf32>
    %517 = vector.shape_cast %514 : vector<1x16xf32> to vector<1x1x16xf32>
    tpu.vector_store %arg12[%c0_69, %c2_70, %c0_71], %517 {strides = array<i32>} : memref<1x17x16xf32, #tpu.memory_space<vmem>>, vector<1x1x16xf32>,
    %518 = arith.mulf %510, %20 : vector<17x16xf32>
    %cst_72 = arith.constant dense<0.000000e+00> : vector<16xf32>
    %519 = vector.multi_reduction <add>, %518, %cst_72 [0] : vector<17x16xf32> to vector<16xf32>
    %520 = vector.shape_cast %519 : vector<16xf32> to vector<1x16xf32>
    %521 = vector.broadcast %6 : f32 to vector<1x16xf32>
    %522 = arith.mulf %521, %520 : vector<1x16xf32>
    %c0_73 = arith.constant 0 : index
    %c2_74 = arith.constant 2 : index
    %c0_75 = arith.constant 0 : index
    %523 = vector.load %arg9[%c0_73, %c2_74, %c0_75] : memref<1x17x16xf32, #tpu.memory_space<vmem>>, vector<1x1x16xf32>
    %524 = vector.shape_cast %523 : vector<1x1x16xf32> to vector<1x16xf32>
    %525 = vector.shape_cast %522 : vector<1x16xf32> to vector<1x1x16xf32>
    tpu.vector_store %arg9[%c0_73, %c2_74, %c0_75], %525 {strides = array<i32>} : memref<1x17x16xf32, #tpu.memory_space<vmem>>, vector<1x1x16xf32>,
    %c3 = arith.constant 3 : index
    %526 = memref.load %arg7[%c3] : memref<136xf32, #tpu.memory_space<smem>>
    %527 = vector.broadcast %526 : f32 to vector<17x16xf32>
    %528 = arith.mulf %323, %527 : vector<17x16xf32>
    %c20 = arith.constant 20 : index
    %529 = memref.load %arg7[%c20] : memref<136xf32, #tpu.memory_space<smem>>
    %530 = vector.broadcast %529 : f32 to vector<17x16xf32>
    %531 = arith.mulf %326, %530 : vector<17x16xf32>
    %532 = arith.addf %528, %531 : vector<17x16xf32>
    %c37 = arith.constant 37 : index
    %533 = memref.load %arg7[%c37] : memref<136xf32, #tpu.memory_space<smem>>
    %534 = vector.broadcast %533 : f32 to vector<17x16xf32>
    %535 = arith.mulf %329, %534 : vector<17x16xf32>
    %536 = arith.addf %532, %535 : vector<17x16xf32>
    %c54 = arith.constant 54 : index
    %537 = memref.load %arg7[%c54] : memref<136xf32, #tpu.memory_space<smem>>
    %538 = vector.broadcast %537 : f32 to vector<17x16xf32>
    %539 = arith.mulf %332, %538 : vector<17x16xf32>
    %540 = arith.addf %536, %539 : vector<17x16xf32>
    %c71 = arith.constant 71 : index
    %541 = memref.load %arg7[%c71] : memref<136xf32, #tpu.memory_space<smem>>
    %542 = vector.broadcast %541 : f32 to vector<17x16xf32>
    %543 = arith.mulf %335, %542 : vector<17x16xf32>
    %544 = arith.addf %540, %543 : vector<17x16xf32>
    %c88 = arith.constant 88 : index
    %545 = memref.load %arg7[%c88] : memref<136xf32, #tpu.memory_space<smem>>
    %546 = vector.broadcast %545 : f32 to vector<17x16xf32>
    %547 = arith.mulf %338, %546 : vector<17x16xf32>
    %548 = arith.addf %544, %547 : vector<17x16xf32>
    %c105 = arith.constant 105 : index
    %549 = memref.load %arg7[%c105] : memref<136xf32, #tpu.memory_space<smem>>
    %550 = vector.broadcast %549 : f32 to vector<17x16xf32>
    %551 = arith.mulf %341, %550 : vector<17x16xf32>
    %552 = arith.addf %548, %551 : vector<17x16xf32>
    %c122 = arith.constant 122 : index
    %553 = memref.load %arg7[%c122] : memref<136xf32, #tpu.memory_space<smem>>
    %554 = vector.broadcast %553 : f32 to vector<17x16xf32>
    %555 = arith.mulf %344, %554 : vector<17x16xf32>
    %556 = arith.addf %552, %555 : vector<17x16xf32>
    %557 = vector.extract_strided_slice %19 {offsets = [3, 0], sizes = [1, 16], strides = [1, 1]} : vector<17x16xf32> to vector<1x16xf32>
    %558 = vector.broadcast %557 : vector<1x16xf32> to vector<17x16xf32>
    %559 = arith.mulf %558, %19 : vector<17x16xf32>
    %560 = arith.mulf %559, %556 : vector<17x16xf32>
    %c3_i32_76 = arith.constant 3 : i32
    %561 = vector.broadcast %c3_i32_76 : i32 to vector<17x1xi32>
    %562 = arith.cmpi eq, %345, %561 : vector<17x1xi32>
    %563 = vector.extract_strided_slice %19 {offsets = [3, 0], sizes = [1, 16], strides = [1, 1]} : vector<17x16xf32> to vector<1x16xf32>
    %cst_77 = arith.constant 0.000000e+00 : f32
    %564 = vector.shape_cast %562 : vector<17x1xi1> to vector<17x1xi1>
    %565 = vector.broadcast %564 : vector<17x1xi1> to vector<17x16xi1>
    %566 = vector.shape_cast %563 : vector<1x16xf32> to vector<1x16xf32>
    %567 = vector.broadcast %566 : vector<1x16xf32> to vector<17x16xf32>
    %568 = vector.broadcast %cst_77 : f32 to vector<17x16xf32>
    %569 = arith.select %565, %567, %568 : vector<17x16xi1>, vector<17x16xf32>
    %570 = arith.subf %569, %560 : vector<17x16xf32>
    %c0_78 = arith.constant 0 : index
    %c3_79 = arith.constant 3 : index
    %c0_80 = arith.constant 0 : index
    %c0_81 = arith.constant 0 : index
    %571 = vector.load %arg10[%c0_78, %c3_79, %c0_80, %c0_81] : memref<1x17x17x16xf32, #tpu.memory_space<vmem>>, vector<1x1x17x16xf32>
    %572 = vector.shape_cast %571 : vector<1x1x17x16xf32> to vector<17x16xf32>
    %573 = vector.shape_cast %570 : vector<17x16xf32> to vector<1x1x17x16xf32>
    tpu.vector_store %arg10[%c0_78, %c3_79, %c0_80, %c0_81], %573 {strides = array<i32>} : memref<1x17x17x16xf32, #tpu.memory_space<vmem>>, vector<1x1x17x16xf32>,
    %574 = vector.extract_strided_slice %560 {offsets = [3, 0], sizes = [1, 16], strides = [1, 1]} : vector<17x16xf32> to vector<1x16xf32>
    %c0_82 = arith.constant 0 : index
    %c3_83 = arith.constant 3 : index
    %c0_84 = arith.constant 0 : index
    %575 = vector.load %arg12[%c0_82, %c3_83, %c0_84] : memref<1x17x16xf32, #tpu.memory_space<vmem>>, vector<1x1x16xf32>
    %576 = vector.shape_cast %575 : vector<1x1x16xf32> to vector<1x16xf32>
    %577 = vector.shape_cast %574 : vector<1x16xf32> to vector<1x1x16xf32>
    tpu.vector_store %arg12[%c0_82, %c3_83, %c0_84], %577 {strides = array<i32>} : memref<1x17x16xf32, #tpu.memory_space<vmem>>, vector<1x1x16xf32>,
    %578 = arith.mulf %570, %20 : vector<17x16xf32>
    %cst_85 = arith.constant dense<0.000000e+00> : vector<16xf32>
    %579 = vector.multi_reduction <add>, %578, %cst_85 [0] : vector<17x16xf32> to vector<16xf32>
    %580 = vector.shape_cast %579 : vector<16xf32> to vector<1x16xf32>
    %581 = vector.broadcast %6 : f32 to vector<1x16xf32>
    %582 = arith.mulf %581, %580 : vector<1x16xf32>
    %c0_86 = arith.constant 0 : index
    %c3_87 = arith.constant 3 : index
    %c0_88 = arith.constant 0 : index
    %583 = vector.load %arg9[%c0_86, %c3_87, %c0_88] : memref<1x17x16xf32, #tpu.memory_space<vmem>>, vector<1x1x16xf32>
    %584 = vector.shape_cast %583 : vector<1x1x16xf32> to vector<1x16xf32>
    %585 = vector.shape_cast %582 : vector<1x16xf32> to vector<1x1x16xf32>
    tpu.vector_store %arg9[%c0_86, %c3_87, %c0_88], %585 {strides = array<i32>} : memref<1x17x16xf32, #tpu.memory_space<vmem>>, vector<1x1x16xf32>,
    %c4 = arith.constant 4 : index
    %586 = memref.load %arg7[%c4] : memref<136xf32, #tpu.memory_space<smem>>
    %587 = vector.broadcast %586 : f32 to vector<17x16xf32>
    %588 = arith.mulf %323, %587 : vector<17x16xf32>
    %c21 = arith.constant 21 : index
    %589 = memref.load %arg7[%c21] : memref<136xf32, #tpu.memory_space<smem>>
    %590 = vector.broadcast %589 : f32 to vector<17x16xf32>
    %591 = arith.mulf %326, %590 : vector<17x16xf32>
    %592 = arith.addf %588, %591 : vector<17x16xf32>
    %c38 = arith.constant 38 : index
    %593 = memref.load %arg7[%c38] : memref<136xf32, #tpu.memory_space<smem>>
    %594 = vector.broadcast %593 : f32 to vector<17x16xf32>
    %595 = arith.mulf %329, %594 : vector<17x16xf32>
    %596 = arith.addf %592, %595 : vector<17x16xf32>
    %c55 = arith.constant 55 : index
    %597 = memref.load %arg7[%c55] : memref<136xf32, #tpu.memory_space<smem>>
    %598 = vector.broadcast %597 : f32 to vector<17x16xf32>
    %599 = arith.mulf %332, %598 : vector<17x16xf32>
    %600 = arith.addf %596, %599 : vector<17x16xf32>
    %c72 = arith.constant 72 : index
    %601 = memref.load %arg7[%c72] : memref<136xf32, #tpu.memory_space<smem>>
    %602 = vector.broadcast %601 : f32 to vector<17x16xf32>
    %603 = arith.mulf %335, %602 : vector<17x16xf32>
    %604 = arith.addf %600, %603 : vector<17x16xf32>
    %c89 = arith.constant 89 : index
    %605 = memref.load %arg7[%c89] : memref<136xf32, #tpu.memory_space<smem>>
    %606 = vector.broadcast %605 : f32 to vector<17x16xf32>
    %607 = arith.mulf %338, %606 : vector<17x16xf32>
    %608 = arith.addf %604, %607 : vector<17x16xf32>
    %c106 = arith.constant 106 : index
    %609 = memref.load %arg7[%c106] : memref<136xf32, #tpu.memory_space<smem>>
    %610 = vector.broadcast %609 : f32 to vector<17x16xf32>
    %611 = arith.mulf %341, %610 : vector<17x16xf32>
    %612 = arith.addf %608, %611 : vector<17x16xf32>
    %c123 = arith.constant 123 : index
    %613 = memref.load %arg7[%c123] : memref<136xf32, #tpu.memory_space<smem>>
    %614 = vector.broadcast %613 : f32 to vector<17x16xf32>
    %615 = arith.mulf %344, %614 : vector<17x16xf32>
    %616 = arith.addf %612, %615 : vector<17x16xf32>
    %617 = vector.extract_strided_slice %19 {offsets = [4, 0], sizes = [1, 16], strides = [1, 1]} : vector<17x16xf32> to vector<1x16xf32>
    %618 = vector.broadcast %617 : vector<1x16xf32> to vector<17x16xf32>
    %619 = arith.mulf %618, %19 : vector<17x16xf32>
    %620 = arith.mulf %619, %616 : vector<17x16xf32>
    %c4_i32_89 = arith.constant 4 : i32
    %621 = vector.broadcast %c4_i32_89 : i32 to vector<17x1xi32>
    %622 = arith.cmpi eq, %345, %621 : vector<17x1xi32>
    %623 = vector.extract_strided_slice %19 {offsets = [4, 0], sizes = [1, 16], strides = [1, 1]} : vector<17x16xf32> to vector<1x16xf32>
    %cst_90 = arith.constant 0.000000e+00 : f32
    %624 = vector.shape_cast %622 : vector<17x1xi1> to vector<17x1xi1>
    %625 = vector.broadcast %624 : vector<17x1xi1> to vector<17x16xi1>
    %626 = vector.shape_cast %623 : vector<1x16xf32> to vector<1x16xf32>
    %627 = vector.broadcast %626 : vector<1x16xf32> to vector<17x16xf32>
    %628 = vector.broadcast %cst_90 : f32 to vector<17x16xf32>
    %629 = arith.select %625, %627, %628 : vector<17x16xi1>, vector<17x16xf32>
    %630 = arith.subf %629, %620 : vector<17x16xf32>
    %c0_91 = arith.constant 0 : index
    %c4_92 = arith.constant 4 : index
    %c0_93 = arith.constant 0 : index
    %c0_94 = arith.constant 0 : index
    %631 = vector.load %arg10[%c0_91, %c4_92, %c0_93, %c0_94] : memref<1x17x17x16xf32, #tpu.memory_space<vmem>>, vector<1x1x17x16xf32>
    %632 = vector.shape_cast %631 : vector<1x1x17x16xf32> to vector<17x16xf32>
    %633 = vector.shape_cast %630 : vector<17x16xf32> to vector<1x1x17x16xf32>
    tpu.vector_store %arg10[%c0_91, %c4_92, %c0_93, %c0_94], %633 {strides = array<i32>} : memref<1x17x17x16xf32, #tpu.memory_space<vmem>>, vector<1x1x17x16xf32>,
    %634 = vector.extract_strided_slice %620 {offsets = [4, 0], sizes = [1, 16], strides = [1, 1]} : vector<17x16xf32> to vector<1x16xf32>
    %c0_95 = arith.constant 0 : index
    %c4_96 = arith.constant 4 : index
    %c0_97 = arith.constant 0 : index
    %635 = vector.load %arg12[%c0_95, %c4_96, %c0_97] : memref<1x17x16xf32, #tpu.memory_space<vmem>>, vector<1x1x16xf32>
    %636 = vector.shape_cast %635 : vector<1x1x16xf32> to vector<1x16xf32>
    %637 = vector.shape_cast %634 : vector<1x16xf32> to vector<1x1x16xf32>
    tpu.vector_store %arg12[%c0_95, %c4_96, %c0_97], %637 {strides = array<i32>} : memref<1x17x16xf32, #tpu.memory_space<vmem>>, vector<1x1x16xf32>,
    %638 = arith.mulf %630, %20 : vector<17x16xf32>
    %cst_98 = arith.constant dense<0.000000e+00> : vector<16xf32>
    %639 = vector.multi_reduction <add>, %638, %cst_98 [0] : vector<17x16xf32> to vector<16xf32>
    %640 = vector.shape_cast %639 : vector<16xf32> to vector<1x16xf32>
    %641 = vector.broadcast %6 : f32 to vector<1x16xf32>
    %642 = arith.mulf %641, %640 : vector<1x16xf32>
    %c0_99 = arith.constant 0 : index
    %c4_100 = arith.constant 4 : index
    %c0_101 = arith.constant 0 : index
    %643 = vector.load %arg9[%c0_99, %c4_100, %c0_101] : memref<1x17x16xf32, #tpu.memory_space<vmem>>, vector<1x1x16xf32>
    %644 = vector.shape_cast %643 : vector<1x1x16xf32> to vector<1x16xf32>
    %645 = vector.shape_cast %642 : vector<1x16xf32> to vector<1x1x16xf32>
    tpu.vector_store %arg9[%c0_99, %c4_100, %c0_101], %645 {strides = array<i32>} : memref<1x17x16xf32, #tpu.memory_space<vmem>>, vector<1x1x16xf32>,
    %c5 = arith.constant 5 : index
    %646 = memref.load %arg7[%c5] : memref<136xf32, #tpu.memory_space<smem>>
    %647 = vector.broadcast %646 : f32 to vector<17x16xf32>
    %648 = arith.mulf %323, %647 : vector<17x16xf32>
    %c22 = arith.constant 22 : index
    %649 = memref.load %arg7[%c22] : memref<136xf32, #tpu.memory_space<smem>>
    %650 = vector.broadcast %649 : f32 to vector<17x16xf32>
    %651 = arith.mulf %326, %650 : vector<17x16xf32>
    %652 = arith.addf %648, %651 : vector<17x16xf32>
    %c39 = arith.constant 39 : index
    %653 = memref.load %arg7[%c39] : memref<136xf32, #tpu.memory_space<smem>>
    %654 = vector.broadcast %653 : f32 to vector<17x16xf32>
    %655 = arith.mulf %329, %654 : vector<17x16xf32>
    %656 = arith.addf %652, %655 : vector<17x16xf32>
    %c56 = arith.constant 56 : index
    %657 = memref.load %arg7[%c56] : memref<136xf32, #tpu.memory_space<smem>>
    %658 = vector.broadcast %657 : f32 to vector<17x16xf32>
    %659 = arith.mulf %332, %658 : vector<17x16xf32>
    %660 = arith.addf %656, %659 : vector<17x16xf32>
    %c73 = arith.constant 73 : index
    %661 = memref.load %arg7[%c73] : memref<136xf32, #tpu.memory_space<smem>>
    %662 = vector.broadcast %661 : f32 to vector<17x16xf32>
    %663 = arith.mulf %335, %662 : vector<17x16xf32>
    %664 = arith.addf %660, %663 : vector<17x16xf32>
    %c90 = arith.constant 90 : index
    %665 = memref.load %arg7[%c90] : memref<136xf32, #tpu.memory_space<smem>>
    %666 = vector.broadcast %665 : f32 to vector<17x16xf32>
    %667 = arith.mulf %338, %666 : vector<17x16xf32>
    %668 = arith.addf %664, %667 : vector<17x16xf32>
    %c107 = arith.constant 107 : index
    %669 = memref.load %arg7[%c107] : memref<136xf32, #tpu.memory_space<smem>>
    %670 = vector.broadcast %669 : f32 to vector<17x16xf32>
    %671 = arith.mulf %341, %670 : vector<17x16xf32>
    %672 = arith.addf %668, %671 : vector<17x16xf32>
    %c124 = arith.constant 124 : index
    %673 = memref.load %arg7[%c124] : memref<136xf32, #tpu.memory_space<smem>>
    %674 = vector.broadcast %673 : f32 to vector<17x16xf32>
    %675 = arith.mulf %344, %674 : vector<17x16xf32>
    %676 = arith.addf %672, %675 : vector<17x16xf32>
    %677 = vector.extract_strided_slice %19 {offsets = [5, 0], sizes = [1, 16], strides = [1, 1]} : vector<17x16xf32> to vector<1x16xf32>
    %678 = vector.broadcast %677 : vector<1x16xf32> to vector<17x16xf32>
    %679 = arith.mulf %678, %19 : vector<17x16xf32>
    %680 = arith.mulf %679, %676 : vector<17x16xf32>
    %c5_i32_102 = arith.constant 5 : i32
    %681 = vector.broadcast %c5_i32_102 : i32 to vector<17x1xi32>
    %682 = arith.cmpi eq, %345, %681 : vector<17x1xi32>
    %683 = vector.extract_strided_slice %19 {offsets = [5, 0], sizes = [1, 16], strides = [1, 1]} : vector<17x16xf32> to vector<1x16xf32>
    %cst_103 = arith.constant 0.000000e+00 : f32
    %684 = vector.shape_cast %682 : vector<17x1xi1> to vector<17x1xi1>
    %685 = vector.broadcast %684 : vector<17x1xi1> to vector<17x16xi1>
    %686 = vector.shape_cast %683 : vector<1x16xf32> to vector<1x16xf32>
    %687 = vector.broadcast %686 : vector<1x16xf32> to vector<17x16xf32>
    %688 = vector.broadcast %cst_103 : f32 to vector<17x16xf32>
    %689 = arith.select %685, %687, %688 : vector<17x16xi1>, vector<17x16xf32>
    %690 = arith.subf %689, %680 : vector<17x16xf32>
    %c0_104 = arith.constant 0 : index
    %c5_105 = arith.constant 5 : index
    %c0_106 = arith.constant 0 : index
    %c0_107 = arith.constant 0 : index
    %691 = vector.load %arg10[%c0_104, %c5_105, %c0_106, %c0_107] : memref<1x17x17x16xf32, #tpu.memory_space<vmem>>, vector<1x1x17x16xf32>
    %692 = vector.shape_cast %691 : vector<1x1x17x16xf32> to vector<17x16xf32>
    %693 = vector.shape_cast %690 : vector<17x16xf32> to vector<1x1x17x16xf32>
    tpu.vector_store %arg10[%c0_104, %c5_105, %c0_106, %c0_107], %693 {strides = array<i32>} : memref<1x17x17x16xf32, #tpu.memory_space<vmem>>, vector<1x1x17x16xf32>,
    %694 = vector.extract_strided_slice %680 {offsets = [5, 0], sizes = [1, 16], strides = [1, 1]} : vector<17x16xf32> to vector<1x16xf32>
    %c0_108 = arith.constant 0 : index
    %c5_109 = arith.constant 5 : index
    %c0_110 = arith.constant 0 : index
    %695 = vector.load %arg12[%c0_108, %c5_109, %c0_110] : memref<1x17x16xf32, #tpu.memory_space<vmem>>, vector<1x1x16xf32>
    %696 = vector.shape_cast %695 : vector<1x1x16xf32> to vector<1x16xf32>
    %697 = vector.shape_cast %694 : vector<1x16xf32> to vector<1x1x16xf32>
    tpu.vector_store %arg12[%c0_108, %c5_109, %c0_110], %697 {strides = array<i32>} : memref<1x17x16xf32, #tpu.memory_space<vmem>>, vector<1x1x16xf32>,
    %698 = arith.mulf %690, %20 : vector<17x16xf32>
    %cst_111 = arith.constant dense<0.000000e+00> : vector<16xf32>
    %699 = vector.multi_reduction <add>, %698, %cst_111 [0] : vector<17x16xf32> to vector<16xf32>
    %700 = vector.shape_cast %699 : vector<16xf32> to vector<1x16xf32>
    %701 = vector.broadcast %6 : f32 to vector<1x16xf32>
    %702 = arith.mulf %701, %700 : vector<1x16xf32>
    %c0_112 = arith.constant 0 : index
    %c5_113 = arith.constant 5 : index
    %c0_114 = arith.constant 0 : index
    %703 = vector.load %arg9[%c0_112, %c5_113, %c0_114] : memref<1x17x16xf32, #tpu.memory_space<vmem>>, vector<1x1x16xf32>
    %704 = vector.shape_cast %703 : vector<1x1x16xf32> to vector<1x16xf32>
    %705 = vector.shape_cast %702 : vector<1x16xf32> to vector<1x1x16xf32>
    tpu.vector_store %arg9[%c0_112, %c5_113, %c0_114], %705 {strides = array<i32>} : memref<1x17x16xf32, #tpu.memory_space<vmem>>, vector<1x1x16xf32>,
    %c6 = arith.constant 6 : index
    %706 = memref.load %arg7[%c6] : memref<136xf32, #tpu.memory_space<smem>>
    %707 = vector.broadcast %706 : f32 to vector<17x16xf32>
    %708 = arith.mulf %323, %707 : vector<17x16xf32>
    %c23 = arith.constant 23 : index
    %709 = memref.load %arg7[%c23] : memref<136xf32, #tpu.memory_space<smem>>
    %710 = vector.broadcast %709 : f32 to vector<17x16xf32>
    %711 = arith.mulf %326, %710 : vector<17x16xf32>
    %712 = arith.addf %708, %711 : vector<17x16xf32>
    %c40 = arith.constant 40 : index
    %713 = memref.load %arg7[%c40] : memref<136xf32, #tpu.memory_space<smem>>
    %714 = vector.broadcast %713 : f32 to vector<17x16xf32>
    %715 = arith.mulf %329, %714 : vector<17x16xf32>
    %716 = arith.addf %712, %715 : vector<17x16xf32>
    %c57 = arith.constant 57 : index
    %717 = memref.load %arg7[%c57] : memref<136xf32, #tpu.memory_space<smem>>
    %718 = vector.broadcast %717 : f32 to vector<17x16xf32>
    %719 = arith.mulf %332, %718 : vector<17x16xf32>
    %720 = arith.addf %716, %719 : vector<17x16xf32>
    %c74 = arith.constant 74 : index
    %721 = memref.load %arg7[%c74] : memref<136xf32, #tpu.memory_space<smem>>
    %722 = vector.broadcast %721 : f32 to vector<17x16xf32>
    %723 = arith.mulf %335, %722 : vector<17x16xf32>
    %724 = arith.addf %720, %723 : vector<17x16xf32>
    %c91 = arith.constant 91 : index
    %725 = memref.load %arg7[%c91] : memref<136xf32, #tpu.memory_space<smem>>
    %726 = vector.broadcast %725 : f32 to vector<17x16xf32>
    %727 = arith.mulf %338, %726 : vector<17x16xf32>
    %728 = arith.addf %724, %727 : vector<17x16xf32>
    %c108 = arith.constant 108 : index
    %729 = memref.load %arg7[%c108] : memref<136xf32, #tpu.memory_space<smem>>
    %730 = vector.broadcast %729 : f32 to vector<17x16xf32>
    %731 = arith.mulf %341, %730 : vector<17x16xf32>
    %732 = arith.addf %728, %731 : vector<17x16xf32>
    %c125 = arith.constant 125 : index
    %733 = memref.load %arg7[%c125] : memref<136xf32, #tpu.memory_space<smem>>
    %734 = vector.broadcast %733 : f32 to vector<17x16xf32>
    %735 = arith.mulf %344, %734 : vector<17x16xf32>
    %736 = arith.addf %732, %735 : vector<17x16xf32>
    %737 = vector.extract_strided_slice %19 {offsets = [6, 0], sizes = [1, 16], strides = [1, 1]} : vector<17x16xf32> to vector<1x16xf32>
    %738 = vector.broadcast %737 : vector<1x16xf32> to vector<17x16xf32>
    %739 = arith.mulf %738, %19 : vector<17x16xf32>
    %740 = arith.mulf %739, %736 : vector<17x16xf32>
    %c6_i32_115 = arith.constant 6 : i32
    %741 = vector.broadcast %c6_i32_115 : i32 to vector<17x1xi32>
    %742 = arith.cmpi eq, %345, %741 : vector<17x1xi32>
    %743 = vector.extract_strided_slice %19 {offsets = [6, 0], sizes = [1, 16], strides = [1, 1]} : vector<17x16xf32> to vector<1x16xf32>
    %cst_116 = arith.constant 0.000000e+00 : f32
    %744 = vector.shape_cast %742 : vector<17x1xi1> to vector<17x1xi1>
    %745 = vector.broadcast %744 : vector<17x1xi1> to vector<17x16xi1>
    %746 = vector.shape_cast %743 : vector<1x16xf32> to vector<1x16xf32>
    %747 = vector.broadcast %746 : vector<1x16xf32> to vector<17x16xf32>
    %748 = vector.broadcast %cst_116 : f32 to vector<17x16xf32>
    %749 = arith.select %745, %747, %748 : vector<17x16xi1>, vector<17x16xf32>
    %750 = arith.subf %749, %740 : vector<17x16xf32>
    %c0_117 = arith.constant 0 : index
    %c6_118 = arith.constant 6 : index
    %c0_119 = arith.constant 0 : index
    %c0_120 = arith.constant 0 : index
    %751 = vector.load %arg10[%c0_117, %c6_118, %c0_119, %c0_120] : memref<1x17x17x16xf32, #tpu.memory_space<vmem>>, vector<1x1x17x16xf32>
    %752 = vector.shape_cast %751 : vector<1x1x17x16xf32> to vector<17x16xf32>
    %753 = vector.shape_cast %750 : vector<17x16xf32> to vector<1x1x17x16xf32>
    tpu.vector_store %arg10[%c0_117, %c6_118, %c0_119, %c0_120], %753 {strides = array<i32>} : memref<1x17x17x16xf32, #tpu.memory_space<vmem>>, vector<1x1x17x16xf32>,
    %754 = vector.extract_strided_slice %740 {offsets = [6, 0], sizes = [1, 16], strides = [1, 1]} : vector<17x16xf32> to vector<1x16xf32>
    %c0_121 = arith.constant 0 : index
    %c6_122 = arith.constant 6 : index
    %c0_123 = arith.constant 0 : index
    %755 = vector.load %arg12[%c0_121, %c6_122, %c0_123] : memref<1x17x16xf32, #tpu.memory_space<vmem>>, vector<1x1x16xf32>
    %756 = vector.shape_cast %755 : vector<1x1x16xf32> to vector<1x16xf32>
    %757 = vector.shape_cast %754 : vector<1x16xf32> to vector<1x1x16xf32>
    tpu.vector_store %arg12[%c0_121, %c6_122, %c0_123], %757 {strides = array<i32>} : memref<1x17x16xf32, #tpu.memory_space<vmem>>, vector<1x1x16xf32>,
    %758 = arith.mulf %750, %20 : vector<17x16xf32>
    %cst_124 = arith.constant dense<0.000000e+00> : vector<16xf32>
    %759 = vector.multi_reduction <add>, %758, %cst_124 [0] : vector<17x16xf32> to vector<16xf32>
    %760 = vector.shape_cast %759 : vector<16xf32> to vector<1x16xf32>
    %761 = vector.broadcast %6 : f32 to vector<1x16xf32>
    %762 = arith.mulf %761, %760 : vector<1x16xf32>
    %c0_125 = arith.constant 0 : index
    %c6_126 = arith.constant 6 : index
    %c0_127 = arith.constant 0 : index
    %763 = vector.load %arg9[%c0_125, %c6_126, %c0_127] : memref<1x17x16xf32, #tpu.memory_space<vmem>>, vector<1x1x16xf32>
    %764 = vector.shape_cast %763 : vector<1x1x16xf32> to vector<1x16xf32>
    %765 = vector.shape_cast %762 : vector<1x16xf32> to vector<1x1x16xf32>
    tpu.vector_store %arg9[%c0_125, %c6_126, %c0_127], %765 {strides = array<i32>} : memref<1x17x16xf32, #tpu.memory_space<vmem>>, vector<1x1x16xf32>,
    %c7 = arith.constant 7 : index
    %766 = memref.load %arg7[%c7] : memref<136xf32, #tpu.memory_space<smem>>
    %767 = vector.broadcast %766 : f32 to vector<17x16xf32>
    %768 = arith.mulf %323, %767 : vector<17x16xf32>
    %c24 = arith.constant 24 : index
    %769 = memref.load %arg7[%c24] : memref<136xf32, #tpu.memory_space<smem>>
    %770 = vector.broadcast %769 : f32 to vector<17x16xf32>
    %771 = arith.mulf %326, %770 : vector<17x16xf32>
    %772 = arith.addf %768, %771 : vector<17x16xf32>
    %c41 = arith.constant 41 : index
    %773 = memref.load %arg7[%c41] : memref<136xf32, #tpu.memory_space<smem>>
    %774 = vector.broadcast %773 : f32 to vector<17x16xf32>
    %775 = arith.mulf %329, %774 : vector<17x16xf32>
    %776 = arith.addf %772, %775 : vector<17x16xf32>
    %c58 = arith.constant 58 : index
    %777 = memref.load %arg7[%c58] : memref<136xf32, #tpu.memory_space<smem>>
    %778 = vector.broadcast %777 : f32 to vector<17x16xf32>
    %779 = arith.mulf %332, %778 : vector<17x16xf32>
    %780 = arith.addf %776, %779 : vector<17x16xf32>
    %c75 = arith.constant 75 : index
    %781 = memref.load %arg7[%c75] : memref<136xf32, #tpu.memory_space<smem>>
    %782 = vector.broadcast %781 : f32 to vector<17x16xf32>
    %783 = arith.mulf %335, %782 : vector<17x16xf32>
    %784 = arith.addf %780, %783 : vector<17x16xf32>
    %c92 = arith.constant 92 : index
    %785 = memref.load %arg7[%c92] : memref<136xf32, #tpu.memory_space<smem>>
    %786 = vector.broadcast %785 : f32 to vector<17x16xf32>
    %787 = arith.mulf %338, %786 : vector<17x16xf32>
    %788 = arith.addf %784, %787 : vector<17x16xf32>
    %c109 = arith.constant 109 : index
    %789 = memref.load %arg7[%c109] : memref<136xf32, #tpu.memory_space<smem>>
    %790 = vector.broadcast %789 : f32 to vector<17x16xf32>
    %791 = arith.mulf %341, %790 : vector<17x16xf32>
    %792 = arith.addf %788, %791 : vector<17x16xf32>
    %c126 = arith.constant 126 : index
    %793 = memref.load %arg7[%c126] : memref<136xf32, #tpu.memory_space<smem>>
    %794 = vector.broadcast %793 : f32 to vector<17x16xf32>
    %795 = arith.mulf %344, %794 : vector<17x16xf32>
    %796 = arith.addf %792, %795 : vector<17x16xf32>
    %797 = vector.extract_strided_slice %19 {offsets = [7, 0], sizes = [1, 16], strides = [1, 1]} : vector<17x16xf32> to vector<1x16xf32>
    %798 = vector.broadcast %797 : vector<1x16xf32> to vector<17x16xf32>
    %799 = arith.mulf %798, %19 : vector<17x16xf32>
    %800 = arith.mulf %799, %796 : vector<17x16xf32>
    %c7_i32_128 = arith.constant 7 : i32
    %801 = vector.broadcast %c7_i32_128 : i32 to vector<17x1xi32>
    %802 = arith.cmpi eq, %345, %801 : vector<17x1xi32>
    %803 = vector.extract_strided_slice %19 {offsets = [7, 0], sizes = [1, 16], strides = [1, 1]} : vector<17x16xf32> to vector<1x16xf32>
    %cst_129 = arith.constant 0.000000e+00 : f32
    %804 = vector.shape_cast %802 : vector<17x1xi1> to vector<17x1xi1>
    %805 = vector.broadcast %804 : vector<17x1xi1> to vector<17x16xi1>
    %806 = vector.shape_cast %803 : vector<1x16xf32> to vector<1x16xf32>
    %807 = vector.broadcast %806 : vector<1x16xf32> to vector<17x16xf32>
    %808 = vector.broadcast %cst_129 : f32 to vector<17x16xf32>
    %809 = arith.select %805, %807, %808 : vector<17x16xi1>, vector<17x16xf32>
    %810 = arith.subf %809, %800 : vector<17x16xf32>
    %c0_130 = arith.constant 0 : index
    %c7_131 = arith.constant 7 : index
    %c0_132 = arith.constant 0 : index
    %c0_133 = arith.constant 0 : index
    %811 = vector.load %arg10[%c0_130, %c7_131, %c0_132, %c0_133] : memref<1x17x17x16xf32, #tpu.memory_space<vmem>>, vector<1x1x17x16xf32>
    %812 = vector.shape_cast %811 : vector<1x1x17x16xf32> to vector<17x16xf32>
    %813 = vector.shape_cast %810 : vector<17x16xf32> to vector<1x1x17x16xf32>
    tpu.vector_store %arg10[%c0_130, %c7_131, %c0_132, %c0_133], %813 {strides = array<i32>} : memref<1x17x17x16xf32, #tpu.memory_space<vmem>>, vector<1x1x17x16xf32>,
    %814 = vector.extract_strided_slice %800 {offsets = [7, 0], sizes = [1, 16], strides = [1, 1]} : vector<17x16xf32> to vector<1x16xf32>
    %c0_134 = arith.constant 0 : index
    %c7_135 = arith.constant 7 : index
    %c0_136 = arith.constant 0 : index
    %815 = vector.load %arg12[%c0_134, %c7_135, %c0_136] : memref<1x17x16xf32, #tpu.memory_space<vmem>>, vector<1x1x16xf32>
    %816 = vector.shape_cast %815 : vector<1x1x16xf32> to vector<1x16xf32>
    %817 = vector.shape_cast %814 : vector<1x16xf32> to vector<1x1x16xf32>
    tpu.vector_store %arg12[%c0_134, %c7_135, %c0_136], %817 {strides = array<i32>} : memref<1x17x16xf32, #tpu.memory_space<vmem>>, vector<1x1x16xf32>,
    %818 = arith.mulf %810, %20 : vector<17x16xf32>
    %cst_137 = arith.constant dense<0.000000e+00> : vector<16xf32>
    %819 = vector.multi_reduction <add>, %818, %cst_137 [0] : vector<17x16xf32> to vector<16xf32>
    %820 = vector.shape_cast %819 : vector<16xf32> to vector<1x16xf32>
    %821 = vector.broadcast %6 : f32 to vector<1x16xf32>
    %822 = arith.mulf %821, %820 : vector<1x16xf32>
    %c0_138 = arith.constant 0 : index
    %c7_139 = arith.constant 7 : index
    %c0_140 = arith.constant 0 : index
    %823 = vector.load %arg9[%c0_138, %c7_139, %c0_140] : memref<1x17x16xf32, #tpu.memory_space<vmem>>, vector<1x1x16xf32>
    %824 = vector.shape_cast %823 : vector<1x1x16xf32> to vector<1x16xf32>
    %825 = vector.shape_cast %822 : vector<1x16xf32> to vector<1x1x16xf32>
    tpu.vector_store %arg9[%c0_138, %c7_139, %c0_140], %825 {strides = array<i32>} : memref<1x17x16xf32, #tpu.memory_space<vmem>>, vector<1x1x16xf32>,
    %c8 = arith.constant 8 : index
    %826 = memref.load %arg7[%c8] : memref<136xf32, #tpu.memory_space<smem>>
    %827 = vector.broadcast %826 : f32 to vector<17x16xf32>
    %828 = arith.mulf %323, %827 : vector<17x16xf32>
    %c25 = arith.constant 25 : index
    %829 = memref.load %arg7[%c25] : memref<136xf32, #tpu.memory_space<smem>>
    %830 = vector.broadcast %829 : f32 to vector<17x16xf32>
    %831 = arith.mulf %326, %830 : vector<17x16xf32>
    %832 = arith.addf %828, %831 : vector<17x16xf32>
    %c42 = arith.constant 42 : index
    %833 = memref.load %arg7[%c42] : memref<136xf32, #tpu.memory_space<smem>>
    %834 = vector.broadcast %833 : f32 to vector<17x16xf32>
    %835 = arith.mulf %329, %834 : vector<17x16xf32>
    %836 = arith.addf %832, %835 : vector<17x16xf32>
    %c59 = arith.constant 59 : index
    %837 = memref.load %arg7[%c59] : memref<136xf32, #tpu.memory_space<smem>>
    %838 = vector.broadcast %837 : f32 to vector<17x16xf32>
    %839 = arith.mulf %332, %838 : vector<17x16xf32>
    %840 = arith.addf %836, %839 : vector<17x16xf32>
    %c76 = arith.constant 76 : index
    %841 = memref.load %arg7[%c76] : memref<136xf32, #tpu.memory_space<smem>>
    %842 = vector.broadcast %841 : f32 to vector<17x16xf32>
    %843 = arith.mulf %335, %842 : vector<17x16xf32>
    %844 = arith.addf %840, %843 : vector<17x16xf32>
    %c93 = arith.constant 93 : index
    %845 = memref.load %arg7[%c93] : memref<136xf32, #tpu.memory_space<smem>>
    %846 = vector.broadcast %845 : f32 to vector<17x16xf32>
    %847 = arith.mulf %338, %846 : vector<17x16xf32>
    %848 = arith.addf %844, %847 : vector<17x16xf32>
    %c110 = arith.constant 110 : index
    %849 = memref.load %arg7[%c110] : memref<136xf32, #tpu.memory_space<smem>>
    %850 = vector.broadcast %849 : f32 to vector<17x16xf32>
    %851 = arith.mulf %341, %850 : vector<17x16xf32>
    %852 = arith.addf %848, %851 : vector<17x16xf32>
    %c127 = arith.constant 127 : index
    %853 = memref.load %arg7[%c127] : memref<136xf32, #tpu.memory_space<smem>>
    %854 = vector.broadcast %853 : f32 to vector<17x16xf32>
    %855 = arith.mulf %344, %854 : vector<17x16xf32>
    %856 = arith.addf %852, %855 : vector<17x16xf32>
    %857 = vector.extract_strided_slice %19 {offsets = [8, 0], sizes = [1, 16], strides = [1, 1]} : vector<17x16xf32> to vector<1x16xf32>
    %858 = vector.broadcast %857 : vector<1x16xf32> to vector<17x16xf32>
    %859 = arith.mulf %858, %19 : vector<17x16xf32>
    %860 = arith.mulf %859, %856 : vector<17x16xf32>
    %c8_i32 = arith.constant 8 : i32
    %861 = vector.broadcast %c8_i32 : i32 to vector<17x1xi32>
    %862 = arith.cmpi eq, %345, %861 : vector<17x1xi32>
    %863 = vector.extract_strided_slice %19 {offsets = [8, 0], sizes = [1, 16], strides = [1, 1]} : vector<17x16xf32> to vector<1x16xf32>
    %cst_141 = arith.constant 0.000000e+00 : f32
    %864 = vector.shape_cast %862 : vector<17x1xi1> to vector<17x1xi1>
    %865 = vector.broadcast %864 : vector<17x1xi1> to vector<17x16xi1>
    %866 = vector.shape_cast %863 : vector<1x16xf32> to vector<1x16xf32>
    %867 = vector.broadcast %866 : vector<1x16xf32> to vector<17x16xf32>
    %868 = vector.broadcast %cst_141 : f32 to vector<17x16xf32>
    %869 = arith.select %865, %867, %868 : vector<17x16xi1>, vector<17x16xf32>
    %870 = arith.subf %869, %860 : vector<17x16xf32>
    %c0_142 = arith.constant 0 : index
    %c8_143 = arith.constant 8 : index
    %c0_144 = arith.constant 0 : index
    %c0_145 = arith.constant 0 : index
    %871 = vector.load %arg10[%c0_142, %c8_143, %c0_144, %c0_145] : memref<1x17x17x16xf32, #tpu.memory_space<vmem>>, vector<1x1x17x16xf32>
    %872 = vector.shape_cast %871 : vector<1x1x17x16xf32> to vector<17x16xf32>
    %873 = vector.shape_cast %870 : vector<17x16xf32> to vector<1x1x17x16xf32>
    tpu.vector_store %arg10[%c0_142, %c8_143, %c0_144, %c0_145], %873 {strides = array<i32>} : memref<1x17x17x16xf32, #tpu.memory_space<vmem>>, vector<1x1x17x16xf32>,
    %874 = vector.extract_strided_slice %860 {offsets = [8, 0], sizes = [1, 16], strides = [1, 1]} : vector<17x16xf32> to vector<1x16xf32>
    %c0_146 = arith.constant 0 : index
    %c8_147 = arith.constant 8 : index
    %c0_148 = arith.constant 0 : index
    %875 = vector.load %arg12[%c0_146, %c8_147, %c0_148] : memref<1x17x16xf32, #tpu.memory_space<vmem>>, vector<1x1x16xf32>
    %876 = vector.shape_cast %875 : vector<1x1x16xf32> to vector<1x16xf32>
    %877 = vector.shape_cast %874 : vector<1x16xf32> to vector<1x1x16xf32>
    tpu.vector_store %arg12[%c0_146, %c8_147, %c0_148], %877 {strides = array<i32>} : memref<1x17x16xf32, #tpu.memory_space<vmem>>, vector<1x1x16xf32>,
    %878 = arith.mulf %870, %20 : vector<17x16xf32>
    %cst_149 = arith.constant dense<0.000000e+00> : vector<16xf32>
    %879 = vector.multi_reduction <add>, %878, %cst_149 [0] : vector<17x16xf32> to vector<16xf32>
    %880 = vector.shape_cast %879 : vector<16xf32> to vector<1x16xf32>
    %881 = vector.broadcast %6 : f32 to vector<1x16xf32>
    %882 = arith.mulf %881, %880 : vector<1x16xf32>
    %c0_150 = arith.constant 0 : index
    %c8_151 = arith.constant 8 : index
    %c0_152 = arith.constant 0 : index
    %883 = vector.load %arg9[%c0_150, %c8_151, %c0_152] : memref<1x17x16xf32, #tpu.memory_space<vmem>>, vector<1x1x16xf32>
    %884 = vector.shape_cast %883 : vector<1x1x16xf32> to vector<1x16xf32>
    %885 = vector.shape_cast %882 : vector<1x16xf32> to vector<1x1x16xf32>
    tpu.vector_store %arg9[%c0_150, %c8_151, %c0_152], %885 {strides = array<i32>} : memref<1x17x16xf32, #tpu.memory_space<vmem>>, vector<1x1x16xf32>,
    %c9 = arith.constant 9 : index
    %886 = memref.load %arg7[%c9] : memref<136xf32, #tpu.memory_space<smem>>
    %887 = vector.broadcast %886 : f32 to vector<17x16xf32>
    %888 = arith.mulf %323, %887 : vector<17x16xf32>
    %c26 = arith.constant 26 : index
    %889 = memref.load %arg7[%c26] : memref<136xf32, #tpu.memory_space<smem>>
    %890 = vector.broadcast %889 : f32 to vector<17x16xf32>
    %891 = arith.mulf %326, %890 : vector<17x16xf32>
    %892 = arith.addf %888, %891 : vector<17x16xf32>
    %c43 = arith.constant 43 : index
    %893 = memref.load %arg7[%c43] : memref<136xf32, #tpu.memory_space<smem>>
    %894 = vector.broadcast %893 : f32 to vector<17x16xf32>
    %895 = arith.mulf %329, %894 : vector<17x16xf32>
    %896 = arith.addf %892, %895 : vector<17x16xf32>
    %c60 = arith.constant 60 : index
    %897 = memref.load %arg7[%c60] : memref<136xf32, #tpu.memory_space<smem>>
    %898 = vector.broadcast %897 : f32 to vector<17x16xf32>
    %899 = arith.mulf %332, %898 : vector<17x16xf32>
    %900 = arith.addf %896, %899 : vector<17x16xf32>
    %c77 = arith.constant 77 : index
    %901 = memref.load %arg7[%c77] : memref<136xf32, #tpu.memory_space<smem>>
    %902 = vector.broadcast %901 : f32 to vector<17x16xf32>
    %903 = arith.mulf %335, %902 : vector<17x16xf32>
    %904 = arith.addf %900, %903 : vector<17x16xf32>
    %c94 = arith.constant 94 : index
    %905 = memref.load %arg7[%c94] : memref<136xf32, #tpu.memory_space<smem>>
    %906 = vector.broadcast %905 : f32 to vector<17x16xf32>
    %907 = arith.mulf %338, %906 : vector<17x16xf32>
    %908 = arith.addf %904, %907 : vector<17x16xf32>
    %c111 = arith.constant 111 : index
    %909 = memref.load %arg7[%c111] : memref<136xf32, #tpu.memory_space<smem>>
    %910 = vector.broadcast %909 : f32 to vector<17x16xf32>
    %911 = arith.mulf %341, %910 : vector<17x16xf32>
    %912 = arith.addf %908, %911 : vector<17x16xf32>
    %c128 = arith.constant 128 : index
    %913 = memref.load %arg7[%c128] : memref<136xf32, #tpu.memory_space<smem>>
    %914 = vector.broadcast %913 : f32 to vector<17x16xf32>
    %915 = arith.mulf %344, %914 : vector<17x16xf32>
    %916 = arith.addf %912, %915 : vector<17x16xf32>
    %917 = vector.extract_strided_slice %19 {offsets = [9, 0], sizes = [1, 16], strides = [1, 1]} : vector<17x16xf32> to vector<1x16xf32>
    %918 = vector.broadcast %917 : vector<1x16xf32> to vector<17x16xf32>
    %919 = arith.mulf %918, %19 : vector<17x16xf32>
    %920 = arith.mulf %919, %916 : vector<17x16xf32>
    %c9_i32 = arith.constant 9 : i32
    %921 = vector.broadcast %c9_i32 : i32 to vector<17x1xi32>
    %922 = arith.cmpi eq, %345, %921 : vector<17x1xi32>
    %923 = vector.extract_strided_slice %19 {offsets = [9, 0], sizes = [1, 16], strides = [1, 1]} : vector<17x16xf32> to vector<1x16xf32>
    %cst_153 = arith.constant 0.000000e+00 : f32
    %924 = vector.shape_cast %922 : vector<17x1xi1> to vector<17x1xi1>
    %925 = vector.broadcast %924 : vector<17x1xi1> to vector<17x16xi1>
    %926 = vector.shape_cast %923 : vector<1x16xf32> to vector<1x16xf32>
    %927 = vector.broadcast %926 : vector<1x16xf32> to vector<17x16xf32>
    %928 = vector.broadcast %cst_153 : f32 to vector<17x16xf32>
    %929 = arith.select %925, %927, %928 : vector<17x16xi1>, vector<17x16xf32>
    %930 = arith.subf %929, %920 : vector<17x16xf32>
    %c0_154 = arith.constant 0 : index
    %c9_155 = arith.constant 9 : index
    %c0_156 = arith.constant 0 : index
    %c0_157 = arith.constant 0 : index
    %931 = vector.load %arg10[%c0_154, %c9_155, %c0_156, %c0_157] : memref<1x17x17x16xf32, #tpu.memory_space<vmem>>, vector<1x1x17x16xf32>
    %932 = vector.shape_cast %931 : vector<1x1x17x16xf32> to vector<17x16xf32>
    %933 = vector.shape_cast %930 : vector<17x16xf32> to vector<1x1x17x16xf32>
    tpu.vector_store %arg10[%c0_154, %c9_155, %c0_156, %c0_157], %933 {strides = array<i32>} : memref<1x17x17x16xf32, #tpu.memory_space<vmem>>, vector<1x1x17x16xf32>,
    %934 = vector.extract_strided_slice %920 {offsets = [9, 0], sizes = [1, 16], strides = [1, 1]} : vector<17x16xf32> to vector<1x16xf32>
    %c0_158 = arith.constant 0 : index
    %c9_159 = arith.constant 9 : index
    %c0_160 = arith.constant 0 : index
    %935 = vector.load %arg12[%c0_158, %c9_159, %c0_160] : memref<1x17x16xf32, #tpu.memory_space<vmem>>, vector<1x1x16xf32>
    %936 = vector.shape_cast %935 : vector<1x1x16xf32> to vector<1x16xf32>
    %937 = vector.shape_cast %934 : vector<1x16xf32> to vector<1x1x16xf32>
    tpu.vector_store %arg12[%c0_158, %c9_159, %c0_160], %937 {strides = array<i32>} : memref<1x17x16xf32, #tpu.memory_space<vmem>>, vector<1x1x16xf32>,
    %938 = arith.mulf %930, %20 : vector<17x16xf32>
    %cst_161 = arith.constant dense<0.000000e+00> : vector<16xf32>
    %939 = vector.multi_reduction <add>, %938, %cst_161 [0] : vector<17x16xf32> to vector<16xf32>
    %940 = vector.shape_cast %939 : vector<16xf32> to vector<1x16xf32>
    %941 = vector.broadcast %6 : f32 to vector<1x16xf32>
    %942 = arith.mulf %941, %940 : vector<1x16xf32>
    %c0_162 = arith.constant 0 : index
    %c9_163 = arith.constant 9 : index
    %c0_164 = arith.constant 0 : index
    %943 = vector.load %arg9[%c0_162, %c9_163, %c0_164] : memref<1x17x16xf32, #tpu.memory_space<vmem>>, vector<1x1x16xf32>
    %944 = vector.shape_cast %943 : vector<1x1x16xf32> to vector<1x16xf32>
    %945 = vector.shape_cast %942 : vector<1x16xf32> to vector<1x1x16xf32>
    tpu.vector_store %arg9[%c0_162, %c9_163, %c0_164], %945 {strides = array<i32>} : memref<1x17x16xf32, #tpu.memory_space<vmem>>, vector<1x1x16xf32>,
    %c10 = arith.constant 10 : index
    %946 = memref.load %arg7[%c10] : memref<136xf32, #tpu.memory_space<smem>>
    %947 = vector.broadcast %946 : f32 to vector<17x16xf32>
    %948 = arith.mulf %323, %947 : vector<17x16xf32>
    %c27 = arith.constant 27 : index
    %949 = memref.load %arg7[%c27] : memref<136xf32, #tpu.memory_space<smem>>
    %950 = vector.broadcast %949 : f32 to vector<17x16xf32>
    %951 = arith.mulf %326, %950 : vector<17x16xf32>
    %952 = arith.addf %948, %951 : vector<17x16xf32>
    %c44 = arith.constant 44 : index
    %953 = memref.load %arg7[%c44] : memref<136xf32, #tpu.memory_space<smem>>
    %954 = vector.broadcast %953 : f32 to vector<17x16xf32>
    %955 = arith.mulf %329, %954 : vector<17x16xf32>
    %956 = arith.addf %952, %955 : vector<17x16xf32>
    %c61 = arith.constant 61 : index
    %957 = memref.load %arg7[%c61] : memref<136xf32, #tpu.memory_space<smem>>
    %958 = vector.broadcast %957 : f32 to vector<17x16xf32>
    %959 = arith.mulf %332, %958 : vector<17x16xf32>
    %960 = arith.addf %956, %959 : vector<17x16xf32>
    %c78 = arith.constant 78 : index
    %961 = memref.load %arg7[%c78] : memref<136xf32, #tpu.memory_space<smem>>
    %962 = vector.broadcast %961 : f32 to vector<17x16xf32>
    %963 = arith.mulf %335, %962 : vector<17x16xf32>
    %964 = arith.addf %960, %963 : vector<17x16xf32>
    %c95 = arith.constant 95 : index
    %965 = memref.load %arg7[%c95] : memref<136xf32, #tpu.memory_space<smem>>
    %966 = vector.broadcast %965 : f32 to vector<17x16xf32>
    %967 = arith.mulf %338, %966 : vector<17x16xf32>
    %968 = arith.addf %964, %967 : vector<17x16xf32>
    %c112 = arith.constant 112 : index
    %969 = memref.load %arg7[%c112] : memref<136xf32, #tpu.memory_space<smem>>
    %970 = vector.broadcast %969 : f32 to vector<17x16xf32>
    %971 = arith.mulf %341, %970 : vector<17x16xf32>
    %972 = arith.addf %968, %971 : vector<17x16xf32>
    %c129 = arith.constant 129 : index
    %973 = memref.load %arg7[%c129] : memref<136xf32, #tpu.memory_space<smem>>
    %974 = vector.broadcast %973 : f32 to vector<17x16xf32>
    %975 = arith.mulf %344, %974 : vector<17x16xf32>
    %976 = arith.addf %972, %975 : vector<17x16xf32>
    %977 = vector.extract_strided_slice %19 {offsets = [10, 0], sizes = [1, 16], strides = [1, 1]} : vector<17x16xf32> to vector<1x16xf32>
    %978 = vector.broadcast %977 : vector<1x16xf32> to vector<17x16xf32>
    %979 = arith.mulf %978, %19 : vector<17x16xf32>
    %980 = arith.mulf %979, %976 : vector<17x16xf32>
    %c10_i32 = arith.constant 10 : i32
    %981 = vector.broadcast %c10_i32 : i32 to vector<17x1xi32>
    %982 = arith.cmpi eq, %345, %981 : vector<17x1xi32>
    %983 = vector.extract_strided_slice %19 {offsets = [10, 0], sizes = [1, 16], strides = [1, 1]} : vector<17x16xf32> to vector<1x16xf32>
    %cst_165 = arith.constant 0.000000e+00 : f32
    %984 = vector.shape_cast %982 : vector<17x1xi1> to vector<17x1xi1>
    %985 = vector.broadcast %984 : vector<17x1xi1> to vector<17x16xi1>
    %986 = vector.shape_cast %983 : vector<1x16xf32> to vector<1x16xf32>
    %987 = vector.broadcast %986 : vector<1x16xf32> to vector<17x16xf32>
    %988 = vector.broadcast %cst_165 : f32 to vector<17x16xf32>
    %989 = arith.select %985, %987, %988 : vector<17x16xi1>, vector<17x16xf32>
    %990 = arith.subf %989, %980 : vector<17x16xf32>
    %c0_166 = arith.constant 0 : index
    %c10_167 = arith.constant 10 : index
    %c0_168 = arith.constant 0 : index
    %c0_169 = arith.constant 0 : index
    %991 = vector.load %arg10[%c0_166, %c10_167, %c0_168, %c0_169] : memref<1x17x17x16xf32, #tpu.memory_space<vmem>>, vector<1x1x17x16xf32>
    %992 = vector.shape_cast %991 : vector<1x1x17x16xf32> to vector<17x16xf32>
    %993 = vector.shape_cast %990 : vector<17x16xf32> to vector<1x1x17x16xf32>
    tpu.vector_store %arg10[%c0_166, %c10_167, %c0_168, %c0_169], %993 {strides = array<i32>} : memref<1x17x17x16xf32, #tpu.memory_space<vmem>>, vector<1x1x17x16xf32>,
    %994 = vector.extract_strided_slice %980 {offsets = [10, 0], sizes = [1, 16], strides = [1, 1]} : vector<17x16xf32> to vector<1x16xf32>
    %c0_170 = arith.constant 0 : index
    %c10_171 = arith.constant 10 : index
    %c0_172 = arith.constant 0 : index
    %995 = vector.load %arg12[%c0_170, %c10_171, %c0_172] : memref<1x17x16xf32, #tpu.memory_space<vmem>>, vector<1x1x16xf32>
    %996 = vector.shape_cast %995 : vector<1x1x16xf32> to vector<1x16xf32>
    %997 = vector.shape_cast %994 : vector<1x16xf32> to vector<1x1x16xf32>
    tpu.vector_store %arg12[%c0_170, %c10_171, %c0_172], %997 {strides = array<i32>} : memref<1x17x16xf32, #tpu.memory_space<vmem>>, vector<1x1x16xf32>,
    %998 = arith.mulf %990, %20 : vector<17x16xf32>
    %cst_173 = arith.constant dense<0.000000e+00> : vector<16xf32>
    %999 = vector.multi_reduction <add>, %998, %cst_173 [0] : vector<17x16xf32> to vector<16xf32>
    %1000 = vector.shape_cast %999 : vector<16xf32> to vector<1x16xf32>
    %1001 = vector.broadcast %6 : f32 to vector<1x16xf32>
    %1002 = arith.mulf %1001, %1000 : vector<1x16xf32>
    %c0_174 = arith.constant 0 : index
    %c10_175 = arith.constant 10 : index
    %c0_176 = arith.constant 0 : index
    %1003 = vector.load %arg9[%c0_174, %c10_175, %c0_176] : memref<1x17x16xf32, #tpu.memory_space<vmem>>, vector<1x1x16xf32>
    %1004 = vector.shape_cast %1003 : vector<1x1x16xf32> to vector<1x16xf32>
    %1005 = vector.shape_cast %1002 : vector<1x16xf32> to vector<1x1x16xf32>
    tpu.vector_store %arg9[%c0_174, %c10_175, %c0_176], %1005 {strides = array<i32>} : memref<1x17x16xf32, #tpu.memory_space<vmem>>, vector<1x1x16xf32>,
    %c11 = arith.constant 11 : index
    %1006 = memref.load %arg7[%c11] : memref<136xf32, #tpu.memory_space<smem>>
    %1007 = vector.broadcast %1006 : f32 to vector<17x16xf32>
    %1008 = arith.mulf %323, %1007 : vector<17x16xf32>
    %c28 = arith.constant 28 : index
    %1009 = memref.load %arg7[%c28] : memref<136xf32, #tpu.memory_space<smem>>
    %1010 = vector.broadcast %1009 : f32 to vector<17x16xf32>
    %1011 = arith.mulf %326, %1010 : vector<17x16xf32>
    %1012 = arith.addf %1008, %1011 : vector<17x16xf32>
    %c45 = arith.constant 45 : index
    %1013 = memref.load %arg7[%c45] : memref<136xf32, #tpu.memory_space<smem>>
    %1014 = vector.broadcast %1013 : f32 to vector<17x16xf32>
    %1015 = arith.mulf %329, %1014 : vector<17x16xf32>
    %1016 = arith.addf %1012, %1015 : vector<17x16xf32>
    %c62 = arith.constant 62 : index
    %1017 = memref.load %arg7[%c62] : memref<136xf32, #tpu.memory_space<smem>>
    %1018 = vector.broadcast %1017 : f32 to vector<17x16xf32>
    %1019 = arith.mulf %332, %1018 : vector<17x16xf32>
    %1020 = arith.addf %1016, %1019 : vector<17x16xf32>
    %c79 = arith.constant 79 : index
    %1021 = memref.load %arg7[%c79] : memref<136xf32, #tpu.memory_space<smem>>
    %1022 = vector.broadcast %1021 : f32 to vector<17x16xf32>
    %1023 = arith.mulf %335, %1022 : vector<17x16xf32>
    %1024 = arith.addf %1020, %1023 : vector<17x16xf32>
    %c96 = arith.constant 96 : index
    %1025 = memref.load %arg7[%c96] : memref<136xf32, #tpu.memory_space<smem>>
    %1026 = vector.broadcast %1025 : f32 to vector<17x16xf32>
    %1027 = arith.mulf %338, %1026 : vector<17x16xf32>
    %1028 = arith.addf %1024, %1027 : vector<17x16xf32>
    %c113 = arith.constant 113 : index
    %1029 = memref.load %arg7[%c113] : memref<136xf32, #tpu.memory_space<smem>>
    %1030 = vector.broadcast %1029 : f32 to vector<17x16xf32>
    %1031 = arith.mulf %341, %1030 : vector<17x16xf32>
    %1032 = arith.addf %1028, %1031 : vector<17x16xf32>
    %c130 = arith.constant 130 : index
    %1033 = memref.load %arg7[%c130] : memref<136xf32, #tpu.memory_space<smem>>
    %1034 = vector.broadcast %1033 : f32 to vector<17x16xf32>
    %1035 = arith.mulf %344, %1034 : vector<17x16xf32>
    %1036 = arith.addf %1032, %1035 : vector<17x16xf32>
    %1037 = vector.extract_strided_slice %19 {offsets = [11, 0], sizes = [1, 16], strides = [1, 1]} : vector<17x16xf32> to vector<1x16xf32>
    %1038 = vector.broadcast %1037 : vector<1x16xf32> to vector<17x16xf32>
    %1039 = arith.mulf %1038, %19 : vector<17x16xf32>
    %1040 = arith.mulf %1039, %1036 : vector<17x16xf32>
    %c11_i32 = arith.constant 11 : i32
    %1041 = vector.broadcast %c11_i32 : i32 to vector<17x1xi32>
    %1042 = arith.cmpi eq, %345, %1041 : vector<17x1xi32>
    %1043 = vector.extract_strided_slice %19 {offsets = [11, 0], sizes = [1, 16], strides = [1, 1]} : vector<17x16xf32> to vector<1x16xf32>
    %cst_177 = arith.constant 0.000000e+00 : f32
    %1044 = vector.shape_cast %1042 : vector<17x1xi1> to vector<17x1xi1>
    %1045 = vector.broadcast %1044 : vector<17x1xi1> to vector<17x16xi1>
    %1046 = vector.shape_cast %1043 : vector<1x16xf32> to vector<1x16xf32>
    %1047 = vector.broadcast %1046 : vector<1x16xf32> to vector<17x16xf32>
    %1048 = vector.broadcast %cst_177 : f32 to vector<17x16xf32>
    %1049 = arith.select %1045, %1047, %1048 : vector<17x16xi1>, vector<17x16xf32>
    %1050 = arith.subf %1049, %1040 : vector<17x16xf32>
    %c0_178 = arith.constant 0 : index
    %c11_179 = arith.constant 11 : index
    %c0_180 = arith.constant 0 : index
    %c0_181 = arith.constant 0 : index
    %1051 = vector.load %arg10[%c0_178, %c11_179, %c0_180, %c0_181] : memref<1x17x17x16xf32, #tpu.memory_space<vmem>>, vector<1x1x17x16xf32>
    %1052 = vector.shape_cast %1051 : vector<1x1x17x16xf32> to vector<17x16xf32>
    %1053 = vector.shape_cast %1050 : vector<17x16xf32> to vector<1x1x17x16xf32>
    tpu.vector_store %arg10[%c0_178, %c11_179, %c0_180, %c0_181], %1053 {strides = array<i32>} : memref<1x17x17x16xf32, #tpu.memory_space<vmem>>, vector<1x1x17x16xf32>,
    %1054 = vector.extract_strided_slice %1040 {offsets = [11, 0], sizes = [1, 16], strides = [1, 1]} : vector<17x16xf32> to vector<1x16xf32>
    %c0_182 = arith.constant 0 : index
    %c11_183 = arith.constant 11 : index
    %c0_184 = arith.constant 0 : index
    %1055 = vector.load %arg12[%c0_182, %c11_183, %c0_184] : memref<1x17x16xf32, #tpu.memory_space<vmem>>, vector<1x1x16xf32>
    %1056 = vector.shape_cast %1055 : vector<1x1x16xf32> to vector<1x16xf32>
    %1057 = vector.shape_cast %1054 : vector<1x16xf32> to vector<1x1x16xf32>
    tpu.vector_store %arg12[%c0_182, %c11_183, %c0_184], %1057 {strides = array<i32>} : memref<1x17x16xf32, #tpu.memory_space<vmem>>, vector<1x1x16xf32>,
    %1058 = arith.mulf %1050, %20 : vector<17x16xf32>
    %cst_185 = arith.constant dense<0.000000e+00> : vector<16xf32>
    %1059 = vector.multi_reduction <add>, %1058, %cst_185 [0] : vector<17x16xf32> to vector<16xf32>
    %1060 = vector.shape_cast %1059 : vector<16xf32> to vector<1x16xf32>
    %1061 = vector.broadcast %6 : f32 to vector<1x16xf32>
    %1062 = arith.mulf %1061, %1060 : vector<1x16xf32>
    %c0_186 = arith.constant 0 : index
    %c11_187 = arith.constant 11 : index
    %c0_188 = arith.constant 0 : index
    %1063 = vector.load %arg9[%c0_186, %c11_187, %c0_188] : memref<1x17x16xf32, #tpu.memory_space<vmem>>, vector<1x1x16xf32>
    %1064 = vector.shape_cast %1063 : vector<1x1x16xf32> to vector<1x16xf32>
    %1065 = vector.shape_cast %1062 : vector<1x16xf32> to vector<1x1x16xf32>
    tpu.vector_store %arg9[%c0_186, %c11_187, %c0_188], %1065 {strides = array<i32>} : memref<1x17x16xf32, #tpu.memory_space<vmem>>, vector<1x1x16xf32>,
    %c12 = arith.constant 12 : index
    %1066 = memref.load %arg7[%c12] : memref<136xf32, #tpu.memory_space<smem>>
    %1067 = vector.broadcast %1066 : f32 to vector<17x16xf32>
    %1068 = arith.mulf %323, %1067 : vector<17x16xf32>
    %c29 = arith.constant 29 : index
    %1069 = memref.load %arg7[%c29] : memref<136xf32, #tpu.memory_space<smem>>
    %1070 = vector.broadcast %1069 : f32 to vector<17x16xf32>
    %1071 = arith.mulf %326, %1070 : vector<17x16xf32>
    %1072 = arith.addf %1068, %1071 : vector<17x16xf32>
    %c46 = arith.constant 46 : index
    %1073 = memref.load %arg7[%c46] : memref<136xf32, #tpu.memory_space<smem>>
    %1074 = vector.broadcast %1073 : f32 to vector<17x16xf32>
    %1075 = arith.mulf %329, %1074 : vector<17x16xf32>
    %1076 = arith.addf %1072, %1075 : vector<17x16xf32>
    %c63 = arith.constant 63 : index
    %1077 = memref.load %arg7[%c63] : memref<136xf32, #tpu.memory_space<smem>>
    %1078 = vector.broadcast %1077 : f32 to vector<17x16xf32>
    %1079 = arith.mulf %332, %1078 : vector<17x16xf32>
    %1080 = arith.addf %1076, %1079 : vector<17x16xf32>
    %c80 = arith.constant 80 : index
    %1081 = memref.load %arg7[%c80] : memref<136xf32, #tpu.memory_space<smem>>
    %1082 = vector.broadcast %1081 : f32 to vector<17x16xf32>
    %1083 = arith.mulf %335, %1082 : vector<17x16xf32>
    %1084 = arith.addf %1080, %1083 : vector<17x16xf32>
    %c97 = arith.constant 97 : index
    %1085 = memref.load %arg7[%c97] : memref<136xf32, #tpu.memory_space<smem>>
    %1086 = vector.broadcast %1085 : f32 to vector<17x16xf32>
    %1087 = arith.mulf %338, %1086 : vector<17x16xf32>
    %1088 = arith.addf %1084, %1087 : vector<17x16xf32>
    %c114 = arith.constant 114 : index
    %1089 = memref.load %arg7[%c114] : memref<136xf32, #tpu.memory_space<smem>>
    %1090 = vector.broadcast %1089 : f32 to vector<17x16xf32>
    %1091 = arith.mulf %341, %1090 : vector<17x16xf32>
    %1092 = arith.addf %1088, %1091 : vector<17x16xf32>
    %c131 = arith.constant 131 : index
    %1093 = memref.load %arg7[%c131] : memref<136xf32, #tpu.memory_space<smem>>
    %1094 = vector.broadcast %1093 : f32 to vector<17x16xf32>
    %1095 = arith.mulf %344, %1094 : vector<17x16xf32>
    %1096 = arith.addf %1092, %1095 : vector<17x16xf32>
    %1097 = vector.extract_strided_slice %19 {offsets = [12, 0], sizes = [1, 16], strides = [1, 1]} : vector<17x16xf32> to vector<1x16xf32>
    %1098 = vector.broadcast %1097 : vector<1x16xf32> to vector<17x16xf32>
    %1099 = arith.mulf %1098, %19 : vector<17x16xf32>
    %1100 = arith.mulf %1099, %1096 : vector<17x16xf32>
    %c12_i32 = arith.constant 12 : i32
    %1101 = vector.broadcast %c12_i32 : i32 to vector<17x1xi32>
    %1102 = arith.cmpi eq, %345, %1101 : vector<17x1xi32>
    %1103 = vector.extract_strided_slice %19 {offsets = [12, 0], sizes = [1, 16], strides = [1, 1]} : vector<17x16xf32> to vector<1x16xf32>
    %cst_189 = arith.constant 0.000000e+00 : f32
    %1104 = vector.shape_cast %1102 : vector<17x1xi1> to vector<17x1xi1>
    %1105 = vector.broadcast %1104 : vector<17x1xi1> to vector<17x16xi1>
    %1106 = vector.shape_cast %1103 : vector<1x16xf32> to vector<1x16xf32>
    %1107 = vector.broadcast %1106 : vector<1x16xf32> to vector<17x16xf32>
    %1108 = vector.broadcast %cst_189 : f32 to vector<17x16xf32>
    %1109 = arith.select %1105, %1107, %1108 : vector<17x16xi1>, vector<17x16xf32>
    %1110 = arith.subf %1109, %1100 : vector<17x16xf32>
    %c0_190 = arith.constant 0 : index
    %c12_191 = arith.constant 12 : index
    %c0_192 = arith.constant 0 : index
    %c0_193 = arith.constant 0 : index
    %1111 = vector.load %arg10[%c0_190, %c12_191, %c0_192, %c0_193] : memref<1x17x17x16xf32, #tpu.memory_space<vmem>>, vector<1x1x17x16xf32>
    %1112 = vector.shape_cast %1111 : vector<1x1x17x16xf32> to vector<17x16xf32>
    %1113 = vector.shape_cast %1110 : vector<17x16xf32> to vector<1x1x17x16xf32>
    tpu.vector_store %arg10[%c0_190, %c12_191, %c0_192, %c0_193], %1113 {strides = array<i32>} : memref<1x17x17x16xf32, #tpu.memory_space<vmem>>, vector<1x1x17x16xf32>,
    %1114 = vector.extract_strided_slice %1100 {offsets = [12, 0], sizes = [1, 16], strides = [1, 1]} : vector<17x16xf32> to vector<1x16xf32>
    %c0_194 = arith.constant 0 : index
    %c12_195 = arith.constant 12 : index
    %c0_196 = arith.constant 0 : index
    %1115 = vector.load %arg12[%c0_194, %c12_195, %c0_196] : memref<1x17x16xf32, #tpu.memory_space<vmem>>, vector<1x1x16xf32>
    %1116 = vector.shape_cast %1115 : vector<1x1x16xf32> to vector<1x16xf32>
    %1117 = vector.shape_cast %1114 : vector<1x16xf32> to vector<1x1x16xf32>
    tpu.vector_store %arg12[%c0_194, %c12_195, %c0_196], %1117 {strides = array<i32>} : memref<1x17x16xf32, #tpu.memory_space<vmem>>, vector<1x1x16xf32>,
    %1118 = arith.mulf %1110, %20 : vector<17x16xf32>
    %cst_197 = arith.constant dense<0.000000e+00> : vector<16xf32>
    %1119 = vector.multi_reduction <add>, %1118, %cst_197 [0] : vector<17x16xf32> to vector<16xf32>
    %1120 = vector.shape_cast %1119 : vector<16xf32> to vector<1x16xf32>
    %1121 = vector.broadcast %6 : f32 to vector<1x16xf32>
    %1122 = arith.mulf %1121, %1120 : vector<1x16xf32>
    %c0_198 = arith.constant 0 : index
    %c12_199 = arith.constant 12 : index
    %c0_200 = arith.constant 0 : index
    %1123 = vector.load %arg9[%c0_198, %c12_199, %c0_200] : memref<1x17x16xf32, #tpu.memory_space<vmem>>, vector<1x1x16xf32>
    %1124 = vector.shape_cast %1123 : vector<1x1x16xf32> to vector<1x16xf32>
    %1125 = vector.shape_cast %1122 : vector<1x16xf32> to vector<1x1x16xf32>
    tpu.vector_store %arg9[%c0_198, %c12_199, %c0_200], %1125 {strides = array<i32>} : memref<1x17x16xf32, #tpu.memory_space<vmem>>, vector<1x1x16xf32>,
    %c13 = arith.constant 13 : index
    %1126 = memref.load %arg7[%c13] : memref<136xf32, #tpu.memory_space<smem>>
    %1127 = vector.broadcast %1126 : f32 to vector<17x16xf32>
    %1128 = arith.mulf %323, %1127 : vector<17x16xf32>
    %c30 = arith.constant 30 : index
    %1129 = memref.load %arg7[%c30] : memref<136xf32, #tpu.memory_space<smem>>
    %1130 = vector.broadcast %1129 : f32 to vector<17x16xf32>
    %1131 = arith.mulf %326, %1130 : vector<17x16xf32>
    %1132 = arith.addf %1128, %1131 : vector<17x16xf32>
    %c47 = arith.constant 47 : index
    %1133 = memref.load %arg7[%c47] : memref<136xf32, #tpu.memory_space<smem>>
    %1134 = vector.broadcast %1133 : f32 to vector<17x16xf32>
    %1135 = arith.mulf %329, %1134 : vector<17x16xf32>
    %1136 = arith.addf %1132, %1135 : vector<17x16xf32>
    %c64 = arith.constant 64 : index
    %1137 = memref.load %arg7[%c64] : memref<136xf32, #tpu.memory_space<smem>>
    %1138 = vector.broadcast %1137 : f32 to vector<17x16xf32>
    %1139 = arith.mulf %332, %1138 : vector<17x16xf32>
    %1140 = arith.addf %1136, %1139 : vector<17x16xf32>
    %c81 = arith.constant 81 : index
    %1141 = memref.load %arg7[%c81] : memref<136xf32, #tpu.memory_space<smem>>
    %1142 = vector.broadcast %1141 : f32 to vector<17x16xf32>
    %1143 = arith.mulf %335, %1142 : vector<17x16xf32>
    %1144 = arith.addf %1140, %1143 : vector<17x16xf32>
    %c98 = arith.constant 98 : index
    %1145 = memref.load %arg7[%c98] : memref<136xf32, #tpu.memory_space<smem>>
    %1146 = vector.broadcast %1145 : f32 to vector<17x16xf32>
    %1147 = arith.mulf %338, %1146 : vector<17x16xf32>
    %1148 = arith.addf %1144, %1147 : vector<17x16xf32>
    %c115 = arith.constant 115 : index
    %1149 = memref.load %arg7[%c115] : memref<136xf32, #tpu.memory_space<smem>>
    %1150 = vector.broadcast %1149 : f32 to vector<17x16xf32>
    %1151 = arith.mulf %341, %1150 : vector<17x16xf32>
    %1152 = arith.addf %1148, %1151 : vector<17x16xf32>
    %c132 = arith.constant 132 : index
    %1153 = memref.load %arg7[%c132] : memref<136xf32, #tpu.memory_space<smem>>
    %1154 = vector.broadcast %1153 : f32 to vector<17x16xf32>
    %1155 = arith.mulf %344, %1154 : vector<17x16xf32>
    %1156 = arith.addf %1152, %1155 : vector<17x16xf32>
    %1157 = vector.extract_strided_slice %19 {offsets = [13, 0], sizes = [1, 16], strides = [1, 1]} : vector<17x16xf32> to vector<1x16xf32>
    %1158 = vector.broadcast %1157 : vector<1x16xf32> to vector<17x16xf32>
    %1159 = arith.mulf %1158, %19 : vector<17x16xf32>
    %1160 = arith.mulf %1159, %1156 : vector<17x16xf32>
    %c13_i32 = arith.constant 13 : i32
    %1161 = vector.broadcast %c13_i32 : i32 to vector<17x1xi32>
    %1162 = arith.cmpi eq, %345, %1161 : vector<17x1xi32>
    %1163 = vector.extract_strided_slice %19 {offsets = [13, 0], sizes = [1, 16], strides = [1, 1]} : vector<17x16xf32> to vector<1x16xf32>
    %cst_201 = arith.constant 0.000000e+00 : f32
    %1164 = vector.shape_cast %1162 : vector<17x1xi1> to vector<17x1xi1>
    %1165 = vector.broadcast %1164 : vector<17x1xi1> to vector<17x16xi1>
    %1166 = vector.shape_cast %1163 : vector<1x16xf32> to vector<1x16xf32>
    %1167 = vector.broadcast %1166 : vector<1x16xf32> to vector<17x16xf32>
    %1168 = vector.broadcast %cst_201 : f32 to vector<17x16xf32>
    %1169 = arith.select %1165, %1167, %1168 : vector<17x16xi1>, vector<17x16xf32>
    %1170 = arith.subf %1169, %1160 : vector<17x16xf32>
    %c0_202 = arith.constant 0 : index
    %c13_203 = arith.constant 13 : index
    %c0_204 = arith.constant 0 : index
    %c0_205 = arith.constant 0 : index
    %1171 = vector.load %arg10[%c0_202, %c13_203, %c0_204, %c0_205] : memref<1x17x17x16xf32, #tpu.memory_space<vmem>>, vector<1x1x17x16xf32>
    %1172 = vector.shape_cast %1171 : vector<1x1x17x16xf32> to vector<17x16xf32>
    %1173 = vector.shape_cast %1170 : vector<17x16xf32> to vector<1x1x17x16xf32>
    tpu.vector_store %arg10[%c0_202, %c13_203, %c0_204, %c0_205], %1173 {strides = array<i32>} : memref<1x17x17x16xf32, #tpu.memory_space<vmem>>, vector<1x1x17x16xf32>,
    %1174 = vector.extract_strided_slice %1160 {offsets = [13, 0], sizes = [1, 16], strides = [1, 1]} : vector<17x16xf32> to vector<1x16xf32>
    %c0_206 = arith.constant 0 : index
    %c13_207 = arith.constant 13 : index
    %c0_208 = arith.constant 0 : index
    %1175 = vector.load %arg12[%c0_206, %c13_207, %c0_208] : memref<1x17x16xf32, #tpu.memory_space<vmem>>, vector<1x1x16xf32>
    %1176 = vector.shape_cast %1175 : vector<1x1x16xf32> to vector<1x16xf32>
    %1177 = vector.shape_cast %1174 : vector<1x16xf32> to vector<1x1x16xf32>
    tpu.vector_store %arg12[%c0_206, %c13_207, %c0_208], %1177 {strides = array<i32>} : memref<1x17x16xf32, #tpu.memory_space<vmem>>, vector<1x1x16xf32>,
    %1178 = arith.mulf %1170, %20 : vector<17x16xf32>
    %cst_209 = arith.constant dense<0.000000e+00> : vector<16xf32>
    %1179 = vector.multi_reduction <add>, %1178, %cst_209 [0] : vector<17x16xf32> to vector<16xf32>
    %1180 = vector.shape_cast %1179 : vector<16xf32> to vector<1x16xf32>
    %1181 = vector.broadcast %6 : f32 to vector<1x16xf32>
    %1182 = arith.mulf %1181, %1180 : vector<1x16xf32>
    %c0_210 = arith.constant 0 : index
    %c13_211 = arith.constant 13 : index
    %c0_212 = arith.constant 0 : index
    %1183 = vector.load %arg9[%c0_210, %c13_211, %c0_212] : memref<1x17x16xf32, #tpu.memory_space<vmem>>, vector<1x1x16xf32>
    %1184 = vector.shape_cast %1183 : vector<1x1x16xf32> to vector<1x16xf32>
    %1185 = vector.shape_cast %1182 : vector<1x16xf32> to vector<1x1x16xf32>
    tpu.vector_store %arg9[%c0_210, %c13_211, %c0_212], %1185 {strides = array<i32>} : memref<1x17x16xf32, #tpu.memory_space<vmem>>, vector<1x1x16xf32>,
    %c14 = arith.constant 14 : index
    %1186 = memref.load %arg7[%c14] : memref<136xf32, #tpu.memory_space<smem>>
    %1187 = vector.broadcast %1186 : f32 to vector<17x16xf32>
    %1188 = arith.mulf %323, %1187 : vector<17x16xf32>
    %c31 = arith.constant 31 : index
    %1189 = memref.load %arg7[%c31] : memref<136xf32, #tpu.memory_space<smem>>
    %1190 = vector.broadcast %1189 : f32 to vector<17x16xf32>
    %1191 = arith.mulf %326, %1190 : vector<17x16xf32>
    %1192 = arith.addf %1188, %1191 : vector<17x16xf32>
    %c48 = arith.constant 48 : index
    %1193 = memref.load %arg7[%c48] : memref<136xf32, #tpu.memory_space<smem>>
    %1194 = vector.broadcast %1193 : f32 to vector<17x16xf32>
    %1195 = arith.mulf %329, %1194 : vector<17x16xf32>
    %1196 = arith.addf %1192, %1195 : vector<17x16xf32>
    %c65 = arith.constant 65 : index
    %1197 = memref.load %arg7[%c65] : memref<136xf32, #tpu.memory_space<smem>>
    %1198 = vector.broadcast %1197 : f32 to vector<17x16xf32>
    %1199 = arith.mulf %332, %1198 : vector<17x16xf32>
    %1200 = arith.addf %1196, %1199 : vector<17x16xf32>
    %c82 = arith.constant 82 : index
    %1201 = memref.load %arg7[%c82] : memref<136xf32, #tpu.memory_space<smem>>
    %1202 = vector.broadcast %1201 : f32 to vector<17x16xf32>
    %1203 = arith.mulf %335, %1202 : vector<17x16xf32>
    %1204 = arith.addf %1200, %1203 : vector<17x16xf32>
    %c99 = arith.constant 99 : index
    %1205 = memref.load %arg7[%c99] : memref<136xf32, #tpu.memory_space<smem>>
    %1206 = vector.broadcast %1205 : f32 to vector<17x16xf32>
    %1207 = arith.mulf %338, %1206 : vector<17x16xf32>
    %1208 = arith.addf %1204, %1207 : vector<17x16xf32>
    %c116 = arith.constant 116 : index
    %1209 = memref.load %arg7[%c116] : memref<136xf32, #tpu.memory_space<smem>>
    %1210 = vector.broadcast %1209 : f32 to vector<17x16xf32>
    %1211 = arith.mulf %341, %1210 : vector<17x16xf32>
    %1212 = arith.addf %1208, %1211 : vector<17x16xf32>
    %c133 = arith.constant 133 : index
    %1213 = memref.load %arg7[%c133] : memref<136xf32, #tpu.memory_space<smem>>
    %1214 = vector.broadcast %1213 : f32 to vector<17x16xf32>
    %1215 = arith.mulf %344, %1214 : vector<17x16xf32>
    %1216 = arith.addf %1212, %1215 : vector<17x16xf32>
    %1217 = vector.extract_strided_slice %19 {offsets = [14, 0], sizes = [1, 16], strides = [1, 1]} : vector<17x16xf32> to vector<1x16xf32>
    %1218 = vector.broadcast %1217 : vector<1x16xf32> to vector<17x16xf32>
    %1219 = arith.mulf %1218, %19 : vector<17x16xf32>
    %1220 = arith.mulf %1219, %1216 : vector<17x16xf32>
    %c14_i32 = arith.constant 14 : i32
    %1221 = vector.broadcast %c14_i32 : i32 to vector<17x1xi32>
    %1222 = arith.cmpi eq, %345, %1221 : vector<17x1xi32>
    %1223 = vector.extract_strided_slice %19 {offsets = [14, 0], sizes = [1, 16], strides = [1, 1]} : vector<17x16xf32> to vector<1x16xf32>
    %cst_213 = arith.constant 0.000000e+00 : f32
    %1224 = vector.shape_cast %1222 : vector<17x1xi1> to vector<17x1xi1>
    %1225 = vector.broadcast %1224 : vector<17x1xi1> to vector<17x16xi1>
    %1226 = vector.shape_cast %1223 : vector<1x16xf32> to vector<1x16xf32>
    %1227 = vector.broadcast %1226 : vector<1x16xf32> to vector<17x16xf32>
    %1228 = vector.broadcast %cst_213 : f32 to vector<17x16xf32>
    %1229 = arith.select %1225, %1227, %1228 : vector<17x16xi1>, vector<17x16xf32>
    %1230 = arith.subf %1229, %1220 : vector<17x16xf32>
    %c0_214 = arith.constant 0 : index
    %c14_215 = arith.constant 14 : index
    %c0_216 = arith.constant 0 : index
    %c0_217 = arith.constant 0 : index
    %1231 = vector.load %arg10[%c0_214, %c14_215, %c0_216, %c0_217] : memref<1x17x17x16xf32, #tpu.memory_space<vmem>>, vector<1x1x17x16xf32>
    %1232 = vector.shape_cast %1231 : vector<1x1x17x16xf32> to vector<17x16xf32>
    %1233 = vector.shape_cast %1230 : vector<17x16xf32> to vector<1x1x17x16xf32>
    tpu.vector_store %arg10[%c0_214, %c14_215, %c0_216, %c0_217], %1233 {strides = array<i32>} : memref<1x17x17x16xf32, #tpu.memory_space<vmem>>, vector<1x1x17x16xf32>,
    %1234 = vector.extract_strided_slice %1220 {offsets = [14, 0], sizes = [1, 16], strides = [1, 1]} : vector<17x16xf32> to vector<1x16xf32>
    %c0_218 = arith.constant 0 : index
    %c14_219 = arith.constant 14 : index
    %c0_220 = arith.constant 0 : index
    %1235 = vector.load %arg12[%c0_218, %c14_219, %c0_220] : memref<1x17x16xf32, #tpu.memory_space<vmem>>, vector<1x1x16xf32>
    %1236 = vector.shape_cast %1235 : vector<1x1x16xf32> to vector<1x16xf32>
    %1237 = vector.shape_cast %1234 : vector<1x16xf32> to vector<1x1x16xf32>
    tpu.vector_store %arg12[%c0_218, %c14_219, %c0_220], %1237 {strides = array<i32>} : memref<1x17x16xf32, #tpu.memory_space<vmem>>, vector<1x1x16xf32>,
    %1238 = arith.mulf %1230, %20 : vector<17x16xf32>
    %cst_221 = arith.constant dense<0.000000e+00> : vector<16xf32>
    %1239 = vector.multi_reduction <add>, %1238, %cst_221 [0] : vector<17x16xf32> to vector<16xf32>
    %1240 = vector.shape_cast %1239 : vector<16xf32> to vector<1x16xf32>
    %1241 = vector.broadcast %6 : f32 to vector<1x16xf32>
    %1242 = arith.mulf %1241, %1240 : vector<1x16xf32>
    %c0_222 = arith.constant 0 : index
    %c14_223 = arith.constant 14 : index
    %c0_224 = arith.constant 0 : index
    %1243 = vector.load %arg9[%c0_222, %c14_223, %c0_224] : memref<1x17x16xf32, #tpu.memory_space<vmem>>, vector<1x1x16xf32>
    %1244 = vector.shape_cast %1243 : vector<1x1x16xf32> to vector<1x16xf32>
    %1245 = vector.shape_cast %1242 : vector<1x16xf32> to vector<1x1x16xf32>
    tpu.vector_store %arg9[%c0_222, %c14_223, %c0_224], %1245 {strides = array<i32>} : memref<1x17x16xf32, #tpu.memory_space<vmem>>, vector<1x1x16xf32>,
    %c15 = arith.constant 15 : index
    %1246 = memref.load %arg7[%c15] : memref<136xf32, #tpu.memory_space<smem>>
    %1247 = vector.broadcast %1246 : f32 to vector<17x16xf32>
    %1248 = arith.mulf %323, %1247 : vector<17x16xf32>
    %c32 = arith.constant 32 : index
    %1249 = memref.load %arg7[%c32] : memref<136xf32, #tpu.memory_space<smem>>
    %1250 = vector.broadcast %1249 : f32 to vector<17x16xf32>
    %1251 = arith.mulf %326, %1250 : vector<17x16xf32>
    %1252 = arith.addf %1248, %1251 : vector<17x16xf32>
    %c49 = arith.constant 49 : index
    %1253 = memref.load %arg7[%c49] : memref<136xf32, #tpu.memory_space<smem>>
    %1254 = vector.broadcast %1253 : f32 to vector<17x16xf32>
    %1255 = arith.mulf %329, %1254 : vector<17x16xf32>
    %1256 = arith.addf %1252, %1255 : vector<17x16xf32>
    %c66 = arith.constant 66 : index
    %1257 = memref.load %arg7[%c66] : memref<136xf32, #tpu.memory_space<smem>>
    %1258 = vector.broadcast %1257 : f32 to vector<17x16xf32>
    %1259 = arith.mulf %332, %1258 : vector<17x16xf32>
    %1260 = arith.addf %1256, %1259 : vector<17x16xf32>
    %c83 = arith.constant 83 : index
    %1261 = memref.load %arg7[%c83] : memref<136xf32, #tpu.memory_space<smem>>
    %1262 = vector.broadcast %1261 : f32 to vector<17x16xf32>
    %1263 = arith.mulf %335, %1262 : vector<17x16xf32>
    %1264 = arith.addf %1260, %1263 : vector<17x16xf32>
    %c100 = arith.constant 100 : index
    %1265 = memref.load %arg7[%c100] : memref<136xf32, #tpu.memory_space<smem>>
    %1266 = vector.broadcast %1265 : f32 to vector<17x16xf32>
    %1267 = arith.mulf %338, %1266 : vector<17x16xf32>
    %1268 = arith.addf %1264, %1267 : vector<17x16xf32>
    %c117 = arith.constant 117 : index
    %1269 = memref.load %arg7[%c117] : memref<136xf32, #tpu.memory_space<smem>>
    %1270 = vector.broadcast %1269 : f32 to vector<17x16xf32>
    %1271 = arith.mulf %341, %1270 : vector<17x16xf32>
    %1272 = arith.addf %1268, %1271 : vector<17x16xf32>
    %c134 = arith.constant 134 : index
    %1273 = memref.load %arg7[%c134] : memref<136xf32, #tpu.memory_space<smem>>
    %1274 = vector.broadcast %1273 : f32 to vector<17x16xf32>
    %1275 = arith.mulf %344, %1274 : vector<17x16xf32>
    %1276 = arith.addf %1272, %1275 : vector<17x16xf32>
    %1277 = vector.extract_strided_slice %19 {offsets = [15, 0], sizes = [1, 16], strides = [1, 1]} : vector<17x16xf32> to vector<1x16xf32>
    %1278 = vector.broadcast %1277 : vector<1x16xf32> to vector<17x16xf32>
    %1279 = arith.mulf %1278, %19 : vector<17x16xf32>
    %1280 = arith.mulf %1279, %1276 : vector<17x16xf32>
    %c15_i32 = arith.constant 15 : i32
    %1281 = vector.broadcast %c15_i32 : i32 to vector<17x1xi32>
    %1282 = arith.cmpi eq, %345, %1281 : vector<17x1xi32>
    %1283 = vector.extract_strided_slice %19 {offsets = [15, 0], sizes = [1, 16], strides = [1, 1]} : vector<17x16xf32> to vector<1x16xf32>
    %cst_225 = arith.constant 0.000000e+00 : f32
    %1284 = vector.shape_cast %1282 : vector<17x1xi1> to vector<17x1xi1>
    %1285 = vector.broadcast %1284 : vector<17x1xi1> to vector<17x16xi1>
    %1286 = vector.shape_cast %1283 : vector<1x16xf32> to vector<1x16xf32>
    %1287 = vector.broadcast %1286 : vector<1x16xf32> to vector<17x16xf32>
    %1288 = vector.broadcast %cst_225 : f32 to vector<17x16xf32>
    %1289 = arith.select %1285, %1287, %1288 : vector<17x16xi1>, vector<17x16xf32>
    %1290 = arith.subf %1289, %1280 : vector<17x16xf32>
    %c0_226 = arith.constant 0 : index
    %c15_227 = arith.constant 15 : index
    %c0_228 = arith.constant 0 : index
    %c0_229 = arith.constant 0 : index
    %1291 = vector.load %arg10[%c0_226, %c15_227, %c0_228, %c0_229] : memref<1x17x17x16xf32, #tpu.memory_space<vmem>>, vector<1x1x17x16xf32>
    %1292 = vector.shape_cast %1291 : vector<1x1x17x16xf32> to vector<17x16xf32>
    %1293 = vector.shape_cast %1290 : vector<17x16xf32> to vector<1x1x17x16xf32>
    tpu.vector_store %arg10[%c0_226, %c15_227, %c0_228, %c0_229], %1293 {strides = array<i32>} : memref<1x17x17x16xf32, #tpu.memory_space<vmem>>, vector<1x1x17x16xf32>,
    %1294 = vector.extract_strided_slice %1280 {offsets = [15, 0], sizes = [1, 16], strides = [1, 1]} : vector<17x16xf32> to vector<1x16xf32>
    %c0_230 = arith.constant 0 : index
    %c15_231 = arith.constant 15 : index
    %c0_232 = arith.constant 0 : index
    %1295 = vector.load %arg12[%c0_230, %c15_231, %c0_232] : memref<1x17x16xf32, #tpu.memory_space<vmem>>, vector<1x1x16xf32>
    %1296 = vector.shape_cast %1295 : vector<1x1x16xf32> to vector<1x16xf32>
    %1297 = vector.shape_cast %1294 : vector<1x16xf32> to vector<1x1x16xf32>
    tpu.vector_store %arg12[%c0_230, %c15_231, %c0_232], %1297 {strides = array<i32>} : memref<1x17x16xf32, #tpu.memory_space<vmem>>, vector<1x1x16xf32>,
    %1298 = arith.mulf %1290, %20 : vector<17x16xf32>
    %cst_233 = arith.constant dense<0.000000e+00> : vector<16xf32>
    %1299 = vector.multi_reduction <add>, %1298, %cst_233 [0] : vector<17x16xf32> to vector<16xf32>
    %1300 = vector.shape_cast %1299 : vector<16xf32> to vector<1x16xf32>
    %1301 = vector.broadcast %6 : f32 to vector<1x16xf32>
    %1302 = arith.mulf %1301, %1300 : vector<1x16xf32>
    %c0_234 = arith.constant 0 : index
    %c15_235 = arith.constant 15 : index
    %c0_236 = arith.constant 0 : index
    %1303 = vector.load %arg9[%c0_234, %c15_235, %c0_236] : memref<1x17x16xf32, #tpu.memory_space<vmem>>, vector<1x1x16xf32>
    %1304 = vector.shape_cast %1303 : vector<1x1x16xf32> to vector<1x16xf32>
    %1305 = vector.shape_cast %1302 : vector<1x16xf32> to vector<1x1x16xf32>
    tpu.vector_store %arg9[%c0_234, %c15_235, %c0_236], %1305 {strides = array<i32>} : memref<1x17x16xf32, #tpu.memory_space<vmem>>, vector<1x1x16xf32>,
    %c16 = arith.constant 16 : index
    %1306 = memref.load %arg7[%c16] : memref<136xf32, #tpu.memory_space<smem>>
    %1307 = vector.broadcast %1306 : f32 to vector<17x16xf32>
    %1308 = arith.mulf %323, %1307 : vector<17x16xf32>
    %c33 = arith.constant 33 : index
    %1309 = memref.load %arg7[%c33] : memref<136xf32, #tpu.memory_space<smem>>
    %1310 = vector.broadcast %1309 : f32 to vector<17x16xf32>
    %1311 = arith.mulf %326, %1310 : vector<17x16xf32>
    %1312 = arith.addf %1308, %1311 : vector<17x16xf32>
    %c50 = arith.constant 50 : index
    %1313 = memref.load %arg7[%c50] : memref<136xf32, #tpu.memory_space<smem>>
    %1314 = vector.broadcast %1313 : f32 to vector<17x16xf32>
    %1315 = arith.mulf %329, %1314 : vector<17x16xf32>
    %1316 = arith.addf %1312, %1315 : vector<17x16xf32>
    %c67 = arith.constant 67 : index
    %1317 = memref.load %arg7[%c67] : memref<136xf32, #tpu.memory_space<smem>>
    %1318 = vector.broadcast %1317 : f32 to vector<17x16xf32>
    %1319 = arith.mulf %332, %1318 : vector<17x16xf32>
    %1320 = arith.addf %1316, %1319 : vector<17x16xf32>
    %c84 = arith.constant 84 : index
    %1321 = memref.load %arg7[%c84] : memref<136xf32, #tpu.memory_space<smem>>
    %1322 = vector.broadcast %1321 : f32 to vector<17x16xf32>
    %1323 = arith.mulf %335, %1322 : vector<17x16xf32>
    %1324 = arith.addf %1320, %1323 : vector<17x16xf32>
    %c101 = arith.constant 101 : index
    %1325 = memref.load %arg7[%c101] : memref<136xf32, #tpu.memory_space<smem>>
    %1326 = vector.broadcast %1325 : f32 to vector<17x16xf32>
    %1327 = arith.mulf %338, %1326 : vector<17x16xf32>
    %1328 = arith.addf %1324, %1327 : vector<17x16xf32>
    %c118 = arith.constant 118 : index
    %1329 = memref.load %arg7[%c118] : memref<136xf32, #tpu.memory_space<smem>>
    %1330 = vector.broadcast %1329 : f32 to vector<17x16xf32>
    %1331 = arith.mulf %341, %1330 : vector<17x16xf32>
    %1332 = arith.addf %1328, %1331 : vector<17x16xf32>
    %c135 = arith.constant 135 : index
    %1333 = memref.load %arg7[%c135] : memref<136xf32, #tpu.memory_space<smem>>
    %1334 = vector.broadcast %1333 : f32 to vector<17x16xf32>
    %1335 = arith.mulf %344, %1334 : vector<17x16xf32>
    %1336 = arith.addf %1332, %1335 : vector<17x16xf32>
    %1337 = vector.extract_strided_slice %19 {offsets = [16, 0], sizes = [1, 16], strides = [1, 1]} : vector<17x16xf32> to vector<1x16xf32>
    %1338 = vector.broadcast %1337 : vector<1x16xf32> to vector<17x16xf32>
    %1339 = arith.mulf %1338, %19 : vector<17x16xf32>
    %1340 = arith.mulf %1339, %1336 : vector<17x16xf32>
    %c16_i32 = arith.constant 16 : i32
    %1341 = vector.broadcast %c16_i32 : i32 to vector<17x1xi32>
    %1342 = arith.cmpi eq, %345, %1341 : vector<17x1xi32>
    %1343 = vector.extract_strided_slice %19 {offsets = [16, 0], sizes = [1, 16], strides = [1, 1]} : vector<17x16xf32> to vector<1x16xf32>
    %cst_237 = arith.constant 0.000000e+00 : f32
    %1344 = vector.shape_cast %1342 : vector<17x1xi1> to vector<17x1xi1>
    %1345 = vector.broadcast %1344 : vector<17x1xi1> to vector<17x16xi1>
    %1346 = vector.shape_cast %1343 : vector<1x16xf32> to vector<1x16xf32>
    %1347 = vector.broadcast %1346 : vector<1x16xf32> to vector<17x16xf32>
    %1348 = vector.broadcast %cst_237 : f32 to vector<17x16xf32>
    %1349 = arith.select %1345, %1347, %1348 : vector<17x16xi1>, vector<17x16xf32>
    %1350 = arith.subf %1349, %1340 : vector<17x16xf32>
    %c0_238 = arith.constant 0 : index
    %c16_239 = arith.constant 16 : index
    %c0_240 = arith.constant 0 : index
    %c0_241 = arith.constant 0 : index
    %1351 = vector.load %arg10[%c0_238, %c16_239, %c0_240, %c0_241] : memref<1x17x17x16xf32, #tpu.memory_space<vmem>>, vector<1x1x17x16xf32>
    %1352 = vector.shape_cast %1351 : vector<1x1x17x16xf32> to vector<17x16xf32>
    %1353 = vector.shape_cast %1350 : vector<17x16xf32> to vector<1x1x17x16xf32>
    tpu.vector_store %arg10[%c0_238, %c16_239, %c0_240, %c0_241], %1353 {strides = array<i32>} : memref<1x17x17x16xf32, #tpu.memory_space<vmem>>, vector<1x1x17x16xf32>,
    %1354 = vector.extract_strided_slice %1340 {offsets = [16, 0], sizes = [1, 16], strides = [1, 1]} : vector<17x16xf32> to vector<1x16xf32>
    %c0_242 = arith.constant 0 : index
    %c16_243 = arith.constant 16 : index
    %c0_244 = arith.constant 0 : index
    %1355 = vector.load %arg12[%c0_242, %c16_243, %c0_244] : memref<1x17x16xf32, #tpu.memory_space<vmem>>, vector<1x1x16xf32>
    %1356 = vector.shape_cast %1355 : vector<1x1x16xf32> to vector<1x16xf32>
    %1357 = vector.shape_cast %1354 : vector<1x16xf32> to vector<1x1x16xf32>
    tpu.vector_store %arg12[%c0_242, %c16_243, %c0_244], %1357 {strides = array<i32>} : memref<1x17x16xf32, #tpu.memory_space<vmem>>, vector<1x1x16xf32>,
    %1358 = arith.mulf %1350, %20 : vector<17x16xf32>
    %cst_245 = arith.constant dense<0.000000e+00> : vector<16xf32>
    %1359 = vector.multi_reduction <add>, %1358, %cst_245 [0] : vector<17x16xf32> to vector<16xf32>
    %1360 = vector.shape_cast %1359 : vector<16xf32> to vector<1x16xf32>
    %1361 = vector.broadcast %6 : f32 to vector<1x16xf32>
    %1362 = arith.mulf %1361, %1360 : vector<1x16xf32>
    %c0_246 = arith.constant 0 : index
    %c16_247 = arith.constant 16 : index
    %c0_248 = arith.constant 0 : index
    %1363 = vector.load %arg9[%c0_246, %c16_247, %c0_248] : memref<1x17x16xf32, #tpu.memory_space<vmem>>, vector<1x1x16xf32>
    %1364 = vector.shape_cast %1363 : vector<1x1x16xf32> to vector<1x16xf32>
    %1365 = vector.shape_cast %1362 : vector<1x16xf32> to vector<1x1x16xf32>
    tpu.vector_store %arg9[%c0_246, %c16_247, %c0_248], %1365 {strides = array<i32>} : memref<1x17x16xf32, #tpu.memory_space<vmem>>, vector<1x1x16xf32>,
    %c0_249 = arith.constant 0 : index
    %c0_250 = arith.constant 0 : index
    %c0_251 = arith.constant 0 : index
    %1366 = vector.load %arg11[%c0_249, %c0_250, %c0_251] : memref<1x17x16xf32, #tpu.memory_space<vmem>>, vector<1x17x16xf32>
    %1367 = vector.shape_cast %1366 : vector<1x17x16xf32> to vector<17x16xf32>
    %1368 = vector.shape_cast %19 : vector<17x16xf32> to vector<1x17x16xf32>
    tpu.vector_store %arg11[%c0_249, %c0_250, %c0_251], %1368 {strides = array<i32>} : memref<1x17x16xf32, #tpu.memory_space<vmem>>, vector<1x17x16xf32>,
    return
  }
  func.func @transform_0(%arg0: i32, %arg1: i32) -> (i32, i32, i32) {
    %c0_i32 = arith.constant 0 : i32
    %c0_i32_0 = arith.constant 0 : i32
    return %arg0, %c0_i32, %arg1 : i32, i32, i32
  }
  func.func @transform_1(%arg0: i32, %arg1: i32) -> (i32, i32) {
    %c0_i32 = arith.constant 0 : i32
    %c0_i32_0 = arith.constant 0 : i32
    %c0_i32_1 = arith.constant 0 : i32
    return %c0_i32, %c0_i32_0 : i32, i32
  }
  func.func @transform_2(%arg0: i32, %arg1: i32) -> (i32, i32) {
    %c0_i32 = arith.constant 0 : i32
    %c0_i32_0 = arith.constant 0 : i32
    %c0_i32_1 = arith.constant 0 : i32
    return %c0_i32, %c0_i32_0 : i32, i32
  }
  func.func @transform_3(%arg0: i32, %arg1: i32) -> (i32, i32) {
    %c0_i32 = arith.constant 0 : i32
    %c0_i32_0 = arith.constant 0 : i32
    %c0_i32_1 = arith.constant 0 : i32
    return %c0_i32, %c0_i32_0 : i32, i32
  }
  func.func @transform_4(%arg0: i32, %arg1: i32) -> (i32, i32) {
    %c0_i32 = arith.constant 0 : i32
    %c0_i32_0 = arith.constant 0 : i32
    %c0_i32_1 = arith.constant 0 : i32
    return %c0_i32, %c0_i32_0 : i32, i32
  }
  func.func @transform_5(%arg0: i32, %arg1: i32) -> i32 {
    %c0_i32 = arith.constant 0 : i32
    %c0_i32_0 = arith.constant 0 : i32
    return %c0_i32 : i32
  }
  func.func @transform_6(%arg0: i32, %arg1: i32) -> i32 {
    %c0_i32 = arith.constant 0 : i32
    %c0_i32_0 = arith.constant 0 : i32
    return %c0_i32 : i32
  }
  func.func @transform_7(%arg0: i32, %arg1: i32) -> (i32, i32, i32) {
    %c0_i32 = arith.constant 0 : i32
    %c0_i32_0 = arith.constant 0 : i32
    return %arg0, %c0_i32, %arg1 : i32, i32, i32
  }
  func.func @transform_8(%arg0: i32, %arg1: i32) -> (i32, i32, i32, i32) {
    %c0_i32 = arith.constant 0 : i32
    %c0_i32_0 = arith.constant 0 : i32
    %c0_i32_1 = arith.constant 0 : i32
    return %arg0, %c0_i32, %c0_i32_0, %arg1 : i32, i32, i32, i32
  }
  func.func @transform_9(%arg0: i32, %arg1: i32) -> (i32, i32, i32) {
    %c0_i32 = arith.constant 0 : i32
    %c0_i32_0 = arith.constant 0 : i32
    return %arg0, %c0_i32, %arg1 : i32, i32, i32
  }
  func.func @transform_10(%arg0: i32, %arg1: i32) -> (i32, i32, i32) {
    %c0_i32 = arith.constant 0 : i32
    %c0_i32_0 = arith.constant 0 : i32
    return %arg0, %c0_i32, %arg1 : i32, i32, i32
  }
}

</mosaic_0001>

<bundles_post_ra>
// kernel: tpu_custom_call.1
= control target key start
LH: loop header
LB: loop body
LE: loop exit
PB: predicated region body
PF: predicated region fallthrough
CT: control target
= control target key end

     0   :  { %s8641_s0 = inlined_call_operand.vmem [shape: f32[2,8,16], index: 0, kind: input, shape index: {}]   ;;  %s8642_s1 = inlined_call_operand.vmem [shape: f32[17,8], index: 1, kind: input, shape index: {}]   ;;  %s8643_s2 = inlined_call_operand.vmem [shape: f32[17,1], index: 2, kind: input, shape index: {}]   ;;  %s8644_s3 = inlined_call_operand.vmem [shape: f32[17,8], index: 3, kind: input, shape index: {}]   ;;  %s8645_s4 = inlined_call_operand.vmem [shape: f32[64,17], index: 4, kind: input, shape index: {}]   ;;  %s8646_s5 = inlined_call_operand.vmem [shape: f32[136], index: 5, kind: input, shape index: {}]   ;;  %s8647_s6 = inlined_call_operand.vmem [shape: f32[2], index: 6, kind: input, shape index: {}]   ;;  %s8648_s7 = inlined_call_operand.vmem [shape: f32[2,17,16], index: 7, kind: output, shape index: {0}]   ;;  %s8649_s8 = inlined_call_operand.vmem [shape: f32[2,17,17,16], index: 8, kind: output, shape index: {1}]   ;;  %s8650_s9 = inlined_call_operand.vmem [shape: f32[2,17,16], index: 9, kind: output, shape index: {2}]   ;;  %s8651_s10 = inlined_call_operand.vmem [shape: f32[2,17,16], index: 10, kind: output, shape index: {3}]  }
   0x1   :  { %8795 = sst [smem:[#allocation247_spill]] %s8641_s0 }
   0x2   :  { %8796 = sst [smem:[#allocation248_spill]] %s8642_s1 }
   0x3   :  { %8797 = sst [smem:[#allocation249_spill]] %s8643_s2 }
   0x4   :  { %8798 = sst [smem:[#allocation250_spill]] %s8644_s3 }
   0x5   :  { %8799 = sst [smem:[#allocation251_spill]] %s8645_s4 }
   0x6   :  { %8800 = sst [smem:[#allocation252_spill]] %s8646_s5 }
   0x7   :  { %8801 = sst [smem:[#allocation253_spill]] %s8647_s6 }
   0x8   :  { %8802 = sst [smem:[#allocation254_spill]] %s8648_s7 }
   0x9   :  { %8803 = sst [smem:[#allocation255_spill]] %s8649_s8 }
   0xa   :  { %8804 = sst [smem:[#allocation256_spill]] %s8650_s9 }
   0xb   :  { %8805 = sst [smem:[#allocation257_spill]] %s8651_s10 }
   0xc   :  { %16 = vsyncpa [#allocation3], 0 }
   0xd   :  { %17 = vsyncpa [#allocation5], 0  ;;  %s4894_s13 = smov 0   ;;  %s4896_s14 = smov 0  }
   0xe   :  { %s4898_s15 = smov 0  }
   0xf LB: > { %8806 = sst [smem:[#allocation8_spill]] %s4828_s14  ;;  %s4268_s16 = sadd.s32 4294967295, %s4832_s15   ;;  %s4832_s15 = sphi %s4898_s15, %s23_s15   ;;  %s4828_s14 = sphi %s4896_s14, %s9580_s14   ;;  %s4824_s13 = sphi %s4894_s13, %s9579_s13  }
  0x10   : > { %8807 = sst [smem:[#allocation9_spill]] %s4832_s15  ;;  %s35_s17 = sadd.s32 1, %s4828_s14 }
  0x11   : > { %p37_p0 = scmp.ge.s32.totalorder %s35_s17, 2  ;;  %p4270_p1 = scmp.ge.s32.totalorder %s4832_s15, 1 }
  0x12   : > { %p306_p2 = scmp.lt.s32.totalorder %s4832_s15, 3  ;;  %p4919_p4 = scmp.eq.s32.totalorder %s4268_s16, 0 }
  0x13   : > { %s9582_s17 = smov (%p37_p0, %s35_s17), 0  ;;  %s8811_s5 = sld [smem:[#allocation252_spill]] }
  0x14   : > { %8808 = sst [smem:[#allocation10_spill]] %s9582_s17  ;;  %p4915_p3 = pnand %p4270_p1, %p306_p2 }
  0x15   : > { %s8810_s19 = scalar_select %p4919_p4, 1, 0 }
  0x16   : > { %s8809_s18 = scalar_select %p4915_p3, 1, 0 }
  0x17   : > { %p4702_p5 = pneg %p4915_p3  ;;  %s8812_s6 = sld [smem:[#allocation253_spill]] }
  0x19   : > { %s331_s22 = sshll.u32 %s8811_s5, 4  ;;  %p4933_p6 = pnand %p4919_p4, %p4702_p5  ;;  %s332_s22 = int_to_ptr.vmem [resolvable:$true] %s331_s22 }
  0x1a   : > { %s4772_s27 = scalar_lea.vmem %s332_s22, 32  ;;  %p4780_p11 = scmp.lt.s32.totalorder %s332_s22, %s332_s22 }
  0x1b   : > { %p4773_p7 = scmp.ne.s32.totalorder %s332_s22, %s4772_s27  ;;  %p4774_p8 = pneg %p4933_p6 }
  0x1c   : > { %p4781_p12 = scmp.lt.s32.totalorder %s4772_s27, %s4772_s27 }
  0x1d   : > { %s342_s25 = sshll.u32 %s8812_s6, 4  ;;  %p4775_p9 = pnand %p4774_p8, %p4773_p7  ;;  %s343_s25 = int_to_ptr.vmem [resolvable:$true] %s342_s25 }
  0x1e   : > { %p4782_p13 = por %p4781_p12, %p4780_p11 }
  0x1f   : > { %p4776_p10 = pneg %p4775_p9 }
  0x21   : > { %p4783_p0 = pnand %p4782_p13, %p4776_p10 }
  0x23   : > { %4786 = shalt.err (!%p4783_p0)
}
  0x24   : > { %s4834_s28 = smov [#allocation2]   ;;  %s4787_s29 = scalar_lea.vmem %s343_s25, 16 }
  0x25   : > { %4705 = dma.vmem_to_smem (!%p4933_p6), %s332_s22, 32, %s4834_s28, [#allocation3]  }
  0x26   : > { %p4788_p1 = scmp.ne.s32.totalorder %s343_s25, %s4787_s29  ;;  %p4795_p4 = scmp.lt.s32.totalorder %s343_s25, %s343_s25 }
  0x27   : > { %p4796_p3 = scmp.lt.s32.totalorder %s4787_s29, %s4787_s29 }
  0x28   : > { %p4790_p2 = pnand %p4788_p1, %p4774_p8 }
  0x29   : > { %p4797_p7 = por %p4796_p3, %p4795_p4 }
  0x2a   : > { %p4791_p5 = pneg %p4790_p2 }
  0x2c   : > { %p4798_p9 = pnand %p4797_p7, %p4791_p5 }
  0x2e   : > { %4801 = shalt.err (!%p4798_p9)
}
  0x2f   : > { %s4835_s30 = smov [#allocation4]   ;;  %p8814_p10 = scmp.ne.s32.totalorder %s8809_s18, 0 }
  0x30   : > { %4708 = dma.vmem_to_smem (!%p4933_p6), %s343_s25, 16, %s4835_s30, [#allocation5]  }
  0x31   : > { %365 = sbr.rel (%p8814_p10) target bundleno = 1229 (0x4cd), region = 48 }
  0x38   : > { %p8815_p11 = scmp.ne.s32.totalorder %s8810_s19, 0 }
  0x3a   : > { %4815 = dma.done.wait (%p8815_p11), [#allocation3], 32  }
  0x3b   : > { %4817 = vsyncadd (%p8815_p11), [#allocation3], 4294967264 }
  0x3c   : > { %4819 = dma.done.wait (%p8815_p11), [#allocation5], 16  }
  0x3d   : > { %4821 = vsyncadd (%p8815_p11), [#allocation5], 4294967280 }
  0x3e   : > { %375 = sfence }
  0x3f   : > { %p437_p3 = scmp.lt.s32.totalorder %s4824_s13, 1  ;;  %v8655_v0 = vmov 0.0   ;;  %vm4837_vm0 = vmmov 0   ;;  %s8816_s2 = sld [smem:[#allocation249_spill]]  ;;  %v4838_v2 = vmov 0   ;;  %vm511_vm1 = vcmask 64512  }
  0x40   : > { %4558 = vmatprep.subr.mxu0 %v8655_v0  ;;  %4560 = vmatprep.mubr.msk.f32.mxu0 %vm4837_vm0, %v8655_v0  ;;  %s8818_s0 = sld [smem:[#allocation247_spill]]  ;;  %s8819_s1 = sld [smem:[#allocation248_spill]]  ;;  %vm711_vm2 = vcmask 138240   ;;  %v845_v32 = vlaneseq  ;;  %vm2286_vm3 = vcmask 130048   ;;  %vm2289_vm4 = vcmask 122880  }
  0x41   : > { %s9584_s13 = smov (!%p437_p3, %s4824_s13), 1  ;;  %4742 = vset.pattern.permute.xlu0 %v4838_v2  ;;  %4743 = vset.pattern.permute.xlu1 %v4838_v2  ;;  %s8820_s4 = sld [smem:[#allocation251_spill]]  ;;  %vm736_vm5 = vcmask 1040384  }
  0x42   : > { %8817 = sst [smem:[#allocation11_spill]] %s9584_s13  ;;  %s4277_s19 = sshll.u32 %s9584_s13, 3  ;;  %4569 = vmatprep.subr.mxu1 %v8655_v0  ;;  %4571 = vmatprep.mubr.msk.f32.mxu1 %vm4837_vm0, %v8655_v0  ;;  %v5000_v35 = vshrl.u32 %v845_v32, 7 }
  0x43   : > { %s4998_s16 = smul.u32 24, %s9584_s13  ;;  %s8822_s9 = sld [smem:[#allocation256_spill]] }
  0x44   : > { %v5011_v38 = vsub.s32 0, %v5000_v35  ;;  %v5014_v39 = vsub.s32 1, %v5000_v35  ;;  %v5017_v40 = vsub.s32 3, %v5000_v35  ;;  %v5020_v41 = vsub.s32 2, %v5000_v35  ;;  %s8839_s3 = sld [smem:[#allocation250_spill]]  ;;  %s5627_s28 = sld [smem:[#allocation2 + $0x1]] }
  0x45   : > { %v480_v1 = vld [vmem:[%s8816_s2] sm:$0xff]  ;;  %v482_v3 = vld [vmem:[%s8816_s2 + $0x10] sm:$0x1]  ;;  %v481_v4 = vld [vmem:[%s8816_s2 + $0x8] sm:$0xff]  ;;  %8821 = sst [smem:[#allocation12_spill]] %s4998_s16  ;;  %v5023_v42 = vsub.s32 4, %v5000_v35 }
  0x46   : > { %498 = vperm.xlu0 %4742, %v480_v1   ;;  %508 = vperm.xlu1 %4743, %v482_v3   ;;  %s443_s24 = scalar_lea.vmem %s8818_s0, %s4277_s19  ;;  %v477_v5 = vld [vmem:[%s8819_s1] sm:$0xff]  ;;  %v478_v7 = vld [vmem:[%s8819_s1 + $0x8] sm:$0xff]  ;;  %v479_v8 = vld [vmem:[%s8819_s1 + $0x10] sm:$0x1]  ;;  %v5026_v43 = vsub.s32 5, %v5000_v35  ;;  %v5032_v45 = vsub.s32 6, %v5000_v35 }
  0x47   : > { %v476_v6 = vld [vmem:[%s443_s24] sm:$0xff]  ;;  %v5035_v46 = vsub.s32 7, %v5000_v35  ;;  %v487_v3 = vld [vmem:[%s8820_s4 + $0x8] sm:$0xff]  ;;  %vm847_vm6 = vcmp.eq.s32.totalorder %v5000_v35, 0  ;;  %vm852_vm7 = vcmp.eq.s32.totalorder %v5000_v35, 5  ;;  %vm850_vm8 = vcmp.eq.s32.totalorder %v5000_v35, 3 }
  0x48   : > { %4559 = vmatpush3.msra.mxu0 %v476_v6  ;;  %4570 = vmatpush3.msra.mxu1 %v476_v6  ;;  %v486_v9 = vld [vmem:[%s8820_s4] sm:$0xff]  ;;  %v489_v6 = vld [vmem:[%s8820_s4 + $0x18] sm:$0xff]  ;;  %vm849_vm9 = vcmp.eq.s32.totalorder %v5000_v35, 2  ;;  %vm848_vm10 = vcmp.eq.s32.totalorder %v5000_v35, 1  ;;  %vm854_vm11 = vcmp.eq.s32.totalorder %v5000_v35, 7  ;;  %vm851_vm12 = vcmp.eq.s32.totalorder %v5000_v35, 4 }
  0x49   : > { %4561 = vmatmul.mubr.msk.f32.vlgmr.msra.gmra.mrb[0].mxu0 %vm511_vm1, %v477_v5  ;;  %4690 = vmatprep.subr.mxu1 %v8655_v0  ;;  %s5006_s20 = scalar_lea.vmem %s8822_s9, %s4998_s16  ;;  %v5212_v32 = vsel %vm854_vm11, 1.0, %v8655_v0  ;;  %vm853_vm13 = vcmp.eq.s32.totalorder %v5000_v35, 6  ;;  %s5625_s27 = sld [smem:[#allocation2]] }
  0x4a   : > { %503 = vperm.xlu0 %4742, %v481_v4   ;;  %4563 = vmatprep.mubr.msk.f32.mxu0 %vm4837_vm0, %v8655_v0  ;;  %v488_v4 = vld [vmem:[%s8820_s4 + $0x10] sm:$0xff]  ;;  %s5629_s29 = sld [smem:[#allocation2 + $0x2]]  ;;  %s5631_s30 = sld [smem:[#allocation2 + $0x3]] }
  0x4b   : > { %s5633_s11 = sld [smem:[#allocation2 + $0x4]]  ;;  %s5635_s12 = sld [smem:[#allocation2 + $0x5]] }
  0x4c   : > { %s5637_s18 = sld [smem:[#allocation2 + $0x6]]  ;;  %s5639_s19 = sld [smem:[#allocation2 + $0x7]] }
  0x4d   : > { %4564 = vmatmul.mubr.msk.f32.gmra.mrb[2].mxu0 %vm511_vm1, %v478_v7  ;;  %s5643_s21 = sld [smem:[#allocation2 + $0x9]]  ;;  %s5645_s22 = sld [smem:[#allocation2 + $0xa]] }
  0x4e   : > { %4566 = vmatprep.mubr.msk.f32.mxu0 %vm4837_vm0, %v8655_v0  ;;  %s5647_s23 = sld [smem:[#allocation2 + $0xb]]  ;;  %s5649_s24 = sld [smem:[#allocation2 + $0xc]] }
  0x4f   : > { %s5651_s25 = sld [smem:[#allocation2 + $0xd]]  ;;  %s5653_s26 = sld [smem:[#allocation2 + $0xe]] }
  0x50   : > { %s5655_s0 = sld [smem:[#allocation2 + $0xf]]  ;;  %s5657_s1 = sld [smem:[#allocation2 + $0x10]] }
  0x51   : > { %4567 = vmatmul.mubr.msk.f32.gmra.mrb[4].mxu0 %vm511_vm1, %v479_v8  ;;  %v490_v8 = vld [vmem:[%s8820_s4 + $0x20] sm:$0xff]  ;;  %s5659_s2 = sld [smem:[#allocation2 + $0x11]]  ;;  %s5665_s5 = sld [smem:[#allocation2 + $0x14]] }
  0x52   : > { %4586 = vmatprep.mubr.msk.f32.mxu0 %vm711_vm2, %v486_v9  ;;  %s5667_s6 = sld [smem:[#allocation2 + $0x15]]  ;;  %s5669_s9 = sld [smem:[#allocation2 + $0x16]] }
  0x53   : > { %s5671_s17 = sld [smem:[#allocation2 + $0x17]]  ;;  %s5673_s14 = sld [smem:[#allocation2 + $0x18]] }
  0x54   : > { %s5675_s15 = sld [smem:[#allocation2 + $0x19]]  ;;  %s5677_s7 = sld [smem:[#allocation2 + $0x1a]] }
  0x55   : > { %s5679_s8 = sld [smem:[#allocation2 + $0x1b]]  ;;  %s5681_s10 = sld [smem:[#allocation2 + $0x1c]] }
  0x56   : > { %s5683_s16 = sld [smem:[#allocation2 + $0x1d]]  ;;  %s5685_s13 = sld [smem:[#allocation2 + $0x1e]] }
  0x57   : > { %8844 = sst [smem:[#allocation32_spill]] %s5665_s5  ;;  %s5687_s5 = sld [smem:[#allocation2 + $0x1f]] }
  0x58   : > { %8845 = sst [smem:[#allocation33_spill]] %s5667_s6  ;;  %s5689_s6 = sld [smem:[#allocation2 + $0x20]] }
  0x5b   : > { %8846 = sst [smem:[#allocation34_spill]] %s5679_s8  ;;  %s5700_s8 = sld [smem:[#allocation2 + $0x21]] }
  0x5c   : > { %8847 = sst [smem:[#allocation35_spill]] %s5681_s10  ;;  %s5702_s10 = sld [smem:[#allocation2 + $0x22]] }
  0x5d   : > { %8848 = sst [smem:[#allocation36_spill]] %s5687_s5  ;;  %s5741_s5 = sld [smem:[#allocation2 + $0x26]] }
  0x5e   : > { %8849 = sst [smem:[#allocation37_spill]] %s5689_s6  ;;  %s5739_s6 = sld [smem:[#allocation2 + $0x25]] }
  0x61   : > { %8852 = sst [smem:[#allocation40_spill]] %s5700_s8 }
  0x62   : > { %8853 = sst [smem:[#allocation41_spill]] %s5702_s10  ;;  %s5722_s8 = sld [smem:[#allocation2 + $0x23]] }
  0x63   : > { %s5724_s10 = sld [smem:[#allocation2 + $0x24]]  ;;  %8864 = sst [smem:[#allocation52_spill]] %s5741_s5 }
  0x64   : > { %8863 = sst [smem:[#allocation51_spill]] %s5739_s6  ;;  %s5766_s6 = sld [smem:[#allocation2 + $0x28]] }
  0x65   : > { %s5764_s5 = sld [smem:[#allocation2 + $0x27]] }
  0x68   : > { %8858 = sst [smem:[#allocation46_spill]] %s5722_s8  ;;  %s5783_s8 = sld [smem:[#allocation2 + $0x2a]] }
  0x69   : > { %8859 = sst [smem:[#allocation47_spill]] %s5724_s10  ;;  %s5781_s10 = sld [smem:[#allocation2 + $0x29]] }
  0x6a   : > { %8870 = sst [smem:[#allocation58_spill]] %s5766_s6  ;;  %s5797_s6 = sld [smem:[#allocation2 + $0x2b]] }
  0x6b   : > { %8869 = sst [smem:[#allocation57_spill]] %s5764_s5  ;;  %s5799_s5 = sld [smem:[#allocation2 + $0x2c]] }
  0x6e   : > { %8875 = sst [smem:[#allocation63_spill]] %s5783_s8  ;;  %s5813_s8 = sld [smem:[#allocation2 + $0x2d]] }
  0x6f   : > { %8874 = sst [smem:[#allocation62_spill]] %s5781_s10  ;;  %s5815_s10 = sld [smem:[#allocation2 + $0x2e]] }
  0x70   : > { %8878 = sst [smem:[#allocation66_spill]] %s5797_s6  ;;  %s5854_s6 = sld [smem:[#allocation2 + $0x32]] }
  0x71   : > { %8879 = sst [smem:[#allocation67_spill]] %s5799_s5  ;;  %s5852_s5 = sld [smem:[#allocation2 + $0x31]] }
  0x74   : > { %8881 = sst [smem:[#allocation69_spill]] %s5813_s8  ;;  %s5840_s8 = sld [smem:[#allocation2 + $0x30]] }
  0x75   : > { %8882 = sst [smem:[#allocation70_spill]] %s5815_s10  ;;  %s5838_s10 = sld [smem:[#allocation2 + $0x2f]] }
  0x76   : > { %8892 = sst [smem:[#allocation80_spill]] %s5854_s6  ;;  %s5879_s6 = sld [smem:[#allocation2 + $0x35]] }
  0x77   : > { %8891 = sst [smem:[#allocation79_spill]] %s5852_s5  ;;  %s5913_s5 = sld [smem:[#allocation2 + $0x3a]] }
  0x7a   : > { %8888 = sst [smem:[#allocation76_spill]] %s5840_s8  ;;  %s5861_s8 = sld [smem:[#allocation2 + $0x33]] }
  0x7b   : > { %8887 = sst [smem:[#allocation75_spill]] %s5838_s10  ;;  %s5863_s10 = sld [smem:[#allocation2 + $0x34]] }
  0x7c   : > { %8899 = sst [smem:[#allocation87_spill]] %s5879_s6  ;;  %s5899_s6 = sld [smem:[#allocation2 + $0x38]] }
  0x80   : > { %8894 = sst [smem:[#allocation82_spill]] %s5861_s8  ;;  %s5881_s8 = sld [smem:[#allocation2 + $0x36]] }
  0x81   : > { %8895 = sst [smem:[#allocation83_spill]] %s5863_s10  ;;  %s5897_s10 = sld [smem:[#allocation2 + $0x37]] }
  0x82   : > { %8905 = sst [smem:[#allocation91_spill]] %s5899_s6  ;;  %s5929_s6 = sld [smem:[#allocation2 + $0x3b]] }
  0x86   : > { %8900 = sst [smem:[#allocation88_spill]] %s5881_s8  ;;  %s5911_s8 = sld [smem:[#allocation2 + $0x39]] }
  0x88   : > { %8914 = sst [smem:[#allocation96_spill]] %s5929_s6  ;;  %s5951_s6 = sld [smem:[#allocation2 + $0x3d]] }
  0x8c   : > { %8908 = sst [smem:[#allocation94_spill]] %s5911_s8  ;;  %s5931_s8 = sld [smem:[#allocation2 + $0x3c]] }
  0x8e   : > { %8920 = sst [smem:[#allocation102_spill]] %s5951_s6  ;;  %s5975_s6 = sld [smem:[#allocation2 + $0x40]] }
  0x92   : > { %8915 = sst [smem:[#allocation97_spill]] %s5931_s8  ;;  %s5953_s8 = sld [smem:[#allocation2 + $0x3e]] }
  0x94   : > { %8927 = sst [smem:[#allocation109_spill]] %s5975_s6  ;;  %s5993_s6 = sld [smem:[#allocation2 + $0x42]] }
  0x98   : > { %8921 = sst [smem:[#allocation103_spill]] %s5953_s8  ;;  %s5973_s8 = sld [smem:[#allocation2 + $0x3f]] }
  0x9a   : > { %8933 = sst [smem:[#allocation115_spill]] %s5993_s6  ;;  %s6014_s6 = sld [smem:[#allocation2 + $0x43]] }
  0x9e   : > { %8926 = sst [smem:[#allocation108_spill]] %s5973_s8  ;;  %s5991_s8 = sld [smem:[#allocation2 + $0x41]] }
  0xa4   : > { %8932 = sst [smem:[#allocation114_spill]] %s5991_s8  ;;  %s6016_s8 = sld [smem:[#allocation2 + $0x44]] }
  0xaa   : > { %8938 = sst [smem:[#allocation120_spill]] %s6016_s8  ;;  %s6044_s8 = sld [smem:[#allocation2 + $0x46]] }
  0xc5   : > { %v499_v10 = vpop.permute.xlu0 %498  ;;  %v509_v20 = vpop.permute.xlu1 %508 }
  0xc9   : > { %v504_v15 = vpop.permute.xlu0 %503 }
 0x11c   : > { %v587_v11 = vpop.f32.mrb[0].mxu0 }
 0x11d   : > { %v588_v12 = vadd.f32 %v587_v11, %v499_v10  ;;  %v4562_v13 = vpop.f32.mrb[1].mxu0 }
 0x11e   : > { %v491_v13 = vld [vmem:[%s8820_s4 + $0x28] sm:$0xff] }
 0x11f   : > { %v601_v14 = vsub.f32 0.0, %v588_v12 }
 0x120   : > { %v592_v16 = vpop.f32.mrb[2].mxu0 }
 0x121   : > { %v604_v17 = vmul.f32 1.442695, %v601_v14  ;;  %v593_v18 = vadd.f32 %v592_v16, %v504_v15  ;;  %v4565_v19 = vpop.f32.mrb[3].mxu0  ;;  %v492_v16 = vld [vmem:[%s8820_s4 + $0x30] sm:$0xff] }
 0x123   : > { %4744 = vpow2.f32 %v604_v17  ;;  %v602_v21 = vsub.f32 0.0, %v593_v18  ;;  %v493_v18 = vld [vmem:[%s8820_s4 + $0x38] sm:$0xff]  ;;  %s5663_s4 = sld [smem:[#allocation2 + $0x13]] }
 0x124   : > { %v597_v22 = vpop.f32.mrb[4].mxu0 }
 0x125   : > { %v606_v23 = vmul.f32 1.442695, %v602_v21  ;;  %v598_v24 = vadd.f32 %v597_v22, %v509_v20  ;;  %v4568_v25 = vpop.f32.mrb[5].mxu0  ;;  %v855_v20 = vsel %vm847_vm6, 1.0, %v8655_v0 }
 0x126   : > { %v5186_v25 = vsel %vm852_vm7, 1.0, %v8655_v0 }
 0x127   : > { %4746 = vpow2.f32 %v606_v23  ;;  %v603_v26 = vsub.f32 0.0, %v598_v24 }
 0x129   : > { %v608_v27 = vmul.f32 1.442695, %v603_v26 }
 0x12b   : > { %4748 = vpow2.f32 %v608_v27  ;;  %v5192_v27 = vsel %vm850_vm8, 1.0, %v8655_v0 }
 0x12d   : > { %v4745_v28 = vpop.eup %4744 }
 0x12e   : > { %v610_v29 = vadd.f32 1.0, %v4745_v28 }
 0x130   : > { %4750 = vrcp.f32 %v610_v29  ;;  %v5199_v29 = vsel %vm849_vm9, 1.0, %v8655_v0 }
 0x131   : > { %v4747_v30 = vpop.eup %4746 }
 0x132   : > { %v611_v31 = vadd.f32 1.0, %v4747_v30 }
 0x134   : > { %4752 = vrcp.f32 %v611_v31  ;;  %v5206_v31 = vsel %vm848_vm10, 1.0, %v8655_v0 }
 0x135   : > { %v4749_v33 = vpop.eup %4748 }
 0x136   : > { %v612_v34 = vadd.f32 1.0, %v4749_v33 }
 0x138   : > { %4754 = vrcp.f32 %v612_v34  ;;  %v5219_v34 = vsel %vm851_vm12, 1.0, %v8655_v0 }
 0x13a   : > { %v4751_v36 = vpop.eup %4750 }
 0x13b   : > { %v5008_v37 = vadd.f32 0.001, %v4751_v36  ;;  %v5224_v36 = vsel %vm853_vm13, 1.0, %v8655_v0 }
 0x13d   : > { %4021 = vst.msk [vmem:[%s5006_s20] sm:$0xff] %vm2286_vm3, %v5008_v37  ;;  %v5041_v48 = vrot.slane %v5008_v37, %v5014_v39  ;;  %v5045_v49 = vrot.slane %v5008_v37, %v5011_v38  ;;  %v5049_v50 = vrot.slane %v5008_v37, %v5017_v40  ;;  %v5053_v51 = vrot.slane %v5008_v37, %v5020_v41 }
 0x13e   : > { %v4753_v44 = vpop.eup %4752  ;;  %v5057_v52 = vrot.slane %v5008_v37, %v5026_v43  ;;  %v5061_v53 = vrot.slane %v5008_v37, %v5023_v42  ;;  %v5090_v61 = vrot.slane %v5008_v37, %v5035_v46  ;;  %v5108_v2 = vrot.slane %v5008_v37, %v5032_v45 }
 0x13f   : > { %v5037_v47 = vadd.f32 0.001, %v4753_v44 }
 0x141   : > { %4022 = vst.msk [vmem:[%s5006_s20 + $0x8] sm:$0xff] %vm2286_vm3, %v5037_v47  ;;  %v4686_v54 = vpack.c.bf16 %v5037_v47, %v5008_v37  ;;  %v5070_v55 = vmul.f32 %v5041_v48, %v5037_v47  ;;  %v5074_v56 = vmul.f32 %v5045_v49, %v5037_v47  ;;  %v5078_v57 = vmul.f32 %v5049_v50, %v5037_v47 }
 0x142   : > { %v4755_v58 = vpop.eup %4754  ;;  %v5082_v59 = vmul.f32 %v5053_v51, %v5037_v47  ;;  %v5086_v60 = vmul.f32 %v5057_v52, %v5037_v47  ;;  %v5096_v63 = vmul.f32 %v5061_v53, %v5037_v47  ;;  %v5100_v1 = vmul.f32 %v5090_v61, %v5037_v47 }
 0x143   : > { %8823 = vst [vmem:[#allocation13_spill] sm:$0xff] %v5070_v55  ;;  %8824 = vst [vmem:[#allocation14_spill] sm:$0xff] %v5074_v56  ;;  %v5092_v62 = vadd.f32 0.001, %v4755_v58  ;;  %4687 = vmatprep.subr.bf16.mxu0 %v4686_v54  ;;  %v5118_v5 = vmul.f32 %v5108_v2, %v5037_v47  ;;  %v5129_v7 = vrot.slane %v5037_v47, %v5011_v38 }
 0x144   : > { %8825 = vst [vmem:[#allocation15_spill] sm:$0xff] %v5078_v57  ;;  %8826 = vst [vmem:[#allocation16_spill] sm:$0xff] %v5082_v59  ;;  %4689 = vmatpush3.bf16.msra.mxu0 %v4686_v54  ;;  %v5136_v9 = vrot.slane %v5037_v47, %v5014_v39  ;;  %v5144_v11 = vrot.slane %v5037_v47, %v5020_v41  ;;  %v5161_v15 = vrot.slane %v5037_v47, %v5017_v40  ;;  %v8840_v57 = vmov 0.0  }
 0x145   : > { %8827 = vst [vmem:[#allocation17_spill] sm:$0xff] %v5086_v60  ;;  %8828 = vst [vmem:[#allocation18_spill] sm:$0xff] %v5092_v62  ;;  %4584 = vmatprep.subr.msk.mxu0 %vm736_vm5, %v5092_v62  ;;  %v5140_v10 = vmul.f32 %v5129_v7, %v5008_v37 }
 0x146   : > { %8829 = vst [vmem:[#allocation19_spill] sm:$0xff] %v5096_v63  ;;  %8830 = vst [vmem:[#allocation20_spill] sm:$0xff] %v5100_v1  ;;  %v5149_v12 = vmul.f32 %v5136_v9, %v5008_v37  ;;  %v5157_v14 = vmul.f32 %v5144_v11, %v5008_v37  ;;  %v5168_v17 = vmul.f32 %v5161_v15, %v5008_v37 }
 0x147   : > { %4023 = vst.msk [vmem:[%s5006_s20 + $0x10] sm:$0x1] %vm2289_vm4, %v5092_v62  ;;  %8831 = vst [vmem:[#allocation21_spill] sm:$0xff] %v5118_v5  ;;  %s4282_s20 = sld [smem:[#allocation4 + $0x1]] }
 0x148   : > { %4585 = vmatpush3.msk.msra.mxu0 %vm736_vm5, %v5092_v62  ;;  %8832 = vst [vmem:[#allocation22_spill] sm:$0xff] %v5136_v9  ;;  %8833 = vst [vmem:[#allocation23_spill] sm:$0xff] %v5140_v10 }
 0x149   : > { %4587 = vmatmul.mubr.msk.f32.vlgmr.msra.gmra.mrb[6].mxu0 %vm711_vm2, %v487_v3  ;;  %4598 = vmatprep.subr.mxu0 %v8655_v0  ;;  %8834 = vst [vmem:[#allocation24_spill] sm:$0xff] %v5144_v11  ;;  %8835 = vst [vmem:[#allocation25_spill] sm:$0xff] %v5149_v12 }
 0x14a   : > { %4589 = vmatprep.mubr.msk.f32.mxu0 %vm711_vm2, %v488_v4  ;;  %8836 = vst [vmem:[#allocation26_spill] sm:$0xff] %v5157_v14  ;;  %8837 = vst [vmem:[#allocation27_spill] sm:$0xff] %v5161_v15 }
 0x14b   : > { %8838 = vst [vmem:[#allocation28_spill] sm:$0xff] %v5168_v17 }
 0x14d   : > { %4590 = vmatmul.mubr.msk.f32.gmra.mrb[8].mxu0 %vm711_vm2, %v489_v6  ;;  %v863_v19 = vstv %s4282_s20  ;;  %s5641_s20 = sld [smem:[#allocation2 + $0x8]] }
 0x14e   : > { %4592 = vmatprep.mubr.msk.f32.mxu0 %vm711_vm2, %v490_v8  ;;  %v864_v21 = vmul.f32 %v863_v19, %v855_v20  ;;  %v869_v30 = vmul.f32 %v863_v19, %v5186_v25  ;;  %v867_v33 = vmul.f32 %v863_v19, %v5192_v27  ;;  %v866_v44 = vmul.f32 %v863_v19, %v5199_v29  ;;  %v5232_v8 = vld [vmem:[%s8839_s3] sm:$0xff] }
 0x14f   : > { %v865_v58 = vmul.f32 %v863_v19, %v5206_v31  ;;  %v871_v6 = vmul.f32 %v863_v19, %v5212_v32  ;;  %4572 = vmatmul.mubr.msk.f32.vlgmr.msra.gmra.mrb[0].mxu1 %vm511_vm1, %v5232_v8 }
 0x150   : > { %4574 = vmatprep.mubr.msk.f32.mxu1 %vm4837_vm0, %v8655_v0 }
 0x151   : > { %4593 = vmatmul.mubr.msk.f32.gmra.mrb[10].mxu0 %vm711_vm2, %v491_v13  ;;  %v868_v13 = vmul.f32 %v863_v19, %v5219_v34 }
 0x152   : > { %4595 = vmatprep.mubr.msk.f32.mxu0 %vm711_vm2, %v492_v16  ;;  %v870_v16 = vmul.f32 %v863_v19, %v5224_v36 }
 0x155   : > { %4596 = vmatmul.mubr.msk.f32.gmra.mrb[12].mxu0 %vm711_vm2, %v493_v18 }
 0x156   : > { %4600 = vmatprep.mubr.msk.f32.mxu0 %vm4837_vm0, %v8655_v0 }
 0x21c   : > { %v4588_v22 = vpop.f32.mrb[6].mxu0 }
 0x21d   : > { %v806_v23 = vpop.f32.mrb[7].mxu0 }
 0x21e   : > { %v872_v24 = vadd.f32 %v864_v21, %v806_v23  ;;  %v5243_v21 = vld [vmem:[%s8839_s3 + $0x8] sm:$0xff] }
 0x21f   : > { %4575 = vmatmul.mubr.msk.f32.gmra.mrb[2].mxu1 %vm511_vm1, %v5243_v21 }
 0x220   : > { %4756 = vrcp.f32 %v872_v24  ;;  %v4591_v26 = vpop.f32.mrb[8].mxu0  ;;  %4577 = vmatprep.mubr.msk.f32.mxu1 %vm4837_vm0, %v8655_v0 }
 0x221   : > { %v816_v28 = vpop.f32.mrb[9].mxu0  ;;  %v875_v18 = vadd.f32 %v4591_v26, %v867_v33 }
 0x222   : > { %v874_v23 = vadd.f32 %v866_v44, %v816_v28  ;;  %v5254_v28 = vld [vmem:[%s8839_s3 + $0x10] sm:$0x1]  ;;  %s5661_s3 = sld [smem:[#allocation2 + $0x12]] }
 0x223   : > { %v903_v33 = vrot.slane %v875_v18, %v5011_v38  ;;  %4578 = vmatmul.mubr.msk.f32.gmra.mrb[4].mxu1 %vm511_vm1, %v5254_v28 }
 0x224   : > { %v4594_v54 = vpop.f32.mrb[10].mxu0  ;;  %4603 = vmatprep.mubr.msk.f32.mxu1 %vm4837_vm0, %v8840_v57 }
 0x225   : > { %v877_v3 = vadd.f32 %v4594_v54, %v869_v30  ;;  %v826_v4 = vpop.f32.mrb[11].mxu0  ;;  %v873_v54 = vadd.f32 %v4588_v22, %v865_v58  ;;  %v899_v22 = vrot.slane %v874_v23, %v5011_v38 }
 0x226   : > { %v876_v63 = vadd.f32 %v868_v13, %v826_v4 }
 0x227   : > { %v911_v44 = vrot.slane %v877_v3, %v5011_v38 }
 0x228   : > { %v4597_v30 = vpop.f32.mrb[12].mxu0 }
 0x229   : > { %v879_v1 = vadd.f32 %v4597_v30, %v871_v6  ;;  %v836_v5 = vpop.f32.mrb[13].mxu0 }
 0x22a   : > { %v4757_v60 = vpop.eup %4756  ;;  %v878_v19 = vadd.f32 %v870_v16, %v836_v5  ;;  %v895_v5 = vrot.slane %v873_v54, %v5011_v38 }
 0x22b   : > { %v885_v26 = vrot.slane %v4757_v60, %v5011_v38  ;;  %v907_v60 = vrot.slane %v876_v63, %v5011_v38  ;;  %v919_v6 = vrot.slane %v879_v1, %v5011_v38 }
 0x22c   : > { %v915_v17 = vrot.slane %v878_v19, %v5011_v38 }
 0x22d   : > { %v5259_v58 = vmul.f32 %v885_v26, %v872_v24  ;;  %v5261_v4 = vmul.f32 %v885_v26, %v855_v20 }
 0x22f   : > { %v921_v13 = vmul.f32 %v895_v5, %v5259_v58  ;;  %v937_v16 = vmul.f32 %v895_v5, %v5261_v4  ;;  %v923_v30 = vmul.f32 %v903_v33, %v5259_v58  ;;  %v939_v0 = vmul.f32 %v903_v33, %v5261_v4 }
 0x230   : > { %v922_v20 = vmul.f32 %v899_v22, %v5259_v58  ;;  %v938_v24 = vmul.f32 %v899_v22, %v5261_v4  ;;  %v925_v26 = vmul.f32 %v911_v44, %v5259_v58  ;;  %v941_v59 = vmul.f32 %v911_v44, %v5261_v4 }
 0x231   : > { %v929_v55 = vsub.f32 %v873_v54, %v921_v13  ;;  %v931_v56 = vsub.f32 %v875_v18, %v923_v30  ;;  %v924_v33 = vmul.f32 %v907_v60, %v5259_v58  ;;  %v940_v12 = vmul.f32 %v907_v60, %v5261_v4 }
 0x232   : > { %v930_v5 = vsub.f32 %v874_v23, %v922_v20  ;;  %v933_v14 = vsub.f32 %v877_v3, %v925_v26  ;;  %v927_v10 = vmul.f32 %v919_v6, %v5259_v58  ;;  %v943_v15 = vmul.f32 %v919_v6, %v5261_v4 }
 0x233   : > { %4758 = vrcp.f32 %v929_v55  ;;  %v932_v22 = vsub.f32 %v876_v63, %v924_v33  ;;  %v926_v11 = vmul.f32 %v915_v17, %v5259_v58  ;;  %v942_v44 = vmul.f32 %v915_v17, %v5261_v4 }
 0x234   : > { %v935_v54 = vsub.f32 %v879_v1, %v927_v10  ;;  %v945_v23 = vsub.f32 %v5206_v31, %v937_v16  ;;  %v947_v3 = vsub.f32 %v5192_v27, %v939_v0  ;;  %v991_v60 = vrot.slane %v931_v56, %v5014_v39 }
 0x235   : > { %v934_v18 = vsub.f32 %v878_v19, %v926_v11  ;;  %v946_v20 = vsub.f32 %v5199_v29, %v938_v24  ;;  %v987_v6 = vrot.slane %v930_v5, %v5014_v39  ;;  %v949_v63 = vsub.f32 %v5186_v25, %v941_v59 }
 0x236   : > { %v999_v1 = vrot.slane %v933_v14, %v5014_v39  ;;  %v948_v10 = vsub.f32 %v5219_v34, %v940_v12  ;;  %v995_v0 = vrot.slane %v932_v22, %v5014_v39  ;;  %v951_v11 = vsub.f32 %v5212_v32, %v943_v15 }
 0x237   : > { %v1007_v27 = vrot.slane %v935_v54, %v5014_v39  ;;  %v1003_v29 = vrot.slane %v934_v18, %v5014_v39  ;;  %v979_v9 = vrot.slane %v5259_v58, %v5014_v39 }
 0x23d   : > { %v4759_v13 = vpop.eup %4758 }
 0x23e   : > { %v973_v30 = vrot.slane %v4759_v13, %v5014_v39 }
 0x240   : > { %v5291_v26 = vmul.f32 %v973_v30, %v929_v55  ;;  %v5293_v17 = vmul.f32 %v973_v30, %v945_v23 }
 0x242   : > { %v1011_v31 = vmul.f32 %v991_v60, %v5291_v26  ;;  %v1027_v59 = vmul.f32 %v991_v60, %v5293_v17  ;;  %v1010_v55 = vmul.f32 %v987_v6, %v5291_v26  ;;  %v1026_v25 = vmul.f32 %v987_v6, %v5293_v17 }
 0x243   : > { %v1013_v19 = vmul.f32 %v999_v1, %v5291_v26  ;;  %v1029_v12 = vmul.f32 %v999_v1, %v5293_v17  ;;  %v1012_v34 = vmul.f32 %v995_v0, %v5291_v26  ;;  %v1028_v15 = vmul.f32 %v995_v0, %v5293_v17 }
 0x244   : > { %v1019_v32 = vsub.f32 %v931_v56, %v1011_v31  ;;  %v5309_v16 = vsub.f32 %v947_v3, %v1027_v59  ;;  %v1018_v24 = vsub.f32 %v930_v5, %v1010_v55  ;;  %v1034_v33 = vsub.f32 %v946_v20, %v1026_v25 }
 0x245   : > { %v1021_v13 = vsub.f32 %v933_v14, %v1013_v19  ;;  %v5311_v23 = vsub.f32 %v949_v63, %v1029_v12  ;;  %v1020_v30 = vsub.f32 %v932_v22, %v1012_v34  ;;  %v5313_v60 = vsub.f32 %v948_v10, %v1028_v15 }
 0x246   : > { %4760 = vrcp.f32 %v1018_v24  ;;  %v1015_v6 = vmul.f32 %v1007_v27, %v5291_v26  ;;  %v1031_v1 = vmul.f32 %v1007_v27, %v5293_v17  ;;  %v950_v56 = vsub.f32 %v5224_v36, %v942_v44 }
 0x247   : > { %v1014_v3 = vmul.f32 %v1003_v29, %v5291_v26  ;;  %v1030_v5 = vmul.f32 %v1003_v29, %v5293_v17  ;;  %v1008_v22 = vmul.f32 %v979_v9, %v5291_v26  ;;  %v1024_v63 = vmul.f32 %v979_v9, %v5293_v17 }
 0x248   : > { %v1023_v14 = vsub.f32 %v935_v54, %v1015_v6  ;;  %v5322_v20 = vsub.f32 %v951_v11, %v1031_v1  ;;  %v1079_v44 = vrot.slane %v1019_v32, %v5020_v41  ;;  %v1087_v11 = vrot.slane %v1021_v13, %v5020_v41 }
 0x249   : > { %v1022_v10 = vsub.f32 %v934_v18, %v1014_v3  ;;  %v5326_v0 = vsub.f32 %v950_v56, %v1030_v5  ;;  %v1016_v27 = vsub.f32 %v5259_v58, %v1008_v22  ;;  %v1032_v39 = vsub.f32 %v5261_v4, %v1024_v63 }
 0x24a   : > { %v1083_v9 = vrot.slane %v1020_v30, %v5020_v41  ;;  %v1095_v18 = vrot.slane %v1023_v14, %v5020_v41 }
 0x24b   : > { %v1091_v59 = vrot.slane %v1022_v10, %v5020_v41  ;;  %v1067_v58 = vrot.slane %v1016_v27, %v5020_v41 }
 0x250   : > { %v4761_v31 = vpop.eup %4760 }
 0x251   : > { %v1061_v36 = vrot.slane %v4761_v31, %v5020_v41 }
 0x253   : > { %v5332_v29 = vmul.f32 %v1061_v36, %v1018_v24  ;;  %v5334_v54 = vmul.f32 %v1061_v36, %v1034_v33 }
 0x255   : > { %v1099_v4 = vmul.f32 %v1079_v44, %v5332_v29  ;;  %v1115_v55 = vmul.f32 %v1079_v44, %v5334_v54  ;;  %v1101_v25 = vmul.f32 %v1087_v11, %v5332_v29  ;;  %v1117_v19 = vmul.f32 %v1087_v11, %v5334_v54 }
 0x256   : > { %v1100_v12 = vmul.f32 %v1083_v9, %v5332_v29  ;;  %v1116_v34 = vmul.f32 %v1083_v9, %v5334_v54  ;;  %v1103_v15 = vmul.f32 %v1095_v18, %v5332_v29  ;;  %v1119_v24 = vmul.f32 %v1095_v18, %v5334_v54 }
 0x257   : > { %v1123_v33 = vsub.f32 %v5309_v16, %v1115_v55  ;;  %v1107_v6 = vsub.f32 %v1019_v32, %v1099_v4  ;;  %v1109_v1 = vsub.f32 %v1021_v13, %v1101_v25  ;;  %v1125_v56 = vsub.f32 %v5311_v23, %v1117_v19 }
 0x258   : > { %v1108_v3 = vsub.f32 %v1020_v30, %v1100_v12  ;;  %v1124_v5 = vsub.f32 %v5313_v60, %v1116_v34  ;;  %v1111_v22 = vsub.f32 %v1023_v14, %v1103_v15  ;;  %v1127_v63 = vsub.f32 %v5322_v20, %v1119_v24 }
 0x259   : > { %4762 = vrcp.f32 %v1107_v6  ;;  %v1102_v31 = vmul.f32 %v1091_v59, %v5332_v29  ;;  %v1118_v36 = vmul.f32 %v1091_v59, %v5334_v54  ;;  %v1071_v44 = vrot.slane %v5291_v26, %v5020_v41 }
 0x25a   : > { %v1096_v16 = vmul.f32 %v1067_v58, %v5332_v29  ;;  %v1112_v32 = vmul.f32 %v1067_v58, %v5334_v54  ;;  %v1183_v4 = vrot.slane %v1111_v22, %v5017_v40 }
 0x25b   : > { %v1110_v13 = vsub.f32 %v1022_v10, %v1102_v31  ;;  %v1126_v23 = vsub.f32 %v5326_v0, %v1118_v36  ;;  %v1097_v30 = vmul.f32 %v1071_v44, %v5332_v29  ;;  %v1113_v60 = vmul.f32 %v1071_v44, %v5334_v54 }
 0x25c   : > { %v1104_v14 = vsub.f32 %v1016_v27, %v1096_v16  ;;  %v5362_v20 = vsub.f32 %v1032_v39, %v1112_v32  ;;  %v1175_v10 = vrot.slane %v1109_v1, %v5017_v40  ;;  %v1171_v0 = vrot.slane %v1108_v3, %v5017_v40 }
 0x25d   : > { %v1105_v11 = vsub.f32 %v5291_v26, %v1097_v30  ;;  %v1121_v9 = vsub.f32 %v5293_v17, %v1113_v60  ;;  %v1179_v27 = vrot.slane %v1110_v13, %v5017_v40 }
 0x25e   : > { %v1155_v39 = vrot.slane %v1104_v14, %v5017_v40 }
 0x25f   : > { %v1159_v26 = vrot.slane %v1105_v11, %v5017_v40 }
 0x263   : > { %v4763_v18 = vpop.eup %4762 }
 0x264   : > { %v1149_v41 = vrot.slane %v4763_v18, %v5017_v40 }
 0x266   : > { %v5367_v59 = vmul.f32 %v1149_v41, %v1107_v6  ;;  %v5369_v58 = vmul.f32 %v1149_v41, %v1123_v33  ;;  %v1163_v41 = vrot.slane %v5332_v29, %v5017_v40 }
 0x268   : > { %v1189_v17 = vmul.f32 %v1175_v10, %v5367_v59  ;;  %v1205_v55 = vmul.f32 %v1175_v10, %v5369_v58  ;;  %v1188_v25 = vmul.f32 %v1171_v0, %v5367_v59  ;;  %v1204_v19 = vmul.f32 %v1171_v0, %v5369_v58 }
 0x269   : > { %v1191_v12 = vmul.f32 %v1183_v4, %v5367_v59  ;;  %v1207_v34 = vmul.f32 %v1183_v4, %v5369_v58  ;;  %v1190_v15 = vmul.f32 %v1179_v27, %v5367_v59  ;;  %v1206_v24 = vmul.f32 %v1179_v27, %v5369_v58 }
 0x26a   : > { %v1197_v33 = vsub.f32 %v1109_v1, %v1189_v17  ;;  %v5385_v6 = vsub.f32 %v1125_v56, %v1205_v55  ;;  %v1196_v31 = vsub.f32 %v1108_v3, %v1188_v25  ;;  %v1212_v36 = vsub.f32 %v1124_v5, %v1204_v19 }
 0x26b   : > { %v1199_v44 = vsub.f32 %v1111_v22, %v1191_v12  ;;  %v5387_v16 = vsub.f32 %v1127_v63, %v1207_v34  ;;  %v1198_v32 = vsub.f32 %v1110_v13, %v1190_v15  ;;  %v5389_v30 = vsub.f32 %v1126_v23, %v1206_v24 }
 0x26c   : > { %4764 = vrcp.f32 %v1196_v31  ;;  %v1184_v60 = vmul.f32 %v1155_v39, %v5367_v59  ;;  %v1200_v18 = vmul.f32 %v1155_v39, %v5369_v58  ;;  %v1185_v1 = vmul.f32 %v1159_v26, %v5367_v59 }
 0x26d   : > { %v1201_v56 = vmul.f32 %v1159_v26, %v5369_v58  ;;  %v1186_v22 = vmul.f32 %v1163_v41, %v5367_v59  ;;  %v1202_v63 = vmul.f32 %v1163_v41, %v5369_v58  ;;  %v1263_v27 = vrot.slane %v1197_v33, %v5023_v42 }
 0x26e   : > { %v1192_v3 = vsub.f32 %v1104_v14, %v1184_v60  ;;  %v1208_v5 = vsub.f32 %v5362_v20, %v1200_v18  ;;  %v1193_v13 = vsub.f32 %v1105_v11, %v1185_v1  ;;  %v1271_v20 = vrot.slane %v1199_v44, %v5023_v42 }
 0x26f   : > { %v5400_v23 = vsub.f32 %v1121_v9, %v1201_v56  ;;  %v1194_v10 = vsub.f32 %v5332_v29, %v1186_v22  ;;  %v1210_v0 = vsub.f32 %v5334_v54, %v1202_v63  ;;  %v1267_v26 = vrot.slane %v1198_v32, %v5023_v42 }
 0x270   : > { %v1243_v11 = vrot.slane %v1192_v3, %v5023_v42  ;;  %v1247_v9 = vrot.slane %v1193_v13, %v5023_v42 }
 0x271   : > { %v1251_v29 = vrot.slane %v1194_v10, %v5023_v42 }
 0x276   : > { %v4765_v4 = vpop.eup %4764 }
 0x277   : > { %v1237_v40 = vrot.slane %v4765_v4, %v5023_v42  ;;  %v1255_v4 = vrot.slane %v5367_v59, %v5023_v42 }
 0x279   : > { %v5406_v39 = vmul.f32 %v1237_v40, %v1196_v31  ;;  %v5408_v14 = vmul.f32 %v1237_v40, %v1212_v36 }
 0x27b   : > { %v1277_v54 = vmul.f32 %v1263_v27, %v5406_v39  ;;  %v1293_v17 = vmul.f32 %v1263_v27, %v5408_v14  ;;  %v1279_v55 = vmul.f32 %v1271_v20, %v5406_v39  ;;  %v1295_v25 = vmul.f32 %v1271_v20, %v5408_v14 }
 0x27c   : > { %v1278_v19 = vmul.f32 %v1267_v26, %v5406_v39  ;;  %v1294_v12 = vmul.f32 %v1267_v26, %v5408_v14  ;;  %v1272_v34 = vmul.f32 %v1243_v11, %v5406_v39  ;;  %v1288_v15 = vmul.f32 %v1243_v11, %v5408_v14 }
 0x27d   : > { %v1301_v24 = vsub.f32 %v5385_v6, %v1293_v17  ;;  %v1285_v31 = vsub.f32 %v1197_v33, %v1277_v54  ;;  %v1287_v36 = vsub.f32 %v1199_v44, %v1279_v55  ;;  %v1303_v60 = vsub.f32 %v5387_v16, %v1295_v25 }
 0x27e   : > { %v1286_v18 = vsub.f32 %v1198_v32, %v1278_v19  ;;  %v1302_v41 = vsub.f32 %v5389_v30, %v1294_v12  ;;  %v1280_v1 = vsub.f32 %v1192_v3, %v1272_v34  ;;  %v5426_v56 = vsub.f32 %v1208_v5, %v1288_v15 }
 0x27f   : > { %4766 = vrcp.f32 %v1285_v31  ;;  %v1273_v22 = vmul.f32 %v1247_v9, %v5406_v39  ;;  %v1289_v63 = vmul.f32 %v1247_v9, %v5408_v14  ;;  %v1274_v6 = vmul.f32 %v1251_v29, %v5406_v39 }
 0x280   : > { %v1290_v33 = vmul.f32 %v1251_v29, %v5408_v14  ;;  %v1275_v32 = vmul.f32 %v1255_v4, %v5406_v39  ;;  %v1291_v5 = vmul.f32 %v1255_v4, %v5408_v14 }
 0x281   : > { %v1281_v44 = vsub.f32 %v1193_v13, %v1273_v22  ;;  %v1297_v16 = vsub.f32 %v5400_v23, %v1289_v63  ;;  %v1282_v30 = vsub.f32 %v1194_v10, %v1274_v6  ;;  %v1359_v13 = vrot.slane %v1287_v36, %v5026_v43 }
 0x282   : > { %v5436_v3 = vsub.f32 %v1210_v0, %v1290_v33  ;;  %v1283_v40 = vsub.f32 %v5367_v59, %v1275_v32  ;;  %v1299_v27 = vsub.f32 %v5369_v58, %v1291_v5  ;;  %v1355_v23 = vrot.slane %v1286_v18, %v5026_v43 }
 0x283   : > { %v1331_v10 = vrot.slane %v1280_v1, %v5026_v43  ;;  %v1335_v0 = vrot.slane %v1281_v44, %v5026_v43  ;;  %v1339_v29 = vrot.slane %v1282_v30, %v5026_v43  ;;  %v1347_v59 = vrot.slane %v5406_v39, %v5026_v43 }
 0x289   : > { %v4767_v20 = vpop.eup %4766 }
 0x28a   : > { %v1325_v26 = vrot.slane %v4767_v20, %v5026_v43  ;;  %v1343_v20 = vrot.slane %v1283_v40, %v5026_v43 }
 0x28c   : > { %v5442_v11 = vmul.f32 %v1325_v26, %v1285_v31  ;;  %v5444_v9 = vmul.f32 %v1325_v26, %v1301_v24 }
 0x28e   : > { %v1367_v58 = vmul.f32 %v1359_v13, %v5442_v11  ;;  %v1383_v54 = vmul.f32 %v1359_v13, %v5444_v9  ;;  %v1366_v17 = vmul.f32 %v1355_v23, %v5442_v11  ;;  %v1382_v55 = vmul.f32 %v1355_v23, %v5444_v9 }
 0x28f   : > { %v1360_v25 = vmul.f32 %v1331_v10, %v5442_v11  ;;  %v1376_v19 = vmul.f32 %v1331_v10, %v5444_v9  ;;  %v1361_v12 = vmul.f32 %v1335_v0, %v5442_v11  ;;  %v1377_v34 = vmul.f32 %v1335_v0, %v5444_v9 }
 0x290   : > { %v1375_v15 = vsub.f32 %v1287_v36, %v1367_v58  ;;  %v5461_v24 = vsub.f32 %v1303_v60, %v1383_v54  ;;  %v1374_v31 = vsub.f32 %v1286_v18, %v1366_v17  ;;  %v1390_v22 = vsub.f32 %v1302_v41, %v1382_v55 }
 0x291   : > { %v1368_v63 = vsub.f32 %v1280_v1, %v1360_v25  ;;  %v1384_v4 = vsub.f32 %v5426_v56, %v1376_v19  ;;  %v1369_v6 = vsub.f32 %v1281_v44, %v1361_v12  ;;  %v5464_v33 = vsub.f32 %v1297_v16, %v1377_v34 }
 0x292   : > { %4768 = vrcp.f32 %v1374_v31  ;;  %v1362_v32 = vmul.f32 %v1339_v29, %v5442_v11  ;;  %v1378_v5 = vmul.f32 %v1339_v29, %v5444_v9  ;;  %v1364_v26 = vmul.f32 %v1347_v59, %v5442_v11 }
 0x293   : > { %v1380_v36 = vmul.f32 %v1347_v59, %v5444_v9  ;;  %v1363_v41 = vmul.f32 %v1343_v20, %v5442_v11  ;;  %v1379_v1 = vmul.f32 %v1343_v20, %v5444_v9  ;;  %v1447_v0 = vrot.slane %v1375_v15, %v5032_v45 }
 0x294   : > { %v1370_v60 = vsub.f32 %v1282_v30, %v1362_v32  ;;  %v1386_v18 = vsub.f32 %v5436_v3, %v1378_v5  ;;  %v1372_v56 = vsub.f32 %v5406_v39, %v1364_v26  ;;  %v1419_v3 = vrot.slane %v1368_v63, %v5032_v45 }
 0x295   : > { %v1388_v44 = vsub.f32 %v5408_v14, %v1380_v36  ;;  %v1371_v16 = vsub.f32 %v1283_v40, %v1363_v41  ;;  %v5476_v13 = vsub.f32 %v1299_v27, %v1379_v1  ;;  %v1423_v59 = vrot.slane %v1369_v6, %v5032_v45 }
 0x296   : > { %v1427_v58 = vrot.slane %v1370_v60, %v5032_v45  ;;  %v1435_v39 = vrot.slane %v1372_v56, %v5032_v45 }
 0x297   : > { %v1431_v14 = vrot.slane %v1371_v16, %v5032_v45 }
 0x29c   : > { %v4769_v23 = vpop.eup %4768 }
 0x29d   : > { %v1413_v10 = vrot.slane %v4769_v23, %v5032_v45  ;;  %v1439_v23 = vrot.slane %v5442_v11, %v5032_v45 }
 0x29f   : > { %v1414_v29 = vmul.f32 %v1413_v10, %v1374_v31  ;;  %v5480_v30 = vmul.f32 %v1413_v10, %v1390_v22 }
 0x2a1   : > { %v1455_v40 = vmul.f32 %v1447_v0, %v1414_v29  ;;  %v1448_v27 = vmul.f32 %v1419_v3, %v1414_v29  ;;  %v1464_v54 = vmul.f32 %v1419_v3, %v5480_v30  ;;  %v1471_v17 = vmul.f32 %v1447_v0, %v5480_v30 }
 0x2a2   : > { %v1449_v55 = vmul.f32 %v1423_v59, %v1414_v29  ;;  %v1465_v25 = vmul.f32 %v1423_v59, %v5480_v30  ;;  %v1450_v19 = vmul.f32 %v1427_v58, %v1414_v29  ;;  %v1466_v12 = vmul.f32 %v1427_v58, %v5480_v30 }
 0x2a3   : > { %v1463_v34 = vsub.f32 %v1375_v15, %v1455_v40  ;;  %v1456_v31 = vsub.f32 %v1368_v63, %v1448_v27  ;;  %v1472_v22 = vsub.f32 %v1384_v4, %v1464_v54  ;;  %v1479_v32 = vsub.f32 %v5461_v24, %v1471_v17 }
 0x2a4   : > { %v1457_v5 = vsub.f32 %v1369_v6, %v1449_v55  ;;  %v1473_v20 = vsub.f32 %v5464_v33, %v1465_v25  ;;  %v1458_v26 = vsub.f32 %v1370_v60, %v1450_v19  ;;  %v1474_v36 = vsub.f32 %v1386_v18, %v1466_v12 }
 0x2a5   : > { %4770 = vrcp.f32 %v1463_v34  ;;  %v1452_v41 = vmul.f32 %v1435_v39, %v1414_v29  ;;  %v1468_v1 = vmul.f32 %v1435_v39, %v5480_v30  ;;  %v1451_v10 = vmul.f32 %v1431_v14, %v1414_v29 }
 0x2a6   : > { %v1467_v0 = vmul.f32 %v1431_v14, %v5480_v30  ;;  %v1453_v4 = vmul.f32 %v1439_v23, %v1414_v29  ;;  %v1469_v6 = vmul.f32 %v1439_v23, %v5480_v30  ;;  %v1506_v58 = vrot.slane %v1456_v31, %v5035_v46 }
 0x2a7   : > { %v1460_v15 = vsub.f32 %v1372_v56, %v1452_v41  ;;  %v1476_v63 = vsub.f32 %v1388_v44, %v1468_v1  ;;  %v1459_v3 = vsub.f32 %v1371_v16, %v1451_v10  ;;  %v1510_v56 = vrot.slane %v1457_v5, %v5035_v46 }
 0x2a8   : > { %v1475_v24 = vsub.f32 %v5476_v13, %v1467_v0  ;;  %v1461_v33 = vsub.f32 %v5442_v11, %v1453_v4  ;;  %v1477_v60 = vsub.f32 %v5444_v9, %v1469_v6  ;;  %v1514_v44 = vrot.slane %v1458_v26, %v5035_v46 }
 0x2a9   : > { %v1522_v16 = vrot.slane %v1460_v15, %v5035_v46  ;;  %v1518_v13 = vrot.slane %v1459_v3, %v5035_v46  ;;  %v1530_v14 = vrot.slane %v1414_v29, %v5035_v46  ;;  %v5711_v41 = vsel %vm847_vm6, %v5045_v49, 0.0 }
 0x2aa   : > { %v1526_v11 = vrot.slane %v1461_v33, %v5035_v46  ;;  %8855 = vst [vmem:[#allocation43_spill] sm:$0xff] %v5711_v41  ;;  %v5715_v1 = vmul.f32 %v5049_v50, %v5008_v37  ;;  %v5720_v23 = vsel %vm850_vm8, %v5049_v50, 0.0  ;;  %v5728_v10 = vmul.f32 %v5053_v51, %v5008_v37 }
 0x2ab   : > { %8857 = vst [vmem:[#allocation45_spill] sm:$0xff] %v5720_v23  ;;  %v5733_v0 = vsel %vm849_vm9, %v5053_v51, 0.0  ;;  %v5737_v15 = vmul.f32 %v5057_v52, %v5008_v37  ;;  %v5749_v4 = vsel %vm852_vm7, %v5057_v52, 0.0  ;;  %v5753_v3 = vmul.f32 %v5061_v53, %v5008_v37 }
 0x2ac   : > { %8856 = vst [vmem:[#allocation44_spill] sm:$0xff] %v5715_v1  ;;  %8860 = vst [vmem:[#allocation48_spill] sm:$0xff] %v5728_v10  ;;  %v5762_v6 = vmul.f32 %v5090_v61, %v5008_v37  ;;  %v5770_v33 = vmul.f32 %v5041_v48, %v5092_v62  ;;  %v6258_v1 = vstv %s5913_s5  ;;  %s6282_s5 = sld [smem:[#allocation2 + $0x63]]  ;;  %vm2398_vm8 = vcmask 123905  }
 0x2ad   : > { %8861 = vst [vmem:[#allocation49_spill] sm:$0xff] %v5733_v0  ;;  %8862 = vst [vmem:[#allocation50_spill] sm:$0xff] %v5737_v15  ;;  %vm2505_vm9 = vcmask 124930  }
 0x2ae   : > { %8865 = vst [vmem:[#allocation53_spill] sm:$0xff] %v5749_v4  ;;  %8866 = vst [vmem:[#allocation54_spill] sm:$0xff] %v5753_v3  ;;  %v6245_v3 = vstv %s5897_s10  ;;  %s6266_s10 = sld [smem:[#allocation2 + $0x61]] }
 0x2af   : > { %v4771_v18 = vpop.eup %4770  ;;  %8868 = vst [vmem:[#allocation56_spill] sm:$0xff] %v5762_v6  ;;  %8871 = vst [vmem:[#allocation59_spill] sm:$0xff] %v5770_v33  ;;  %v6114_v33 = vstv %s5669_s9  ;;  %s8959_s9 = sld [smem:[#allocation51_spill]] }
 0x2b0   : > { %v1501_v59 = vrot.slane %v4771_v18, %v5035_v46  ;;  %v5779_v18 = vsel %vm854_vm11, %v5090_v61, 0.0  ;;  %9022 = vst [vmem:[#allocation155_spill] sm:$0xff] %v6245_v3  ;;  %9028 = vst [vmem:[#allocation158_spill] sm:$0xff] %v6258_v1  ;;  %vm2719_vm11 = vcmask 126980  }
 0x2b1   : > { %8873 = vst [vmem:[#allocation61_spill] sm:$0xff] %v5779_v18 }
 0x2b2   : > { %v5503_v39 = vmul.f32 %v1501_v59, %v1479_v32  ;;  %v5787_v59 = vrot.slane %v5037_v47, %v5023_v42  ;;  %v5807_v42 = vrot.slane %v5037_v47, %v5032_v45  ;;  %v5828_v45 = vmul.f32 %v5061_v53, %v5092_v62 }
 0x2b4   : > { %v1535_v9 = vmul.f32 %v1506_v58, %v5503_v39  ;;  %v1536_v40 = vmul.f32 %v1510_v56, %v5503_v39  ;;  %v1537_v27 = vmul.f32 %v1514_v44, %v5503_v39  ;;  %v1539_v54 = vmul.f32 %v1522_v16, %v5503_v39  ;;  %8884 = vst [vmem:[#allocation72_spill] sm:$0xff] %v5828_v45 }
 0x2b5   : > { %v1538_v17 = vmul.f32 %v1518_v13, %v5503_v39  ;;  %v1541_v55 = vmul.f32 %v1530_v14, %v5503_v39  ;;  %v1540_v25 = vmul.f32 %v1526_v11, %v5503_v39  ;;  %v5803_v58 = vrot.slane %v5037_v47, %v5026_v43  ;;  %v8903_v13 = vld [vmem:[#allocation22_spill] sm:$0xff] }
 0x2b6   : > { %v1543_v19 = vsub.f32 %v1472_v22, %v1535_v9  ;;  %v1544_v12 = vsub.f32 %v1473_v20, %v1536_v40  ;;  %v1545_v34 = vsub.f32 %v1474_v36, %v1537_v27  ;;  %v1547_v29 = vsub.f32 %v1476_v63, %v1539_v54  ;;  %v8912_v54 = vld [vmem:[#allocation27_spill] sm:$0xff] }
 0x2b7   : > { %v1546_v31 = vsub.f32 %v1475_v24, %v1538_v17  ;;  %v1549_v32 = vsub.f32 %v5480_v30, %v1541_v55  ;;  %v1548_v5 = vsub.f32 %v1477_v60, %v1540_v25  ;;  %v5619_v30 = vpop.f32.mrb[0].mxu1  ;;  %v5744_v63 = vadd.s32 8, %v5000_v35 }
 0x2b8   : > { %4599 = vmatpush3.msra.mxu0 %v1543_v19  ;;  %4691 = vmatpush3.msra.mxu1 %v1543_v19  ;;  %8841 = vst [vmem:[#allocation29_spill] sm:$0xff] %v5619_v30  ;;  %v4573_v22 = vpop.f32.mrb[1].mxu1  ;;  %v5758_v24 = vsel %vm851_vm12, %v5061_v53, 0.0  ;;  %v5774_v60 = vmul.f32 %v5045_v49, %v5092_v62  ;;  %v5823_v43 = vrot.slane %v5092_v62, %v5011_v38  ;;  %v6098_v45 = vstv %s5661_s3  ;;  %s8951_s3 = sld [smem:[#allocation41_spill]] }
 0x2b9   : > { %4601 = vmatmul.mubr.msk.f32.vlgmr.msra.gmra.mrb[14].mxu0 %vm511_vm1, %v5232_v8  ;;  %4604 = vmatmul.mubr.msk.f32.vlgmr.msra.gmra.mrb[6].mxu1 %vm511_vm1, %v5243_v21  ;;  %8867 = vst [vmem:[#allocation55_spill] sm:$0xff] %v5758_v24  ;;  %vm3130_vm14 = vcmp.eq.s32.totalorder %v5744_v63, 8  ;;  %vm3237_vm15 = vcmp.eq.s32.totalorder %v5744_v63, 9  ;;  %v5845_v38 = vmul.f32 %v5108_v2, %v5092_v62  ;;  %v5858_v53 = vmul.f32 %v5787_v59, %v5008_v37 }
 0x2ba   : > { %4609 = vmatprep.subr.mxu1 %v8840_v57  ;;  %4620 = vmatprep.subr.mxu0 %v8840_v57  ;;  %8872 = vst [vmem:[#allocation60_spill] sm:$0xff] %v5774_v60  ;;  %8883 = vst [vmem:[#allocation71_spill] sm:$0xff] %v5823_v43  ;;  %v5876_v56 = vsel %vm3130_vm14, %v5129_v7, 0.0  ;;  %v5889_v16 = vmul.f32 %v5823_v43, %v5008_v37  ;;  %v5894_v14 = vsel %vm3237_vm15, %v8903_v13, 0.0  ;;  %vm3558_vm2 = vcmp.eq.s32.totalorder %v5744_v63, 12 }
 0x2bb   : > { %4610 = vmatpush3.msra.mxu1 %v1544_v12  ;;  %4621 = vmatpush3.msra.mxu0 %v1545_v34  ;;  %8889 = vst [vmem:[#allocation77_spill] sm:$0xff] %v5845_v38  ;;  %8893 = vst [vmem:[#allocation81_spill] sm:$0xff] %v5858_v53  ;;  %v5903_v11 = vmul.f32 %v5129_v7, %v5037_v47  ;;  %v5907_v9 = vmul.f32 %v8903_v13, %v5037_v47  ;;  %vm3665_vm5 = vcmp.eq.s32.totalorder %v5744_v63, 13  ;;  %vm2826_vm12 = vcmask 128005  }
 0x2bc   : > { %4606 = vmatprep.mubr.msk.f32.mxu1 %vm4837_vm0, %v8840_v57  ;;  %4622 = vmatprep.mubr.msk.f32.mxu0 %vm4837_vm0, %v8840_v57  ;;  %8898 = vst [vmem:[#allocation86_spill] sm:$0xff] %v5876_v56  ;;  %8902 = vst [vmem:[#allocation90_spill] sm:$0xff] %v5889_v16  ;;  %vm3772_vm6 = vcmp.eq.s32.totalorder %v5744_v63, 14  ;;  %v5926_v17 = vmul.f32 %v8912_v54, %v5037_v47  ;;  %vm3879_vm7 = vcmp.eq.s32.totalorder %v5744_v63, 15  ;;  %v5945_v19 = vsel %vm3558_vm2, %v5787_v59, 0.0 }
 0x2bd   : > { %4642 = vmatprep.subr.mxu0 %v8840_v57  ;;  %4607 = vmatmul.mubr.msk.f32.gmra.mrb[8].mxu1 %vm511_vm1, %v5254_v28  ;;  %8904 = vst [vmem:[#allocation22_spill] sm:$0xff] %v5894_v14  ;;  %8906 = vst [vmem:[#allocation92_spill] sm:$0xff] %v5903_v11  ;;  %v5940_v25 = vmul.f32 %v5787_v59, %v5037_v47  ;;  %v5949_v12 = vmul.f32 %v5803_v58, %v5037_v47  ;;  %v5958_v34 = vsel %vm3665_vm5, %v5803_v58, 0.0  ;;  %vm3040_vm14 = vcmask 130055  }
 0x2be   : > { %4623 = vmatmul.mubr.msk.f32.vlgmr.msra.gmra.mrb[16].mxu0 %vm511_vm1, %v5232_v8  ;;  %4611 = vmatprep.mubr.msk.f32.mxu1 %vm4837_vm0, %v8840_v57  ;;  %8907 = vst [vmem:[#allocation93_spill] sm:$0xff] %v5907_v9  ;;  %8913 = vst [vmem:[#allocation27_spill] sm:$0xff] %v5926_v17  ;;  %v5982_v22 = vmul.f32 %v5823_v43, %v5037_v47  ;;  %v6034_v43 = vstv %s5629_s29  ;;  %s6060_s29 = sld [smem:[#allocation2 + $0x48]]  ;;  %v6088_v38 = vstv %s5657_s1  ;;  %s8946_s1 = sld [smem:[#allocation36_spill]]  ;;  %v6117_v60 = vstv %s5671_s17 }
 0x2bf   : > { %4643 = vmatpush3.msra.mxu0 %v1547_v29  ;;  %4625 = vmatprep.mubr.msk.f32.mxu0 %vm4837_vm0, %v8840_v57  ;;  %8917 = vst [vmem:[#allocation99_spill] sm:$0xff] %v5940_v25  ;;  %8918 = vst [vmem:[#allocation100_spill] sm:$0xff] %v5945_v19  ;;  %v5962_v29 = vmul.f32 %v5807_v42, %v5037_v47  ;;  %s8961_s17 = sld [smem:[#allocation52_spill]]  ;;  %v6146_v19 = vstv %s5685_s13  ;;  %s8979_s13 = sld [smem:[#allocation69_spill]]  ;;  %v6175_v17 = vstv %s8959_s9  ;;  %v6399_v3 = vstv %s6266_s10 }
 0x2c0   : > { %4631 = vmatprep.subr.mxu1 %v8840_v57  ;;  %4664 = vmatprep.subr.mxu0 %v8840_v57  ;;  %8919 = vst [vmem:[#allocation101_spill] sm:$0xff] %v5949_v12  ;;  %8922 = vst [vmem:[#allocation104_spill] sm:$0xff] %v5958_v34  ;;  %v6143_v34 = vstv %s5683_s16  ;;  %s8981_s16 = sld [smem:[#allocation70_spill]]  ;;  %s8997_s9 = sld [smem:[#allocation87_spill]] }
 0x2c1   : > { %4612 = vmatmul.mubr.msk.f32.vlgmr.msra.gmra.mrb[10].mxu1 %vm511_vm1, %v5232_v8  ;;  %8923 = vst [vmem:[#allocation105_spill] sm:$0xff] %v5962_v29  ;;  %8929 = vst [vmem:[#allocation111_spill] sm:$0xff] %v5982_v22  ;;  %v6120_v22 = vstv %s5673_s14  ;;  %s8963_s14 = sld [smem:[#allocation57_spill]]  ;;  %s7846_s10 = sld [smem:[#allocation2 + $0x77]] }
 0x2c2   : > { %4626 = vmatmul.mubr.msk.f32.gmra.mrb[18].mxu0 %vm511_vm1, %v5243_v21  ;;  %4632 = vmatpush3.msra.mxu1 %v1546_v31  ;;  %v5967_v31 = vsel %vm3772_vm6, %v5807_v42, 0.0  ;;  %8950 = vst [vmem:[#allocation124_spill] sm:$0xff] %v6120_v22  ;;  %8966 = vst [vmem:[#allocation129_spill] sm:$0xff] %v6143_v34 }
 0x2c3   : > { %4614 = vmatprep.mubr.msk.f32.mxu1 %vm4837_vm0, %v8840_v57  ;;  %4628 = vmatprep.mubr.msk.f32.mxu0 %vm4837_vm0, %v8840_v57  ;;  %8924 = vst [vmem:[#allocation106_spill] sm:$0xff] %v5967_v31  ;;  %v6130_v31 = vstv %s5677_s7  ;;  %8967 = vst [vmem:[#allocation130_spill] sm:$0xff] %v6146_v19  ;;  %s8969_s7 = sld [smem:[#allocation62_spill]] }
 0x2c4   : > { %4653 = vmatprep.subr.mxu1 %v8840_v57  ;;  %8957 = vst [vmem:[#allocation126_spill] sm:$0xff] %v6130_v31  ;;  %v6149_v12 = vstv %s8946_s1  ;;  %s6170_s1 = sld [smem:[#allocation2 + $0x55]]  ;;  %8985 = vst [vmem:[#allocation137_spill] sm:$0xff] %v6175_v17 }
 0x2c5   : > { %4615 = vmatmul.mubr.msk.f32.gmra.mrb[12].mxu1 %vm511_vm1, %v5243_v21  ;;  %8968 = vst [vmem:[#allocation131_spill] sm:$0xff] %v6149_v12  ;;  %9082 = vst [vmem:[#allocation197_spill] sm:$0xff] %v6399_v3 }
 0x2c6   : > { %4629 = vmatmul.mubr.msk.f32.gmra.mrb[20].mxu0 %vm511_vm1, %v5254_v28  ;;  %4617 = vmatprep.mubr.msk.f32.mxu1 %vm4837_vm0, %v8840_v57  ;;  %v6210_v53 = vstv %s8981_s16  ;;  %s9016_s16 = sld [smem:[#allocation103_spill]]  ;;  %v6239_v24 = vstv %s8997_s9  ;;  %s6284_s9 = sld [smem:[#allocation2 + $0x64]] }
 0x2c7   : > { %4644 = vmatprep.mubr.msk.f32.mxu0 %vm4837_vm0, %v8840_v57  ;;  %v6181_v9 = vstv %s8963_s14  ;;  %s6202_s14 = sld [smem:[#allocation2 + $0x59]]  ;;  %9004 = vst [vmem:[#allocation146_spill] sm:$0xff] %v6210_v53  ;;  %9020 = vst [vmem:[#allocation153_spill] sm:$0xff] %v6239_v24 }
 0x2c8   : > { %8987 = vst [vmem:[#allocation139_spill] sm:$0xff] %v6181_v9 }
 0x2c9   : > { %4618 = vmatmul.mubr.msk.f32.gmra.mrb[14].mxu1 %vm511_vm1, %v5254_v28 }
 0x2ca   : > { %4645 = vmatmul.mubr.msk.f32.vlgmr.msra.gmra.mrb[22].mxu0 %vm511_vm1, %v5232_v8  ;;  %4633 = vmatprep.mubr.msk.f32.mxu1 %vm4837_vm0, %v8840_v57  ;;  %8982 = sst [smem:[#allocation41_spill]] %s6170_s1  ;;  %s8993_s1 = sld [smem:[#allocation83_spill]] }
 0x2cb   : > { %4665 = vmatpush3.msra.mxu0 %v1549_v32  ;;  %4647 = vmatprep.mubr.msk.f32.mxu0 %vm4837_vm0, %v8840_v57 }
 0x2cd   : > { %4634 = vmatmul.mubr.msk.f32.vlgmr.msra.gmra.mrb[16].mxu1 %vm511_vm1, %v5232_v8 }
 0x2ce   : > { %4654 = vmatpush3.msra.mxu1 %v1548_v5  ;;  %4636 = vmatprep.mubr.msk.f32.mxu1 %vm4837_vm0, %v8840_v57 }
 0x2cf   : > { %4648 = vmatmul.mubr.msk.f32.gmra.mrb[24].mxu0 %vm511_vm1, %v5243_v21  ;;  %4675 = vmatprep.subr.mxu1 %v8840_v57 }
 0x2d0   : > { %4650 = vmatprep.mubr.msk.f32.mxu0 %vm4837_vm0, %v8840_v57  ;;  %v6232_v15 = vstv %s8993_s1  ;;  %s6252_s1 = sld [smem:[#allocation2 + $0x60]] }
 0x2d1   : > { %4637 = vmatmul.mubr.msk.f32.gmra.mrb[18].mxu1 %vm511_vm1, %v5243_v21  ;;  %9015 = vst [vmem:[#allocation152_spill] sm:$0xff] %v6232_v15 }
 0x2d2   : > { %4639 = vmatprep.mubr.msk.f32.mxu1 %vm4837_vm0, %v8840_v57 }
 0x2d3   : > { %4651 = vmatmul.mubr.msk.f32.gmra.mrb[26].mxu0 %vm511_vm1, %v5254_v28 }
 0x2d4   : > { %4666 = vmatprep.mubr.msk.f32.mxu0 %vm4837_vm0, %v8840_v57 }
 0x2d5   : > { %4640 = vmatmul.mubr.msk.f32.gmra.mrb[20].mxu1 %vm511_vm1, %v5254_v28 }
 0x2d6   : > { %4655 = vmatprep.mubr.msk.f32.mxu1 %vm4837_vm0, %v8840_v57 }
 0x2d7   : > { %4667 = vmatmul.mubr.msk.f32.vlgmr.msra.gmra.mrb[28].mxu0 %vm511_vm1, %v5232_v8 }
 0x2d8   : > { %4669 = vmatprep.mubr.msk.f32.mxu0 %vm4837_vm0, %v8840_v57 }
 0x2d9   : > { %4656 = vmatmul.mubr.msk.f32.vlgmr.msra.gmra.mrb[22].mxu1 %vm511_vm1, %v5232_v8 }
 0x2da   : > { %4676 = vmatpush3.msra.mxu1 %v5503_v39  ;;  %4658 = vmatprep.mubr.msk.f32.mxu1 %vm4837_vm0, %v8840_v57  ;;  %v5836_v39 = vmul.f32 %v5108_v2, %v5008_v37 }
 0x2db   : > { %4670 = vmatmul.mubr.msk.f32.gmra.mrb[30].mxu0 %vm511_vm1, %v5243_v21 }
 0x2dc   : > { %4672 = vmatprep.mubr.msk.f32.mxu0 %vm4837_vm0, %v8840_v57  ;;  %8886 = vst [vmem:[#allocation74_spill] sm:$0xff] %v5836_v39 }
 0x2dd   : > { %4659 = vmatmul.mubr.msk.f32.gmra.mrb[24].mxu1 %vm511_vm1, %v5243_v21 }
 0x2de   : > { %4661 = vmatprep.mubr.msk.f32.mxu1 %vm4837_vm0, %v8840_v57 }
 0x2df   : > { %4673 = vmatmul.mubr.msk.f32.gmra.mrb[32].mxu0 %vm511_vm1, %v5254_v28 }
 0x2e1   : > { %4662 = vmatmul.mubr.msk.f32.gmra.mrb[26].mxu1 %vm511_vm1, %v5254_v28 }
 0x2e2   : > { %4677 = vmatprep.mubr.msk.f32.mxu1 %vm4837_vm0, %v8840_v57 }
 0x2e5   : > { %4678 = vmatmul.mubr.msk.f32.vlgmr.msra.gmra.mrb[28].mxu1 %vm511_vm1, %v5232_v8 }
 0x2e6   : > { %4680 = vmatprep.mubr.msk.f32.mxu1 %vm4837_vm0, %v8840_v57 }
 0x2e9   : > { %4681 = vmatmul.mubr.msk.f32.gmra.mrb[30].mxu1 %vm511_vm1, %v5243_v21  ;;  %v5698_v21 = vsel %vm848_vm10, %v5041_v48, 0.0  ;;  %vm2612_vm10 = vcmask 125955  }
 0x2ea   : > { %4683 = vmatprep.mubr.msk.f32.mxu1 %vm4837_vm0, %v8840_v57  ;;  %v5693_v57 = vmul.f32 %v5041_v48, %v5008_v37  ;;  %8851 = vst [vmem:[#allocation39_spill] sm:$0xff] %v5698_v21  ;;  %v5791_v48 = vmul.f32 %v5049_v50, %v5092_v62  ;;  %v5811_v50 = vmul.f32 %v5057_v52, %v5092_v62  ;;  %vm3344_vm0 = vcmp.eq.s32.totalorder %v5744_v63, 10 }
 0x2eb   : > { %v5832_v52 = vmul.f32 %v5090_v61, %v5092_v62  ;;  %v5867_v61 = vmul.f32 %v5803_v58, %v5008_v37 }
 0x2ec   : > { %8850 = vst [vmem:[#allocation38_spill] sm:$0xff] %v5693_v57  ;;  %8876 = vst [vmem:[#allocation64_spill] sm:$0xff] %v5791_v48  ;;  %v6274_v57 = vstv %s9016_s16  ;;  %s6314_s16 = sld [smem:[#allocation2 + $0x67]] }
 0x2ed   : > { %4684 = vmatmul.mubr.msk.f32.gmra.mrb[32].mxu1 %vm511_vm1, %v5254_v28  ;;  %v5706_v28 = vmul.f32 %v5045_v49, %v5008_v37  ;;  %v5795_v49 = vmul.f32 %v5053_v51, %v5092_v62  ;;  %8880 = vst [vmem:[#allocation68_spill] sm:$0xff] %v5811_v50  ;;  %v5819_v51 = vrot.slane %v5037_v47, %v5035_v46  ;;  %8885 = vst [vmem:[#allocation73_spill] sm:$0xff] %v5832_v52 }
 0x2ee   : > { %v5850_v46 = vsel %vm853_vm13, %v5108_v2, 0.0  ;;  %8896 = vst [vmem:[#allocation84_spill] sm:$0xff] %v5867_v61  ;;  %v5871_v2 = vmul.f32 %v5807_v42, %v5008_v37  ;;  %vm3451_vm1 = vcmp.eq.s32.totalorder %v5744_v63, 11  ;;  %v5997_v63 = vmul.f32 %v8903_v13, %v5092_v62  ;;  %9032 = vst [vmem:[#allocation162_spill] sm:$0xff] %v6274_v57 }
 0x2ef   : > { %8854 = vst [vmem:[#allocation42_spill] sm:$0xff] %v5706_v28  ;;  %8877 = vst [vmem:[#allocation65_spill] sm:$0xff] %v5795_v49  ;;  %v5885_v44 = vmul.f32 %v5819_v51, %v5008_v37  ;;  %v8909_v37 = vld [vmem:[#allocation24_spill] sm:$0xff]  ;;  %v5936_v55 = vsel %vm3451_vm1, %v8912_v54, 0.0  ;;  %v5971_v32 = vmul.f32 %v5819_v51, %v5037_v47  ;;  %v5978_v5 = vsel %vm3879_vm7, %v5819_v51, 0.0 }
 0x2f0   : > { %8890 = vst [vmem:[#allocation78_spill] sm:$0xff] %v5850_v46  ;;  %8897 = vst [vmem:[#allocation85_spill] sm:$0xff] %v5871_v2  ;;  %v5917_v40 = vmul.f32 %v8909_v37, %v5037_v47  ;;  %v5922_v27 = vsel %vm3344_vm0, %v8909_v37, 0.0  ;;  %v6001_v47 = vmul.f32 %v8909_v37, %v5092_v62  ;;  %v6020_v13 = vmul.f32 %v5803_v58, %v5092_v62 }
 0x2f1   : > { %8901 = vst [vmem:[#allocation89_spill] sm:$0xff] %v5885_v44  ;;  %8911 = vst [vmem:[#allocation95_spill] sm:$0xff] %v5922_v27  ;;  %v6024_v37 = vmul.f32 %v5807_v42, %v5092_v62  ;;  %v6040_v58 = vstv %s5633_s11  ;;  %v6047_v42 = vstv %s5635_s12  ;;  %s8943_s11 = sld [smem:[#allocation33_spill]]  ;;  %s6074_s12 = sld [smem:[#allocation2 + $0x49]]  ;;  %v6085_v52 = vstv %s5655_s0 }
 0x2f2   : > { %v5621_v20 = vpop.f32.mrb[2].mxu1  ;;  %8910 = vst [vmem:[#allocation24_spill] sm:$0xff] %v5917_v40  ;;  %8916 = vst [vmem:[#allocation98_spill] sm:$0xff] %v5936_v55  ;;  %v6095_v50 = vstv %s5659_s2  ;;  %s6106_s0 = sld [smem:[#allocation2 + $0x4d]]  ;;  %s8949_s2 = sld [smem:[#allocation40_spill]]  ;;  %v6162_v27 = vstv %s8951_s3  ;;  %v6178_v40 = vstv %s8961_s17  ;;  %v6207_v61 = vstv %s8979_s13 }
 0x2f3   : > { %8842 = vst [vmem:[#allocation30_spill] sm:$0xff] %v5621_v20  ;;  %v4576_v26 = vpop.f32.mrb[3].mxu1  ;;  %8925 = vst [vmem:[#allocation107_spill] sm:$0xff] %v5971_v32  ;;  %s8990_s3 = sld [smem:[#allocation80_spill]]  ;;  %v6191_v20 = vstv %s8969_s7  ;;  %s8999_s17 = sld [smem:[#allocation88_spill]]  ;;  %v6417_v24 = vstv %s6314_s16  ;;  %vm2933_vm13 = vcmask 129030  }
 0x2f4   : > { %8928 = vst [vmem:[#allocation110_spill] sm:$0xff] %v5978_v5  ;;  %v5985_v26 = vadd.s32 16, %v5000_v35  ;;  %8934 = vst [vmem:[#allocation116_spill] sm:$0xff] %v5997_v63  ;;  %v6005_v35 = vmul.f32 %v8912_v54, %v5092_v62  ;;  %v6031_v54 = vstv %s5627_s28  ;;  %s6058_s28 = sld [smem:[#allocation2 + $0x47]]  ;;  %v6079_v63 = vstv %s5651_s25  ;;  %s8953_s25 = sld [smem:[#allocation46_spill]] }
 0x2f5   : > { %8935 = vst [vmem:[#allocation117_spill] sm:$0xff] %v6001_v47  ;;  %8939 = vst [vmem:[#allocation121_spill] sm:$0xff] %v6020_v13  ;;  %v6066_v13 = vstv %s5645_s22  ;;  %v6072_v47 = vstv %s5649_s24  ;;  %s8945_s22 = sld [smem:[#allocation35_spill]]  ;;  %s8948_s24 = sld [smem:[#allocation37_spill]]  ;;  %v6127_v5 = vstv %s5675_s15 }
 0x2f6   : > { %v5623_v36 = vpop.f32.mrb[4].mxu1  ;;  %8930 = vst [vmem:[#allocation112_spill] sm:$0xff] %v5985_v26  ;;  %8936 = vst [vmem:[#allocation118_spill] sm:$0xff] %v6005_v35  ;;  %v6012_v26 = vstv %s5625_s27  ;;  %s6042_s27 = sld [smem:[#allocation2 + $0x45]]  ;;  %v6069_v35 = vstv %s5647_s23  ;;  %s6108_s23 = sld [smem:[#allocation2 + $0x4e]] }
 0x2f7   : > { %8843 = vst [vmem:[#allocation31_spill] sm:$0xff] %v5623_v36  ;;  %v4579_v8 = vpop.f32.mrb[5].mxu1  ;;  %8940 = vst [vmem:[#allocation122_spill] sm:$0xff] %v6024_v37  ;;  %v6063_v37 = vstv %s5643_s21  ;;  %s6092_s21 = sld [smem:[#allocation2 + $0x4c]]  ;;  %v6101_v36 = vstv %s5663_s4  ;;  %v6111_v49 = vstv %s8943_s11  ;;  %s6122_s4 = sld [smem:[#allocation2 + $0x4f]] }
 0x2f8   : > { %v5989_v8 = vmul.f32 %v5129_v7, %v5092_v62  ;;  %v6009_v7 = vmul.f32 %v5787_v59, %v5092_v62  ;;  %v6028_v59 = vmul.f32 %v5819_v51, %v5092_v62  ;;  %v6050_v51 = vstv %s5637_s18  ;;  %s6076_s18 = sld [smem:[#allocation2 + $0x4a]]  ;;  %8956 = vst [vmem:[#allocation125_spill] sm:$0xff] %v6127_v5  ;;  %s6138_s11 = sld [smem:[#allocation2 + $0x51]]  ;;  %8977 = vst [vmem:[#allocation134_spill] sm:$0xff] %v6162_v27 }
 0x2f9   : > { %v6053_v62 = vstv %s5639_s19  ;;  %s6090_s19 = sld [smem:[#allocation2 + $0x4b]]  ;;  %s8971_s15 = sld [smem:[#allocation63_spill]]  ;;  %v6159_v55 = vstv %s8949_s2  ;;  %8986 = vst [vmem:[#allocation138_spill] sm:$0xff] %v6178_v40  ;;  %8994 = vst [vmem:[#allocation141_spill] sm:$0xff] %v6191_v20  ;;  %v6226_v4 = vstv %s8990_s3  ;;  %v6242_v23 = vstv %s8999_s17 }
 0x2fa   : > { %8931 = vst [vmem:[#allocation113_spill] sm:$0xff] %v5989_v8  ;;  %8937 = vst [vmem:[#allocation119_spill] sm:$0xff] %v6009_v7  ;;  %v6037_v7 = vstv %s5631_s30  ;;  %s8942_s30 = sld [smem:[#allocation32_spill]]  ;;  %v6082_v8 = vstv %s5653_s26  ;;  %s6124_s26 = sld [smem:[#allocation2 + $0x50]]  ;;  %v6165_v14 = vstv %s8953_s25 }
 0x2fb   : > { %8941 = vst [vmem:[#allocation123_spill] sm:$0xff] %v6028_v59  ;;  %v6056_v59 = vstv %s5641_s20  ;;  %s8944_s20 = sld [smem:[#allocation34_spill]]  ;;  %v6136_v29 = vstv %s8945_s22  ;;  %v6152_v25 = vstv %s8948_s24  ;;  %s8973_s22 = sld [smem:[#allocation66_spill]]  ;;  %8976 = vst [vmem:[#allocation133_spill] sm:$0xff] %v6159_v55 }
 0x2fc   : > { %8947 = sst [smem:[#allocation32_spill]] %s6108_s23  ;;  %8960 = vst [vmem:[#allocation128_spill] sm:$0xff] %v6136_v29  ;;  %s6140_s23 = sld [smem:[#allocation2 + $0x52]]  ;;  %8970 = vst [vmem:[#allocation132_spill] sm:$0xff] %v6152_v25 }
 0x2fd   : > { %8952 = sst [smem:[#allocation33_spill]] %s6122_s4  ;;  %s8965_s4 = sld [smem:[#allocation58_spill]]  ;;  %8978 = vst [vmem:[#allocation135_spill] sm:$0xff] %v6165_v14  ;;  %9003 = vst [vmem:[#allocation145_spill] sm:$0xff] %v6207_v61 }
 0x2fe   : > { %8962 = sst [smem:[#allocation35_spill]] %s6138_s11  ;;  %s8975_s11 = sld [smem:[#allocation67_spill]]  ;;  %9012 = vst [vmem:[#allocation150_spill] sm:$0xff] %v6226_v4  ;;  %9021 = vst [vmem:[#allocation154_spill] sm:$0xff] %v6242_v23  ;;  %v6408_v23 = vstv %s6284_s9 }
 0x2ff   : > { %s8983_s24 = sld [smem:[#allocation75_spill]]  ;;  %s8988_s2 = sld [smem:[#allocation79_spill]]  ;;  %v6194_v16 = vstv %s8971_s15  ;;  %9085 = vst [vmem:[#allocation200_spill] sm:$0xff] %v6408_v23  ;;  %9088 = vst [vmem:[#allocation203_spill] sm:$0xff] %v6417_v24 }
 0x300   : > { %v6104_v48 = vstv %s8942_s30  ;;  %8954 = sst [smem:[#allocation34_spill]] %s6124_s26  ;;  %s8955_s30 = sld [smem:[#allocation47_spill]]  ;;  %8995 = vst [vmem:[#allocation142_spill] sm:$0xff] %v6194_v16 }
 0x301   : > { %v6133_v32 = vstv %s8944_s20  ;;  %s6154_s20 = sld [smem:[#allocation2 + $0x53]]  ;;  %s6156_s26 = sld [smem:[#allocation2 + $0x54]]  ;;  %v6197_v44 = vstv %s8973_s22 }
 0x302   : > { %8958 = vst [vmem:[#allocation127_spill] sm:$0xff] %v6133_v32  ;;  %8964 = sst [smem:[#allocation36_spill]] %s6140_s23  ;;  %s6172_s23 = sld [smem:[#allocation2 + $0x56]]  ;;  %8996 = vst [vmem:[#allocation143_spill] sm:$0xff] %v6197_v44 }
 0x303   : > { %v6184_v11 = vstv %s8965_s4  ;;  %s6186_s25 = sld [smem:[#allocation2 + $0x57]]  ;;  %9000 = sst [smem:[#allocation47_spill]] %s6202_s14 }
 0x304   : > { %8989 = vst [vmem:[#allocation140_spill] sm:$0xff] %v6184_v11  ;;  %v6200_v2 = vstv %s8975_s11  ;;  %s6204_s4 = sld [smem:[#allocation2 + $0x5a]]  ;;  %s6218_s15 = sld [smem:[#allocation2 + $0x5b]] }
 0x305   : > { %8998 = vst [vmem:[#allocation144_spill] sm:$0xff] %v6200_v2  ;;  %v6213_v18 = vstv %s8983_s24  ;;  %s9006_s7 = sld [smem:[#allocation94_spill]]  ;;  %s9009_s11 = sld [smem:[#allocation96_spill]]  ;;  %v6223_v46 = vstv %s8988_s2 }
 0x306   : > { %v6168_v56 = vstv %s8955_s30  ;;  %s8992_s30 = sld [smem:[#allocation82_spill]]  ;;  %9005 = vst [vmem:[#allocation147_spill] sm:$0xff] %v6213_v18  ;;  %s6220_s22 = sld [smem:[#allocation2 + $0x5c]]  ;;  %9011 = vst [vmem:[#allocation149_spill] sm:$0xff] %v6223_v46 }
 0x307   : > { %8972 = sst [smem:[#allocation37_spill]] %s6154_s20  ;;  %8980 = vst [vmem:[#allocation136_spill] sm:$0xff] %v6168_v56  ;;  %s9010_s14 = sld [smem:[#allocation97_spill]] }
 0x308   : > { %8974 = sst [smem:[#allocation40_spill]] %s6156_s26  ;;  %s8984_s20 = sld [smem:[#allocation76_spill]] }
 0x309   : > { %8991 = sst [smem:[#allocation46_spill]] %s6186_s25  ;;  %s6188_s26 = sld [smem:[#allocation2 + $0x58]] }
 0x30a   : > { %9001 = sst [smem:[#allocation51_spill]] %s6204_s4  ;;  %s9002_s25 = sld [smem:[#allocation91_spill]] }
 0x30b   : > { %9008 = sst [smem:[#allocation52_spill]] %s6218_s15  ;;  %s9014_s13 = sld [smem:[#allocation102_spill]]  ;;  %v6255_v30 = vstv %s9006_s7  ;;  %v6261_v10 = vstv %s9009_s11 }
 0x30c   : > { %v6229_v39 = vstv %s8992_s30  ;;  %s6234_s24 = sld [smem:[#allocation2 + $0x5d]]  ;;  %s6236_s4 = sld [smem:[#allocation2 + $0x5e]]  ;;  %9027 = vst [vmem:[#allocation157_spill] sm:$0xff] %v6255_v30  ;;  %9029 = vst [vmem:[#allocation159_spill] sm:$0xff] %v6261_v10  ;;  %v6293_v30 = vstv %s6014_s6 }
 0x30d   : > { %9013 = vst [vmem:[#allocation151_spill] sm:$0xff] %v6229_v39  ;;  %s9019_s15 = sld [smem:[#allocation109_spill]]  ;;  %s9023_s2 = sld [smem:[#allocation114_spill]]  ;;  %v6264_v21 = vstv %s9010_s14  ;;  %9037 = vst [vmem:[#allocation167_spill] sm:$0xff] %v6293_v30  ;;  %v6322_v30 = vstv %s6076_s18 }
 0x30e   : > { %v6216_v6 = vstv %s8984_s20  ;;  %s9018_s20 = sld [smem:[#allocation108_spill]]  ;;  %s9025_s3 = sld [smem:[#allocation115_spill]]  ;;  %9030 = vst [vmem:[#allocation160_spill] sm:$0xff] %v6264_v21  ;;  %9051 = vst [vmem:[#allocation174_spill] sm:$0xff] %v6322_v30 }
 0x30f   : > { %9007 = vst [vmem:[#allocation148_spill] sm:$0xff] %v6216_v6  ;;  %s6250_s30 = sld [smem:[#allocation2 + $0x5f]]  ;;  %s9039_s17 = sld [smem:[#allocation32_spill]] }
 0x310   : > { %v6248_v0 = vstv %s9002_s25  ;;  %s6268_s25 = sld [smem:[#allocation2 + $0x62]]  ;;  %s6298_s14 = sld [smem:[#allocation2 + $0x65]] }
 0x311   : > { %9024 = vst [vmem:[#allocation156_spill] sm:$0xff] %v6248_v0  ;;  %v6271_v41 = vstv %s9014_s13  ;;  %s9040_s7 = sld [smem:[#allocation33_spill]]  ;;  %s9041_s11 = sld [smem:[#allocation34_spill]]  ;;  %v6396_v0 = vstv %s6252_s1 }
 0x312   : > { %9017 = sst [smem:[#allocation57_spill]] %s6234_s24  ;;  %s9026_s24 = sld [smem:[#allocation120_spill]]  ;;  %9031 = vst [vmem:[#allocation161_spill] sm:$0xff] %v6271_v41  ;;  %v6309_v41 = vstv %s6058_s28  ;;  %9081 = vst [vmem:[#allocation196_spill] sm:$0xff] %v6396_v0 }
 0x313   : > { %v6280_v1 = vstv %s9019_s15  ;;  %v6287_v21 = vstv %s9023_s2  ;;  %s6300_s15 = sld [smem:[#allocation2 + $0x66]]  ;;  %9044 = vst [vmem:[#allocation171_spill] sm:$0xff] %v6309_v41  ;;  %s9045_s13 = sld [smem:[#allocation35_spill]] }
 0x314   : > { %v6277_v28 = vstv %s9018_s20  ;;  %9034 = vst [vmem:[#allocation164_spill] sm:$0xff] %v6280_v1  ;;  %9035 = vst [vmem:[#allocation165_spill] sm:$0xff] %v6287_v21  ;;  %v6290_v10 = vstv %s9025_s3  ;;  %v6303_v1 = vstv %s6042_s27  ;;  %s9047_s6 = sld [smem:[#allocation36_spill]]  ;;  %s6316_s20 = sld [smem:[#allocation2 + $0x68]]  ;;  %v6325_v21 = vstv %s6090_s19 }
 0x315   : > { %9033 = vst [vmem:[#allocation163_spill] sm:$0xff] %v6277_v28  ;;  %9036 = vst [vmem:[#allocation166_spill] sm:$0xff] %v6290_v10  ;;  %v6306_v28 = vstv %s6044_s8  ;;  %v6312_v10 = vstv %s6060_s29  ;;  %s9049_s2 = sld [smem:[#allocation40_spill]]  ;;  %s9053_s8 = sld [smem:[#allocation41_spill]]  ;;  %v6338_v41 = vstv %s9039_s17 }
 0x316   : > { %9042 = vst [vmem:[#allocation169_spill] sm:$0xff] %v6303_v1  ;;  %9043 = vst [vmem:[#allocation170_spill] sm:$0xff] %v6306_v28  ;;  %v6328_v28 = vstv %s6092_s21  ;;  %s6330_s27 = sld [smem:[#allocation2 + $0x69]]  ;;  %s9055_s28 = sld [smem:[#allocation46_spill]] }
 0x317   : > { %9046 = vst [vmem:[#allocation172_spill] sm:$0xff] %v6312_v10  ;;  %9052 = vst [vmem:[#allocation175_spill] sm:$0xff] %v6325_v21  ;;  %s6332_s29 = sld [smem:[#allocation2 + $0x6a]]  ;;  %v6335_v10 = vstv %s6106_s0  ;;  %v6341_v1 = vstv %s9040_s7  ;;  %v6344_v30 = vstv %s9041_s11  ;;  %s9062_s18 = sld [smem:[#allocation51_spill]] }
 0x318   : > { %v6296_v57 = vstv %s9026_s24  ;;  %s9048_s24 = sld [smem:[#allocation37_spill]]  ;;  %9054 = vst [vmem:[#allocation176_spill] sm:$0xff] %v6328_v28  ;;  %9057 = vst [vmem:[#allocation177_spill] sm:$0xff] %v6335_v10  ;;  %s6346_s19 = sld [smem:[#allocation2 + $0x6b]] }
 0x319   : > { %9038 = vst [vmem:[#allocation168_spill] sm:$0xff] %v6296_v57  ;;  %v6319_v57 = vstv %s6074_s12  ;;  %9058 = vst [vmem:[#allocation178_spill] sm:$0xff] %v6338_v41  ;;  %s9060_s12 = sld [smem:[#allocation47_spill]]  ;;  %s9063_s21 = sld [smem:[#allocation52_spill]]  ;;  %v6351_v28 = vstv %s9045_s13  ;;  %v6366_v41 = vstv %s6172_s23 }
 0x31a   : > { %9050 = vst [vmem:[#allocation173_spill] sm:$0xff] %v6319_v57  ;;  %9059 = vst [vmem:[#allocation179_spill] sm:$0xff] %v6341_v1  ;;  %s6348_s3 = sld [smem:[#allocation2 + $0x6c]]  ;;  %v6354_v21 = vstv %s9047_s6  ;;  %s4401_s0 = sld [smem:[#allocation2 + $0x6d]]  ;;  %v6393_v57 = vstv %s6250_s30 }
 0x31b   : > { %9061 = vst [vmem:[#allocation180_spill] sm:$0xff] %v6344_v30  ;;  %9064 = vst [vmem:[#allocation181_spill] sm:$0xff] %v6351_v28  ;;  %v6360_v1 = vstv %s9049_s2  ;;  %s4412_s17 = sld [smem:[#allocation2 + $0x6e]]  ;;  %v6363_v30 = vstv %s9053_s8  ;;  %s4423_s7 = sld [smem:[#allocation2 + $0x6f]] }
 0x31c   : > { %9066 = vst [vmem:[#allocation182_spill] sm:$0xff] %v6354_v21  ;;  %9068 = vst [vmem:[#allocation184_spill] sm:$0xff] %v6360_v1  ;;  %v6369_v28 = vstv %s9055_s28  ;;  %v6372_v21 = vstv %s6188_s26  ;;  %s4434_s11 = sld [smem:[#allocation2 + $0x70]]  ;;  %s7561_s23 = sld [smem:[#allocation2 + $0x71]] }
 0x31d   : > { %9056 = sst [smem:[#allocation58_spill]] %s6332_s29  ;;  %s9065_s29 = sld [smem:[#allocation57_spill]]  ;;  %9069 = vst [vmem:[#allocation185_spill] sm:$0xff] %v6363_v30  ;;  %9070 = vst [vmem:[#allocation186_spill] sm:$0xff] %v6366_v41  ;;  %v6384_v41 = vstv %s6220_s22 }
 0x31e   : > { %v6357_v10 = vstv %s9048_s24  ;;  %9071 = vst [vmem:[#allocation187_spill] sm:$0xff] %v6369_v28  ;;  %9072 = vst [vmem:[#allocation188_spill] sm:$0xff] %v6372_v21  ;;  %s9075_s13 = sld [smem:[#allocation58_spill]]  ;;  %v6390_v21 = vstv %s6236_s4  ;;  %v6429_v0 = vstv %s6346_s19  ;;  %s7573_s4 = sld [smem:[#allocation2 + $0x73]] }
 0x31f   : > { %9067 = vst [vmem:[#allocation183_spill] sm:$0xff] %v6357_v10  ;;  %v6375_v1 = vstv %s9060_s12  ;;  %v6378_v10 = vstv %s9062_s18  ;;  %v6381_v30 = vstv %s9063_s21  ;;  %9077 = vst [vmem:[#allocation192_spill] sm:$0xff] %v6384_v41  ;;  %v6414_v41 = vstv %s6300_s15  ;;  %s7563_s26 = sld [smem:[#allocation2 + $0x72]]  ;;  %s7575_s22 = sld [smem:[#allocation2 + $0x74]] }
 0x320   : > { %9073 = vst [vmem:[#allocation189_spill] sm:$0xff] %v6375_v1  ;;  %9074 = vst [vmem:[#allocation190_spill] sm:$0xff] %v6378_v10  ;;  %v6402_v1 = vstv %s6268_s25  ;;  %v6405_v10 = vstv %s6282_s5  ;;  %v6432_v3 = vstv %s6348_s3  ;;  %v6436_v23 = vstv %s4401_s0  ;;  %s7584_s30 = sld [smem:[#allocation2 + $0x75]]  ;;  %s7590_s1 = sld [smem:[#allocation2 + $0x76]] }
 0x321   : > { %9076 = vst [vmem:[#allocation191_spill] sm:$0xff] %v6381_v30  ;;  %9079 = vst [vmem:[#allocation194_spill] sm:$0xff] %v6390_v21  ;;  %v6411_v30 = vstv %s6298_s14  ;;  %v6423_v21 = vstv %s6330_s27  ;;  %s7848_s25 = sld [smem:[#allocation2 + $0x78]]  ;;  %s7864_s5 = sld [smem:[#allocation2 + $0x79]] }
 0x322   : > { %9080 = vst [vmem:[#allocation195_spill] sm:$0xff] %v6393_v57  ;;  %9083 = vst [vmem:[#allocation198_spill] sm:$0xff] %v6402_v1  ;;  %v6442_v24 = vstv %s4434_s11  ;;  %s7874_s9 = sld [smem:[#allocation2 + $0x7a]]  ;;  %s7884_s14 = sld [smem:[#allocation2 + $0x7b]] }
 0x323   : > { %v6387_v28 = vstv %s9065_s29  ;;  %9084 = vst [vmem:[#allocation199_spill] sm:$0xff] %v6405_v10  ;;  %9086 = vst [vmem:[#allocation201_spill] sm:$0xff] %v6411_v30  ;;  %v6438_v30 = vstv %s4412_s17  ;;  %s9456_s15 = sld [smem:[#allocation11_spill]]  ;;  %s7902_s6 = sld [smem:[#allocation2 + $0x7c]] }
 0x324   : > { %9078 = vst [vmem:[#allocation193_spill] sm:$0xff] %v6387_v28  ;;  %9087 = vst [vmem:[#allocation202_spill] sm:$0xff] %v6414_v41  ;;  %v6420_v28 = vstv %s6316_s20  ;;  %v6426_v57 = vstv %s9075_s13  ;;  %v6440_v41 = vstv %s4423_s7  ;;  %s7904_s16 = sld [smem:[#allocation2 + $0x7d]]  ;;  %s9460_s24 = sld [smem:[#allocation12_spill]] }
 0x325   : > { %9089 = vst [vmem:[#allocation204_spill] sm:$0xff] %v6420_v28  ;;  %9090 = vst [vmem:[#allocation205_spill] sm:$0xff] %v6423_v21  ;;  %s7938_s2 = sld [smem:[#allocation2 + $0x7e]]  ;;  %s9467_s28 = sld [smem:[#allocation257_spill]] }
 0x326   : > { %9091 = vst [vmem:[#allocation206_spill] sm:$0xff] %v6426_v57  ;;  %9092 = vst [vmem:[#allocation207_spill] sm:$0xff] %v6429_v0  ;;  %s7963_s12 = sld [smem:[#allocation2 + $0x7f]]  ;;  %s9471_s21 = sld [smem:[#allocation255_spill]] }
 0x327   : > { %9093 = vst [vmem:[#allocation208_spill] sm:$0xff] %v6432_v3  ;;  %9094 = vst [vmem:[#allocation209_spill] sm:$0xff] %v6436_v23  ;;  %s7985_s0 = sld [smem:[#allocation2 + $0x80]]  ;;  %s7987_s17 = sld [smem:[#allocation2 + $0x81]] }
 0x328   : > { %9095 = vst [vmem:[#allocation210_spill] sm:$0xff] %v6438_v30  ;;  %9096 = vst [vmem:[#allocation211_spill] sm:$0xff] %v6440_v41  ;;  %s8004_s7 = sld [smem:[#allocation2 + $0x82]]  ;;  %s8006_s11 = sld [smem:[#allocation2 + $0x83]] }
 0x329   : > { %9097 = vst [vmem:[#allocation212_spill] sm:$0xff] %v6442_v24  ;;  %s4693_s20 = smul.u32 408, %s9456_s15  ;;  %s8035_s13 = sld [smem:[#allocation2 + $0x84]] }
 0x32b   : > { %s7951_s29 = scalar_lea.vmem %s9467_s28, %s9460_s24 }
 0x32c   : > { %s7968_s3 = scalar_lea.vmem %s9471_s21, %s4693_s20 }
 0x38c   : > { %v1630_v1 = vpop.f32.mrb[6].mxu1  ;;  %v6434_v10 = vpop.f32.mrb[14].mxu0 }
 0x38d   : > { %v6445_v28 = vmul.f32 %v6012_v26, %v1630_v1  ;;  %v6448_v57 = vmul.f32 %v6031_v54, %v1630_v1  ;;  %v6451_v0 = vmul.f32 %v6034_v43, %v1630_v1  ;;  %v6454_v3 = vmul.f32 %v6037_v7, %v1630_v1  ;;  %v4605_v21 = vpop.f32.mrb[7].mxu1  ;;  %v4602_v23 = vpop.f32.mrb[15].mxu0 }
 0x38e   : > { %v6457_v30 = vmul.f32 %v6040_v58, %v1630_v1  ;;  %v6460_v41 = vmul.f32 %v6047_v42, %v1630_v1  ;;  %v6463_v24 = vmul.f32 %v6050_v51, %v1630_v1  ;;  %v6466_v15 = vmul.f32 %v6053_v62, %v1630_v1 }
 0x38f   : > { %v6469_v39 = vmul.f32 %v6056_v59, %v1630_v1  ;;  %v6472_v4 = vmul.f32 %v6063_v37, %v1630_v1  ;;  %v6475_v21 = vmul.f32 %v6066_v13, %v1630_v1  ;;  %v6478_v23 = vmul.f32 %v6069_v35, %v1630_v1 }
 0x390   : > { %v6481_v46 = vmul.f32 %v6072_v47, %v1630_v1  ;;  %v6484_v6 = vmul.f32 %v6079_v63, %v1630_v1  ;;  %v6487_v18 = vmul.f32 %v6082_v8, %v1630_v1  ;;  %v6490_v53 = vmul.f32 %v6085_v52, %v1630_v1  ;;  %v1635_v61 = vpop.f32.mrb[8].mxu1 }
 0x391   : > { %v6493_v2 = vmul.f32 %v6088_v38, %v1630_v1  ;;  %v6496_v44 = vmul.f32 %v6012_v26, %v1635_v61  ;;  %v6499_v16 = vmul.f32 %v6031_v54, %v1635_v61  ;;  %v6502_v20 = vmul.f32 %v6034_v43, %v1635_v61  ;;  %v4608_v11 = vpop.f32.mrb[9].mxu1  ;;  %v6504_v9 = vpop.f32.mrb[16].mxu0 }
 0x392   : > { %9098 = vst [vmem:[#allocation213_spill] sm:$0xff] %v6481_v46  ;;  %9099 = vst [vmem:[#allocation214_spill] sm:$0xff] %v6484_v6  ;;  %v6507_v40 = vmul.f32 %v6037_v7, %v1635_v61  ;;  %v6510_v17 = vmul.f32 %v6040_v58, %v1635_v61  ;;  %v6513_v1 = vmul.f32 %v6047_v42, %v1635_v61 }
 0x393   : > { %9100 = vst [vmem:[#allocation215_spill] sm:$0xff] %v6487_v18  ;;  %9101 = vst [vmem:[#allocation216_spill] sm:$0xff] %v6490_v53  ;;  %v6522_v11 = vmul.f32 %v6056_v59, %v1635_v61 }
 0x394   : > { %9102 = vst [vmem:[#allocation217_spill] sm:$0xff] %v6493_v2  ;;  %9103 = vst [vmem:[#allocation218_spill] sm:$0xff] %v6496_v44  ;;  %v6516_v44 = vmul.f32 %v6050_v51, %v1635_v61  ;;  %v4624_v2 = vpop.f32.mrb[17].mxu0 }
 0x395   : > { %9104 = vst [vmem:[#allocation219_spill] sm:$0xff] %v6499_v16  ;;  %9105 = vst [vmem:[#allocation220_spill] sm:$0xff] %v6502_v20  ;;  %v6519_v16 = vmul.f32 %v6053_v62, %v1635_v61  ;;  %v6525_v20 = vmul.f32 %v6063_v37, %v1635_v61  ;;  %v6537_v2 = vmul.f32 %v6079_v63, %v1635_v61  ;;  %v6554_v53 = vpop.f32.mrb[18].mxu0 }
 0x396   : > { %9106 = vst [vmem:[#allocation221_spill] sm:$0xff] %v6504_v9  ;;  %9107 = vst [vmem:[#allocation222_spill] sm:$0xff] %v6507_v40  ;;  %v6528_v40 = vmul.f32 %v6066_v13, %v1635_v61 }
 0x397   : > { %9108 = vst [vmem:[#allocation223_spill] sm:$0xff] %v6510_v17  ;;  %9109 = vst [vmem:[#allocation224_spill] sm:$0xff] %v6513_v1  ;;  %v6531_v17 = vmul.f32 %v6069_v35, %v1635_v61  ;;  %v6534_v1 = vmul.f32 %v6072_v47, %v1635_v61 }
 0x398   : > { %9110 = vst [vmem:[#allocation225_spill] sm:$0xff] %v6516_v44  ;;  %9111 = vst [vmem:[#allocation226_spill] sm:$0xff] %v6519_v16  ;;  %v6540_v16 = vmul.f32 %v6082_v8, %v1635_v61  ;;  %v6542_v44 = vpop.f32.mrb[10].mxu1 }
 0x399   : > { %9112 = vst [vmem:[#allocation227_spill] sm:$0xff] %v6522_v11  ;;  %9113 = vst [vmem:[#allocation228_spill] sm:$0xff] %v6525_v20  ;;  %v6545_v11 = vmul.f32 %v6085_v52, %v1635_v61  ;;  %v6548_v20 = vmul.f32 %v6088_v38, %v1635_v61  ;;  %v2739_v61 = vmul.f32 %v6047_v42, %v6434_v10 }
 0x39a   : > { %9114 = vst [vmem:[#allocation229_spill] sm:$0xff] %v6528_v40  ;;  %9115 = vst [vmem:[#allocation230_spill] sm:$0xff] %v6531_v17  ;;  %v2203_v17 = vmul.f32 %v6012_v26, %v6434_v10  ;;  %v4613_v40 = vpop.f32.mrb[11].mxu1  ;;  %v2846_v26 = vmul.f32 %v6050_v51, %v6434_v10  ;;  %v3595_v42 = vmul.f32 %v6079_v63, %v6434_v10 }
 0x39b   : > { %9116 = vst [vmem:[#allocation231_spill] sm:$0xff] %v6534_v1  ;;  %9117 = vst [vmem:[#allocation232_spill] sm:$0xff] %v6537_v2  ;;  %v2311_v1 = vmul.f32 %v6031_v54, %v6434_v10  ;;  %v2525_v2 = vmul.f32 %v6037_v7, %v6434_v10  ;;  %v2953_v40 = vmul.f32 %v6053_v62, %v6434_v10  ;;  %v6580_v51 = vpop.f32.mrb[12].mxu1 }
 0x39c   : > { %9118 = vst [vmem:[#allocation233_spill] sm:$0xff] %v6540_v16  ;;  %9119 = vst [vmem:[#allocation234_spill] sm:$0xff] %v6545_v11  ;;  %v2418_v16 = vmul.f32 %v6034_v43, %v6434_v10  ;;  %v2632_v11 = vmul.f32 %v6040_v58, %v6434_v10  ;;  %v3060_v54 = vmul.f32 %v6056_v59, %v6434_v10  ;;  %v4616_v59 = vpop.f32.mrb[13].mxu1 }
 0x39d   : > { %9120 = vst [vmem:[#allocation235_spill] sm:$0xff] %v6548_v20  ;;  %9121 = vst [vmem:[#allocation236_spill] sm:$0xff] %v6554_v53  ;;  %v4627_v20 = vpop.f32.mrb[19].mxu0  ;;  %v3167_v43 = vmul.f32 %v6063_v37, %v6434_v10  ;;  %v3274_v7 = vmul.f32 %v6066_v13, %v6434_v10  ;;  %v3381_v58 = vmul.f32 %v6069_v35, %v6434_v10 }
 0x39e   : > { %v3488_v20 = vmul.f32 %v6072_v47, %v6434_v10  ;;  %v3702_v62 = vmul.f32 %v6082_v8, %v6434_v10  ;;  %v3809_v37 = vmul.f32 %v6085_v52, %v6434_v10  ;;  %v3916_v13 = vmul.f32 %v6088_v38, %v6434_v10  ;;  %v6590_v53 = vpop.f32.mrb[20].mxu0 }
 0x39f   : > { %v2208_v35 = vmul.f32 %v6095_v50, %v6542_v44  ;;  %9122 = vst [vmem:[#allocation237_spill] sm:$0xff] %v6590_v53  ;;  %v2316_v63 = vmul.f32 %v6098_v45, %v6542_v44  ;;  %v2423_v47 = vmul.f32 %v6101_v36, %v6542_v44  ;;  %v2530_v8 = vmul.f32 %v6104_v48, %v6542_v44  ;;  %v4630_v56 = vpop.f32.mrb[21].mxu0 }
 0x3a0   : > { %v2637_v52 = vmul.f32 %v6111_v49, %v6542_v44  ;;  %v2744_v38 = vmul.f32 %v6114_v33, %v6542_v44  ;;  %v2851_v59 = vmul.f32 %v6117_v60, %v6542_v44  ;;  %v2958_v53 = vmul.f32 %v6120_v22, %v6542_v44  ;;  %v6616_v56 = vpop.f32.mrb[14].mxu1 }
 0x3a1   : > { %v6600_v10 = vadd.f32 %v2208_v35, %v2203_v17  ;;  %v6608_v14 = vadd.f32 %v2316_v63, %v2311_v1  ;;  %v6610_v27 = vadd.f32 %v2423_v47, %v2418_v16  ;;  %v6612_v9 = vadd.f32 %v2530_v8, %v2525_v2  ;;  %9124 = vst [vmem:[#allocation239_spill] sm:$0xff] %v6616_v56  ;;  %v4619_v46 = vpop.f32.mrb[15].mxu1  ;;  %v6626_v1 = vpop.f32.mrb[22].mxu0 }
 0x3a2   : > { %v6614_v18 = vadd.f32 %v2637_v52, %v2632_v11  ;;  %v6618_v17 = vadd.f32 %v2744_v38, %v2739_v61  ;;  %v6620_v35 = vadd.f32 %v2851_v59, %v2846_v26  ;;  %v3065_v6 = vmul.f32 %v6127_v5, %v6542_v44  ;;  %9125 = vst [vmem:[#allocation240_spill] sm:$0xff] %v6626_v1  ;;  %v6652_v59 = vpop.f32.mrb[16].mxu1 }
 0x3a3   : > { %9123 = vst [vmem:[#allocation238_spill] sm:$0xff] %v6600_v10  ;;  %v6622_v10 = vadd.f32 %v2958_v53, %v2953_v40  ;;  %v3172_v16 = vmul.f32 %v6130_v31, %v6542_v44  ;;  %v3279_v11 = vmul.f32 %v6133_v32, %v6542_v44  ;;  %v3386_v2 = vmul.f32 %v6136_v29, %v6542_v44  ;;  %v4646_v53 = vpop.f32.mrb[23].mxu0  ;;  %v4635_v56 = vpop.f32.mrb[17].mxu1 }
 0x3a4   : > { %v3493_v61 = vmul.f32 %v6143_v34, %v6542_v44  ;;  %v6636_v26 = vadd.f32 %v3065_v6, %v3060_v54  ;;  %v3600_v46 = vmul.f32 %v6146_v19, %v6542_v44  ;;  %v3707_v40 = vmul.f32 %v6149_v12, %v6542_v44  ;;  %9126 = vst [vmem:[#allocation241_spill] sm:$0xff] %v6652_v59  ;;  %v9141_v59 = vld [vmem:[#allocation138_spill] sm:$0xff] }
 0x3a5   : > { %v3814_v63 = vmul.f32 %v6152_v25, %v6542_v44  ;;  %v6644_v47 = vadd.f32 %v3172_v16, %v3167_v43  ;;  %v6646_v8 = vadd.f32 %v3279_v11, %v3274_v7  ;;  %v6648_v52 = vadd.f32 %v3386_v2, %v3381_v58 }
 0x3a6   : > { %v6650_v38 = vadd.f32 %v3493_v61, %v3488_v20  ;;  %v6654_v6 = vadd.f32 %v3600_v46, %v3595_v42  ;;  %v6656_v54 = vadd.f32 %v3707_v40, %v3702_v62  ;;  %v3921_v1 = vmul.f32 %v6159_v55, %v6542_v44  ;;  %v6670_v42 = vpop.f32.mrb[24].mxu0 }
 0x3a7   : > { %v6658_v53 = vadd.f32 %v3814_v63, %v3809_v37  ;;  %v2209_v43 = vmul.f32 %v6095_v50, %v6580_v51  ;;  %v2317_v7 = vmul.f32 %v6098_v45, %v6580_v51  ;;  %v2424_v58 = vmul.f32 %v6101_v36, %v6580_v51  ;;  %9127 = vst [vmem:[#allocation242_spill] sm:$0xff] %v6670_v42  ;;  %v4649_v16 = vpop.f32.mrb[25].mxu0  ;;  %v9132_v42 = vld [vmem:[#allocation214_spill] sm:$0xff] }
 0x3a8   : > { %v2531_v20 = vmul.f32 %v6104_v48, %v6580_v51  ;;  %v6672_v62 = vadd.f32 %v3921_v1, %v3916_v13  ;;  %v2638_v44 = vmul.f32 %v6111_v49, %v6580_v51  ;;  %v2745_v37 = vmul.f32 %v6114_v33, %v6580_v51  ;;  %v6692_v1 = vpop.f32.mrb[18].mxu1 }
 0x3a9   : > { %v2852_v56 = vmul.f32 %v6117_v60, %v6580_v51  ;;  %v6681_v11 = vadd.f32 %v2209_v43, %v6445_v28  ;;  %v6684_v2 = vadd.f32 %v2317_v7, %v6448_v57  ;;  %v6687_v61 = vadd.f32 %v2424_v58, %v6451_v0  ;;  %9128 = vst [vmem:[#allocation243_spill] sm:$0xff] %v6692_v1  ;;  %v4638_v63 = vpop.f32.mrb[19].mxu1  ;;  %v6713_v43 = vpop.f32.mrb[26].mxu0 }
 0x3aa   : > { %v6690_v13 = vadd.f32 %v2531_v20, %v6454_v3  ;;  %v6695_v46 = vadd.f32 %v2638_v44, %v6457_v30  ;;  %v6698_v40 = vadd.f32 %v2745_v37, %v6460_v41  ;;  %v2959_v57 = vmul.f32 %v6120_v22, %v6580_v51  ;;  %9129 = vst [vmem:[#allocation244_spill] sm:$0xff] %v6713_v43  ;;  %v4652_v44 = vpop.f32.mrb[27].mxu0  ;;  %v9131_v63 = vld [vmem:[#allocation213_spill] sm:$0xff] }
 0x3ab   : > { %v6701_v28 = vadd.f32 %v2852_v56, %v6463_v24  ;;  %v3066_v0 = vmul.f32 %v6127_v5, %v6580_v51  ;;  %v3173_v3 = vmul.f32 %v6130_v31, %v6580_v51  ;;  %v3280_v30 = vmul.f32 %v6133_v32, %v6580_v51  ;;  %v9133_v44 = vld [vmem:[#allocation215_spill] sm:$0xff] }
 0x3ac   : > { %v3387_v41 = vmul.f32 %v6136_v29, %v6580_v51  ;;  %v6716_v24 = vadd.f32 %v2959_v57, %v6466_v15  ;;  %v3494_v7 = vmul.f32 %v6143_v34, %v6580_v51  ;;  %v3601_v58 = vmul.f32 %v6146_v19, %v6580_v51  ;;  %v6736_v57 = vpop.f32.mrb[20].mxu1  ;;  %v9143_v19 = vld [vmem:[#allocation217_spill] sm:$0xff]  ;;  %v9144_v29 = vld [vmem:[#allocation238_spill] sm:$0xff] }
 0x3ad   : > { %v3708_v20 = vmul.f32 %v6149_v12, %v6580_v51  ;;  %v6725_v37 = vadd.f32 %v3066_v0, %v6469_v39  ;;  %v6728_v56 = vadd.f32 %v3173_v3, %v6472_v4  ;;  %v6731_v16 = vadd.f32 %v3280_v30, %v6475_v21  ;;  %9130 = vst [vmem:[#allocation245_spill] sm:$0xff] %v6736_v57  ;;  %v4641_v0 = vpop.f32.mrb[21].mxu1  ;;  %v9135_v3 = vld [vmem:[#allocation134_spill] sm:$0xff]  ;;  %v9140_v57 = vld [vmem:[#allocation137_spill] sm:$0xff] }
 0x3ae   : > { %v6734_v15 = vadd.f32 %v3387_v41, %v6478_v23  ;;  %v6739_v43 = vadd.f32 %v3494_v7, %v9131_v63  ;;  %v6742_v1 = vadd.f32 %v3601_v58, %v9132_v42  ;;  %v3815_v4 = vmul.f32 %v6152_v25, %v6580_v51  ;;  %v9134_v23 = vld [vmem:[#allocation221_spill] sm:$0xff]  ;;  %v9136_v41 = vld [vmem:[#allocation135_spill] sm:$0xff]  ;;  %v9137_v63 = vld [vmem:[#allocation136_spill] sm:$0xff]  ;;  %v6757_v58 = vpop.f32.mrb[28].mxu0 }
 0x3af   : > { %v6745_v39 = vadd.f32 %v3708_v20, %v9133_v44  ;;  %v3922_v21 = vmul.f32 %v6159_v55, %v6580_v51  ;;  %v2216_v30 = vmul.f32 %v9135_v3, %v9134_v23  ;;  %v2324_v7 = vmul.f32 %v9136_v41, %v9134_v23  ;;  %9138 = vst [vmem:[#allocation213_spill] sm:$0xff] %v6757_v58  ;;  %v9139_v20 = vld [vmem:[#allocation216_spill] sm:$0xff]  ;;  %v9142_v55 = vld [vmem:[#allocation139_spill] sm:$0xff]  ;;  %v4668_v12 = vpop.f32.mrb[29].mxu0 }
 0x3b0   : > { %v2431_v42 = vmul.f32 %v9137_v63, %v9134_v23  ;;  %v6760_v44 = vadd.f32 %v3815_v4, %v9139_v20  ;;  %v2538_v0 = vmul.f32 %v9140_v57, %v9134_v23  ;;  %v2645_v51 = vmul.f32 %v9141_v59, %v9134_v23  ;;  %v6780_v20 = vpop.f32.mrb[22].mxu1  ;;  %v9152_v12 = vld [vmem:[#allocation140_spill] sm:$0xff] }
 0x3b1   : > { %v2752_v25 = vmul.f32 %v9142_v55, %v9134_v23  ;;  %v6769_v34 = vadd.f32 %v3922_v21, %v9143_v19  ;;  %v6772_v32 = vadd.f32 %v2216_v30, %v9144_v29  ;;  %v6775_v58 = vadd.f32 %v2324_v7, %v6608_v14  ;;  %9148 = vst [vmem:[#allocation134_spill] sm:$0xff] %v6780_v20  ;;  %v4657_v21 = vpop.f32.mrb[23].mxu1  ;;  %v9153_v14 = vld [vmem:[#allocation141_spill] sm:$0xff]  ;;  %v9160_v20 = vld [vmem:[#allocation146_spill] sm:$0xff] }
 0x3b2   : > { %v6778_v4 = vadd.f32 %v2431_v42, %v6610_v27  ;;  %v6783_v31 = vadd.f32 %v2538_v0, %v6612_v9  ;;  %v6786_v5 = vadd.f32 %v2645_v51, %v6614_v18  ;;  %v2859_v29 = vmul.f32 %v9152_v12, %v9134_v23  ;;  %v9154_v27 = vld [vmem:[#allocation142_spill] sm:$0xff]  ;;  %v9155_v42 = vld [vmem:[#allocation143_spill] sm:$0xff]  ;;  %v9156_v0 = vld [vmem:[#allocation144_spill] sm:$0xff]  ;;  %v6801_v51 = vpop.f32.mrb[30].mxu0 }
 0x3b3   : > { %9145 = vst [vmem:[#allocation214_spill] sm:$0xff] %v6772_v32  ;;  %9146 = vst [vmem:[#allocation215_spill] sm:$0xff] %v6775_v58  ;;  %v6789_v19 = vadd.f32 %v2752_v25, %v6618_v17  ;;  %v2966_v30 = vmul.f32 %v9153_v14, %v9134_v23  ;;  %v3073_v7 = vmul.f32 %v9154_v27, %v9134_v23  ;;  %v9159_v17 = vld [vmem:[#allocation145_spill] sm:$0xff] }
 0x3b4   : > { %9147 = vst [vmem:[#allocation221_spill] sm:$0xff] %v6778_v4  ;;  %9149 = vst [vmem:[#allocation135_spill] sm:$0xff] %v6783_v31  ;;  %v3180_v9 = vmul.f32 %v9155_v42, %v9134_v23  ;;  %v3287_v18 = vmul.f32 %v9156_v0, %v9134_v23  ;;  %v6804_v25 = vadd.f32 %v2859_v29, %v6620_v35  ;;  %v4671_v4 = vpop.f32.mrb[31].mxu0  ;;  %v6824_v29 = vpop.f32.mrb[24].mxu1 }
 0x3b5   : > { %9150 = vst [vmem:[#allocation136_spill] sm:$0xff] %v6786_v5  ;;  %9151 = vst [vmem:[#allocation216_spill] sm:$0xff] %v6789_v19  ;;  %v3394_v21 = vmul.f32 %v9159_v17, %v9134_v23  ;;  %v3501_v19 = vmul.f32 %v9160_v20, %v9134_v23  ;;  %v9161_v5 = vld [vmem:[#allocation147_spill] sm:$0xff]  ;;  %v6813_v58 = vadd.f32 %v2966_v30, %v6622_v10  ;;  %v4660_v30 = vpop.f32.mrb[25].mxu1 }
 0x3b6   : > { %9157 = vst [vmem:[#allocation137_spill] sm:$0xff] %v6801_v51  ;;  %9158 = vst [vmem:[#allocation138_spill] sm:$0xff] %v6804_v25  ;;  %v3608_v31 = vmul.f32 %v9161_v5, %v9134_v23  ;;  %v6816_v32 = vadd.f32 %v3073_v7, %v6636_v26  ;;  %v6819_v51 = vadd.f32 %v3180_v9, %v6644_v47  ;;  %v9165_v26 = vld [vmem:[#allocation148_spill] sm:$0xff]  ;;  %v9166_v47 = vld [vmem:[#allocation149_spill] sm:$0xff] }
 0x3b7   : > { %v6822_v35 = vadd.f32 %v3287_v18, %v6646_v8  ;;  %9162 = vst [vmem:[#allocation139_spill] sm:$0xff] %v6824_v29  ;;  %v6827_v25 = vadd.f32 %v3394_v21, %v6648_v52  ;;  %v6830_v22 = vadd.f32 %v3501_v19, %v6650_v38  ;;  %v3715_v4 = vmul.f32 %v9165_v26, %v9134_v23  ;;  %v9167_v8 = vld [vmem:[#allocation150_spill] sm:$0xff]  ;;  %v9168_v18 = vld [vmem:[#allocation236_spill] sm:$0xff]  ;;  %v6845_v19 = vpop.f32.mrb[32].mxu0 }
 0x3b8   : > { %v6833_v10 = vadd.f32 %v3608_v31, %v6654_v6  ;;  %v3822_v7 = vmul.f32 %v9166_v47, %v9134_v23  ;;  %v3929_v9 = vmul.f32 %v9167_v8, %v9134_v23  ;;  %v2217_v52 = vmul.f32 %v9135_v3, %v9168_v18  ;;  %9169 = vst [vmem:[#allocation140_spill] sm:$0xff] %v6845_v19  ;;  %v4674_v30 = vpop.f32.mrb[33].mxu0 }
 0x3b9   : > { %9163 = vst [vmem:[#allocation217_spill] sm:$0xff] %v6830_v22  ;;  %v2325_v38 = vmul.f32 %v9136_v41, %v9168_v18  ;;  %v6848_v31 = vadd.f32 %v3715_v4, %v6656_v54  ;;  %v2432_v6 = vmul.f32 %v9137_v63, %v9168_v18  ;;  %v2539_v21 = vmul.f32 %v9140_v57, %v9168_v18  ;;  %v6868_v4 = vpop.f32.mrb[26].mxu1 }
 0x3ba   : > { %9164 = vst [vmem:[#allocation238_spill] sm:$0xff] %v6833_v10  ;;  %v2646_v23 = vmul.f32 %v9141_v59, %v9168_v18  ;;  %v6857_v29 = vadd.f32 %v3822_v7, %v6658_v53  ;;  %v6860_v10 = vadd.f32 %v3929_v9, %v6672_v62  ;;  %v6863_v19 = vadd.f32 %v2217_v52, %v6681_v11  ;;  %v4663_v7 = vpop.f32.mrb[27].mxu1 }
 0x3bb   : > { %9170 = vst [vmem:[#allocation141_spill] sm:$0xff] %v6848_v31  ;;  %v6866_v54 = vadd.f32 %v2325_v38, %v6684_v2  ;;  %9171 = vst [vmem:[#allocation142_spill] sm:$0xff] %v6868_v4  ;;  %v6871_v31 = vadd.f32 %v2432_v6, %v6687_v61  ;;  %v6874_v22 = vadd.f32 %v2539_v21, %v6690_v13  ;;  %v6910_v30 = vpop.f32.mrb[28].mxu1  ;;  %v9187_v4 = vld [vmem:[#allocation222_spill] sm:$0xff] }
 0x3bc   : > { %v6877_v53 = vadd.f32 %v2646_v23, %v6695_v46  ;;  %v2753_v62 = vmul.f32 %v9142_v55, %v9168_v18  ;;  %v2860_v11 = vmul.f32 %v9152_v12, %v9168_v18  ;;  %v2967_v2 = vmul.f32 %v9153_v14, %v9168_v18  ;;  %9175 = vst [vmem:[#allocation146_spill] sm:$0xff] %v6910_v30 }
 0x3bd   : > { %v3074_v61 = vmul.f32 %v9154_v27, %v9168_v18  ;;  %v3181_v13 = vmul.f32 %v9155_v42, %v9168_v18  ;;  %v3288_v46 = vmul.f32 %v9156_v0, %v9168_v18  ;;  %v3395_v52 = vmul.f32 %v9159_v17, %v9168_v18 }
 0x3be   : > { %v6890_v9 = vadd.f32 %v2753_v62, %v6698_v40  ;;  %v3502_v38 = vmul.f32 %v9160_v20, %v9168_v18  ;;  %v6899_v6 = vadd.f32 %v2860_v11, %v6701_v28  ;;  %v6902_v21 = vadd.f32 %v2967_v2, %v6716_v24  ;;  %v4679_v11 = vpop.f32.mrb[29].mxu1  ;;  %v9179_v2 = vld [vmem:[#allocation239_spill] sm:$0xff] }
 0x3bf   : > { %v6905_v23 = vadd.f32 %v3074_v61, %v6725_v37  ;;  %v6908_v40 = vadd.f32 %v3181_v13, %v6728_v56  ;;  %v6913_v62 = vadd.f32 %v3288_v46, %v6731_v16  ;;  %v6916_v7 = vadd.f32 %v3395_v52, %v6734_v15 }
 0x3c0   : > { %9172 = vst [vmem:[#allocation143_spill] sm:$0xff] %v6902_v21  ;;  %v6919_v28 = vadd.f32 %v3502_v38, %v6739_v43  ;;  %v3609_v24 = vmul.f32 %v9161_v5, %v9168_v18  ;;  %v3716_v37 = vmul.f32 %v9165_v26, %v9168_v18  ;;  %v3823_v56 = vmul.f32 %v9166_v47, %v9168_v18 }
 0x3c1   : > { %9173 = vst [vmem:[#allocation144_spill] sm:$0xff] %v6905_v23  ;;  %9174 = vst [vmem:[#allocation145_spill] sm:$0xff] %v6908_v40  ;;  %v3930_v16 = vmul.f32 %v9167_v8, %v9168_v18  ;;  %v2210_v15 = vmul.f32 %v6095_v50, %v9179_v2  ;;  %v2318_v43 = vmul.f32 %v6098_v45, %v9179_v2  ;;  %v9186_v45 = vld [vmem:[#allocation220_spill] sm:$0xff]  ;;  %v9202_v40 = vld [vmem:[#allocation130_spill] sm:$0xff] }
 0x3c2   : > { %9176 = vst [vmem:[#allocation147_spill] sm:$0xff] %v6913_v62  ;;  %9177 = vst [vmem:[#allocation148_spill] sm:$0xff] %v6916_v7  ;;  %v6932_v61 = vadd.f32 %v3609_v24, %v6742_v1  ;;  %v2425_v13 = vmul.f32 %v6101_v36, %v9179_v2  ;;  %v2532_v46 = vmul.f32 %v6104_v48, %v9179_v2  ;;  %v9184_v1 = vld [vmem:[#allocation218_spill] sm:$0xff]  ;;  %v9185_v24 = vld [vmem:[#allocation219_spill] sm:$0xff] }
 0x3c3   : > { %9178 = vst [vmem:[#allocation149_spill] sm:$0xff] %v6919_v28  ;;  %v6941_v52 = vadd.f32 %v3716_v37, %v6745_v39  ;;  %v6944_v18 = vadd.f32 %v3823_v56, %v6760_v44  ;;  %v6947_v50 = vadd.f32 %v3930_v16, %v6769_v34  ;;  %v2213_v38 = vadd.f32 %v2210_v15, %v9184_v1  ;;  %v9188_v34 = vld [vmem:[#allocation124_spill] sm:$0xff]  ;;  %v9189_v56 = vld [vmem:[#allocation125_spill] sm:$0xff]  ;;  %v9190_v15 = vld [vmem:[#allocation223_spill] sm:$0xff] }
 0x3c4   : > { %9180 = vst [vmem:[#allocation150_spill] sm:$0xff] %v6932_v61  ;;  %v2321_v11 = vadd.f32 %v2318_v43, %v9185_v24  ;;  %v2428_v30 = vadd.f32 %v2425_v13, %v9186_v45  ;;  %v2535_v36 = vadd.f32 %v2532_v46, %v9187_v4  ;;  %v2639_v48 = vmul.f32 %v6111_v49, %v9179_v2  ;;  %v9191_v13 = vld [vmem:[#allocation126_spill] sm:$0xff]  ;;  %v9192_v46 = vld [vmem:[#allocation127_spill] sm:$0xff]  ;;  %v9193_v1 = vld [vmem:[#allocation128_spill] sm:$0xff] }
 0x3c5   : > { %9181 = vst [vmem:[#allocation236_spill] sm:$0xff] %v6941_v52  ;;  %9182 = vst [vmem:[#allocation239_spill] sm:$0xff] %v6944_v18  ;;  %v2746_v39 = vmul.f32 %v6114_v33, %v9179_v2  ;;  %v2853_v44 = vmul.f32 %v6117_v60, %v9179_v2  ;;  %v2960_v37 = vmul.f32 %v9188_v34, %v9179_v2  ;;  %v9194_v24 = vld [vmem:[#allocation224_spill] sm:$0xff]  ;;  %v9195_v60 = vld [vmem:[#allocation225_spill] sm:$0xff] }
 0x3c6   : > { %9183 = vst [vmem:[#allocation246_spill] sm:$0xff] %v6947_v50  ;;  %v3067_v16 = vmul.f32 %v9189_v56, %v9179_v2  ;;  %v2642_v43 = vadd.f32 %v2639_v48, %v9190_v15  ;;  %v3174_v4 = vmul.f32 %v9191_v13, %v9179_v2  ;;  %v3281_v49 = vmul.f32 %v9192_v46, %v9179_v2  ;;  %v9196_v18 = vld [vmem:[#allocation226_spill] sm:$0xff]  ;;  %v9197_v52 = vld [vmem:[#allocation227_spill] sm:$0xff]  ;;  %v9198_v56 = vld [vmem:[#allocation228_spill] sm:$0xff] }
 0x3c7   : > { %v3388_v33 = vmul.f32 %v9193_v1, %v9179_v2  ;;  %v2749_v45 = vadd.f32 %v2746_v39, %v9194_v24  ;;  %v2856_v50 = vadd.f32 %v2853_v44, %v9195_v60  ;;  %v2963_v34 = vadd.f32 %v2960_v37, %v9196_v18  ;;  %v9199_v48 = vld [vmem:[#allocation229_spill] sm:$0xff]  ;;  %v9200_v7 = vld [vmem:[#allocation230_spill] sm:$0xff]  ;;  %v9203_v39 = vld [vmem:[#allocation131_spill] sm:$0xff] }
 0x3c8   : > { %v3070_v61 = vadd.f32 %v3067_v16, %v9197_v52  ;;  %v3177_v28 = vadd.f32 %v3174_v4, %v9198_v56  ;;  %v3284_v15 = vadd.f32 %v3281_v49, %v9199_v48  ;;  %v9201_v62 = vld [vmem:[#allocation129_spill] sm:$0xff]  ;;  %v3602_v1 = vmul.f32 %v9202_v40, %v9179_v2  ;;  %v9204_v44 = vld [vmem:[#allocation132_spill] sm:$0xff]  ;;  %v9206_v16 = vld [vmem:[#allocation231_spill] sm:$0xff] }
 0x3c9   : > { %v3391_v13 = vadd.f32 %v3388_v33, %v9200_v7  ;;  %v3495_v46 = vmul.f32 %v9201_v62, %v9179_v2  ;;  %v3709_v24 = vmul.f32 %v9203_v39, %v9179_v2  ;;  %v3816_v18 = vmul.f32 %v9204_v44, %v9179_v2  ;;  %v9205_v52 = vld [vmem:[#allocation133_spill] sm:$0xff]  ;;  %v9208_v33 = vld [vmem:[#allocation232_spill] sm:$0xff]  ;;  %v9210_v39 = vld [vmem:[#allocation234_spill] sm:$0xff] }
 0x3ca   : > { %v3923_v37 = vmul.f32 %v9205_v52, %v9179_v2  ;;  %v9207_v49 = vld [vmem:[#allocation237_spill] sm:$0xff]  ;;  %v3605_v60 = vadd.f32 %v3602_v1, %v9208_v33  ;;  %v9211_v23 = vld [vmem:[#allocation235_spill] sm:$0xff] }
 0x3cb   : > { %v3498_v4 = vadd.f32 %v3495_v46, %v9206_v16  ;;  %v2218_v7 = vmul.f32 %v9135_v3, %v9207_v49  ;;  %v2326_v62 = vmul.f32 %v9136_v41, %v9207_v49  ;;  %v2433_v40 = vmul.f32 %v9137_v63, %v9207_v49  ;;  %v9209_v56 = vld [vmem:[#allocation233_spill] sm:$0xff] }
 0x3cc   : > { %v3712_v48 = vadd.f32 %v3709_v24, %v9209_v56  ;;  %v3819_v44 = vadd.f32 %v3816_v18, %v9210_v39  ;;  %v3926_v21 = vadd.f32 %v3923_v37, %v9211_v23  ;;  %v2540_v3 = vmul.f32 %v9140_v57, %v9207_v49 }
 0x3cd   : > { %v6998_v2 = vadd.f32 %v2218_v7, %v2213_v38  ;;  %v7000_v46 = vadd.f32 %v2326_v62, %v2321_v11  ;;  %v7002_v52 = vadd.f32 %v2433_v40, %v2428_v30  ;;  %v2647_v41 = vmul.f32 %v9141_v59, %v9207_v49  ;;  %v9232_v62 = vld [vmem:[#allocation153_spill] sm:$0xff] }
 0x3ce   : > { %v2754_v63 = vmul.f32 %v9142_v55, %v9207_v49  ;;  %v2861_v1 = vmul.f32 %v9152_v12, %v9207_v49  ;;  %v2968_v23 = vmul.f32 %v9153_v14, %v9207_v49  ;;  %v7014_v38 = vadd.f32 %v2540_v3, %v2535_v36  ;;  %v9237_v3 = vld [vmem:[#allocation221_spill] sm:$0xff] }
 0x3cf   : > { %9212 = vst [vmem:[#allocation218_spill] sm:$0xff] %v7002_v52  ;;  %v3075_v30 = vmul.f32 %v9154_v27, %v9207_v49  ;;  %v3182_v57 = vmul.f32 %v9155_v42, %v9207_v49  ;;  %v3289_v59 = vmul.f32 %v9156_v0, %v9207_v49  ;;  %v7022_v11 = vadd.f32 %v2647_v41, %v2642_v43 }
 0x3d0   : > { %9213 = vst [vmem:[#allocation219_spill] sm:$0xff] %v7014_v38  ;;  %v7024_v55 = vadd.f32 %v2754_v63, %v2749_v45  ;;  %v7026_v24 = vadd.f32 %v2861_v1, %v2856_v50  ;;  %v7028_v12 = vadd.f32 %v2968_v23, %v2963_v34  ;;  %v3396_v27 = vmul.f32 %v9159_v17, %v9207_v49  ;;  %v9222_v45 = vld [vmem:[#allocation241_spill] sm:$0xff]  ;;  %v9223_v34 = vld [vmem:[#allocation151_spill] sm:$0xff]  ;;  %v9238_v63 = vld [vmem:[#allocation158_spill] sm:$0xff] }
 0x3d1   : > { %9214 = vst [vmem:[#allocation220_spill] sm:$0xff] %v7022_v11  ;;  %v7030_v14 = vadd.f32 %v3075_v30, %v3070_v61  ;;  %v7032_v36 = vadd.f32 %v3182_v57, %v3177_v28  ;;  %v7034_v18 = vadd.f32 %v3289_v59, %v3284_v15  ;;  %v3503_v42 = vmul.f32 %v9160_v20, %v9207_v49  ;;  %v9224_v15 = vld [vmem:[#allocation152_spill] sm:$0xff]  ;;  %v9239_v23 = vld [vmem:[#allocation159_spill] sm:$0xff] }
 0x3d2   : > { %9215 = vst [vmem:[#allocation222_spill] sm:$0xff] %v7024_v55  ;;  %9216 = vst [vmem:[#allocation124_spill] sm:$0xff] %v7026_v24  ;;  %v3610_v0 = vmul.f32 %v9161_v5, %v9207_v49  ;;  %v3717_v50 = vmul.f32 %v9165_v26, %v9207_v49  ;;  %v3824_v61 = vmul.f32 %v9166_v47, %v9207_v49  ;;  %v9240_v57 = vld [vmem:[#allocation160_spill] sm:$0xff] }
 0x3d3   : > { %9217 = vst [vmem:[#allocation125_spill] sm:$0xff] %v7028_v12  ;;  %9218 = vst [vmem:[#allocation223_spill] sm:$0xff] %v7030_v14  ;;  %v7046_v43 = vadd.f32 %v3396_v27, %v3391_v13  ;;  %v3931_v28 = vmul.f32 %v9167_v8, %v9207_v49  ;;  %v2224_v17 = vmul.f32 %v9223_v34, %v9222_v45  ;;  %v9230_v13 = vld [vmem:[#allocation214_spill] sm:$0xff]  ;;  %v9231_v8 = vld [vmem:[#allocation215_spill] sm:$0xff] }
 0x3d4   : > { %9219 = vst [vmem:[#allocation126_spill] sm:$0xff] %v7032_v36  ;;  %9220 = vst [vmem:[#allocation127_spill] sm:$0xff] %v7034_v18  ;;  %v2332_v20 = vmul.f32 %v9224_v15, %v9222_v45  ;;  %v7054_v37 = vadd.f32 %v3503_v42, %v3498_v4  ;;  %v7056_v5 = vadd.f32 %v3610_v0, %v3605_v60  ;;  %v9233_v4 = vld [vmem:[#allocation154_spill] sm:$0xff]  ;;  %v9234_v60 = vld [vmem:[#allocation155_spill] sm:$0xff] }
 0x3d5   : > { %9221 = vst [vmem:[#allocation128_spill] sm:$0xff] %v7046_v43  ;;  %v7058_v16 = vadd.f32 %v3717_v50, %v3712_v48  ;;  %v7060_v26 = vadd.f32 %v3824_v61, %v3819_v44  ;;  %v7062_v47 = vadd.f32 %v3931_v28, %v3926_v21  ;;  %v7065_v7 = vadd.f32 %v2224_v17, %v9230_v13  ;;  %v9235_v48 = vld [vmem:[#allocation156_spill] sm:$0xff]  ;;  %v9236_v21 = vld [vmem:[#allocation157_spill] sm:$0xff]  ;;  %v9241_v27 = vld [vmem:[#allocation135_spill] sm:$0xff] }
 0x3d6   : > { %9225 = vst [vmem:[#allocation224_spill] sm:$0xff] %v7054_v37  ;;  %9226 = vst [vmem:[#allocation225_spill] sm:$0xff] %v7056_v5  ;;  %v7068_v49 = vadd.f32 %v2332_v20, %v9231_v8  ;;  %v2439_v40 = vmul.f32 %v9232_v62, %v9222_v45  ;;  %v2546_v33 = vmul.f32 %v9233_v4, %v9222_v45  ;;  %v9242_v0 = vld [vmem:[#allocation136_spill] sm:$0xff]  ;;  %v9244_v17 = vld [vmem:[#allocation138_spill] sm:$0xff] }
 0x3d7   : > { %9227 = vst [vmem:[#allocation226_spill] sm:$0xff] %v7058_v16  ;;  %9228 = vst [vmem:[#allocation227_spill] sm:$0xff] %v7060_v26  ;;  %v2653_v56 = vmul.f32 %v9234_v60, %v9222_v45  ;;  %v2760_v39 = vmul.f32 %v9235_v48, %v9222_v45  ;;  %v2867_v44 = vmul.f32 %v9236_v21, %v9222_v45  ;;  %v9243_v61 = vld [vmem:[#allocation216_spill] sm:$0xff]  ;;  %v9253_v26 = vld [vmem:[#allocation243_spill] sm:$0xff] }
 0x3d8   : > { %9229 = vst [vmem:[#allocation228_spill] sm:$0xff] %v7062_v47  ;;  %v7081_v41 = vadd.f32 %v2439_v40, %v9237_v3  ;;  %v2974_v1 = vmul.f32 %v9238_v63, %v9222_v45  ;;  %v3081_v30 = vmul.f32 %v9239_v23, %v9222_v45  ;;  %v3188_v59 = vmul.f32 %v9240_v57, %v9222_v45  ;;  %v9254_v43 = vld [vmem:[#allocation217_spill] sm:$0xff]  ;;  %v9258_v12 = vld [vmem:[#allocation144_spill] sm:$0xff] }
 0x3d9   : > { %v7090_v42 = vadd.f32 %v2546_v33, %v9241_v27  ;;  %v7093_v50 = vadd.f32 %v2653_v56, %v9242_v0  ;;  %v7096_v28 = vadd.f32 %v2760_v39, %v9243_v61  ;;  %v7099_v20 = vadd.f32 %v2867_v44, %v9244_v17  ;;  %v9245_v33 = vld [vmem:[#allocation161_spill] sm:$0xff]  ;;  %v9246_v56 = vld [vmem:[#allocation162_spill] sm:$0xff]  ;;  %v9247_v39 = vld [vmem:[#allocation163_spill] sm:$0xff] }
 0x3da   : > { %v7102_v13 = vadd.f32 %v2974_v1, %v6813_v58  ;;  %v7105_v8 = vadd.f32 %v3081_v30, %v6816_v32  ;;  %v7108_v40 = vadd.f32 %v3188_v59, %v6819_v51  ;;  %v3295_v3 = vmul.f32 %v9245_v33, %v9222_v45  ;;  %v9248_v44 = vld [vmem:[#allocation164_spill] sm:$0xff]  ;;  %v9249_v58 = vld [vmem:[#allocation165_spill] sm:$0xff]  ;;  %v7120_v32 = vpop.f32.mrb[30].mxu1  ;;  %v9251_v30 = vld [vmem:[#allocation166_spill] sm:$0xff] }
 0x3db   : > { %v3402_v27 = vmul.f32 %v9246_v56, %v9222_v45  ;;  %v3509_v0 = vmul.f32 %v9247_v39, %v9222_v45  ;;  %v3616_v61 = vmul.f32 %v9248_v44, %v9222_v45  ;;  %v3723_v1 = vmul.f32 %v9249_v58, %v9222_v45  ;;  %9250 = vst [vmem:[#allocation229_spill] sm:$0xff] %v7120_v32  ;;  %v9252_v17 = vld [vmem:[#allocation167_spill] sm:$0xff]  ;;  %v4682_v5 = vpop.f32.mrb[31].mxu1  ;;  %v9255_v32 = vld [vmem:[#allocation238_spill] sm:$0xff] }
 0x3dc   : > { %v7123_v51 = vadd.f32 %v3295_v3, %v6822_v35  ;;  %v3830_v59 = vmul.f32 %v9251_v30, %v9222_v45  ;;  %v3937_v47 = vmul.f32 %v9252_v17, %v9222_v45  ;;  %v2225_v16 = vmul.f32 %v9223_v34, %v9253_v26  ;;  %v9256_v35 = vld [vmem:[#allocation141_spill] sm:$0xff] }
 0x3dd   : > { %v7132_v37 = vadd.f32 %v3402_v27, %v6827_v25  ;;  %v7135_v18 = vadd.f32 %v3509_v0, %v9254_v43  ;;  %v7138_v36 = vadd.f32 %v3616_v61, %v9255_v32  ;;  %v7141_v3 = vadd.f32 %v3723_v1, %v9256_v35  ;;  %v9257_v35 = vld [vmem:[#allocation143_spill] sm:$0xff] }
 0x3de   : > { %v7144_v14 = vadd.f32 %v3830_v59, %v6857_v29  ;;  %v7147_v45 = vadd.f32 %v3937_v47, %v6860_v10  ;;  %v7150_v5 = vadd.f32 %v2225_v16, %v6863_v19  ;;  %v2333_v25 = vmul.f32 %v9224_v15, %v9253_v26 }
 0x3df   : > { %v2440_v43 = vmul.f32 %v9232_v62, %v9253_v26  ;;  %v2547_v27 = vmul.f32 %v9233_v4, %v9253_v26  ;;  %v2654_v0 = vmul.f32 %v9234_v60, %v9253_v26  ;;  %v2761_v29 = vmul.f32 %v9235_v48, %v9253_v26 }
 0x3e0   : > { %v7163_v10 = vadd.f32 %v2333_v25, %v6866_v54  ;;  %v2868_v19 = vmul.f32 %v9236_v21, %v9253_v26  ;;  %v2975_v16 = vmul.f32 %v9238_v63, %v9253_v26  ;;  %v3082_v47 = vmul.f32 %v9239_v23, %v9253_v26  ;;  %v9276_v63 = vld [vmem:[#allocation175_spill] sm:$0xff] }
 0x3e1   : > { %v7172_v61 = vadd.f32 %v2440_v43, %v6871_v31  ;;  %v7175_v1 = vadd.f32 %v2547_v27, %v6874_v22  ;;  %v7178_v32 = vadd.f32 %v2654_v0, %v6877_v53  ;;  %v7181_v54 = vadd.f32 %v2761_v29, %v6890_v9  ;;  %v9259_v43 = vld [vmem:[#allocation145_spill] sm:$0xff] }
 0x3e2   : > { %v7184_v59 = vadd.f32 %v2868_v19, %v6899_v6  ;;  %v7187_v25 = vadd.f32 %v2975_v16, %v9257_v35  ;;  %v7190_v24 = vadd.f32 %v3082_v47, %v9258_v12  ;;  %v3189_v31 = vmul.f32 %v9240_v57, %v9253_v26  ;;  %v9260_v19 = vld [vmem:[#allocation147_spill] sm:$0xff]  ;;  %v9261_v47 = vld [vmem:[#allocation148_spill] sm:$0xff]  ;;  %v9266_v57 = vld [vmem:[#allocation246_spill] sm:$0xff] }
 0x3e3   : > { %v3296_v22 = vmul.f32 %v9245_v33, %v9253_v26  ;;  %v3403_v53 = vmul.f32 %v9246_v56, %v9253_v26  ;;  %v3510_v9 = vmul.f32 %v9247_v39, %v9253_v26  ;;  %v3617_v6 = vmul.f32 %v9248_v44, %v9253_v26  ;;  %v9262_v39 = vld [vmem:[#allocation149_spill] sm:$0xff]  ;;  %v9264_v56 = vld [vmem:[#allocation236_spill] sm:$0xff]  ;;  %v9265_v33 = vld [vmem:[#allocation239_spill] sm:$0xff] }
 0x3e4   : > { %v7203_v27 = vadd.f32 %v3189_v31, %v9259_v43  ;;  %v3724_v12 = vmul.f32 %v9249_v58, %v9253_v26  ;;  %v3831_v0 = vmul.f32 %v9251_v30, %v9253_v26  ;;  %v3938_v29 = vmul.f32 %v9252_v17, %v9253_v26  ;;  %v9263_v31 = vld [vmem:[#allocation150_spill] sm:$0xff] }
 0x3e5   : > { %v7212_v16 = vadd.f32 %v3296_v22, %v9260_v19  ;;  %v7215_v35 = vadd.f32 %v3403_v53, %v9261_v47  ;;  %v7218_v44 = vadd.f32 %v3510_v9, %v9262_v39  ;;  %v7221_v43 = vadd.f32 %v3617_v6, %v9263_v31  ;;  %v9267_v22 = vld [vmem:[#allocation240_spill] sm:$0xff]  ;;  %v9269_v53 = vld [vmem:[#allocation169_spill] sm:$0xff]  ;;  %v9270_v39 = vld [vmem:[#allocation170_spill] sm:$0xff] }
 0x3e6   : > { %v7224_v58 = vadd.f32 %v3724_v12, %v9264_v56  ;;  %v7227_v30 = vadd.f32 %v3831_v0, %v9265_v33  ;;  %v7230_v26 = vadd.f32 %v3938_v29, %v9266_v57  ;;  %v9268_v19 = vld [vmem:[#allocation168_spill] sm:$0xff]  ;;  %v2340_v47 = vmul.f32 %v9269_v53, %v9267_v22  ;;  %v9271_v6 = vld [vmem:[#allocation171_spill] sm:$0xff]  ;;  %v9274_v57 = vld [vmem:[#allocation173_spill] sm:$0xff] }
 0x3e7   : > { %v2232_v17 = vmul.f32 %v9268_v19, %v9267_v22  ;;  %v2447_v9 = vmul.f32 %v9270_v39, %v9267_v22  ;;  %v2554_v31 = vmul.f32 %v9271_v6, %v9267_v22  ;;  %v9272_v56 = vld [vmem:[#allocation172_spill] sm:$0xff]  ;;  %v2768_v0 = vmul.f32 %v9274_v57, %v9267_v22  ;;  %v9275_v29 = vld [vmem:[#allocation174_spill] sm:$0xff] }
 0x3e8   : > { %v2661_v12 = vmul.f32 %v9272_v56, %v9267_v22  ;;  %v2875_v23 = vmul.f32 %v9275_v29, %v9267_v22  ;;  %v2982_v21 = vmul.f32 %v9276_v63, %v9267_v22  ;;  %v7252_v55 = vadd.f32 %v2340_v47, %v7068_v49  ;;  %v9284_v49 = vld [vmem:[#allocation176_spill] sm:$0xff] }
 0x3e9   : > { %v7243_v33 = vadd.f32 %v2232_v17, %v7065_v7  ;;  %v7255_v11 = vadd.f32 %v2447_v9, %v7081_v41  ;;  %v7258_v38 = vadd.f32 %v2554_v31, %v7090_v42  ;;  %v7264_v17 = vadd.f32 %v2768_v0, %v7096_v28  ;;  %v9285_v41 = vld [vmem:[#allocation177_spill] sm:$0xff]  ;;  %v9286_v42 = vld [vmem:[#allocation178_spill] sm:$0xff]  ;;  %v9288_v28 = vld [vmem:[#allocation180_spill] sm:$0xff] }
 0x3ea   : > { %9277 = vst [vmem:[#allocation129_spill] sm:$0xff] %v7252_v55  ;;  %v7261_v7 = vadd.f32 %v2661_v12, %v7093_v50  ;;  %v7270_v52 = vadd.f32 %v2982_v21, %v7102_v13  ;;  %v3089_v47 = vmul.f32 %v9284_v49, %v9267_v22  ;;  %v3196_v9 = vmul.f32 %v9285_v41, %v9267_v22  ;;  %v9287_v50 = vld [vmem:[#allocation179_spill] sm:$0xff]  ;;  %v9290_v21 = vld [vmem:[#allocation181_spill] sm:$0xff]  ;;  %v9291_v13 = vld [vmem:[#allocation182_spill] sm:$0xff] }
 0x3eb   : > { %9273 = vst [vmem:[#allocation230_spill] sm:$0xff] %v7243_v33  ;;  %9278 = vst [vmem:[#allocation130_spill] sm:$0xff] %v7255_v11  ;;  %v7267_v33 = vadd.f32 %v2875_v23, %v7099_v20  ;;  %v3303_v31 = vmul.f32 %v9286_v42, %v9267_v22  ;;  %v3410_v12 = vmul.f32 %v9287_v50, %v9267_v22 }
 0x3ec   : > { %9279 = vst [vmem:[#allocation131_spill] sm:$0xff] %v7258_v38  ;;  %9280 = vst [vmem:[#allocation132_spill] sm:$0xff] %v7261_v7  ;;  %v3517_v0 = vmul.f32 %v9288_v28, %v9267_v22  ;;  %v7283_v23 = vadd.f32 %v3089_v47, %v7105_v8  ;;  %v3624_v20 = vmul.f32 %v9290_v21, %v9267_v22 }
 0x3ed   : > { %9281 = vst [vmem:[#allocation133_spill] sm:$0xff] %v7264_v17  ;;  %9282 = vst [vmem:[#allocation231_spill] sm:$0xff] %v7267_v33  ;;  %v9292_v33 = vld [vmem:[#allocation183_spill] sm:$0xff]  ;;  %v7292_v7 = vadd.f32 %v3196_v9, %v7108_v40  ;;  %v7295_v38 = vadd.f32 %v3303_v31, %v7123_v51  ;;  %v7298_v11 = vadd.f32 %v3410_v12, %v7132_v37  ;;  %v9293_v40 = vld [vmem:[#allocation184_spill] sm:$0xff] }
 0x3ee   : > { %9283 = vst [vmem:[#allocation237_spill] sm:$0xff] %v7270_v52  ;;  %9289 = vst [vmem:[#allocation232_spill] sm:$0xff] %v7283_v23  ;;  %v3731_v52 = vmul.f32 %v9291_v13, %v9267_v22  ;;  %v3838_v17 = vmul.f32 %v9292_v33, %v9267_v22  ;;  %v7301_v8 = vadd.f32 %v3517_v0, %v7135_v18  ;;  %v9294_v51 = vld [vmem:[#allocation242_spill] sm:$0xff] }
 0x3ef   : > { %v7304_v47 = vadd.f32 %v3624_v20, %v7138_v36  ;;  %v3945_v9 = vmul.f32 %v9293_v40, %v9267_v22  ;;  %v2233_v31 = vmul.f32 %v9268_v19, %v9294_v51  ;;  %v2341_v37 = vmul.f32 %v9269_v53, %v9294_v51 }
 0x3f0   : > { %v7307_v23 = vadd.f32 %v3731_v52, %v7141_v3  ;;  %v7310_v55 = vadd.f32 %v3838_v17, %v7144_v14  ;;  %v2448_v18 = vmul.f32 %v9270_v39, %v9294_v51  ;;  %v2555_v36 = vmul.f32 %v9271_v6, %v9294_v51 }
 0x3f1   : > { %v7323_v52 = vadd.f32 %v3945_v9, %v7147_v45  ;;  %v2662_v14 = vmul.f32 %v9272_v56, %v9294_v51  ;;  %v2769_v3 = vmul.f32 %v9274_v57, %v9294_v51  ;;  %v2876_v22 = vmul.f32 %v9275_v29, %v9294_v51 }
 0x3f2   : > { %v7332_v17 = vadd.f32 %v2233_v31, %v7150_v5  ;;  %v7335_v12 = vadd.f32 %v2341_v37, %v7163_v10  ;;  %v7338_v0 = vadd.f32 %v2448_v18, %v7172_v61  ;;  %v7341_v45 = vadd.f32 %v2555_v36, %v7175_v1 }
 0x3f3   : > { %9295 = vst [vmem:[#allocation233_spill] sm:$0xff] %v7323_v52  ;;  %v7344_v20 = vadd.f32 %v2662_v14, %v7178_v32  ;;  %v7347_v9 = vadd.f32 %v2769_v3, %v7181_v54  ;;  %v7350_v52 = vadd.f32 %v2876_v22, %v7184_v59  ;;  %v2983_v5 = vmul.f32 %v9276_v63, %v9294_v51 }
 0x3f4   : > { %v3090_v10 = vmul.f32 %v9284_v49, %v9294_v51  ;;  %v3197_v61 = vmul.f32 %v9285_v41, %v9294_v51  ;;  %v3304_v1 = vmul.f32 %v9286_v42, %v9294_v51  ;;  %v3411_v32 = vmul.f32 %v9287_v50, %v9294_v51 }
 0x3f5   : > { %v7363_v54 = vadd.f32 %v2983_v5, %v7187_v25  ;;  %v3518_v59 = vmul.f32 %v9288_v28, %v9294_v51  ;;  %v3625_v31 = vmul.f32 %v9290_v21, %v9294_v51  ;;  %v3732_v37 = vmul.f32 %v9291_v13, %v9294_v51 }
 0x3f6   : > { %v7372_v18 = vadd.f32 %v3090_v10, %v7190_v24  ;;  %v7375_v36 = vadd.f32 %v3197_v61, %v7203_v27  ;;  %v7378_v14 = vadd.f32 %v3304_v1, %v7212_v16  ;;  %v7381_v25 = vadd.f32 %v3411_v32, %v7215_v35  ;;  %v9304_v16 = vld [vmem:[#allocation245_spill] sm:$0xff]  ;;  %v7411_v1 = vpop.f32.mrb[32].mxu1 }
 0x3f7   : > { %9296 = vst [vmem:[#allocation234_spill] sm:$0xff] %v7363_v54  ;;  %v7384_v3 = vadd.f32 %v3518_v59, %v7218_v44  ;;  %v7387_v22 = vadd.f32 %v3625_v31, %v7221_v43  ;;  %v7390_v5 = vadd.f32 %v3732_v37, %v7224_v58  ;;  %v3839_v24 = vmul.f32 %v9292_v33, %v9294_v51  ;;  %v4685_v59 = vpop.f32.mrb[33].mxu1  ;;  %v9309_v31 = vld [vmem:[#allocation219_spill] sm:$0xff]  ;;  %v9310_v37 = vld [vmem:[#allocation220_spill] sm:$0xff]  ;;  %v9329_v54 = vld [vmem:[#allocation166_spill] sm:$0xff] }
 0x3f8   : > { %9297 = vst [vmem:[#allocation235_spill] sm:$0xff] %v7372_v18  ;;  %9298 = vst [vmem:[#allocation241_spill] sm:$0xff] %v7375_v36  ;;  %v3946_v27 = vmul.f32 %v9293_v40, %v9294_v51  ;;  %v2226_v10 = vmul.f32 %v9223_v34, %v9304_v16  ;;  %v2334_v35 = vmul.f32 %v9224_v15, %v9304_v16  ;;  %v9319_v59 = vld [vmem:[#allocation163_spill] sm:$0xff]  ;;  %v9327_v36 = vld [vmem:[#allocation225_spill] sm:$0xff] }
 0x3f9   : > { %9299 = vst [vmem:[#allocation151_spill] sm:$0xff] %v7378_v14  ;;  %9300 = vst [vmem:[#allocation152_spill] sm:$0xff] %v7381_v25  ;;  %v2441_v44 = vmul.f32 %v9232_v62, %v9304_v16  ;;  %v7403_v43 = vadd.f32 %v3839_v24, %v7227_v30  ;;  %v2548_v58 = vmul.f32 %v9233_v4, %v9304_v16  ;;  %v9308_v30 = vld [vmem:[#allocation218_spill] sm:$0xff]  ;;  %v9328_v18 = vld [vmem:[#allocation165_spill] sm:$0xff] }
 0x3fa   : > { %9301 = vst [vmem:[#allocation214_spill] sm:$0xff] %v7384_v3  ;;  %9302 = vst [vmem:[#allocation215_spill] sm:$0xff] %v7387_v22  ;;  %v2655_v61 = vmul.f32 %v9234_v60, %v9304_v16  ;;  %v2762_v51 = vmul.f32 %v9235_v48, %v9304_v16  ;;  %v7414_v34 = vadd.f32 %v3946_v27, %v7230_v26  ;;  %v9311_v60 = vld [vmem:[#allocation222_spill] sm:$0xff]  ;;  %v9312_v48 = vld [vmem:[#allocation157_spill] sm:$0xff] }
 0x3fb   : > { %9303 = vst [vmem:[#allocation153_spill] sm:$0xff] %v7390_v5  ;;  %9305 = vst [vmem:[#allocation154_spill] sm:$0xff] %v7403_v43  ;;  %v2229_v15 = vadd.f32 %v2226_v10, %v6998_v2  ;;  %v2337_v62 = vadd.f32 %v2334_v35, %v7000_v46  ;;  %v2444_v32 = vadd.f32 %v2441_v44, %v9308_v30  ;;  %v9314_v27 = vld [vmem:[#allocation159_spill] sm:$0xff]  ;;  %v9315_v46 = vld [vmem:[#allocation160_spill] sm:$0xff] }
 0x3fc   : > { %9306 = vst [vmem:[#allocation155_spill] sm:$0xff] %v7411_v1  ;;  %9307 = vst [vmem:[#allocation156_spill] sm:$0xff] %v7414_v34  ;;  %v2551_v4 = vadd.f32 %v2548_v58, %v9309_v31  ;;  %v2658_v24 = vadd.f32 %v2655_v61, %v9310_v37  ;;  %v2765_v43 = vadd.f32 %v2762_v51, %v9311_v60  ;;  %v9313_v1 = vld [vmem:[#allocation158_spill] sm:$0xff]  ;;  %v9316_v35 = vld [vmem:[#allocation161_spill] sm:$0xff] }
 0x3fd   : > { %v2869_v5 = vmul.f32 %v9312_v48, %v9304_v16  ;;  %v2976_v26 = vmul.f32 %v9313_v1, %v9304_v16  ;;  %v3083_v2 = vmul.f32 %v9314_v27, %v9304_v16  ;;  %v3190_v10 = vmul.f32 %v9315_v46, %v9304_v16  ;;  %v9317_v58 = vld [vmem:[#allocation124_spill] sm:$0xff]  ;;  %v9318_v61 = vld [vmem:[#allocation162_spill] sm:$0xff]  ;;  %v9321_v60 = vld [vmem:[#allocation125_spill] sm:$0xff] }
 0x3fe   : > { %v3297_v44 = vmul.f32 %v9316_v35, %v9304_v16  ;;  %v3404_v51 = vmul.f32 %v9318_v61, %v9304_v16  ;;  %v3511_v31 = vmul.f32 %v9319_v59, %v9304_v16  ;;  %v9320_v37 = vld [vmem:[#allocation164_spill] sm:$0xff]  ;;  %v9322_v27 = vld [vmem:[#allocation223_spill] sm:$0xff]  ;;  %v9323_v22 = vld [vmem:[#allocation126_spill] sm:$0xff]  ;;  %v3725_v59 = vmul.f32 %v9328_v18, %v9304_v16 }
 0x3ff   : > { %v2872_v30 = vadd.f32 %v2869_v5, %v9317_v58  ;;  %v3618_v1 = vmul.f32 %v9320_v37, %v9304_v16  ;;  %v2979_v48 = vadd.f32 %v2976_v26, %v9321_v60  ;;  %v3086_v34 = vadd.f32 %v3083_v2, %v9322_v27  ;;  %v9324_v3 = vld [vmem:[#allocation127_spill] sm:$0xff]  ;;  %v9325_v35 = vld [vmem:[#allocation128_spill] sm:$0xff] }
 0x400   : > { %v3193_v46 = vadd.f32 %v3190_v10, %v9323_v22  ;;  %v3300_v25 = vadd.f32 %v3297_v44, %v9324_v3  ;;  %v3407_v14 = vadd.f32 %v3404_v51, %v9325_v35  ;;  %v9326_v5 = vld [vmem:[#allocation224_spill] sm:$0xff]  ;;  %v3832_v37 = vmul.f32 %v9329_v54, %v9304_v16  ;;  %v9330_v26 = vld [vmem:[#allocation167_spill] sm:$0xff]  ;;  %v9332_v10 = vld [vmem:[#allocation226_spill] sm:$0xff] }
 0x401   : > { %v3514_v58 = vadd.f32 %v3511_v31, %v9326_v5  ;;  %v3621_v61 = vadd.f32 %v3618_v1, %v9327_v36  ;;  %v3939_v60 = vmul.f32 %v9330_v26, %v9304_v16  ;;  %v9331_v2 = vld [vmem:[#allocation244_spill] sm:$0xff]  ;;  %v3728_v44 = vadd.f32 %v3725_v59, %v9332_v10  ;;  %v9333_v51 = vld [vmem:[#allocation227_spill] sm:$0xff]  ;;  %v9358_v10 = vld [vmem:[#allocation129_spill] sm:$0xff] }
 0x402   : > { %v2234_v22 = vmul.f32 %v9268_v19, %v9331_v2  ;;  %v2342_v3 = vmul.f32 %v9269_v53, %v9331_v2  ;;  %v2449_v36 = vmul.f32 %v9270_v39, %v9331_v2  ;;  %v2556_v18 = vmul.f32 %v9271_v6, %v9331_v2  ;;  %v9334_v16 = vld [vmem:[#allocation228_spill] sm:$0xff]  ;;  %v9352_v26 = vld [vmem:[#allocation187_spill] sm:$0xff] }
 0x403   : > { %v2663_v54 = vmul.f32 %v9272_v56, %v9331_v2  ;;  %v3835_v31 = vadd.f32 %v3832_v37, %v9333_v51  ;;  %v3942_v1 = vadd.f32 %v3939_v60, %v9334_v16  ;;  %v2770_v39 = vmul.f32 %v9274_v57, %v9331_v2  ;;  %v9353_v60 = vld [vmem:[#allocation188_spill] sm:$0xff]  ;;  %v9361_v16 = vld [vmem:[#allocation189_spill] sm:$0xff] }
 0x404   : > { %v7465_v27 = vadd.f32 %v2234_v22, %v2229_v15  ;;  %v7467_v19 = vadd.f32 %v2342_v3, %v2337_v62  ;;  %v7469_v53 = vadd.f32 %v2449_v36, %v2444_v32  ;;  %v7471_v35 = vadd.f32 %v2556_v18, %v2551_v4  ;;  %v9359_v36 = vld [vmem:[#allocation130_spill] sm:$0xff] }
 0x405   : > { %v7473_v5 = vadd.f32 %v2663_v54, %v2658_v24  ;;  %v2877_v6 = vmul.f32 %v9275_v29, %v9331_v2  ;;  %v2984_v56 = vmul.f32 %v9276_v63, %v9331_v2  ;;  %v3091_v15 = vmul.f32 %v9284_v49, %v9331_v2  ;;  %v9360_v54 = vld [vmem:[#allocation131_spill] sm:$0xff] }
 0x406   : > { %9335 = vst [vmem:[#allocation221_spill] sm:$0xff] %v7465_v27  ;;  %9336 = vst [vmem:[#allocation135_spill] sm:$0xff] %v7467_v19  ;;  %v3198_v62 = vmul.f32 %v9285_v41, %v9331_v2  ;;  %v7485_v32 = vadd.f32 %v2770_v39, %v2765_v43  ;;  %v3305_v4 = vmul.f32 %v9286_v42, %v9331_v2  ;;  %v7631_v27 = vstv %s7561_s23  ;;  %s8037_s23 = sld [smem:[#allocation2 + $0x85]] }
 0x407   : > { %9337 = vst [vmem:[#allocation136_spill] sm:$0xff] %v7469_v53  ;;  %9338 = vst [vmem:[#allocation216_spill] sm:$0xff] %v7471_v35  ;;  %v3412_v57 = vmul.f32 %v9287_v50, %v9331_v2  ;;  %v3519_v29 = vmul.f32 %v9288_v28, %v9331_v2  ;;  %v7493_v24 = vadd.f32 %v2877_v6, %v2872_v30  ;;  %v9348_v30 = vld [vmem:[#allocation134_spill] sm:$0xff] }
 0x408   : > { %9339 = vst [vmem:[#allocation138_spill] sm:$0xff] %v7473_v5  ;;  %9340 = vst [vmem:[#allocation243_spill] sm:$0xff] %v7485_v32  ;;  %v7495_v63 = vadd.f32 %v2984_v56, %v2979_v48  ;;  %v7497_v59 = vadd.f32 %v3091_v15, %v3086_v34  ;;  %v7499_v49 = vadd.f32 %v3198_v62, %v3193_v46  ;;  %v9349_v48 = vld [vmem:[#allocation185_spill] sm:$0xff]  ;;  %v9362_v6 = vld [vmem:[#allocation190_spill] sm:$0xff] }
 0x409   : > { %9341 = vst [vmem:[#allocation217_spill] sm:$0xff] %v7493_v24  ;;  %v7501_v41 = vadd.f32 %v3305_v4, %v3300_v25  ;;  %v7503_v43 = vadd.f32 %v3412_v57, %v3407_v14  ;;  %v7505_v37 = vadd.f32 %v3519_v29, %v3514_v58  ;;  %v3626_v42 = vmul.f32 %v9290_v21, %v9331_v2  ;;  %v9351_v14 = vld [vmem:[#allocation186_spill] sm:$0xff]  ;;  %v9365_v62 = vld [vmem:[#allocation193_spill] sm:$0xff]  ;;  %v9366_v57 = vld [vmem:[#allocation132_spill] sm:$0xff] }
 0x40a   : > { %9342 = vst [vmem:[#allocation238_spill] sm:$0xff] %v7495_v63  ;;  %9343 = vst [vmem:[#allocation141_spill] sm:$0xff] %v7497_v59  ;;  %v3733_v50 = vmul.f32 %v9291_v13, %v9331_v2  ;;  %v3840_v28 = vmul.f32 %v9292_v33, %v9331_v2  ;;  %v3947_v34 = vmul.f32 %v9293_v40, %v9331_v2  ;;  %v9357_v40 = vld [vmem:[#allocation230_spill] sm:$0xff]  ;;  %v9383_v63 = vld [vmem:[#allocation233_spill] sm:$0xff] }
 0x40b   : > { %9344 = vst [vmem:[#allocation143_spill] sm:$0xff] %v7499_v49  ;;  %9345 = vst [vmem:[#allocation144_spill] sm:$0xff] %v7501_v41  ;;  %v2240_v25 = vmul.f32 %v9349_v48, %v9348_v30  ;;  %v7517_v46 = vadd.f32 %v3626_v42, %v3621_v61  ;;  %v2348_v58 = vmul.f32 %v9351_v14, %v9348_v30  ;;  %v9367_v42 = vld [vmem:[#allocation194_spill] sm:$0xff]  ;;  %v9387_v5 = vld [vmem:[#allocation205_spill] sm:$0xff] }
 0x40c   : > { %9346 = vst [vmem:[#allocation145_spill] sm:$0xff] %v7503_v43  ;;  %9347 = vst [vmem:[#allocation147_spill] sm:$0xff] %v7505_v37  ;;  %v2455_v21 = vmul.f32 %v9352_v26, %v9348_v30  ;;  %v2562_v13 = vmul.f32 %v9353_v60, %v9348_v30  ;;  %v7525_v22 = vadd.f32 %v3733_v50, %v3728_v44  ;;  %v9363_v44 = vld [vmem:[#allocation191_spill] sm:$0xff]  ;;  %v9382_v43 = vld [vmem:[#allocation204_spill] sm:$0xff] }
 0x40d   : > { %9350 = vst [vmem:[#allocation148_spill] sm:$0xff] %v7517_v46  ;;  %v7527_v33 = vadd.f32 %v3840_v28, %v3835_v31  ;;  %v7529_v3 = vadd.f32 %v3947_v34, %v3942_v1  ;;  %v2243_v2 = vadd.f32 %v2240_v25, %v9357_v40  ;;  %v2351_v61 = vadd.f32 %v2348_v58, %v9358_v10  ;;  %v9364_v1 = vld [vmem:[#allocation192_spill] sm:$0xff]  ;;  %v9368_v28 = vld [vmem:[#allocation195_spill] sm:$0xff]  ;;  %v9374_v46 = vld [vmem:[#allocation197_spill] sm:$0xff] }
 0x40e   : > { %9354 = vst [vmem:[#allocation149_spill] sm:$0xff] %v7525_v22  ;;  %v2458_v18 = vadd.f32 %v2455_v21, %v9359_v36  ;;  %v2565_v51 = vadd.f32 %v2562_v13, %v9360_v54  ;;  %v2669_v39 = vmul.f32 %v9361_v16, %v9348_v30  ;;  %v2776_v56 = vmul.f32 %v9362_v6, %v9348_v30  ;;  %v9369_v25 = vld [vmem:[#allocation196_spill] sm:$0xff]  ;;  %v9370_v21 = vld [vmem:[#allocation133_spill] sm:$0xff]  ;;  %v9371_v40 = vld [vmem:[#allocation231_spill] sm:$0xff] }
 0x40f   : > { %9355 = vst [vmem:[#allocation150_spill] sm:$0xff] %v7527_v33  ;;  %9356 = vst [vmem:[#allocation236_spill] sm:$0xff] %v7529_v3  ;;  %v2883_v31 = vmul.f32 %v9363_v44, %v9348_v30  ;;  %v2990_v15 = vmul.f32 %v9364_v1, %v9348_v30  ;;  %v3097_v4 = vmul.f32 %v9365_v62, %v9348_v30  ;;  %v9372_v36 = vld [vmem:[#allocation237_spill] sm:$0xff]  ;;  %v9373_v3 = vld [vmem:[#allocation232_spill] sm:$0xff] }
 0x410   : > { %v2672_v29 = vadd.f32 %v2669_v39, %v9366_v57  ;;  %v3204_v50 = vmul.f32 %v9367_v42, %v9348_v30  ;;  %v3311_v34 = vmul.f32 %v9368_v28, %v9348_v30  ;;  %v3418_v58 = vmul.f32 %v9369_v25, %v9348_v30  ;;  %v9388_v53 = vld [vmem:[#allocation206_spill] sm:$0xff] }
 0x411   : > { %v2779_v13 = vadd.f32 %v2776_v56, %v9370_v21  ;;  %v2886_v10 = vadd.f32 %v2883_v31, %v9371_v40  ;;  %v2993_v54 = vadd.f32 %v2990_v15, %v9372_v36  ;;  %v3100_v33 = vadd.f32 %v3097_v4, %v9373_v3  ;;  %v9375_v56 = vld [vmem:[#allocation198_spill] sm:$0xff]  ;;  %v9376_v15 = vld [vmem:[#allocation199_spill] sm:$0xff]  ;;  %v9377_v3 = vld [vmem:[#allocation200_spill] sm:$0xff] }
 0x412   : > { %v3207_v22 = vadd.f32 %v3204_v50, %v7292_v7  ;;  %v3314_v39 = vadd.f32 %v3311_v34, %v7295_v38  ;;  %v3421_v57 = vadd.f32 %v3418_v58, %v7298_v11  ;;  %v3525_v37 = vmul.f32 %v9374_v46, %v9348_v30  ;;  %v9378_v38 = vld [vmem:[#allocation201_spill] sm:$0xff]  ;;  %v9380_v34 = vld [vmem:[#allocation202_spill] sm:$0xff]  ;;  %v9381_v40 = vld [vmem:[#allocation203_spill] sm:$0xff] }
 0x413   : > { %v3632_v31 = vmul.f32 %v9375_v56, %v9348_v30  ;;  %v3739_v21 = vmul.f32 %v9376_v15, %v9348_v30  ;;  %v3846_v7 = vmul.f32 %v9377_v3, %v9348_v30  ;;  %v3953_v4 = vmul.f32 %v9378_v38, %v9348_v30  ;;  %v9379_v50 = vld [vmem:[#allocation213_spill] sm:$0xff] }
 0x414   : > { %v3528_v11 = vadd.f32 %v3525_v37, %v7301_v8  ;;  %v2248_v58 = vmul.f32 %v9380_v34, %v9379_v50  ;;  %v2356_v36 = vmul.f32 %v9381_v40, %v9379_v50  ;;  %v2463_v41 = vmul.f32 %v9382_v43, %v9379_v50 }
 0x415   : > { %v3635_v49 = vadd.f32 %v3632_v31, %v7304_v47  ;;  %v3742_v30 = vadd.f32 %v3739_v21, %v7307_v23  ;;  %v3849_v59 = vadd.f32 %v3846_v7, %v7310_v55  ;;  %v3956_v24 = vadd.f32 %v3953_v4, %v9383_v63  ;;  %v9389_v23 = vld [vmem:[#allocation207_spill] sm:$0xff]  ;;  %v9390_v63 = vld [vmem:[#allocation208_spill] sm:$0xff] }
 0x416   : > { %v7592_v8 = vadd.f32 %v2248_v58, %v2243_v2  ;;  %v7594_v37 = vadd.f32 %v2356_v36, %v2351_v61  ;;  %v7596_v32 = vadd.f32 %v2463_v41, %v2458_v18  ;;  %v2570_v35 = vmul.f32 %v9387_v5, %v9379_v50  ;;  %v9391_v2 = vld [vmem:[#allocation209_spill] sm:$0xff]  ;;  %v9393_v18 = vld [vmem:[#allocation210_spill] sm:$0xff]  ;;  %v9394_v7 = vld [vmem:[#allocation211_spill] sm:$0xff] }
 0x417   : > { %v2677_v47 = vmul.f32 %v9388_v53, %v9379_v50  ;;  %v2784_v55 = vmul.f32 %v9389_v23, %v9379_v50  ;;  %v2891_v31 = vmul.f32 %v9390_v63, %v9379_v50  ;;  %v2998_v61 = vmul.f32 %v9391_v2, %v9379_v50  ;;  %v9395_v58 = vld [vmem:[#allocation212_spill] sm:$0xff] }
 0x418   : > { %9384 = vst [vmem:[#allocation239_spill] sm:$0xff] %v7592_v8  ;;  %9385 = vst [vmem:[#allocation246_spill] sm:$0xff] %v7594_v37  ;;  %v7608_v41 = vadd.f32 %v2570_v35, %v2565_v51  ;;  %v3105_v21 = vmul.f32 %v9393_v18, %v9379_v50  ;;  %v3212_v4 = vmul.f32 %v9394_v7, %v9379_v50 }
 0x419   : > { %9386 = vst [vmem:[#allocation240_spill] sm:$0xff] %v7596_v32  ;;  %v3319_v36 = vmul.f32 %v9395_v58, %v9379_v50  ;;  %v7616_v32 = vadd.f32 %v2677_v47, %v2672_v29  ;;  %v7618_v37 = vadd.f32 %v2784_v55, %v2779_v13  ;;  %v7620_v8 = vadd.f32 %v2891_v31, %v2886_v10 }
 0x41a   : > { %9392 = vst [vmem:[#allocation168_spill] sm:$0xff] %v7608_v41  ;;  %v7622_v19 = vadd.f32 %v2998_v61, %v2993_v54  ;;  %v7624_v35 = vadd.f32 %v3105_v21, %v3100_v33  ;;  %v7626_v51 = vadd.f32 %v3212_v4, %v3207_v22  ;;  %v3426_v58 = vmul.f32 %v7631_v27, %v9379_v50  ;;  %v9404_v61 = vld [vmem:[#allocation139_spill] sm:$0xff] }
 0x41b   : > { %9396 = vst [vmem:[#allocation169_spill] sm:$0xff] %v7616_v32  ;;  %9397 = vst [vmem:[#allocation170_spill] sm:$0xff] %v7618_v37  ;;  %v7628_v41 = vadd.f32 %v3319_v36, %v3314_v39  ;;  %v7636_v29 = vstv %s7563_s26  ;;  %v7639_v13 = vstv %s7573_s4  ;;  %v7642_v10 = vstv %s7575_s22  ;;  %s8078_s26 = sld [smem:[#allocation2 + $0x86]]  ;;  %s8105_s4 = sld [smem:[#allocation2 + $0x87]] }
 0x41c   : > { %9398 = vst [vmem:[#allocation171_spill] sm:$0xff] %v7620_v8  ;;  %9399 = vst [vmem:[#allocation172_spill] sm:$0xff] %v7622_v19  ;;  %v3533_v54 = vmul.f32 %v7636_v29, %v9379_v50  ;;  %v3640_v22 = vmul.f32 %v7639_v13, %v9379_v50  ;;  %v3747_v33 = vmul.f32 %v7642_v10, %v9379_v50  ;;  %v7651_v39 = vstv %s7584_s30  ;;  %v9417_v8 = vld [vmem:[#allocation153_spill] sm:$0xff]  ;;  %s8304_s22 = sld [smem:[#allocation4]] }
 0x41d   : > { %9400 = vst [vmem:[#allocation173_spill] sm:$0xff] %v7624_v35  ;;  %9401 = vst [vmem:[#allocation174_spill] sm:$0xff] %v7626_v51  ;;  %v7653_v47 = vadd.f32 %v3426_v58, %v3421_v57  ;;  %v3854_v55 = vmul.f32 %v7651_v39, %v9379_v50  ;;  %v7658_v31 = vstv %s7590_s1  ;;  %v2241_v21 = vmul.f32 %v9349_v48, %v9404_v61 }
 0x41e   : > { %9402 = vst [vmem:[#allocation175_spill] sm:$0xff] %v7628_v41  ;;  %v7662_v4 = vadd.f32 %v3533_v54, %v3528_v11  ;;  %v7664_v36 = vadd.f32 %v3640_v22, %v3635_v49  ;;  %v7666_v41 = vadd.f32 %v3747_v33, %v3742_v30  ;;  %v3961_v51 = vmul.f32 %v7658_v31, %v9379_v50 }
 0x41f   : > { %9403 = vst [vmem:[#allocation176_spill] sm:$0xff] %v7653_v47  ;;  %v7670_v35 = vadd.f32 %v3854_v55, %v3849_v59  ;;  %v2244_v57 = vadd.f32 %v2241_v21, %v7332_v17  ;;  %v2349_v58 = vmul.f32 %v9351_v14, %v9404_v61  ;;  %v2456_v47 = vmul.f32 %v9352_v26, %v9404_v61 }
 0x420   : > { %9405 = vst [vmem:[#allocation177_spill] sm:$0xff] %v7662_v4  ;;  %9406 = vst [vmem:[#allocation178_spill] sm:$0xff] %v7664_v36  ;;  %v7677_v19 = vadd.f32 %v3961_v51, %v3956_v24  ;;  %v2563_v49 = vmul.f32 %v9353_v60, %v9404_v61  ;;  %v2670_v11 = vmul.f32 %v9361_v16, %v9404_v61 }
 0x421   : > { %9407 = vst [vmem:[#allocation179_spill] sm:$0xff] %v7666_v41  ;;  %9408 = vst [vmem:[#allocation180_spill] sm:$0xff] %v7670_v35  ;;  %v2777_v59 = vmul.f32 %v9362_v6, %v9404_v61  ;;  %v2352_v50 = vadd.f32 %v2349_v58, %v7335_v12  ;;  %v2459_v17 = vadd.f32 %v2456_v47, %v7338_v0  ;;  %v9410_v12 = vld [vmem:[#allocation234_spill] sm:$0xff]  ;;  %v9411_v58 = vld [vmem:[#allocation235_spill] sm:$0xff] }
 0x422   : > { %9409 = vst [vmem:[#allocation181_spill] sm:$0xff] %v7677_v19  ;;  %v2884_v30 = vmul.f32 %v9363_v44, %v9404_v61  ;;  %v2991_v24 = vmul.f32 %v9364_v1, %v9404_v61  ;;  %v2566_v51 = vadd.f32 %v2563_v49, %v7341_v45  ;;  %v2673_v54 = vadd.f32 %v2670_v11, %v7344_v20  ;;  %v9413_v11 = vld [vmem:[#allocation151_spill] sm:$0xff] }
 0x423   : > { %v2780_v22 = vadd.f32 %v2777_v59, %v7347_v9  ;;  %v3098_v33 = vmul.f32 %v9365_v62, %v9404_v61  ;;  %v3205_v0 = vmul.f32 %v9367_v42, %v9404_v61  ;;  %v3312_v47 = vmul.f32 %v9368_v28, %v9404_v61  ;;  %v9416_v41 = vld [vmem:[#allocation215_spill] sm:$0xff] }
 0x424   : > { %v2887_v55 = vadd.f32 %v2884_v30, %v7350_v52  ;;  %v2994_v21 = vadd.f32 %v2991_v24, %v9410_v12  ;;  %v3419_v45 = vmul.f32 %v9369_v25, %v9404_v61  ;;  %v3526_v20 = vmul.f32 %v9374_v46, %v9404_v61  ;;  %v9412_v52 = vld [vmem:[#allocation241_spill] sm:$0xff] }
 0x425   : > { %v3101_v19 = vadd.f32 %v3098_v33, %v9411_v58  ;;  %v3633_v9 = vmul.f32 %v9375_v56, %v9404_v61  ;;  %v3208_v49 = vadd.f32 %v3205_v0, %v9412_v52  ;;  %v3315_v59 = vadd.f32 %v3312_v47, %v9413_v11  ;;  %v9414_v33 = vld [vmem:[#allocation152_spill] sm:$0xff]  ;;  %v9415_v58 = vld [vmem:[#allocation214_spill] sm:$0xff]  ;;  %v9419_v47 = vld [vmem:[#allocation137_spill] sm:$0xff] }
 0x426   : > { %v3740_v30 = vmul.f32 %v9376_v15, %v9404_v61  ;;  %v3847_v24 = vmul.f32 %v9377_v3, %v9404_v61  ;;  %v3422_v12 = vadd.f32 %v3419_v45, %v9414_v33  ;;  %v3529_v35 = vadd.f32 %v3526_v20, %v9415_v58  ;;  %v9418_v0 = vld [vmem:[#allocation154_spill] sm:$0xff]  ;;  %v9420_v3 = vld [vmem:[#allocation156_spill] sm:$0xff] }
 0x427   : > { %v3636_v36 = vadd.f32 %v3633_v9, %v9416_v41  ;;  %v3954_v4 = vmul.f32 %v9378_v38, %v9404_v61  ;;  %v2249_v11 = vmul.f32 %v9380_v34, %v9419_v47  ;;  %v2357_v32 = vmul.f32 %v9381_v40, %v9419_v47 }
 0x428   : > { %v3743_v37 = vadd.f32 %v3740_v30, %v9417_v8  ;;  %v3850_v52 = vadd.f32 %v3847_v24, %v9418_v0  ;;  %v2464_v45 = vmul.f32 %v9382_v43, %v9419_v47  ;;  %v2571_v41 = vmul.f32 %v9387_v5, %v9419_v47 }
 0x429   : > { %v3957_v15 = vadd.f32 %v3954_v4, %v9420_v3  ;;  %v2678_v61 = vmul.f32 %v9388_v53, %v9419_v47  ;;  %v7733_v8 = vadd.f32 %v2249_v11, %v2244_v57  ;;  %v7735_v20 = vadd.f32 %v2357_v32, %v2352_v50 }
 0x42a   : > { %v2785_v9 = vmul.f32 %v9389_v23, %v9419_v47  ;;  %v2892_v30 = vmul.f32 %v9390_v63, %v9419_v47  ;;  %v7741_v3 = vadd.f32 %v2464_v45, %v2459_v17  ;;  %v7743_v4 = vadd.f32 %v2571_v41, %v2566_v51  ;;  %v9421_v17 = vld [vmem:[#allocation212_spill] sm:$0xff] }
 0x42b   : > { %v7745_v24 = vadd.f32 %v2678_v61, %v2673_v54  ;;  %v2999_v33 = vmul.f32 %v9391_v2, %v9419_v47  ;;  %v3106_v32 = vmul.f32 %v9393_v18, %v9419_v47  ;;  %v3213_v50 = vmul.f32 %v9394_v7, %v9419_v47 }
 0x42c   : > { %v7749_v58 = vadd.f32 %v2785_v9, %v2780_v22  ;;  %v7751_v57 = vadd.f32 %v2892_v30, %v2887_v55  ;;  %v3320_v51 = vmul.f32 %v9421_v17, %v9419_v47  ;;  %v3427_v54 = vmul.f32 %v7631_v27, %v9419_v47 }
 0x42d   : > { %v7757_v0 = vadd.f32 %v2999_v33, %v2994_v21  ;;  %v3534_v22 = vmul.f32 %v7636_v29, %v9419_v47  ;;  %v7765_v11 = vadd.f32 %v3106_v32, %v3101_v19  ;;  %v7767_v55 = vadd.f32 %v3213_v50, %v3208_v49  ;;  %v9423_v32 = vld [vmem:[#allocation142_spill] sm:$0xff] }
 0x42e   : > { %v3641_v45 = vmul.f32 %v7639_v13, %v9419_v47  ;;  %v3748_v21 = vmul.f32 %v7642_v10, %v9419_v47  ;;  %v7773_v41 = vadd.f32 %v3320_v51, %v3315_v59  ;;  %v7775_v61 = vadd.f32 %v3427_v54, %v3422_v12 }
 0x42f   : > { %9422 = vst [vmem:[#allocation182_spill] sm:$0xff] %v7767_v55  ;;  %v7777_v9 = vadd.f32 %v3534_v22, %v3529_v35  ;;  %v3855_v30 = vmul.f32 %v7651_v39, %v9419_v47  ;;  %v3962_v49 = vmul.f32 %v7658_v31, %v9419_v47  ;;  %v2242_v50 = vmul.f32 %v9349_v48, %v9423_v32  ;;  %v9428_v22 = vld [vmem:[#allocation136_spill] sm:$0xff] }
 0x430   : > { %v7781_v33 = vadd.f32 %v3641_v45, %v3636_v36  ;;  %v7783_v19 = vadd.f32 %v3748_v21, %v3743_v37  ;;  %v2350_v59 = vmul.f32 %v9351_v14, %v9423_v32  ;;  %v2457_v35 = vmul.f32 %v9352_v26, %v9423_v32  ;;  %v9426_v37 = vld [vmem:[#allocation221_spill] sm:$0xff]  ;;  %v9429_v45 = vld [vmem:[#allocation216_spill] sm:$0xff] }
 0x431   : > { %v7789_v55 = vadd.f32 %v3855_v30, %v3850_v52  ;;  %v2564_v36 = vmul.f32 %v9353_v60, %v9423_v32  ;;  %v7797_v12 = vadd.f32 %v3962_v49, %v3957_v15  ;;  %v2245_v51 = vadd.f32 %v2242_v50, %v9426_v37  ;;  %v9427_v52 = vld [vmem:[#allocation135_spill] sm:$0xff]  ;;  %v9430_v60 = vld [vmem:[#allocation138_spill] sm:$0xff] }
 0x432   : > { %v2671_v47 = vmul.f32 %v9361_v16, %v9423_v32  ;;  %v2778_v48 = vmul.f32 %v9362_v6, %v9423_v32  ;;  %v2353_v54 = vadd.f32 %v2350_v59, %v9427_v52  ;;  %v2460_v14 = vadd.f32 %v2457_v35, %v9428_v22  ;;  %v9431_v30 = vld [vmem:[#allocation243_spill] sm:$0xff]  ;;  %v9432_v6 = vld [vmem:[#allocation217_spill] sm:$0xff] }
 0x433   : > { %9424 = vst [vmem:[#allocation183_spill] sm:$0xff] %v7789_v55  ;;  %9425 = vst [vmem:[#allocation184_spill] sm:$0xff] %v7797_v12  ;;  %v2567_v21 = vadd.f32 %v2564_v36, %v9429_v45  ;;  %v2885_v26 = vmul.f32 %v9363_v44, %v9423_v32  ;;  %v2992_v50 = vmul.f32 %v9364_v1, %v9423_v32  ;;  %v9433_v36 = vld [vmem:[#allocation238_spill] sm:$0xff]  ;;  %v9435_v22 = vld [vmem:[#allocation143_spill] sm:$0xff] }
 0x434   : > { %v2674_v15 = vadd.f32 %v2671_v47, %v9430_v60  ;;  %v2781_v49 = vadd.f32 %v2778_v48, %v9431_v30  ;;  %v3099_v16 = vmul.f32 %v9365_v62, %v9423_v32  ;;  %v3206_v59 = vmul.f32 %v9367_v42, %v9423_v32  ;;  %v9434_v48 = vld [vmem:[#allocation141_spill] sm:$0xff] }
 0x435   : > { %v2888_v37 = vadd.f32 %v2885_v26, %v9432_v6  ;;  %v3313_v35 = vmul.f32 %v9368_v28, %v9423_v32  ;;  %v3420_v44 = vmul.f32 %v9369_v25, %v9423_v32  ;;  %v2995_v47 = vadd.f32 %v2992_v50, %v9433_v36  ;;  %v9436_v26 = vld [vmem:[#allocation144_spill] sm:$0xff]  ;;  %v9437_v60 = vld [vmem:[#allocation145_spill] sm:$0xff]  ;;  %v9438_v28 = vld [vmem:[#allocation199_spill] sm:$0xff] }
 0x436   : > { %v3102_v52 = vadd.f32 %v3099_v16, %v9434_v48  ;;  %v3527_v1 = vmul.f32 %v9374_v46, %v9423_v32  ;;  %v3634_v62 = vmul.f32 %v9375_v56, %v9423_v32  ;;  %v3209_v45 = vadd.f32 %v3206_v59, %v9435_v22  ;;  %v9439_v25 = vld [vmem:[#allocation147_spill] sm:$0xff]  ;;  %v9440_v50 = vld [vmem:[#allocation148_spill] sm:$0xff]  ;;  %v9442_v56 = vld [vmem:[#allocation149_spill] sm:$0xff] }
 0x437   : > { %v3316_v42 = vadd.f32 %v3313_v35, %v9436_v26  ;;  %v3423_v30 = vadd.f32 %v3420_v44, %v9437_v60  ;;  %v3741_v6 = vmul.f32 %v9438_v28, %v9423_v32  ;;  %v9441_v16 = vld [vmem:[#allocation200_spill] sm:$0xff]  ;;  %v3955_v46 = vmul.f32 %v9378_v38, %v9423_v32 }
 0x438   : > { %v3530_v12 = vadd.f32 %v3527_v1, %v9439_v25  ;;  %v3637_v36 = vadd.f32 %v3634_v62, %v9440_v50  ;;  %v3848_v48 = vmul.f32 %v9441_v16, %v9423_v32  ;;  %v9443_v59 = vld [vmem:[#allocation140_spill] sm:$0xff]  ;;  %v9444_v1 = vld [vmem:[#allocation150_spill] sm:$0xff] }
 0x439   : > { %v3744_v55 = vadd.f32 %v3741_v6, %v9442_v56  ;;  %v2250_v35 = vmul.f32 %v9380_v34, %v9443_v59  ;;  %v2358_v44 = vmul.f32 %v9381_v40, %v9443_v59  ;;  %v2465_v22 = vmul.f32 %v9382_v43, %v9443_v59  ;;  %v9445_v26 = vld [vmem:[#allocation236_spill] sm:$0xff]  ;;  %v9463_v50 = vld [vmem:[#allocation146_spill] sm:$0xff] }
 0x43a   : > { %v3851_v62 = vadd.f32 %v3848_v48, %v9444_v1  ;;  %v3958_v60 = vadd.f32 %v3955_v46, %v9445_v26  ;;  %v2572_v38 = vmul.f32 %v9387_v5, %v9443_v59  ;;  %v2679_v34 = vmul.f32 %v9388_v53, %v9443_v59  ;;  %v9466_v48 = vld [vmem:[#allocation246_spill] sm:$0xff] }
 0x43b   : > { %v7856_v32 = vadd.f32 %v2250_v35, %v2245_v51  ;;  %v7858_v40 = vadd.f32 %v2358_v44, %v2353_v54  ;;  %v7860_v28 = vadd.f32 %v2465_v22, %v2460_v14  ;;  %v2786_v43 = vmul.f32 %v9389_v23, %v9443_v59  ;;  %v9468_v22 = vld [vmem:[#allocation42_spill] sm:$0xff] }
 0x43c   : > { %v7866_v6 = vadd.f32 %v2572_v38, %v2567_v21  ;;  %v7868_v25 = vadd.f32 %v2679_v34, %v2674_v15  ;;  %v2893_v5 = vmul.f32 %v9390_v63, %v9443_v59  ;;  %v3000_v53 = vmul.f32 %v9391_v2, %v9443_v59 }
 0x43d   : > { %9446 = vst [vmem:[#allocation242_spill] sm:$0xff] %v7858_v40  ;;  %9447 = vst [vmem:[#allocation245_spill] sm:$0xff] %v7860_v28  ;;  %v7876_v51 = vadd.f32 %v2786_v43, %v2781_v49  ;;  %v3107_v54 = vmul.f32 %v9393_v18, %v9443_v59  ;;  %v3214_v23 = vmul.f32 %v9394_v7, %v9443_v59  ;;  %v7956_v44 = vstv %s7884_s14  ;;  %v9472_v43 = vld [vmem:[#allocation168_spill] sm:$0xff] }
 0x43e   : > { %9448 = vst [vmem:[#allocation218_spill] sm:$0xff] %v7866_v6  ;;  %9449 = vst [vmem:[#allocation219_spill] sm:$0xff] %v7868_v25  ;;  %v3321_v14 = vmul.f32 %v9421_v17, %v9443_v59  ;;  %v7886_v21 = vadd.f32 %v2893_v5, %v2888_v37  ;;  %v7888_v63 = vadd.f32 %v3000_v53, %v2995_v47  ;;  %v7972_v53 = vstv %s7902_s6 }
 0x43f   : > { %9450 = vst [vmem:[#allocation220_spill] sm:$0xff] %v7876_v51  ;;  %v3428_v2 = vmul.f32 %v7631_v27, %v9443_v59  ;;  %v3535_v18 = vmul.f32 %v7636_v29, %v9443_v59  ;;  %v7894_v15 = vadd.f32 %v3107_v54, %v3102_v52  ;;  %v7896_v7 = vadd.f32 %v3214_v23, %v3209_v45  ;;  %v9473_v23 = vld [vmem:[#allocation43_spill] sm:$0xff] }
 0x440   : > { %9451 = vst [vmem:[#allocation222_spill] sm:$0xff] %v7886_v21  ;;  %9452 = vst [vmem:[#allocation157_spill] sm:$0xff] %v7888_v63  ;;  %v7898_v49 = vadd.f32 %v3321_v14, %v3316_v42  ;;  %v3642_v17 = vmul.f32 %v7639_v13, %v9443_v59  ;;  %v3749_v29 = vmul.f32 %v7642_v10, %v9443_v59  ;;  %v7919_v45 = vstv %s7846_s10  ;;  %s9557_s10 = sld [smem:[#allocation254_spill]] }
 0x441   : > { %9453 = vst [vmem:[#allocation158_spill] sm:$0xff] %v7894_v15  ;;  %9454 = vst [vmem:[#allocation159_spill] sm:$0xff] %v7896_v7  ;;  %v7906_v37 = vadd.f32 %v3428_v2, %v3423_v30  ;;  %v7908_v27 = vadd.f32 %v3535_v18, %v3530_v12  ;;  %v3856_v47 = vmul.f32 %v7651_v39, %v9443_v59  ;;  %v7922_v42 = vstv %s7848_s25  ;;  %v9474_v2 = vld [vmem:[#allocation39_spill] sm:$0xff]  ;;  %v9503_v15 = vld [vmem:[#allocation179_spill] sm:$0xff] }
 0x442   : > { %9455 = vst [vmem:[#allocation160_spill] sm:$0xff] %v7898_v49  ;;  %v7914_v52 = vadd.f32 %v3642_v17, %v3637_v36  ;;  %v3963_v13 = vmul.f32 %v7658_v31, %v9443_v59  ;;  %v7924_v30 = vadd.f32 %v3749_v29, %v3744_v55  ;;  %v2256_v10 = vmul.f32 %v7919_v45, %v9463_v50  ;;  %v9465_v55 = vld [vmem:[#allocation239_spill] sm:$0xff]  ;;  %v9475_v17 = vld [vmem:[#allocation48_spill] sm:$0xff] }
 0x443   : > { %9457 = vst [vmem:[#allocation161_spill] sm:$0xff] %v7906_v37  ;;  %9458 = vst [vmem:[#allocation124_spill] sm:$0xff] %v7908_v27  ;;  %v7926_v12 = vadd.f32 %v3856_v47, %v3851_v62  ;;  %v2364_v39 = vmul.f32 %v7922_v42, %v9463_v50  ;;  %v7936_v31 = vstv %s7864_s5  ;;  %v7945_v59 = vstv %s7874_s9  ;;  %v9469_v62 = vld [vmem:[#allocation38_spill] sm:$0xff]  ;;  %v9476_v47 = vld [vmem:[#allocation169_spill] sm:$0xff] }
 0x444   : > { %9459 = vst [vmem:[#allocation162_spill] sm:$0xff] %v7914_v52  ;;  %9461 = vst [vmem:[#allocation163_spill] sm:$0xff] %v7924_v30  ;;  %v7933_v36 = vadd.f32 %v3963_v13, %v3958_v60  ;;  %v2259_v16 = vadd.f32 %v2256_v10, %v9465_v55  ;;  %v2471_v56 = vmul.f32 %v7936_v31, %v9463_v50  ;;  %v9470_v60 = vld [vmem:[#allocation240_spill] sm:$0xff]  ;;  %v7975_v54 = vstv %s7904_s16  ;;  %v9477_v10 = vld [vmem:[#allocation44_spill] sm:$0xff] }
 0x445   : > { %9462 = vst [vmem:[#allocation164_spill] sm:$0xff] %v7926_v12  ;;  %v2367_v46 = vadd.f32 %v2364_v39, %v9466_v48  ;;  %v2578_v35 = vmul.f32 %v7945_v59, %v9463_v50  ;;  %v2685_v34 = vmul.f32 %v7956_v44, %v9463_v50  ;;  %v2792_v55 = vmul.f32 %v7972_v53, %v9463_v50  ;;  %v9478_v48 = vld [vmem:[#allocation29_spill] sm:$0xff]  ;;  %v9495_v12 = vld [vmem:[#allocation175_spill] sm:$0xff]  ;;  %v9499_v37 = vld [vmem:[#allocation177_spill] sm:$0xff] }
 0x446   : > { %9464 = vst [vmem:[#allocation125_spill] sm:$0xff] %v7933_v36  ;;  %v2269_v1 = vmul.f32 %v9468_v22, %v2259_v16  ;;  %v2474_v38 = vadd.f32 %v2471_v56, %v9470_v60  ;;  %v2899_v16 = vmul.f32 %v7975_v54, %v9463_v50  ;;  %v8138_v21 = vstv %s8078_s26  ;;  %s8490_s25 = scalar_lea.vmem %s9557_s10, %s9460_s24 }
 0x447   : > { %v2377_v26 = vmul.f32 %v9469_v62, %v2367_v46  ;;  %v2581_v5 = vadd.f32 %v2578_v35, %v9472_v43  ;;  %v2688_v13 = vadd.f32 %v2685_v34, %v9476_v47  ;;  %v9479_v35 = vld [vmem:[#allocation49_spill] sm:$0xff]  ;;  %v9483_v43 = vld [vmem:[#allocation171_spill] sm:$0xff] }
 0x448   : > { %v2283_v14 = vsub.f32 %v9473_v23, %v2269_v1  ;;  %2291 = vst.msk [vmem:[%s7951_s29] sm:$0x1] %vm2289_vm4, %v2269_v1  ;;  %v2484_v29 = vmul.f32 %v9475_v17, %v2474_v38  ;;  %v9480_v1 = vld [vmem:[#allocation54_spill] sm:$0xff]  ;;  %v9482_v38 = vld [vmem:[#allocation170_spill] sm:$0xff]  ;;  %v8014_v23 = vstv %s7938_s2 }
 0x449   : > { %v2391_v18 = vsub.f32 %v9474_v2, %v2377_v26  ;;  %2399 = vst.msk [vmem:[%s7951_s29] sm:$0x2] %vm2398_vm8, %v2377_v26  ;;  %v2591_v39 = vmul.f32 %v9477_v10, %v2581_v5  ;;  %v2698_v62 = vmul.f32 %v9480_v1, %v2688_v13  ;;  %v9481_v26 = vld [vmem:[#allocation45_spill] sm:$0xff]  ;;  %v2795_v34 = vadd.f32 %v2792_v55, %v9482_v38  ;;  %v9484_v17 = vld [vmem:[#allocation55_spill] sm:$0xff]  ;;  %v9485_v13 = vld [vmem:[#allocation50_spill] sm:$0xff] }
 0x44a   : > { %2287 = vst.msk [vmem:[%s7968_s3] sm:$0xff] %vm2286_vm3, %v2283_v14  ;;  %v2292_v46 = vmul.f32 %v2283_v14, %v9478_v48  ;;  %v2498_v22 = vsub.f32 %v9479_v35, %v2484_v29  ;;  %v2902_v5 = vadd.f32 %v2899_v16, %v9483_v43  ;;  %v3006_v16 = vmul.f32 %v8014_v23, %v9463_v50  ;;  %v9487_v1 = vld [vmem:[#allocation53_spill] sm:$0xff] }
 0x44b   : > { %4337 = vst.msk [vmem:[%s7968_s3 + $0x18] sm:$0xff] %vm2286_vm3, %v2391_v18  ;;  %v2400_v56 = vmul.f32 %v2391_v18, %v9478_v48  ;;  %v2605_v60 = vsub.f32 %v9481_v26, %v2591_v39  ;;  %v2805_v10 = vmul.f32 %v9485_v13, %v2795_v34  ;;  %v8046_v35 = vstv %s7963_s12  ;;  %v9488_v26 = vld [vmem:[#allocation78_spill] sm:$0xff]  ;;  %v9489_v38 = vld [vmem:[#allocation172_spill] sm:$0xff] }
 0x44c   : > { %2506 = vst.msk [vmem:[%s7951_s29] sm:$0x4] %vm2505_vm9, %v2484_v29  ;;  %v8017_v14 = vsel %vm2286_vm3, %v2292_v46, 0.0  ;;  %v2507_v18 = vmul.f32 %v2498_v22, %v9478_v48  ;;  %v2712_v29 = vsub.f32 %v9484_v17, %v2698_v62  ;;  %v3009_v34 = vadd.f32 %v3006_v16, %v9489_v38  ;;  %v9490_v13 = vld [vmem:[#allocation56_spill] sm:$0xff]  ;;  %v9492_v38 = vld [vmem:[#allocation61_spill] sm:$0xff] }
 0x44d   : > { %2613 = vst.msk [vmem:[%s7951_s29] sm:$0x8] %vm2612_vm10, %v2591_v39  ;;  %v8020_v2 = vsel %vm2286_vm3, %v2400_v56, 0.0  ;;  %v2614_v47 = vmul.f32 %v2605_v60, %v9478_v48  ;;  %v9486_v39 = vld [vmem:[#allocation74_spill] sm:$0xff]  ;;  %v8067_v17 = vstv %s7987_s17 }
 0x44e   : > { %4348 = vst.msk [vmem:[%s7968_s3 + $0x30] sm:$0xff] %vm2286_vm3, %v2498_v22  ;;  %4359 = vst.msk [vmem:[%s7968_s3 + $0x48] sm:$0xff] %vm2286_vm3, %v2605_v60  ;;  %v2912_v55 = vmul.f32 %v9486_v39, %v2902_v5  ;;  %v8040_v46 = vsel %vm2286_vm3, %v2507_v18, 0.0  ;;  %v2721_v56 = vmul.f32 %v2712_v29, %v9478_v48  ;;  %v3113_v5 = vmul.f32 %v8046_v35, %v9463_v50 }
 0x44f   : > { %2720 = vst.msk [vmem:[%s7951_s29] sm:$0x10] %vm2719_vm11, %v2698_v62  ;;  %v8049_v22 = vsel %vm2286_vm3, %v2614_v47, 0.0  ;;  %v2819_v62 = vsub.f32 %v9487_v1, %v2805_v10  ;;  %v8064_v18 = vstv %s7985_s0  ;;  %v8084_v1 = vstv %s8004_s7 }
 0x450   : > { %4370 = vst.msk [vmem:[%s7968_s3 + $0x60] sm:$0xff] %vm2286_vm3, %v2712_v29  ;;  %v2926_v60 = vsub.f32 %v9488_v26, %v2912_v55  ;;  %v8059_v43 = vsel %vm2286_vm3, %v2721_v56, 0.0  ;;  %v3220_v39 = vmul.f32 %v8064_v18, %v9463_v50  ;;  %v3327_v56 = vmul.f32 %v8067_v17, %v9463_v50 }
 0x451   : > { %2827 = vst.msk [vmem:[%s7951_s29] sm:$0x20] %vm2826_vm12, %v2805_v10  ;;  %v2828_v29 = vmul.f32 %v2819_v62, %v9478_v48  ;;  %v3019_v10 = vmul.f32 %v9490_v13, %v3009_v34  ;;  %v3434_v52 = vmul.f32 %v8084_v1, %v9463_v50 }
 0x452   : > { %2934 = vst.msk [vmem:[%s7951_s29] sm:$0x40] %vm2933_vm13, %v2912_v55  ;;  %v2935_v47 = vmul.f32 %v2926_v60, %v9478_v48  ;;  %v9491_v55 = vld [vmem:[#allocation173_spill] sm:$0xff]  ;;  %v3330_v30 = vadd.f32 %v3327_v56, %v9495_v12 }
 0x453   : > { %4381 = vst.msk [vmem:[%s7968_s3 + $0x78] sm:$0xff] %vm2286_vm3, %v2819_v62  ;;  %4392 = vst.msk [vmem:[%s7968_s3 + $0x90] sm:$0xff] %vm2286_vm3, %v2926_v60  ;;  %v3116_v16 = vadd.f32 %v3113_v5, %v9491_v55  ;;  %v8087_v62 = vstv %s8006_s11  ;;  %v8090_v26 = vsel %vm2286_vm3, %v2828_v29, 0.0  ;;  %v3033_v34 = vsub.f32 %v9492_v38, %v3019_v10  ;;  %v9493_v5 = vld [vmem:[#allocation174_spill] sm:$0xff]  ;;  %v9497_v56 = vld [vmem:[#allocation26_spill] sm:$0xff] }
 0x454   : > { %v8093_v60 = vsel %vm2286_vm3, %v2935_v47, 0.0  ;;  %3041 = vst.msk [vmem:[%s7951_s29] sm:$0x80] %vm3040_vm14, %v3019_v10  ;;  %v3223_v13 = vadd.f32 %v3220_v39, %v9493_v5  ;;  %v9494_v55 = vld [vmem:[#allocation23_spill] sm:$0xff]  ;;  %v3541_v29 = vmul.f32 %v8087_v62, %v9463_v50  ;;  %v9496_v10 = vld [vmem:[#allocation25_spill] sm:$0xff]  ;;  %v8112_v39 = vstv %s8035_s13 }
 0x455   : > { %v3126_v36 = vmul.f32 %v9494_v55, %v3116_v16  ;;  %4403 = vst.msk [vmem:[%s7968_s3 + $0xa8] sm:$0xff] %vm2286_vm3, %v3033_v34  ;;  %v3042_v47 = vmul.f32 %v3033_v34, %v9478_v48  ;;  %v8115_v16 = vstv %s8037_s23  ;;  %v3340_v5 = vmul.f32 %v9497_v56, %v3330_v30  ;;  %v9498_v55 = vld [vmem:[#allocation176_spill] sm:$0xff]  ;;  %v9500_v56 = vld [vmem:[#allocation28_spill] sm:$0xff] }
 0x456   : > { %v3233_v38 = vmul.f32 %v9496_v10, %v3223_v13  ;;  %v3437_v27 = vadd.f32 %v3434_v52, %v9498_v55  ;;  %v3544_v49 = vadd.f32 %v3541_v29, %v9499_v37  ;;  %v3648_v13 = vmul.f32 %v8112_v39, %v9463_v50  ;;  %v9501_v55 = vld [vmem:[#allocation81_spill] sm:$0xff] }
 0x457   : > { %v3141_v12 = vsub.f32 0.0, %v3126_v36  ;;  %v8121_v7 = vsel %vm2286_vm3, %v3042_v47, 0.0  ;;  %v3755_v10 = vmul.f32 %v8115_v16, %v9463_v50  ;;  %v3355_v36 = vsub.f32 0.0, %v3340_v5  ;;  %v9502_v47 = vld [vmem:[#allocation178_spill] sm:$0xff] }
 0x458   : > { %v3248_v34 = vsub.f32 0.0, %v3233_v38  ;;  %v3447_v52 = vmul.f32 %v9500_v56, %v3437_v27  ;;  %v3554_v37 = vmul.f32 %v9501_v55, %v3544_v49  ;;  %v3651_v38 = vadd.f32 %v3648_v13, %v9502_v47  ;;  %v9505_v13 = vld [vmem:[#allocation85_spill] sm:$0xff] }
 0x459   : > { %4414 = vst.msk [vmem:[%s7968_s3 + $0xc0] sm:$0xff] %vm2286_vm3, %v3141_v12  ;;  %v3149_v30 = vmul.f32 %v3141_v12, %v9478_v48  ;;  %v3758_v63 = vadd.f32 %v3755_v10, %v9503_v15  ;;  %4436 = vst.msk [vmem:[%s7968_s3 + $0xf0] sm:$0xff] %vm2286_vm3, %v3355_v36  ;;  %v3363_v49 = vmul.f32 %v3355_v36, %v9478_v48 }
 0x45a   : > { %4425 = vst.msk [vmem:[%s7968_s3 + $0xd8] sm:$0xff] %vm2286_vm3, %v3248_v34  ;;  %v3256_v29 = vmul.f32 %v3248_v34, %v9478_v48  ;;  %v3462_v27 = vsub.f32 0.0, %v3447_v52  ;;  %v3569_v5 = vsub.f32 0.0, %v3554_v37  ;;  %v9504_v34 = vld [vmem:[#allocation84_spill] sm:$0xff]  ;;  %v3862_v15 = vmul.f32 %v8138_v21, %v9463_v50 }
 0x45b   : > { %v8141_v12 = vsel %vm2286_vm3, %v3149_v30, 0.0  ;;  %v3661_v55 = vmul.f32 %v9504_v34, %v3651_v38  ;;  %v3768_v47 = vmul.f32 %v9505_v13, %v3758_v63  ;;  %v8154_v10 = vsel %vm2286_vm3, %v3363_v49, 0.0 }
 0x45c   : > { %v8147_v56 = vsel %vm2286_vm3, %v3256_v29, 0.0  ;;  %4447 = vst.msk [vmem:[%s7968_s3 + $0x108] sm:$0xff] %vm2286_vm3, %v3462_v27  ;;  %v3470_v30 = vmul.f32 %v3462_v27, %v9478_v48  ;;  %4458 = vst.msk [vmem:[%s7968_s3 + $0x120] sm:$0xff] %vm2286_vm3, %v3569_v5  ;;  %v3577_v36 = vmul.f32 %v3569_v5, %v9478_v48  ;;  %v8163_v52 = vstv %s8105_s4  ;;  %v9506_v29 = vld [vmem:[#allocation180_spill] sm:$0xff]  ;;  %v9507_v27 = vld [vmem:[#allocation229_spill] sm:$0xff] }
 0x45d   : > { %v3676_v37 = vsub.f32 0.0, %v3661_v55  ;;  %v3783_v63 = vsub.f32 0.0, %v3768_v47  ;;  %v3865_v38 = vadd.f32 %v3862_v15, %v9506_v29  ;;  %v3969_v34 = vmul.f32 %v8163_v52, %v9463_v50  ;;  %v9508_v47 = vld [vmem:[#allocation89_spill] sm:$0xff] }
 0x45e   : > { %v8169_v49 = vsel %vm2286_vm3, %v3470_v30, 0.0  ;;  %v8172_v13 = vsel %vm2286_vm3, %v3577_v36, 0.0  ;;  %v2257_v51 = vmul.f32 %v7919_v45, %v9507_v27  ;;  %v2365_v5 = vmul.f32 %v7922_v42, %v9507_v27  ;;  %v9509_v30 = vld [vmem:[#allocation181_spill] sm:$0xff] }
 0x45f   : > { %4469 = vst.msk [vmem:[%s7968_s3 + $0x138] sm:$0xff] %vm2286_vm3, %v3676_v37  ;;  %v3684_v55 = vmul.f32 %v3676_v37, %v9478_v48  ;;  %4480 = vst.msk [vmem:[%s7968_s3 + $0x150] sm:$0xff] %vm2286_vm3, %v3783_v63  ;;  %v3791_v50 = vmul.f32 %v3783_v63, %v9478_v48  ;;  %v3875_v15 = vmul.f32 %v9508_v47, %v3865_v38  ;;  %v9510_v38 = vld [vmem:[#allocation90_spill] sm:$0xff] }
 0x460   : > { %v3972_v36 = vadd.f32 %v3969_v34, %v9509_v30  ;;  %v2260_v29 = vadd.f32 %v2257_v51, %v7733_v8  ;;  %v2368_v25 = vadd.f32 %v2365_v5, %v7735_v20  ;;  %v2472_v6 = vmul.f32 %v7936_v31, %v9507_v27  ;;  %v9511_v47 = vld [vmem:[#allocation14_spill] sm:$0xff]  ;;  %v9512_v51 = vld [vmem:[#allocation13_spill] sm:$0xff] }
 0x461   : > { %v2579_v28 = vmul.f32 %v7945_v59, %v9507_v27  ;;  %v8193_v37 = vsel %vm2286_vm3, %v3684_v55, 0.0  ;;  %v8196_v40 = vsel %vm2286_vm3, %v3791_v50, 0.0  ;;  %v3890_v63 = vsub.f32 0.0, %v3875_v15 }
 0x462   : > { %v3982_v34 = vmul.f32 %v9510_v38, %v3972_v36  ;;  %v2270_v8 = vmul.f32 %v9511_v47, %v2260_v29  ;;  %v2378_v20 = vmul.f32 %v9512_v51, %v2368_v25  ;;  %v2475_v5 = vadd.f32 %v2472_v6, %v7741_v3  ;;  %v9513_v25 = vld [vmem:[#allocation16_spill] sm:$0xff]  ;;  %v9514_v3 = vld [vmem:[#allocation15_spill] sm:$0xff] }
 0x463   : > { %v2582_v30 = vadd.f32 %v2579_v28, %v7743_v4  ;;  %4491 = vst.msk [vmem:[%s7968_s3 + $0x168] sm:$0xff] %vm2286_vm3, %v3890_v63  ;;  %v3898_v55 = vmul.f32 %v3890_v63, %v9478_v48  ;;  %v2686_v15 = vmul.f32 %v7956_v44, %v9507_v27  ;;  %v2793_v36 = vmul.f32 %v7972_v53, %v9507_v27 }
 0x464   : > { %v3997_v50 = vsub.f32 0.0, %v3982_v34  ;;  %v2284_v29 = vsub.f32 0.0, %v2270_v8  ;;  %v2392_v38 = vsub.f32 0.0, %v2378_v20  ;;  %v2485_v47 = vmul.f32 %v9513_v25, %v2475_v5  ;;  %v9515_v8 = vld [vmem:[#allocation30_spill] sm:$0xff]  ;;  %v9516_v25 = vld [vmem:[#allocation19_spill] sm:$0xff] }
 0x465   : > { %v2592_v6 = vmul.f32 %v9514_v3, %v2582_v30  ;;  %v8213_v4 = vsel %vm2286_vm3, %v3898_v55, 0.0  ;;  %v2689_v63 = vadd.f32 %v2686_v15, %v7745_v24  ;;  %v2796_v34 = vadd.f32 %v2793_v36, %v7749_v58 }
 0x466   : > { %4502 = vst.msk [vmem:[%s7968_s3 + $0x180] sm:$0xff] %vm2286_vm3, %v3997_v50  ;;  %v4005_v28 = vmul.f32 %v3997_v50, %v9478_v48  ;;  %2288 = vst.msk [vmem:[%s7968_s3 + $0x8] sm:$0xff] %vm2286_vm3, %v2284_v29  ;;  %v2293_v51 = vmul.f32 %v2284_v29, %v9515_v8  ;;  %v2401_v20 = vmul.f32 %v2392_v38, %v9515_v8  ;;  %v2499_v5 = vsub.f32 0.0, %v2485_v47  ;;  %v9517_v50 = vld [vmem:[#allocation17_spill] sm:$0xff] }
 0x467   : > { %4338 = vst.msk [vmem:[%s7968_s3 + $0x20] sm:$0xff] %vm2286_vm3, %v2392_v38  ;;  %v2606_v30 = vsub.f32 0.0, %v2592_v6  ;;  %v2699_v48 = vmul.f32 %v9516_v25, %v2689_v63  ;;  %v2806_v24 = vmul.f32 %v9517_v50, %v2796_v34  ;;  %v2900_v58 = vmul.f32 %v7975_v54, %v9507_v27  ;;  %v9518_v25 = vld [vmem:[#allocation21_spill] sm:$0xff] }
 0x468   : > { %v8227_v55 = vsel %vm2286_vm3, %v4005_v28, 0.0  ;;  %v2296_v15 = vsel %vm2286_vm3, %v2293_v51, 0.0  ;;  %v2404_v36 = vsel %vm2286_vm3, %v2401_v20, 0.0  ;;  %4349 = vst.msk [vmem:[%s7968_s3 + $0x38] sm:$0xff] %vm2286_vm3, %v2499_v5  ;;  %v2508_v29 = vmul.f32 %v2499_v5, %v9515_v8 }
 0x469   : > { %4360 = vst.msk [vmem:[%s7968_s3 + $0x50] sm:$0xff] %vm2286_vm3, %v2606_v30  ;;  %v2615_v38 = vmul.f32 %v2606_v30, %v9515_v8  ;;  %v8242_v47 = vadd.f32 %v2296_v15, %v8017_v14  ;;  %v8245_v3 = vadd.f32 %v2404_v36, %v8020_v2  ;;  %v2713_v6 = vsub.f32 0.0, %v2699_v48 }
 0x46a   : > { %v2820_v28 = vsub.f32 0.0, %v2806_v24  ;;  %v2511_v63 = vsel %vm2286_vm3, %v2508_v29, 0.0  ;;  %v2903_v51 = vadd.f32 %v2900_v58, %v7751_v57  ;;  %v3007_v20 = vmul.f32 %v8014_v23, %v9507_v27 }
 0x46b   : > { %v2618_v34 = vsel %vm2286_vm3, %v2615_v38, 0.0  ;;  %v8253_v5 = vadd.f32 %v2511_v63, %v8040_v46  ;;  %4371 = vst.msk [vmem:[%s7968_s3 + $0x68] sm:$0xff] %vm2286_vm3, %v2713_v6  ;;  %v2722_v2 = vmul.f32 %v2713_v6, %v9515_v8  ;;  %v3114_v46 = vmul.f32 %v8046_v35, %v9507_v27  ;;  %v9519_v38 = vld [vmem:[#allocation20_spill] sm:$0xff]  ;;  %v9520_v63 = vld [vmem:[#allocation182_spill] sm:$0xff] }
 0x46c   : > { %v8256_v14 = vadd.f32 %v2618_v34, %v8049_v22  ;;  %4382 = vst.msk [vmem:[%s7968_s3 + $0x80] sm:$0xff] %vm2286_vm3, %v2820_v28  ;;  %v2829_v30 = vmul.f32 %v2820_v28, %v9515_v8  ;;  %v2913_v48 = vmul.f32 %v9518_v25, %v2903_v51  ;;  %v3010_v57 = vadd.f32 %v3007_v20, %v7757_v0 }
 0x46d   : > { %v3221_v22 = vmul.f32 %v8064_v18, %v9507_v27  ;;  %v2725_v50 = vsel %vm2286_vm3, %v2722_v2, 0.0  ;;  %v3328_v58 = vmul.f32 %v8067_v17, %v9507_v27  ;;  %v3435_v15 = vmul.f32 %v8084_v1, %v9507_v27 }
 0x46e   : > { %v2832_v24 = vsel %vm2286_vm3, %v2829_v30, 0.0  ;;  %v8277_v36 = vadd.f32 %v2725_v50, %v8059_v43  ;;  %v2927_v29 = vsub.f32 0.0, %v2913_v48  ;;  %v3020_v6 = vmul.f32 %v9519_v38, %v3010_v57  ;;  %v9522_v48 = vld [vmem:[#allocation93_spill] sm:$0xff] }
 0x46f   : > { %v8280_v0 = vadd.f32 %v2832_v24, %v8090_v26  ;;  %v3117_v28 = vadd.f32 %v3114_v46, %v7765_v11  ;;  %v3224_v34 = vadd.f32 %v3221_v22, %v9520_v63  ;;  %v3331_v51 = vadd.f32 %v3328_v58, %v7773_v41  ;;  %v9521_v11 = vld [vmem:[#allocation92_spill] sm:$0xff]  ;;  %v9523_v57 = vld [vmem:[#allocation24_spill] sm:$0xff] }
 0x470   : > { %v3438_v20 = vadd.f32 %v3435_v15, %v7775_v61  ;;  %4393 = vst.msk [vmem:[%s7968_s3 + $0x98] sm:$0xff] %vm2286_vm3, %v2927_v29  ;;  %v2936_v43 = vmul.f32 %v2927_v29, %v9515_v8  ;;  %v3034_v2 = vsub.f32 0.0, %v3020_v6  ;;  %v3542_v26 = vmul.f32 %v8087_v62, %v9507_v27  ;;  %v9524_v46 = vld [vmem:[#allocation27_spill] sm:$0xff]  ;;  %v9525_v38 = vld [vmem:[#allocation86_spill] sm:$0xff] }
 0x471   : > { %v3649_v30 = vmul.f32 %v8112_v39, %v9507_v27  ;;  %v3127_v25 = vmul.f32 %v9521_v11, %v3117_v28  ;;  %v3234_v41 = vmul.f32 %v9522_v48, %v3224_v34  ;;  %v3341_v61 = vmul.f32 %v9523_v57, %v3331_v51  ;;  %v9526_v28 = vld [vmem:[#allocation22_spill] sm:$0xff] }
 0x472   : > { %v3448_v22 = vmul.f32 %v9524_v46, %v3438_v20  ;;  %v2939_v50 = vsel %vm2286_vm3, %v2936_v43, 0.0  ;;  %4404 = vst.msk [vmem:[%s7968_s3 + $0xb0] sm:$0xff] %vm2286_vm3, %v3034_v2  ;;  %v3043_v24 = vmul.f32 %v3034_v2, %v9515_v8  ;;  %v3545_v58 = vadd.f32 %v3542_v26, %v7777_v9  ;;  %v9527_v9 = vld [vmem:[#allocation95_spill] sm:$0xff]  ;;  %v9529_v20 = vld [vmem:[#allocation99_spill] sm:$0xff] }
 0x473   : > { %v3652_v15 = vadd.f32 %v3649_v30, %v7781_v33  ;;  %v8307_v29 = vadd.f32 %v2939_v50, %v8093_v60  ;;  %v3142_v6 = vsub.f32 %v9525_v38, %v3127_v25  ;;  %3148 = vst.msk [vmem:[%s7951_s29 + $0x8] sm:$0x1] %vm2289_vm4, %v3127_v25  ;;  %v3249_v63 = vsub.f32 %v9526_v28, %v3234_v41  ;;  %v9528_v60 = vld [vmem:[#allocation98_spill] sm:$0xff]  ;;  %v9530_v2 = vld [vmem:[#allocation101_spill] sm:$0xff] }
 0x474   : > { %3255 = vst.msk [vmem:[%s7951_s29 + $0x8] sm:$0x2] %vm2398_vm8, %v3234_v41  ;;  %v3356_v34 = vsub.f32 %v9527_v9, %v3341_v61  ;;  %v3046_v33 = vsel %vm2286_vm3, %v3043_v24, 0.0  ;;  %v3463_v51 = vsub.f32 %v9528_v60, %v3448_v22  ;;  %v3555_v43 = vmul.f32 %v9529_v20, %v3545_v58 }
 0x475   : > { %3362 = vst.msk [vmem:[%s7951_s29 + $0x8] sm:$0x4] %vm2505_vm9, %v3341_v61  ;;  %v3662_v26 = vmul.f32 %v9530_v2, %v3652_v15  ;;  %v8325_v30 = vadd.f32 %v3046_v33, %v8121_v7  ;;  %v3150_v11 = vmul.f32 %v3142_v6, %v9515_v8  ;;  %v3257_v25 = vmul.f32 %v3249_v63, %v9515_v8  ;;  %v9531_v7 = vld [vmem:[#allocation100_spill] sm:$0xff]  ;;  %v9532_v61 = vld [vmem:[#allocation104_spill] sm:$0xff] }
 0x476   : > { %3469 = vst.msk [vmem:[%s7951_s29 + $0x8] sm:$0x8] %vm2612_vm10, %v3448_v22  ;;  %v3364_v48 = vmul.f32 %v3356_v34, %v9515_v8  ;;  %v3471_v41 = vmul.f32 %v3463_v51, %v9515_v8  ;;  %v3570_v57 = vsub.f32 %v9531_v7, %v3555_v43  ;;  %v3756_v22 = vmul.f32 %v8115_v16, %v9507_v27  ;;  %v9533_v33 = vld [vmem:[#allocation183_spill] sm:$0xff] }
 0x477   : > { %4415 = vst.msk [vmem:[%s7968_s3 + $0xc8] sm:$0xff] %vm2286_vm3, %v3142_v6  ;;  %4426 = vst.msk [vmem:[%s7968_s3 + $0xe0] sm:$0xff] %vm2286_vm3, %v3249_v63  ;;  %v3677_v46 = vsub.f32 %v9532_v61, %v3662_v26  ;;  %v3153_v50 = vsel %vm2286_vm3, %v3150_v11, 0.0  ;;  %v3260_v24 = vsel %vm2286_vm3, %v3257_v25, 0.0  ;;  %v3863_v15 = vmul.f32 %v8138_v21, %v9507_v27 }
 0x478   : > { %4437 = vst.msk [vmem:[%s7968_s3 + $0xf8] sm:$0xff] %vm2286_vm3, %v3356_v34  ;;  %4448 = vst.msk [vmem:[%s7968_s3 + $0x110] sm:$0xff] %vm2286_vm3, %v3463_v51  ;;  %v3367_v58 = vsel %vm2286_vm3, %v3364_v48, 0.0  ;;  %v8353_v38 = vadd.f32 %v3153_v50, %v8141_v12  ;;  %v8356_v6 = vadd.f32 %v3260_v24, %v8147_v56  ;;  %v3474_v63 = vsel %vm2286_vm3, %v3471_v41, 0.0  ;;  %v9534_v51 = vld [vmem:[#allocation155_spill] sm:$0xff]  ;;  %v9537_v41 = vld [vmem:[#allocation184_spill] sm:$0xff] }
 0x479   : > { %3576 = vst.msk [vmem:[%s7951_s29 + $0x8] sm:$0x10] %vm2719_vm11, %v3555_v43  ;;  %v8359_v28 = vadd.f32 %v3367_v58, %v8154_v10  ;;  %v8367_v9 = vadd.f32 %v3474_v63, %v8169_v49  ;;  %v3578_v34 = vmul.f32 %v3570_v57, %v9515_v8  ;;  %v3685_v12 = vmul.f32 %v3677_v46, %v9515_v8 }
 0x47a   : > { %3683 = vst.msk [vmem:[%s7951_s29 + $0x8] sm:$0x20] %vm2826_vm12, %v3662_v26  ;;  %v3759_v56 = vadd.f32 %v3756_v22, %v7783_v19  ;;  %v3866_v60 = vadd.f32 %v3863_v15, %v9533_v33  ;;  %v3970_v10 = vmul.f32 %v8163_v52, %v9507_v27  ;;  %v2258_v20 = vmul.f32 %v7919_v45, %v9534_v51  ;;  %v9535_v26 = vld [vmem:[#allocation105_spill] sm:$0xff]  ;;  %v9536_v45 = vld [vmem:[#allocation107_spill] sm:$0xff]  ;;  %v9544_v33 = vld [vmem:[#allocation245_spill] sm:$0xff] }
 0x47b   : > { %4459 = vst.msk [vmem:[%s7968_s3 + $0x128] sm:$0xff] %vm2286_vm3, %v3570_v57  ;;  %4470 = vst.msk [vmem:[%s7968_s3 + $0x140] sm:$0xff] %vm2286_vm3, %v3677_v46  ;;  %v8378_v43 = vstv %s8304_s22  ;;  %v3581_v49 = vsel %vm2286_vm3, %v3578_v34, 0.0  ;;  %v3688_v2 = vsel %vm2286_vm3, %v3685_v12, 0.0  ;;  %v2366_v19 = vmul.f32 %v7922_v42, %v9534_v51  ;;  %v9538_v57 = vld [vmem:[#allocation106_spill] sm:$0xff]  ;;  %v9539_v22 = vld [vmem:[#allocation242_spill] sm:$0xff] }
 0x47c   : > { %v3769_v11 = vmul.f32 %v9535_v26, %v3759_v56  ;;  %v8386_v25 = vadd.f32 %v3581_v49, %v8172_v13  ;;  %v8389_v27 = vadd.f32 %v3688_v2, %v8193_v37  ;;  %v3876_v48 = vmul.f32 %v9536_v45, %v3866_v60  ;;  %v9540_v13 = vld [vmem:[#allocation110_spill] sm:$0xff]  ;;  %v9541_v37 = vld [vmem:[#allocation111_spill] sm:$0xff]  ;;  %v9546_v49 = vld [vmem:[#allocation219_spill] sm:$0xff] }
 0x47d   : > { %v3973_v7 = vadd.f32 %v3970_v10, %v9537_v41  ;;  %v2261_v46 = vadd.f32 %v2258_v20, %v7856_v32  ;;  %v2369_v50 = vadd.f32 %v2366_v19, %v9539_v22  ;;  %v2473_v42 = vmul.f32 %v7936_v31, %v9534_v51  ;;  %v9542_v34 = vld [vmem:[#allocation60_spill] sm:$0xff]  ;;  %v9543_v31 = vld [vmem:[#allocation59_spill] sm:$0xff]  ;;  %v9545_v20 = vld [vmem:[#allocation218_spill] sm:$0xff] }
 0x47e   : > { %v3784_v61 = vsub.f32 %v9538_v57, %v3769_v11  ;;  %3790 = vst.msk [vmem:[%s7951_s29 + $0x8] sm:$0x40] %vm2933_vm13, %v3769_v11  ;;  %v3891_v24 = vsub.f32 %v9540_v13, %v3876_v48  ;;  %v2580_v15 = vmul.f32 %v7945_v59, %v9534_v51  ;;  %v2687_v63 = vmul.f32 %v7956_v44, %v9534_v51  ;;  %v9547_v45 = vld [vmem:[#allocation65_spill] sm:$0xff] }
 0x47f   : > { %3897 = vst.msk [vmem:[%s7951_s29 + $0x8] sm:$0x80] %vm3040_vm14, %v3876_v48  ;;  %v3983_v58 = vmul.f32 %v9541_v37, %v3973_v7  ;;  %v2271_v12 = vmul.f32 %v9542_v34, %v2261_v46  ;;  %v2379_v56 = vmul.f32 %v9543_v31, %v2369_v50  ;;  %v2476_v60 = vadd.f32 %v2473_v42, %v9544_v33  ;;  %v9549_v50 = vld [vmem:[#allocation31_spill] sm:$0xff]  ;;  %v9551_v33 = vld [vmem:[#allocation220_spill] sm:$0xff] }
 0x480   : > { %4481 = vst.msk [vmem:[%s7968_s3 + $0x158] sm:$0xff] %vm2286_vm3, %v3784_v61  ;;  %v3792_v32 = vmul.f32 %v3784_v61, %v9515_v8  ;;  %4492 = vst.msk [vmem:[%s7968_s3 + $0x170] sm:$0xff] %vm2286_vm3, %v3891_v24  ;;  %v3899_v10 = vmul.f32 %v3891_v24, %v9515_v8  ;;  %v2583_v44 = vadd.f32 %v2580_v15, %v9545_v20  ;;  %v9548_v61 = vld [vmem:[#allocation64_spill] sm:$0xff] }
 0x481   : > { %v3998_v59 = vsub.f32 0.0, %v3983_v58  ;;  %v2690_v2 = vadd.f32 %v2687_v63, %v9546_v49  ;;  %v2285_v11 = vsub.f32 0.0, %v2271_v12  ;;  %v2393_v19 = vsub.f32 0.0, %v2379_v56  ;;  %v9550_v58 = vld [vmem:[#allocation72_spill] sm:$0xff] }
 0x482   : > { %v3795_v26 = vsel %vm2286_vm3, %v3792_v32, 0.0  ;;  %v2486_v48 = vmul.f32 %v9547_v45, %v2476_v60  ;;  %v3902_v7 = vsel %vm2286_vm3, %v3899_v10, 0.0  ;;  %v2593_v46 = vmul.f32 %v9548_v61, %v2583_v44 }
 0x483   : > { %v8422_v41 = vadd.f32 %v3795_v26, %v8196_v40  ;;  %4503 = vst.msk [vmem:[%s7968_s3 + $0x188] sm:$0xff] %vm2286_vm3, %v3998_v59  ;;  %v4006_v57 = vmul.f32 %v3998_v59, %v9515_v8  ;;  %v8430_v22 = vadd.f32 %v3902_v7, %v8213_v4  ;;  %v2294_v42 = vmul.f32 %v2285_v11, %v9549_v50  ;;  %v9552_v26 = vld [vmem:[#allocation68_spill] sm:$0xff] }
 0x484   : > { %2290 = vst.msk [vmem:[%s7968_s3 + $0x10] sm:$0x1] %vm2289_vm4, %v2285_v11  ;;  %4339 = vst.msk [vmem:[%s7968_s3 + $0x28] sm:$0x1] %vm2289_vm4, %v2393_v19  ;;  %v2402_v40 = vmul.f32 %v2393_v19, %v9549_v50  ;;  %v2500_v13 = vsub.f32 0.0, %v2486_v48  ;;  %v2607_v37 = vsub.f32 0.0, %v2593_v46  ;;  %v2700_v8 = vmul.f32 %v9550_v58, %v2690_v2 }
 0x485   : > { %v4009_v24 = vsel %vm2286_vm3, %v4006_v57, 0.0  ;;  %v2794_v15 = vmul.f32 %v7972_v53, %v9534_v51  ;;  %v2298_v63 = vsel %vm2289_vm4, %v2294_v42, 0.0  ;;  %v2901_v10 = vmul.f32 %v7975_v54, %v9534_v51  ;;  %v9553_v19 = vld [vmem:[#allocation222_spill] sm:$0xff]  ;;  %v9554_v7 = vld [vmem:[#allocation157_spill] sm:$0xff] }
 0x486   : > { %v8443_v4 = vadd.f32 %v4009_v24, %v8227_v55  ;;  %v2406_v32 = vsel %vm2289_vm4, %v2402_v40, 0.0  ;;  %4350 = vst.msk [vmem:[%s7968_s3 + $0x40] sm:$0x1] %vm2289_vm4, %v2500_v13  ;;  %v2509_v34 = vmul.f32 %v2500_v13, %v9549_v50  ;;  %v2299_v12 = vadd.f32 %v2298_v63, %v8242_v47  ;;  %4361 = vst.msk [vmem:[%s7968_s3 + $0x58] sm:$0x1] %vm2289_vm4, %v2607_v37  ;;  %v9555_v42 = vld [vmem:[#allocation77_spill] sm:$0xff] }
 0x487   : > { %v2407_v31 = vadd.f32 %v2406_v32, %v8245_v3  ;;  %v2616_v53 = vmul.f32 %v2607_v37, %v9549_v50  ;;  %v2714_v56 = vsub.f32 0.0, %v2700_v8  ;;  %v2797_v60 = vadd.f32 %v2794_v15, %v9551_v33  ;;  %v9556_v63 = vld [vmem:[#allocation73_spill] sm:$0xff] }
 0x488   : > { %v2513_v55 = vsel %vm2289_vm4, %v2509_v34, 0.0  ;;  %v3008_v59 = vmul.f32 %v8014_v23, %v9534_v51  ;;  %v2300_v20 = vrot.slane %v2299_v12, 4  ;;  %v2904_v54 = vadd.f32 %v2901_v10, %v9553_v19 }
 0x489   : > { %v2408_v44 = vrot.slane %v2407_v31, 4  ;;  %v2514_v47 = vadd.f32 %v2513_v55, %v8253_v5  ;;  %v2620_v3 = vsel %vm2289_vm4, %v2616_v53, 0.0  ;;  %4372 = vst.msk [vmem:[%s7968_s3 + $0x70] sm:$0x1] %vm2289_vm4, %v2714_v56  ;;  %v2723_v2 = vmul.f32 %v2714_v56, %v9549_v50 }
 0x48a   : > { %v2621_v49 = vadd.f32 %v2620_v3, %v8256_v14  ;;  %v2807_v11 = vmul.f32 %v9552_v26, %v2797_v60  ;;  %v2301_v45 = vadd.f32 %v2300_v20, %v2299_v12  ;;  %v3011_v57 = vadd.f32 %v3008_v59, %v9554_v7 }
 0x48b   : > { %v2409_v48 = vadd.f32 %v2408_v44, %v2407_v31  ;;  %v2515_v23 = vrot.slane %v2514_v47, 4  ;;  %v2727_v5 = vsel %vm2289_vm4, %v2723_v2, 0.0  ;;  %v2914_v40 = vmul.f32 %v9555_v42, %v2904_v54 }
 0x48c   : > { %v2622_v61 = vrot.slane %v2621_v49, 4  ;;  %v2821_v46 = vsub.f32 0.0, %v2807_v11  ;;  %v2302_v14 = vrot.slane %v2301_v45, 2  ;;  %v2728_v37 = vadd.f32 %v2727_v5, %v8277_v36 }
 0x48d   : > { %v2410_v13 = vrot.slane %v2409_v48, 2  ;;  %v2516_v24 = vadd.f32 %v2515_v23, %v2514_v47  ;;  %v2928_v15 = vsub.f32 0.0, %v2914_v40  ;;  %v3021_v32 = vmul.f32 %v9556_v63, %v3011_v57  ;;  %v9558_v63 = vld [vmem:[#allocation158_spill] sm:$0xff] }
 0x48e   : > { %v2623_v58 = vadd.f32 %v2622_v61, %v2621_v49  ;;  %4383 = vst.msk [vmem:[%s7968_s3 + $0x88] sm:$0x1] %vm2289_vm4, %v2821_v46  ;;  %v2830_v8 = vmul.f32 %v2821_v46, %v9549_v50  ;;  %v2303_v34 = vadd.f32 %v2302_v14, %v2301_v45  ;;  %v2729_v53 = vrot.slane %v2728_v37, 4 }
 0x48f   : > { %v2411_v12 = vadd.f32 %v2410_v13, %v2409_v48  ;;  %v2517_v31 = vrot.slane %v2516_v24, 2  ;;  %4394 = vst.msk [vmem:[%s7968_s3 + $0xa0] sm:$0x1] %vm2289_vm4, %v2928_v15  ;;  %v2937_v36 = vmul.f32 %v2928_v15, %v9549_v50  ;;  %v3035_v33 = vsub.f32 0.0, %v3021_v32 }
 0x490   : > { %v2624_v56 = vrot.slane %v2623_v58, 2  ;;  %v2834_v55 = vsel %vm2289_vm4, %v2830_v8, 0.0  ;;  %v2304_v60 = vrot.slane %v2303_v34, 1  ;;  %v2730_v20 = vadd.f32 %v2729_v53, %v2728_v37 }
 0x491   : > { %v2412_v10 = vrot.slane %v2411_v12, 1  ;;  %v2518_v59 = vadd.f32 %v2517_v31, %v2516_v24  ;;  %v2835_v47 = vadd.f32 %v2834_v55, %v8280_v0  ;;  %v2941_v3 = vsel %vm2289_vm4, %v2937_v36, 0.0  ;;  %4405 = vst.msk [vmem:[%s7968_s3 + $0xb8] sm:$0x1] %vm2289_vm4, %v3035_v33  ;;  %v9560_v36 = vld [vmem:[#allocation113_spill] sm:$0xff] }
 0x492   : > { %v2625_v44 = vadd.f32 %v2624_v56, %v2623_v58  ;;  %v3044_v49 = vmul.f32 %v3035_v33, %v9549_v50  ;;  %v2305_v2 = vadd.f32 %v2304_v60, %v2303_v34  ;;  %v2731_v19 = vrot.slane %v2730_v20, 2  ;;  %v9559_v34 = vld [vmem:[#allocation159_spill] sm:$0xff]  ;;  %v9561_v60 = vld [vmem:[#allocation116_spill] sm:$0xff] }
 0x493   : > { %v2413_v26 = vadd.f32 %v2412_v10, %v2411_v12  ;;  %v2519_v11 = vrot.slane %v2518_v59, 1  ;;  %v2836_v45 = vrot.slane %v2835_v47, 4  ;;  %v2942_v0 = vadd.f32 %v2941_v3, %v8307_v29  ;;  %v9563_v3 = vld [vmem:[#allocation161_spill] sm:$0xff] }
 0x494   : > { %v2626_v54 = vrot.slane %v2625_v44, 1  ;;  %v3048_v48 = vsel %vm2289_vm4, %v3044_v49, 0.0  ;;  %v2307_v23 = vmul.f32 %v8378_v43, %v2305_v2  ;;  %v2732_v61 = vadd.f32 %v2731_v19, %v2730_v20 }
 0x495   : > { %v2414_v7 = vmul.f32 %v2413_v26, %v8378_v43  ;;  %v2520_v57 = vadd.f32 %v2519_v11, %v2518_v59  ;;  %v2837_v46 = vadd.f32 %v2836_v45, %v2835_v47  ;;  %v2943_v42 = vrot.slane %v2942_v0, 4  ;;  %v9562_v59 = vld [vmem:[#allocation160_spill] sm:$0xff] }
 0x496   : > { %v2627_v5 = vadd.f32 %v2626_v54, %v2625_v44  ;;  %v3049_v40 = vadd.f32 %v3048_v48, %v8325_v30  ;;  %2308 = vst.msk [vmem:[%s8490_s25] sm:$0x1] %vm2289_vm4, %v2307_v23  ;;  %v2733_v14 = vrot.slane %v2732_v61, 1  ;;  %v3115_v13 = vmul.f32 %v8046_v35, %v9534_v51  ;;  %v9565_v48 = vld [vmem:[#allocation118_spill] sm:$0xff] }
 0x497   : > { %2415 = vst.msk [vmem:[%s8490_s25 + $0x1] sm:$0x1] %vm2289_vm4, %v2414_v7  ;;  %v2521_v29 = vmul.f32 %v2520_v57, %v8378_v43  ;;  %v3222_v24 = vmul.f32 %v8064_v18, %v9534_v51  ;;  %v2838_v58 = vrot.slane %v2837_v46, 2  ;;  %v2944_v8 = vadd.f32 %v2943_v42, %v2942_v0 }
 0x498   : > { %v2628_v37 = vmul.f32 %v2627_v5, %v8378_v43  ;;  %v3050_v15 = vrot.slane %v3049_v40, 4  ;;  %v2734_v30 = vadd.f32 %v2733_v14, %v2732_v61  ;;  %v3118_v32 = vadd.f32 %v3115_v13, %v9558_v63  ;;  %v9566_v5 = vld [vmem:[#allocation124_spill] sm:$0xff] }
 0x499   : > { %2522 = vst.msk [vmem:[%s8490_s25 + $0x2] sm:$0x1] %vm2289_vm4, %v2521_v29  ;;  %v3225_v12 = vadd.f32 %v3222_v24, %v9559_v34  ;;  %v3329_v31 = vmul.f32 %v8067_v17, %v9534_v51  ;;  %v2839_v35 = vadd.f32 %v2838_v58, %v2837_v46  ;;  %v2945_v18 = vrot.slane %v2944_v8, 2 }
 0x49a   : > { %2629 = vst.msk [vmem:[%s8490_s25 + $0x3] sm:$0x1] %vm2289_vm4, %v2628_v37  ;;  %v3051_v53 = vadd.f32 %v3050_v15, %v3049_v40  ;;  %v3436_v56 = vmul.f32 %v8084_v1, %v9534_v51  ;;  %v2735_v55 = vmul.f32 %v2734_v30, %v8378_v43  ;;  %v3128_v33 = vmul.f32 %v9560_v36, %v3118_v32  ;;  %v9564_v1 = vld [vmem:[#allocation117_spill] sm:$0xff]  ;;  %v9567_v37 = vld [vmem:[#allocation119_spill] sm:$0xff] }
 0x49b   : > { %v3235_v10 = vmul.f32 %v9561_v60, %v3225_v12  ;;  %v3332_v20 = vadd.f32 %v3329_v31, %v9562_v59  ;;  %v2840_v44 = vrot.slane %v2839_v35, 1  ;;  %v2946_v17 = vadd.f32 %v2945_v18, %v2944_v8 }
 0x49c   : > { %v3052_v47 = vrot.slane %v3051_v53, 2  ;;  %v3439_v49 = vadd.f32 %v3436_v56, %v9563_v3  ;;  %2736 = vst.msk [vmem:[%s8490_s25 + $0x4] sm:$0x1] %vm2289_vm4, %v2735_v55  ;;  %v3143_v2 = vsub.f32 0.0, %v3128_v33  ;;  %v3543_v19 = vmul.f32 %v8087_v62, %v9534_v51  ;;  %v9568_v55 = vld [vmem:[#allocation162_spill] sm:$0xff] }
 0x49d   : > { %v3250_v26 = vsub.f32 0.0, %v3235_v10  ;;  %v3342_v11 = vmul.f32 %v9564_v1, %v3332_v20  ;;  %v2841_v54 = vadd.f32 %v2840_v44, %v2839_v35  ;;  %v2947_v45 = vrot.slane %v2946_v17, 1  ;;  %v9569_v20 = vld [vmem:[#allocation121_spill] sm:$0xff] }
 0x49e   : > { %v3053_v0 = vadd.f32 %v3052_v47, %v3051_v53  ;;  %v3449_v23 = vmul.f32 %v9565_v48, %v3439_v49  ;;  %4416 = vst.msk [vmem:[%s7968_s3 + $0xd0] sm:$0x1] %vm2289_vm4, %v3143_v2  ;;  %v3151_v7 = vmul.f32 %v3143_v2, %v9549_v50  ;;  %v3546_v46 = vadd.f32 %v3543_v19, %v9566_v5  ;;  %v9571_v19 = vld [vmem:[#allocation122_spill] sm:$0xff]  ;;  %v9573_v5 = vld [vmem:[#allocation123_spill] sm:$0xff] }
 0x49f   : > { %4427 = vst.msk [vmem:[%s7968_s3 + $0xe8] sm:$0x1] %vm2289_vm4, %v3250_v26  ;;  %v3258_v57 = vmul.f32 %v3250_v26, %v9549_v50  ;;  %v3357_v61 = vsub.f32 0.0, %v3342_v11  ;;  %v2842_v62 = vmul.f32 %v2841_v54, %v8378_v43  ;;  %v2948_v42 = vadd.f32 %v2947_v45, %v2946_v17  ;;  %v9570_v17 = vld [vmem:[#allocation163_spill] sm:$0xff] }
 0x4a0   : > { %v3054_v40 = vrot.slane %v3053_v0, 1  ;;  %v3464_v29 = vsub.f32 0.0, %v3449_v23  ;;  %v3155_v14 = vsel %vm2289_vm4, %v3151_v7, 0.0  ;;  %v3556_v58 = vmul.f32 %v9567_v37, %v3546_v46 }
 0x4a1   : > { %v3262_v13 = vsel %vm2289_vm4, %v3258_v57, 0.0  ;;  %4438 = vst.msk [vmem:[%s7968_s3 + $0x100] sm:$0x1] %vm2289_vm4, %v3357_v61  ;;  %v3365_v24 = vmul.f32 %v3357_v61, %v9549_v50  ;;  %2843 = vst.msk [vmem:[%s8490_s25 + $0x5] sm:$0x1] %vm2289_vm4, %v2842_v62  ;;  %v2949_v8 = vmul.f32 %v2948_v42, %v8378_v43  ;;  %v3156_v30 = vadd.f32 %v3155_v14, %v8353_v38 }
 0x4a2   : > { %v3055_v15 = vadd.f32 %v3054_v40, %v3053_v0  ;;  %v3263_v63 = vadd.f32 %v3262_v13, %v8356_v6  ;;  %4449 = vst.msk [vmem:[%s7968_s3 + $0x118] sm:$0x1] %vm2289_vm4, %v3464_v29  ;;  %v3472_v34 = vmul.f32 %v3464_v29, %v9549_v50  ;;  %v3571_v12 = vsub.f32 0.0, %v3556_v58 }
 0x4a3   : > { %v3369_v32 = vsel %vm2289_vm4, %v3365_v24, 0.0  ;;  %v3650_v31 = vmul.f32 %v8112_v39, %v9534_v51  ;;  %2950 = vst.msk [vmem:[%s8490_s25 + $0x6] sm:$0x1] %vm2289_vm4, %v2949_v8  ;;  %v3157_v18 = vrot.slane %v3156_v30, 4  ;;  %v3757_v33 = vmul.f32 %v8115_v16, %v9534_v51 }
 0x4a4   : > { %v3056_v35 = vmul.f32 %v3055_v15, %v8378_v43  ;;  %v3264_v53 = vrot.slane %v3263_v63, 4  ;;  %v3370_v38 = vadd.f32 %v3369_v32, %v8359_v28  ;;  %v3476_v6 = vsel %vm2289_vm4, %v3472_v34, 0.0  ;;  %4460 = vst.msk [vmem:[%s7968_s3 + $0x130] sm:$0x1] %vm2289_vm4, %v3571_v12 }
 0x4a5   : > { %v3579_v56 = vmul.f32 %v3571_v12, %v9549_v50  ;;  %v3653_v36 = vadd.f32 %v3650_v31, %v9568_v55  ;;  %v3158_v39 = vadd.f32 %v3157_v18, %v3156_v30  ;;  %v3477_v59 = vadd.f32 %v3476_v6, %v8367_v9  ;;  %v9572_v9 = vld [vmem:[#allocation164_spill] sm:$0xff] }
 0x4a6   : > { %3057 = vst.msk [vmem:[%s8490_s25 + $0x7] sm:$0x1] %vm2289_vm4, %v3056_v35  ;;  %v3265_v60 = vadd.f32 %v3264_v53, %v3263_v63  ;;  %v3371_v10 = vrot.slane %v3370_v38, 4  ;;  %v3760_v47 = vadd.f32 %v3757_v33, %v9570_v17  ;;  %v3864_v3 = vmul.f32 %v8138_v21, %v9534_v51  ;;  %v9576_v17 = vld [vmem:[#allocation125_spill] sm:$0xff] }
 0x4a7   : > { %v3583_v28 = vsel %vm2289_vm4, %v3579_v56, 0.0  ;;  %v3663_v44 = vmul.f32 %v9569_v20, %v3653_v36  ;;  %v3159_v49 = vrot.slane %v3158_v39, 2  ;;  %v3478_v26 = vrot.slane %v3477_v59, 4 }
 0x4a8   : > { %v3266_v2 = vrot.slane %v3265_v60, 2  ;;  %v3372_v16 = vadd.f32 %v3371_v10, %v3370_v38  ;;  %v3584_v1 = vadd.f32 %v3583_v28, %v8386_v25  ;;  %v3770_v54 = vmul.f32 %v9571_v19, %v3760_v47 }
 0x4a9   : > { %v3678_v11 = vsub.f32 0.0, %v3663_v44  ;;  %v3867_v45 = vadd.f32 %v3864_v3, %v9572_v9  ;;  %v3160_v0 = vadd.f32 %v3159_v49, %v3158_v39  ;;  %v3479_v7 = vadd.f32 %v3478_v26, %v3477_v59  ;;  %v9574_v59 = vld [vmem:[#allocation18_spill] sm:$0xff]  ;;  %v9577_v3 = vld [vmem:[#allocation112_spill] sm:$0xff] }
 0x4aa   : > { %v3267_v48 = vadd.f32 %v3266_v2, %v3265_v60  ;;  %v3373_v23 = vrot.slane %v3372_v16, 2  ;;  %v3585_v57 = vrot.slane %v3584_v1, 4  ;;  %v3785_v61 = vsub.f32 0.0, %v3770_v54 }
 0x4ab   : > { %4471 = vst.msk [vmem:[%s7968_s3 + $0x148] sm:$0x1] %vm2289_vm4, %v3678_v11  ;;  %v3686_v21 = vmul.f32 %v3678_v11, %v9549_v50  ;;  %v3877_v46 = vmul.f32 %v9573_v5, %v3867_v45  ;;  %v3161_v62 = vrot.slane %v3160_v0, 1  ;;  %v3480_v40 = vrot.slane %v3479_v7, 2 }
 0x4ac   : > { %v3268_v25 = vrot.slane %v3267_v48, 1  ;;  %v3374_v42 = vadd.f32 %v3373_v23, %v3372_v16  ;;  %v3586_v29 = vadd.f32 %v3585_v57, %v3584_v1  ;;  %4482 = vst.msk [vmem:[%s7968_s3 + $0x160] sm:$0x1] %vm2289_vm4, %v3785_v61  ;;  %v3793_v13 = vmul.f32 %v3785_v61, %v9549_v50 }
 0x4ad   : > { %v3690_v14 = vsel %vm2289_vm4, %v3686_v21, 0.0  ;;  %v3892_v24 = vsub.f32 0.0, %v3877_v46  ;;  %v3162_v37 = vadd.f32 %v3161_v62, %v3160_v0  ;;  %v3481_v15 = vadd.f32 %v3480_v40, %v3479_v7 }
 0x4ae   : > { %v3269_v58 = vadd.f32 %v3268_v25, %v3267_v48  ;;  %v3375_v8 = vrot.slane %v3374_v42, 1  ;;  %v3587_v30 = vrot.slane %v3586_v29, 2  ;;  %v3691_v63 = vadd.f32 %v3690_v14, %v8389_v27 }
 0x4af   : > { %v3797_v32 = vsel %vm2289_vm4, %v3793_v13, 0.0  ;;  %4493 = vst.msk [vmem:[%s7968_s3 + $0x178] sm:$0x1] %vm2289_vm4, %v3892_v24  ;;  %v3900_v34 = vmul.f32 %v3892_v24, %v9549_v50  ;;  %v3163_v12 = vmul.f32 %v3162_v37, %v8378_v43  ;;  %v3482_v18 = vrot.slane %v3481_v15, 1 }
 0x4b0   : > { %v3270_v31 = vmul.f32 %v3269_v58, %v8378_v43  ;;  %v3376_v35 = vadd.f32 %v3375_v8, %v3374_v42  ;;  %v3588_v53 = vadd.f32 %v3587_v30, %v3586_v29  ;;  %v3692_v38 = vrot.slane %v3691_v63, 4 }
 0x4b1   : > { %v3798_v6 = vadd.f32 %v3797_v32, %v8422_v41  ;;  %v3904_v56 = vsel %vm2289_vm4, %v3900_v34, 0.0  ;;  %3164 = vst.msk [vmem:[%s8490_s25 + $0x8] sm:$0x1] %vm2289_vm4, %v3163_v12  ;;  %v3483_v55 = vadd.f32 %v3482_v18, %v3481_v15  ;;  %v3971_v33 = vmul.f32 %v8163_v52, %v9534_v51  ;;  %v9575_v41 = vld [vmem:[#allocation71_spill] sm:$0xff] }
 0x4b2   : > { %3271 = vst.msk [vmem:[%s8490_s25 + $0x9] sm:$0x1] %vm2289_vm4, %v3270_v31  ;;  %v3377_v27 = vmul.f32 %v3376_v35, %v8378_v43  ;;  %v3905_v36 = vadd.f32 %v3904_v56, %v8430_v22  ;;  %v3589_v39 = vrot.slane %v3588_v53, 1  ;;  %v3693_v60 = vadd.f32 %v3692_v38, %v3691_v63 }
 0x4b3   : > { %v3799_v10 = vrot.slane %v3798_v6, 4  ;;  %v3981_v28 = vmul.f32 %v9575_v41, %v9574_v59  ;;  %v3484_v20 = vmul.f32 %v3483_v55, %v8378_v43  ;;  %v3974_v47 = vadd.f32 %v3971_v33, %v9576_v17 }
 0x4b4   : > { %3378 = vst.msk [vmem:[%s8490_s25 + $0xa] sm:$0x1] %vm2289_vm4, %v3377_v27  ;;  %v3906_v44 = vrot.slane %v3905_v36, 4  ;;  %vm3987_vm3 = vcmp.eq.s32.totalorder %v9577_v3, 16  ;;  %v3590_v22 = vadd.f32 %v3589_v39, %v3588_v53  ;;  %v3694_v49 = vrot.slane %v3693_v60, 2 }
 0x4b5   : > { %v3800_v52 = vadd.f32 %v3799_v10, %v3798_v6  ;;  %3485 = vst.msk [vmem:[%s8490_s25 + $0xb] sm:$0x1] %vm2289_vm4, %v3484_v20  ;;  %v3984_v2 = vmul.f32 %v3981_v28, %v3974_v47  ;;  %v3996_v11 = vsel %vm3987_vm3, %v9575_v41, 0.0 }
 0x4b6   : > { %v3907_v51 = vadd.f32 %v3906_v44, %v3905_v36  ;;  %v3591_v16 = vmul.f32 %v3590_v22, %v8378_v43  ;;  %v3695_v26 = vadd.f32 %v3694_v49, %v3693_v60 }
 0x4b7   : > { %v3801_v1 = vrot.slane %v3800_v52, 2  ;;  %v3999_v54 = vsub.f32 %v3996_v11, %v3984_v2  ;;  %4004 = vst.msk [vmem:[%s7951_s29 + $0x10] sm:$0x1] %vm2289_vm4, %v3984_v2 }
 0x4b8   : > { %v3908_v19 = vrot.slane %v3907_v51, 2  ;;  %3592 = vst.msk [vmem:[%s8490_s25 + $0xc] sm:$0x1] %vm2289_vm4, %v3591_v16  ;;  %v3696_v9 = vrot.slane %v3695_v26, 1 }
 0x4b9   : > { %v3802_v45 = vadd.f32 %v3801_v1, %v3800_v52  ;;  %4504 = vst.msk [vmem:[%s7968_s3 + $0x190] sm:$0x1] %vm2289_vm4, %v3999_v54  ;;  %v4007_v48 = vmul.f32 %v3999_v54, %v9549_v50 }
 0x4ba   : > { %v3909_v0 = vadd.f32 %v3908_v19, %v3907_v51  ;;  %v3697_v23 = vadd.f32 %v3696_v9, %v3695_v26 }
 0x4bb   : > { %v3803_v7 = vrot.slane %v3802_v45, 1  ;;  %v4011_v21 = vsel %vm2289_vm4, %v4007_v48, 0.0 }
 0x4bc   : > { %v3910_v57 = vrot.slane %v3909_v0, 1  ;;  %v3698_v61 = vmul.f32 %v3697_v23, %v8378_v43  ;;  %v4012_v46 = vadd.f32 %v4011_v21, %v8443_v4 }
 0x4bd   : > { %v3804_v5 = vadd.f32 %v3803_v7, %v3802_v45 }
 0x4be   : > { %v3911_v62 = vadd.f32 %v3910_v57, %v3909_v0  ;;  %3699 = vst.msk [vmem:[%s8490_s25 + $0xd] sm:$0x1] %vm2289_vm4, %v3698_v61  ;;  %v4013_v42 = vrot.slane %v4012_v46, 4 }
 0x4bf   : > { %v3805_v25 = vmul.f32 %v3804_v5, %v8378_v43 }
 0x4c0   : > { %v3912_v40 = vmul.f32 %v3911_v62, %v8378_v43  ;;  %v4014_v50 = vadd.f32 %v4013_v42, %v4012_v46 }
 0x4c1   : > { %3806 = vst.msk [vmem:[%s8490_s25 + $0xe] sm:$0x1] %vm2289_vm4, %v3805_v25 }
 0x4c2   : > { %3913 = vst.msk [vmem:[%s8490_s25 + $0xf] sm:$0x1] %vm2289_vm4, %v3912_v40  ;;  %v4015_v29 = vrot.slane %v4014_v50, 2 }
 0x4c4   : > { %v4016_v14 = vadd.f32 %v4015_v29, %v4014_v50 }
 0x4c6   : > { %v4017_v13 = vrot.slane %v4016_v14, 1 }
 0x4c8   : > { %v4018_v24 = vadd.f32 %v4017_v13, %v4016_v14 }
 0x4ca   : > { %v4019_v37 = vmul.f32 %v4018_v24, %v8378_v43 }
 0x4cc   : > { %4020 = vst.msk [vmem:[%s8490_s25 + $0x10] sm:$0x1] %vm2289_vm4, %v4019_v37 }
 0x4cd PF: > { %s9578_s5 = sld [smem:[#allocation9_spill]]  ;;  %s9579_s13 = sld [smem:[#allocation8_spill]] }
 0x4ce   : > { %s9580_s14 = sld [smem:[#allocation10_spill]] }
 0x4d3   : > { %s23_s15 = sadd.s32 1, %s9578_s5  }
 0x4d4   : > { %p20_p4 = scmp.ge.s32.totalorder %s23_s15, 4  }
 0x4d6   :  { %22 = sbr.rel (!%p20_p4) target bundleno = 15 (0xf), region = 139 }
 0x4dd   :  { %4117 = vsyncpa [#allocation3], 1 }
 0x4de   :  { %4119 = vsyncpa [#allocation3 + $0x1], 1 }
 0x4df   :  { %4120 = vsyncpa [#allocation5], 1 }

</bundles_post_ra>
